<compile_context>
chip_gen: v6e
topology: v6e:2x2x1
jax: 0.10.0
libtpu: 0.0.40
codegen_flags: <defaults>
</compile_context>

<pallas_src>
import functools
import math

import jax
import jax.numpy as jnp
from jax import lax
from jax.experimental import pallas as pl
from jax.experimental.pallas import tpu as pltpu

KSIZE = 7
PAD = (KSIZE - 1) // 2     # 3
H_CHUNK = 16               # output rows accumulated at a time (bounds vregs)
C_CHUNK = 8                # channels pooled per chunk (bounds live ranges)


def _round_up(a, m):
    return -(-a // m) * m


def _cdiv(a, b):
    return -(-a // b)


def _choose_batch_tile(N, C, H, W, itemsize):
    """Number of batch images packed side-by-side along lanes per grid step."""
    seg = W + 2 * PAD
    # Lane budget: keep the packed accumulator within ~4 vregs of lanes.
    lane_cap = max(1, 512 // seg)
    # VMEM budget: keep the double-buffered input block (last dim padded to
    # 128 lanes by the (8,128) tiling) within ~24 MiB -> safe on v7x's 64 MiB.
    blk1 = 2 * C * _round_up(H, 8) * _round_up(W, 128) * itemsize
    vmem_cap = max(1, (24 << 20) // blk1)
    tb = max(1, min(N, lane_cap, vmem_cap))
    # v7x has 2 TensorCores: prefer >= 2 parallel grid steps when N > 1,
    # unless that would drop the packed width below one vreg of lanes that it
    # currently meets.
    if N > 1 and _cdiv(N, tb) < 2:
        tb_half = _cdiv(N, 2)
        if tb_half * seg >= 128 or tb * seg < 128:
            tb = tb_half
    # Balance: minimize the padded batch tail for the chosen step count.
    tb = _cdiv(N, _cdiv(N, tb))
    return tb


def _spatial_gate_kernel(x_ref, wa_ref, wb_ref, bias_ref, o_ref, p_pad,
                         *, C, H, W, TB):
    """One grid step processes TB batch images packed along the lane axis.

    x_ref   : (TB, C, H, W)        VMEM  input block
    wa_ref  : (3*7*7,)             SMEM  taps for the REAL output, planes
                                         [max, avg_r, avg_i] = [wr0, wr1, -wi1]
    wb_ref  : (3*7*7,)             SMEM  taps for the IMAG output = [wi0, wi1, wr1]
    bias_ref: (2,)                 SMEM  [b_r - b_i, b_r + b_i]
    o_ref   : (1, 2, H, TB*seg)    VMEM  packed output slab (per-image halos
                                         stripped by the wrapper)
    p_pad   : (3, H+6, TB*seg+6)   VMEM  zero-padded packed pooled planes
    """
    half = C // 2
    seg = W + 2 * PAD
    Wp = TB * seg              # packed accumulator / output width
    Wpp = Wp + 2 * PAD         # packed plane width (extra global lane halo)
    f32 = jnp.float32

    # ---------------- ChannelPool: chunked channel reductions --------------
    mx = sr = si = None
    for c0 in range(0, half, C_CHUNK):
        c1 = min(half, c0 + C_CHUNK)
        xr = x_ref[:, c0:c1, :, :].astype(f32)               # (TB, ch, H, W)
        xi = x_ref[:, half + c0:half + c1, :, :].astype(f32)
        m = jnp.max(xr, axis=1)                              # (TB, H, W)
        r = jnp.sum(xr, axis=1)
        s = jnp.sum(xi, axis=1)
        if mx is None:
            mx, sr, si = m, r, s
        else:
            mx = jnp.maximum(mx, m)
            sr = sr + r
            si = si + s
    inv = 1.0 / half
    planes = (mx, sr * inv, si * inv)                        # each (TB, H, W)

    # ------- build packed, lane-padded planes; dense stores only -----------
    # Vertical halos: thin top/bottom zero bands, rewritten every step
    # (lane-dense stores; safe for core-private scratch under "parallel").
    zb = jnp.zeros((3, PAD, Wpp), f32)
    p_pad[:, 0:PAD, :] = zb
    p_pad[:, PAD + H:PAD + H + PAD, :] = zb

    # Lane packing + per-image halos assembled in registers with a single
    # minor-axis concatenate per plane, then one full-lane-width store.
    # Layout per row: [6 zeros][img_0][6 zeros][img_1]...[img_{TB-1}][6 zeros]
    z6 = jnp.zeros((H, 2 * PAD), f32)
    for p in range(3):
        pieces = [z6]
        for b in range(TB):
            pieces.append(planes[p][b])
            pieces.append(z6)
        p_pad[p, PAD:PAD + H, :] = jnp.concatenate(pieces, axis=1)  # (H, Wpp)

    # -------- 7x7 "same" conv: 3 real planes -> (real, imag) ---------------
    # VPU MAC; lane windows are static slices of the haloed slab (relayout
    # work co-issues under the 4-wide VALU MAC). Rows are processed in
    # H_CHUNK blocks so the two f32 accumulators stay ~16 vregs.
    br = bias_ref[0]
    bi = bias_ref[1]
    for h0 in range(0, H, H_CHUNK):
        hc = min(H_CHUNK, H - h0)
        acc_r = jnp.zeros((hc, Wp), f32)
        acc_i = jnp.zeros((hc, Wp), f32)
        for p in range(3):
            for ky in range(KSIZE):
                slab = p_pad[p, h0 + ky:h0 + ky + hc, :]     # (hc, Wpp)
                for kx in range(KSIZE):
                    win = slab[:, kx:kx + Wp]                # (hc, Wp)
                    idx = (p * KSIZE + ky) * KSIZE + kx
                    acc_r = acc_r + wa_ref[idx] * win
                    acc_i = acc_i + wb_ref[idx] * win
        # Lane-dense packed stores; bias added once on the packed width.
        o_ref[0, 0, h0:h0 + hc, :] = (acc_r + br).astype(o_ref.dtype)
        o_ref[0, 1, h0:h0 + hc, :] = (acc_i + bi).astype(o_ref.dtype)


@jax.jit
def spatial_gate(x, w_r, b_r, w_i, b_i):
    """x: (N, C, H, W), C even. Conv weights: (1, 2, 7, 7); biases: (1,)."""
    N, C, H, W = x.shape
    assert C % 2 == 0 and C >= 2

    seg = W + 2 * PAD
    TB = _choose_batch_tile(N, C, H, W, x.dtype.itemsize)
    G = _cdiv(N, TB)
    Np = G * TB
    Wp = TB * seg
    Wpp = Wp + 2 * PAD
    Hp = H + 2 * PAD

    # Pad the batch to a whole number of grid steps (padded images produce
    # throwaway rows that are sliced off below).
    if Np != N:
        x = jnp.concatenate(
            [x, jnp.zeros((Np - N, C, H, W), x.dtype)], axis=0)

    # Pre-combined tap weights for the 3 real planes [max, avg_r, avg_i]:
    #   real out = wr0*max + wr1*avg_r - wi1*avg_i + (b_r - b_i)
    #   imag out = wi0*max + wi1*avg_r + wr1*avg_i + (b_r + b_i)
    wr = w_r.reshape(2, KSIZE, KSIZE).astype(jnp.float32)
    wi = w_i.reshape(2, KSIZE, KSIZE).astype(jnp.float32)
    w_real = jnp.stack([wr[0], wr[1], -wi[1]]).reshape(-1)
    w_imag = jnp.stack([wi[0], wi[1], wr[1]]).reshape(-1)
    bias2 = jnp.stack([b_r[0] - b_i[0], b_r[0] + b_i[0]]).astype(jnp.float32)

    kernel = functools.partial(_spatial_gate_kernel, C=C, H=H, W=W, TB=TB)

    # Explicit VMEM budget: double-buffered in/out blocks + packed-plane
    # scratch ((8,128) tile padding included), floored at the default scope.
    itemsize = x.dtype.itemsize
    vmem_bytes = (
        2 * TB * C * _round_up(H, 8) * _round_up(W, 128) * itemsize
        + 2 * 2 * _round_up(H, 8) * _round_up(Wp, 128) * itemsize
        + 3 * _round_up(Hp, 8) * _round_up(Wpp, 128) * 4
        + (4 << 20))
    vmem_limit = int(min(max(vmem_bytes, 32 << 20), 64 << 20))

    out_packed = pl.pallas_call(
        kernel,
        out_shape=jax.ShapeDtypeStruct((G, 2, H, Wp), x.dtype),
        grid_spec=pltpu.PrefetchScalarGridSpec(
            num_scalar_prefetch=0,
            grid=(G,),
            in_specs=[
                pl.BlockSpec((TB, C, H, W), lambda g: (g, 0, 0, 0)),
                pl.BlockSpec(memory_space=pltpu.MemorySpace.SMEM),
                pl.BlockSpec(memory_space=pltpu.MemorySpace.SMEM),
                pl.BlockSpec(memory_space=pltpu.MemorySpace.SMEM),
            ],
            out_specs=pl.BlockSpec((1, 2, H, Wp), lambda g: (g, 0, 0, 0)),
            scratch_shapes=[
                pltpu.VMEM((3, Hp, Wpp), jnp.float32),
            ],
        ),
        compiler_params=pltpu.CompilerParams(
            dimension_semantics=("parallel",),
            vmem_limit_bytes=vmem_limit),
    )(x, w_real, w_imag, bias2)

    # Strip the per-image lane halos (cheap XLA slice/transpose on the small
    # 2-channel output) and unpack the batch.
    out = out_packed.reshape(G, 2, H, TB, seg)[..., PAD:PAD + W]
    out = jnp.transpose(out, (0, 3, 1, 2, 4)).reshape(Np, 2, H, W)
    return out[:N]


def reference(x, w_r, b_r, w_i, b_i):
    """Pure-JAX reference of the same semantics (for verification)."""
    N, C, H, W = x.shape
    half = C // 2
    xr, xi = x[:, :half], x[:, half:]
    max_map = jnp.max(xr, axis=1)
    avg_r = jnp.mean(xr, axis=1)
    avg_i = jnp.mean(xi, axis=1)
    p_real = jnp.stack([max_map, avg_r], axis=1)                   # (N,2,H,W)
    p_imag = jnp.stack([jnp.zeros_like(max_map), avg_i], axis=1)   # (N,2,H,W)

    def conv(inp, w, b):
        y = lax.conv_general_dilated(
            inp, w, window_strides=(1, 1), padding=[(PAD, PAD), (PAD, PAD)],
            dimension_numbers=("NCHW", "OIHW", "NCHW"),
            precision=lax.Precision.HIGHEST)
        return y + b.reshape(1, -1, 1, 1)

    rr = conv(p_real, w_r, b_r)
    ii = conv(p_imag, w_i, b_i)
    ri = conv(p_imag, w_r, b_r)
    ir = conv(p_real, w_i, b_i)
    return jnp.concatenate([rr - ii, ri + ir], axis=1)


if __name__ == "__main__":
    key = jax.random.PRNGKey(0)
    kx, kwr, kbr, kwi, kbi = jax.random.split(key, 5)

    N, C, H, W = 2, 4, 16, 16
    x = jax.random.normal(kx, (N, C, H, W), dtype=jnp.float32)

    # Deterministic parameter init (PyTorch Conv2d-style uniform bounds).
    fan_in = 2 * KSIZE * KSIZE
    bound = 1.0 / math.sqrt(fan_in)
    w_r = jax.random.uniform(kwr, (1, 2, KSIZE, KSIZE), jnp.float32, -bound, bound)
    b_r = jax.random.uniform(kbr, (1,), jnp.float32, -bound, bound)
    w_i = jax.random.uniform(kwi, (1, 2, KSIZE, KSIZE), jnp.float32, -bound, bound)
    b_i = jax.random.uniform(kbi, (1,), jnp.float32, -bound, bound)

    out = spatial_gate(x, w_r, b_r, w_i, b_i)
    out = jax.block_until_ready(out)

    ref = reference(x, w_r, b_r, w_i, b_i)
    assert out.shape == (N, 2, H, W), out.shape
    if not jnp.allclose(out, ref, atol=1e-3, rtol=1e-3):
        err = float(jnp.max(jnp.abs(out - ref)))
        raise AssertionError(
            f"Pallas kernel does not match JAX reference (max abs err {err})")

    print("KERNEL_OK")
</pallas_src>

<mosaic_0001>
module attributes {stable_mosaic.version = 11 : i64} {
  func.func @_spatial_gate_kernel(%arg0: i32, %arg1: memref<1x4x16x16xf32, #tpu.memory_space<vmem>>, %arg2: memref<147xf32, #tpu.memory_space<smem>>, %arg3: memref<147xf32, #tpu.memory_space<smem>>, %arg4: memref<2xf32, #tpu.memory_space<smem>>, %arg5: memref<1x2x16x22xf32, #tpu.memory_space<vmem>>, %arg6: memref<3x22x28xf32, #tpu.memory_space<vmem>>) attributes {dimension_semantics = [#tpu.dimension_semantics<parallel>], iteration_bounds = array<i64: 2>, scalar_prefetch = 0 : i64, scratch_operands = 1 : i64, tpu.core_type = #tpu.core_type<tc>, window_params = [{transform_indices = @transform_0, window_bounds = array<i64: 1, 4, 16, 16>}, {transform_indices = @transform_1, window_bounds = array<i64: 147>}, {transform_indices = @transform_2, window_bounds = array<i64: 147>}, {transform_indices = @transform_3, window_bounds = array<i64: 2>}, {transform_indices = @transform_4, window_bounds = array<i64: 1, 2, 16, 22>}]} {
    %c0 = arith.constant 0 : index
    %c0_0 = arith.constant 0 : index
    %c0_1 = arith.constant 0 : index
    %c0_2 = arith.constant 0 : index
    %0 = vector.load %arg1[%c0, %c0_0, %c0_1, %c0_2] : memref<1x4x16x16xf32, #tpu.memory_space<vmem>>, vector<1x2x16x16xf32>
    %c0_3 = arith.constant 0 : index
    %c2 = arith.constant 2 : index
    %c0_4 = arith.constant 0 : index
    %c0_5 = arith.constant 0 : index
    %1 = vector.load %arg1[%c0_3, %c2, %c0_4, %c0_5] : memref<1x4x16x16xf32, #tpu.memory_space<vmem>>, vector<1x2x16x16xf32>
    %cst = arith.constant dense<0xFF800000> : vector<1x16x16xf32>
    %2 = vector.multi_reduction <maximumf>, %0, %cst [1] : vector<1x2x16x16xf32> to vector<1x16x16xf32>
    %cst_6 = arith.constant dense<0.000000e+00> : vector<1x16x16xf32>
    %3 = vector.multi_reduction <add>, %0, %cst_6 [1] : vector<1x2x16x16xf32> to vector<1x16x16xf32>
    %cst_7 = arith.constant dense<0.000000e+00> : vector<1x16x16xf32>
    %4 = vector.multi_reduction <add>, %1, %cst_7 [1] : vector<1x2x16x16xf32> to vector<1x16x16xf32>
    %cst_8 = arith.constant 5.000000e-01 : f32
    %5 = vector.broadcast %cst_8 : f32 to vector<1x16x16xf32>
    %6 = arith.mulf %3, %5 : vector<1x16x16xf32>
    %cst_9 = arith.constant 5.000000e-01 : f32
    %7 = vector.broadcast %cst_9 : f32 to vector<1x16x16xf32>
    %8 = arith.mulf %4, %7 : vector<1x16x16xf32>
    %cst_10 = arith.constant 0.000000e+00 : f32
    %9 = vector.broadcast %cst_10 : f32 to vector<3x3x28xf32>
    %c0_11 = arith.constant 0 : index
    %c0_12 = arith.constant 0 : index
    %c0_13 = arith.constant 0 : index
    %10 = vector.load %arg6[%c0_11, %c0_12, %c0_13] : memref<3x22x28xf32, #tpu.memory_space<vmem>>, vector<3x3x28xf32>
    tpu.vector_store %arg6[%c0_11, %c0_12, %c0_13], %9 {strides = array<i32>} : memref<3x22x28xf32, #tpu.memory_space<vmem>>, vector<3x3x28xf32>,
    %c0_14 = arith.constant 0 : index
    %c19 = arith.constant 19 : index
    %c0_15 = arith.constant 0 : index
    %11 = vector.load %arg6[%c0_14, %c19, %c0_15] : memref<3x22x28xf32, #tpu.memory_space<vmem>>, vector<3x3x28xf32>
    tpu.vector_store %arg6[%c0_14, %c19, %c0_15], %9 {strides = array<i32>} : memref<3x22x28xf32, #tpu.memory_space<vmem>>, vector<3x3x28xf32>,
    %cst_16 = arith.constant 0.000000e+00 : f32
    %12 = vector.broadcast %cst_16 : f32 to vector<16x6xf32>
    %13 = vector.shape_cast %2 : vector<1x16x16xf32> to vector<16x16xf32>
    %14 = tpu.concatenate %12, %13, %12 in 1 : vector<16x6xf32>, vector<16x16xf32>, vector<16x6xf32> -> vector<16x28xf32>
    %c0_17 = arith.constant 0 : index
    %c3 = arith.constant 3 : index
    %c0_18 = arith.constant 0 : index
    %15 = vector.load %arg6[%c0_17, %c3, %c0_18] : memref<3x22x28xf32, #tpu.memory_space<vmem>>, vector<1x16x28xf32>
    %16 = vector.shape_cast %15 : vector<1x16x28xf32> to vector<16x28xf32>
    %17 = vector.shape_cast %14 : vector<16x28xf32> to vector<1x16x28xf32>
    tpu.vector_store %arg6[%c0_17, %c3, %c0_18], %17 {strides = array<i32>} : memref<3x22x28xf32, #tpu.memory_space<vmem>>, vector<1x16x28xf32>,
    %18 = vector.shape_cast %6 : vector<1x16x16xf32> to vector<16x16xf32>
    %19 = tpu.concatenate %12, %18, %12 in 1 : vector<16x6xf32>, vector<16x16xf32>, vector<16x6xf32> -> vector<16x28xf32>
    %c1 = arith.constant 1 : index
    %c3_19 = arith.constant 3 : index
    %c0_20 = arith.constant 0 : index
    %20 = vector.load %arg6[%c1, %c3_19, %c0_20] : memref<3x22x28xf32, #tpu.memory_space<vmem>>, vector<1x16x28xf32>
    %21 = vector.shape_cast %20 : vector<1x16x28xf32> to vector<16x28xf32>
    %22 = vector.shape_cast %19 : vector<16x28xf32> to vector<1x16x28xf32>
    tpu.vector_store %arg6[%c1, %c3_19, %c0_20], %22 {strides = array<i32>} : memref<3x22x28xf32, #tpu.memory_space<vmem>>, vector<1x16x28xf32>,
    %23 = vector.shape_cast %8 : vector<1x16x16xf32> to vector<16x16xf32>
    %24 = tpu.concatenate %12, %23, %12 in 1 : vector<16x6xf32>, vector<16x16xf32>, vector<16x6xf32> -> vector<16x28xf32>
    %c2_21 = arith.constant 2 : index
    %c3_22 = arith.constant 3 : index
    %c0_23 = arith.constant 0 : index
    %25 = vector.load %arg6[%c2_21, %c3_22, %c0_23] : memref<3x22x28xf32, #tpu.memory_space<vmem>>, vector<1x16x28xf32>
    %26 = vector.shape_cast %25 : vector<1x16x28xf32> to vector<16x28xf32>
    %27 = vector.shape_cast %24 : vector<16x28xf32> to vector<1x16x28xf32>
    tpu.vector_store %arg6[%c2_21, %c3_22, %c0_23], %27 {strides = array<i32>} : memref<3x22x28xf32, #tpu.memory_space<vmem>>, vector<1x16x28xf32>,
    %c0_24 = arith.constant 0 : index
    %28 = memref.load %arg4[%c0_24] : memref<2xf32, #tpu.memory_space<smem>>
    %c1_25 = arith.constant 1 : index
    %29 = memref.load %arg4[%c1_25] : memref<2xf32, #tpu.memory_space<smem>>
    %cst_26 = arith.constant 0.000000e+00 : f32
    %30 = vector.broadcast %cst_26 : f32 to vector<16x22xf32>
    %cst_27 = arith.constant 0.000000e+00 : f32
    %31 = vector.broadcast %cst_27 : f32 to vector<16x22xf32>
    %c0_28 = arith.constant 0 : index
    %c0_29 = arith.constant 0 : index
    %c0_30 = arith.constant 0 : index
    %32 = vector.load %arg6[%c0_28, %c0_29, %c0_30] : memref<3x22x28xf32, #tpu.memory_space<vmem>>, vector<1x16x28xf32>
    %33 = vector.shape_cast %32 : vector<1x16x28xf32> to vector<16x28xf32>
    %34 = vector.extract_strided_slice %33 {offsets = [0, 0], sizes = [16, 22], strides = [1, 1]} : vector<16x28xf32> to vector<16x22xf32>
    %c0_31 = arith.constant 0 : index
    %35 = memref.load %arg2[%c0_31] : memref<147xf32, #tpu.memory_space<smem>>
    %36 = vector.broadcast %35 : f32 to vector<16x22xf32>
    %37 = arith.mulf %36, %34 : vector<16x22xf32>
    %38 = arith.addf %30, %37 : vector<16x22xf32>
    %c0_32 = arith.constant 0 : index
    %39 = memref.load %arg3[%c0_32] : memref<147xf32, #tpu.memory_space<smem>>
    %40 = vector.broadcast %39 : f32 to vector<16x22xf32>
    %41 = arith.mulf %40, %34 : vector<16x22xf32>
    %42 = arith.addf %31, %41 : vector<16x22xf32>
    %43 = vector.extract_strided_slice %33 {offsets = [0, 1], sizes = [16, 22], strides = [1, 1]} : vector<16x28xf32> to vector<16x22xf32>
    %c1_33 = arith.constant 1 : index
    %44 = memref.load %arg2[%c1_33] : memref<147xf32, #tpu.memory_space<smem>>
    %45 = vector.broadcast %44 : f32 to vector<16x22xf32>
    %46 = arith.mulf %45, %43 : vector<16x22xf32>
    %47 = arith.addf %38, %46 : vector<16x22xf32>
    %c1_34 = arith.constant 1 : index
    %48 = memref.load %arg3[%c1_34] : memref<147xf32, #tpu.memory_space<smem>>
    %49 = vector.broadcast %48 : f32 to vector<16x22xf32>
    %50 = arith.mulf %49, %43 : vector<16x22xf32>
    %51 = arith.addf %42, %50 : vector<16x22xf32>
    %52 = vector.extract_strided_slice %33 {offsets = [0, 2], sizes = [16, 22], strides = [1, 1]} : vector<16x28xf32> to vector<16x22xf32>
    %c2_35 = arith.constant 2 : index
    %53 = memref.load %arg2[%c2_35] : memref<147xf32, #tpu.memory_space<smem>>
    %54 = vector.broadcast %53 : f32 to vector<16x22xf32>
    %55 = arith.mulf %54, %52 : vector<16x22xf32>
    %56 = arith.addf %47, %55 : vector<16x22xf32>
    %c2_36 = arith.constant 2 : index
    %57 = memref.load %arg3[%c2_36] : memref<147xf32, #tpu.memory_space<smem>>
    %58 = vector.broadcast %57 : f32 to vector<16x22xf32>
    %59 = arith.mulf %58, %52 : vector<16x22xf32>
    %60 = arith.addf %51, %59 : vector<16x22xf32>
    %61 = vector.extract_strided_slice %33 {offsets = [0, 3], sizes = [16, 22], strides = [1, 1]} : vector<16x28xf32> to vector<16x22xf32>
    %c3_37 = arith.constant 3 : index
    %62 = memref.load %arg2[%c3_37] : memref<147xf32, #tpu.memory_space<smem>>
    %63 = vector.broadcast %62 : f32 to vector<16x22xf32>
    %64 = arith.mulf %63, %61 : vector<16x22xf32>
    %65 = arith.addf %56, %64 : vector<16x22xf32>
    %c3_38 = arith.constant 3 : index
    %66 = memref.load %arg3[%c3_38] : memref<147xf32, #tpu.memory_space<smem>>
    %67 = vector.broadcast %66 : f32 to vector<16x22xf32>
    %68 = arith.mulf %67, %61 : vector<16x22xf32>
    %69 = arith.addf %60, %68 : vector<16x22xf32>
    %70 = vector.extract_strided_slice %33 {offsets = [0, 4], sizes = [16, 22], strides = [1, 1]} : vector<16x28xf32> to vector<16x22xf32>
    %c4 = arith.constant 4 : index
    %71 = memref.load %arg2[%c4] : memref<147xf32, #tpu.memory_space<smem>>
    %72 = vector.broadcast %71 : f32 to vector<16x22xf32>
    %73 = arith.mulf %72, %70 : vector<16x22xf32>
    %74 = arith.addf %65, %73 : vector<16x22xf32>
    %c4_39 = arith.constant 4 : index
    %75 = memref.load %arg3[%c4_39] : memref<147xf32, #tpu.memory_space<smem>>
    %76 = vector.broadcast %75 : f32 to vector<16x22xf32>
    %77 = arith.mulf %76, %70 : vector<16x22xf32>
    %78 = arith.addf %69, %77 : vector<16x22xf32>
    %79 = vector.extract_strided_slice %33 {offsets = [0, 5], sizes = [16, 22], strides = [1, 1]} : vector<16x28xf32> to vector<16x22xf32>
    %c5 = arith.constant 5 : index
    %80 = memref.load %arg2[%c5] : memref<147xf32, #tpu.memory_space<smem>>
    %81 = vector.broadcast %80 : f32 to vector<16x22xf32>
    %82 = arith.mulf %81, %79 : vector<16x22xf32>
    %83 = arith.addf %74, %82 : vector<16x22xf32>
    %c5_40 = arith.constant 5 : index
    %84 = memref.load %arg3[%c5_40] : memref<147xf32, #tpu.memory_space<smem>>
    %85 = vector.broadcast %84 : f32 to vector<16x22xf32>
    %86 = arith.mulf %85, %79 : vector<16x22xf32>
    %87 = arith.addf %78, %86 : vector<16x22xf32>
    %88 = vector.extract_strided_slice %33 {offsets = [0, 6], sizes = [16, 22], strides = [1, 1]} : vector<16x28xf32> to vector<16x22xf32>
    %c6 = arith.constant 6 : index
    %89 = memref.load %arg2[%c6] : memref<147xf32, #tpu.memory_space<smem>>
    %90 = vector.broadcast %89 : f32 to vector<16x22xf32>
    %91 = arith.mulf %90, %88 : vector<16x22xf32>
    %92 = arith.addf %83, %91 : vector<16x22xf32>
    %c6_41 = arith.constant 6 : index
    %93 = memref.load %arg3[%c6_41] : memref<147xf32, #tpu.memory_space<smem>>
    %94 = vector.broadcast %93 : f32 to vector<16x22xf32>
    %95 = arith.mulf %94, %88 : vector<16x22xf32>
    %96 = arith.addf %87, %95 : vector<16x22xf32>
    %c0_42 = arith.constant 0 : index
    %c1_43 = arith.constant 1 : index
    %c0_44 = arith.constant 0 : index
    %97 = vector.load %arg6[%c0_42, %c1_43, %c0_44] : memref<3x22x28xf32, #tpu.memory_space<vmem>>, vector<1x16x28xf32>
    %98 = vector.shape_cast %97 : vector<1x16x28xf32> to vector<16x28xf32>
    %99 = vector.extract_strided_slice %98 {offsets = [0, 0], sizes = [16, 22], strides = [1, 1]} : vector<16x28xf32> to vector<16x22xf32>
    %c7 = arith.constant 7 : index
    %100 = memref.load %arg2[%c7] : memref<147xf32, #tpu.memory_space<smem>>
    %101 = vector.broadcast %100 : f32 to vector<16x22xf32>
    %102 = arith.mulf %101, %99 : vector<16x22xf32>
    %103 = arith.addf %92, %102 : vector<16x22xf32>
    %c7_45 = arith.constant 7 : index
    %104 = memref.load %arg3[%c7_45] : memref<147xf32, #tpu.memory_space<smem>>
    %105 = vector.broadcast %104 : f32 to vector<16x22xf32>
    %106 = arith.mulf %105, %99 : vector<16x22xf32>
    %107 = arith.addf %96, %106 : vector<16x22xf32>
    %108 = vector.extract_strided_slice %98 {offsets = [0, 1], sizes = [16, 22], strides = [1, 1]} : vector<16x28xf32> to vector<16x22xf32>
    %c8 = arith.constant 8 : index
    %109 = memref.load %arg2[%c8] : memref<147xf32, #tpu.memory_space<smem>>
    %110 = vector.broadcast %109 : f32 to vector<16x22xf32>
    %111 = arith.mulf %110, %108 : vector<16x22xf32>
    %112 = arith.addf %103, %111 : vector<16x22xf32>
    %c8_46 = arith.constant 8 : index
    %113 = memref.load %arg3[%c8_46] : memref<147xf32, #tpu.memory_space<smem>>
    %114 = vector.broadcast %113 : f32 to vector<16x22xf32>
    %115 = arith.mulf %114, %108 : vector<16x22xf32>
    %116 = arith.addf %107, %115 : vector<16x22xf32>
    %117 = vector.extract_strided_slice %98 {offsets = [0, 2], sizes = [16, 22], strides = [1, 1]} : vector<16x28xf32> to vector<16x22xf32>
    %c9 = arith.constant 9 : index
    %118 = memref.load %arg2[%c9] : memref<147xf32, #tpu.memory_space<smem>>
    %119 = vector.broadcast %118 : f32 to vector<16x22xf32>
    %120 = arith.mulf %119, %117 : vector<16x22xf32>
    %121 = arith.addf %112, %120 : vector<16x22xf32>
    %c9_47 = arith.constant 9 : index
    %122 = memref.load %arg3[%c9_47] : memref<147xf32, #tpu.memory_space<smem>>
    %123 = vector.broadcast %122 : f32 to vector<16x22xf32>
    %124 = arith.mulf %123, %117 : vector<16x22xf32>
    %125 = arith.addf %116, %124 : vector<16x22xf32>
    %126 = vector.extract_strided_slice %98 {offsets = [0, 3], sizes = [16, 22], strides = [1, 1]} : vector<16x28xf32> to vector<16x22xf32>
    %c10 = arith.constant 10 : index
    %127 = memref.load %arg2[%c10] : memref<147xf32, #tpu.memory_space<smem>>
    %128 = vector.broadcast %127 : f32 to vector<16x22xf32>
    %129 = arith.mulf %128, %126 : vector<16x22xf32>
    %130 = arith.addf %121, %129 : vector<16x22xf32>
    %c10_48 = arith.constant 10 : index
    %131 = memref.load %arg3[%c10_48] : memref<147xf32, #tpu.memory_space<smem>>
    %132 = vector.broadcast %131 : f32 to vector<16x22xf32>
    %133 = arith.mulf %132, %126 : vector<16x22xf32>
    %134 = arith.addf %125, %133 : vector<16x22xf32>
    %135 = vector.extract_strided_slice %98 {offsets = [0, 4], sizes = [16, 22], strides = [1, 1]} : vector<16x28xf32> to vector<16x22xf32>
    %c11 = arith.constant 11 : index
    %136 = memref.load %arg2[%c11] : memref<147xf32, #tpu.memory_space<smem>>
    %137 = vector.broadcast %136 : f32 to vector<16x22xf32>
    %138 = arith.mulf %137, %135 : vector<16x22xf32>
    %139 = arith.addf %130, %138 : vector<16x22xf32>
    %c11_49 = arith.constant 11 : index
    %140 = memref.load %arg3[%c11_49] : memref<147xf32, #tpu.memory_space<smem>>
    %141 = vector.broadcast %140 : f32 to vector<16x22xf32>
    %142 = arith.mulf %141, %135 : vector<16x22xf32>
    %143 = arith.addf %134, %142 : vector<16x22xf32>
    %144 = vector.extract_strided_slice %98 {offsets = [0, 5], sizes = [16, 22], strides = [1, 1]} : vector<16x28xf32> to vector<16x22xf32>
    %c12 = arith.constant 12 : index
    %145 = memref.load %arg2[%c12] : memref<147xf32, #tpu.memory_space<smem>>
    %146 = vector.broadcast %145 : f32 to vector<16x22xf32>
    %147 = arith.mulf %146, %144 : vector<16x22xf32>
    %148 = arith.addf %139, %147 : vector<16x22xf32>
    %c12_50 = arith.constant 12 : index
    %149 = memref.load %arg3[%c12_50] : memref<147xf32, #tpu.memory_space<smem>>
    %150 = vector.broadcast %149 : f32 to vector<16x22xf32>
    %151 = arith.mulf %150, %144 : vector<16x22xf32>
    %152 = arith.addf %143, %151 : vector<16x22xf32>
    %153 = vector.extract_strided_slice %98 {offsets = [0, 6], sizes = [16, 22], strides = [1, 1]} : vector<16x28xf32> to vector<16x22xf32>
    %c13 = arith.constant 13 : index
    %154 = memref.load %arg2[%c13] : memref<147xf32, #tpu.memory_space<smem>>
    %155 = vector.broadcast %154 : f32 to vector<16x22xf32>
    %156 = arith.mulf %155, %153 : vector<16x22xf32>
    %157 = arith.addf %148, %156 : vector<16x22xf32>
    %c13_51 = arith.constant 13 : index
    %158 = memref.load %arg3[%c13_51] : memref<147xf32, #tpu.memory_space<smem>>
    %159 = vector.broadcast %158 : f32 to vector<16x22xf32>
    %160 = arith.mulf %159, %153 : vector<16x22xf32>
    %161 = arith.addf %152, %160 : vector<16x22xf32>
    %c0_52 = arith.constant 0 : index
    %c2_53 = arith.constant 2 : index
    %c0_54 = arith.constant 0 : index
    %162 = vector.load %arg6[%c0_52, %c2_53, %c0_54] : memref<3x22x28xf32, #tpu.memory_space<vmem>>, vector<1x16x28xf32>
    %163 = vector.shape_cast %162 : vector<1x16x28xf32> to vector<16x28xf32>
    %164 = vector.extract_strided_slice %163 {offsets = [0, 0], sizes = [16, 22], strides = [1, 1]} : vector<16x28xf32> to vector<16x22xf32>
    %c14 = arith.constant 14 : index
    %165 = memref.load %arg2[%c14] : memref<147xf32, #tpu.memory_space<smem>>
    %166 = vector.broadcast %165 : f32 to vector<16x22xf32>
    %167 = arith.mulf %166, %164 : vector<16x22xf32>
    %168 = arith.addf %157, %167 : vector<16x22xf32>
    %c14_55 = arith.constant 14 : index
    %169 = memref.load %arg3[%c14_55] : memref<147xf32, #tpu.memory_space<smem>>
    %170 = vector.broadcast %169 : f32 to vector<16x22xf32>
    %171 = arith.mulf %170, %164 : vector<16x22xf32>
    %172 = arith.addf %161, %171 : vector<16x22xf32>
    %173 = vector.extract_strided_slice %163 {offsets = [0, 1], sizes = [16, 22], strides = [1, 1]} : vector<16x28xf32> to vector<16x22xf32>
    %c15 = arith.constant 15 : index
    %174 = memref.load %arg2[%c15] : memref<147xf32, #tpu.memory_space<smem>>
    %175 = vector.broadcast %174 : f32 to vector<16x22xf32>
    %176 = arith.mulf %175, %173 : vector<16x22xf32>
    %177 = arith.addf %168, %176 : vector<16x22xf32>
    %c15_56 = arith.constant 15 : index
    %178 = memref.load %arg3[%c15_56] : memref<147xf32, #tpu.memory_space<smem>>
    %179 = vector.broadcast %178 : f32 to vector<16x22xf32>
    %180 = arith.mulf %179, %173 : vector<16x22xf32>
    %181 = arith.addf %172, %180 : vector<16x22xf32>
    %182 = vector.extract_strided_slice %163 {offsets = [0, 2], sizes = [16, 22], strides = [1, 1]} : vector<16x28xf32> to vector<16x22xf32>
    %c16 = arith.constant 16 : index
    %183 = memref.load %arg2[%c16] : memref<147xf32, #tpu.memory_space<smem>>
    %184 = vector.broadcast %183 : f32 to vector<16x22xf32>
    %185 = arith.mulf %184, %182 : vector<16x22xf32>
    %186 = arith.addf %177, %185 : vector<16x22xf32>
    %c16_57 = arith.constant 16 : index
    %187 = memref.load %arg3[%c16_57] : memref<147xf32, #tpu.memory_space<smem>>
    %188 = vector.broadcast %187 : f32 to vector<16x22xf32>
    %189 = arith.mulf %188, %182 : vector<16x22xf32>
    %190 = arith.addf %181, %189 : vector<16x22xf32>
    %191 = vector.extract_strided_slice %163 {offsets = [0, 3], sizes = [16, 22], strides = [1, 1]} : vector<16x28xf32> to vector<16x22xf32>
    %c17 = arith.constant 17 : index
    %192 = memref.load %arg2[%c17] : memref<147xf32, #tpu.memory_space<smem>>
    %193 = vector.broadcast %192 : f32 to vector<16x22xf32>
    %194 = arith.mulf %193, %191 : vector<16x22xf32>
    %195 = arith.addf %186, %194 : vector<16x22xf32>
    %c17_58 = arith.constant 17 : index
    %196 = memref.load %arg3[%c17_58] : memref<147xf32, #tpu.memory_space<smem>>
    %197 = vector.broadcast %196 : f32 to vector<16x22xf32>
    %198 = arith.mulf %197, %191 : vector<16x22xf32>
    %199 = arith.addf %190, %198 : vector<16x22xf32>
    %200 = vector.extract_strided_slice %163 {offsets = [0, 4], sizes = [16, 22], strides = [1, 1]} : vector<16x28xf32> to vector<16x22xf32>
    %c18 = arith.constant 18 : index
    %201 = memref.load %arg2[%c18] : memref<147xf32, #tpu.memory_space<smem>>
    %202 = vector.broadcast %201 : f32 to vector<16x22xf32>
    %203 = arith.mulf %202, %200 : vector<16x22xf32>
    %204 = arith.addf %195, %203 : vector<16x22xf32>
    %c18_59 = arith.constant 18 : index
    %205 = memref.load %arg3[%c18_59] : memref<147xf32, #tpu.memory_space<smem>>
    %206 = vector.broadcast %205 : f32 to vector<16x22xf32>
    %207 = arith.mulf %206, %200 : vector<16x22xf32>
    %208 = arith.addf %199, %207 : vector<16x22xf32>
    %209 = vector.extract_strided_slice %163 {offsets = [0, 5], sizes = [16, 22], strides = [1, 1]} : vector<16x28xf32> to vector<16x22xf32>
    %c19_60 = arith.constant 19 : index
    %210 = memref.load %arg2[%c19_60] : memref<147xf32, #tpu.memory_space<smem>>
    %211 = vector.broadcast %210 : f32 to vector<16x22xf32>
    %212 = arith.mulf %211, %209 : vector<16x22xf32>
    %213 = arith.addf %204, %212 : vector<16x22xf32>
    %c19_61 = arith.constant 19 : index
    %214 = memref.load %arg3[%c19_61] : memref<147xf32, #tpu.memory_space<smem>>
    %215 = vector.broadcast %214 : f32 to vector<16x22xf32>
    %216 = arith.mulf %215, %209 : vector<16x22xf32>
    %217 = arith.addf %208, %216 : vector<16x22xf32>
    %218 = vector.extract_strided_slice %163 {offsets = [0, 6], sizes = [16, 22], strides = [1, 1]} : vector<16x28xf32> to vector<16x22xf32>
    %c20 = arith.constant 20 : index
    %219 = memref.load %arg2[%c20] : memref<147xf32, #tpu.memory_space<smem>>
    %220 = vector.broadcast %219 : f32 to vector<16x22xf32>
    %221 = arith.mulf %220, %218 : vector<16x22xf32>
    %222 = arith.addf %213, %221 : vector<16x22xf32>
    %c20_62 = arith.constant 20 : index
    %223 = memref.load %arg3[%c20_62] : memref<147xf32, #tpu.memory_space<smem>>
    %224 = vector.broadcast %223 : f32 to vector<16x22xf32>
    %225 = arith.mulf %224, %218 : vector<16x22xf32>
    %226 = arith.addf %217, %225 : vector<16x22xf32>
    %c0_63 = arith.constant 0 : index
    %c3_64 = arith.constant 3 : index
    %c0_65 = arith.constant 0 : index
    %227 = vector.load %arg6[%c0_63, %c3_64, %c0_65] : memref<3x22x28xf32, #tpu.memory_space<vmem>>, vector<1x16x28xf32>
    %228 = vector.shape_cast %227 : vector<1x16x28xf32> to vector<16x28xf32>
    %229 = vector.extract_strided_slice %228 {offsets = [0, 0], sizes = [16, 22], strides = [1, 1]} : vector<16x28xf32> to vector<16x22xf32>
    %c21 = arith.constant 21 : index
    %230 = memref.load %arg2[%c21] : memref<147xf32, #tpu.memory_space<smem>>
    %231 = vector.broadcast %230 : f32 to vector<16x22xf32>
    %232 = arith.mulf %231, %229 : vector<16x22xf32>
    %233 = arith.addf %222, %232 : vector<16x22xf32>
    %c21_66 = arith.constant 21 : index
    %234 = memref.load %arg3[%c21_66] : memref<147xf32, #tpu.memory_space<smem>>
    %235 = vector.broadcast %234 : f32 to vector<16x22xf32>
    %236 = arith.mulf %235, %229 : vector<16x22xf32>
    %237 = arith.addf %226, %236 : vector<16x22xf32>
    %238 = vector.extract_strided_slice %228 {offsets = [0, 1], sizes = [16, 22], strides = [1, 1]} : vector<16x28xf32> to vector<16x22xf32>
    %c22 = arith.constant 22 : index
    %239 = memref.load %arg2[%c22] : memref<147xf32, #tpu.memory_space<smem>>
    %240 = vector.broadcast %239 : f32 to vector<16x22xf32>
    %241 = arith.mulf %240, %238 : vector<16x22xf32>
    %242 = arith.addf %233, %241 : vector<16x22xf32>
    %c22_67 = arith.constant 22 : index
    %243 = memref.load %arg3[%c22_67] : memref<147xf32, #tpu.memory_space<smem>>
    %244 = vector.broadcast %243 : f32 to vector<16x22xf32>
    %245 = arith.mulf %244, %238 : vector<16x22xf32>
    %246 = arith.addf %237, %245 : vector<16x22xf32>
    %247 = vector.extract_strided_slice %228 {offsets = [0, 2], sizes = [16, 22], strides = [1, 1]} : vector<16x28xf32> to vector<16x22xf32>
    %c23 = arith.constant 23 : index
    %248 = memref.load %arg2[%c23] : memref<147xf32, #tpu.memory_space<smem>>
    %249 = vector.broadcast %248 : f32 to vector<16x22xf32>
    %250 = arith.mulf %249, %247 : vector<16x22xf32>
    %251 = arith.addf %242, %250 : vector<16x22xf32>
    %c23_68 = arith.constant 23 : index
    %252 = memref.load %arg3[%c23_68] : memref<147xf32, #tpu.memory_space<smem>>
    %253 = vector.broadcast %252 : f32 to vector<16x22xf32>
    %254 = arith.mulf %253, %247 : vector<16x22xf32>
    %255 = arith.addf %246, %254 : vector<16x22xf32>
    %256 = vector.extract_strided_slice %228 {offsets = [0, 3], sizes = [16, 22], strides = [1, 1]} : vector<16x28xf32> to vector<16x22xf32>
    %c24 = arith.constant 24 : index
    %257 = memref.load %arg2[%c24] : memref<147xf32, #tpu.memory_space<smem>>
    %258 = vector.broadcast %257 : f32 to vector<16x22xf32>
    %259 = arith.mulf %258, %256 : vector<16x22xf32>
    %260 = arith.addf %251, %259 : vector<16x22xf32>
    %c24_69 = arith.constant 24 : index
    %261 = memref.load %arg3[%c24_69] : memref<147xf32, #tpu.memory_space<smem>>
    %262 = vector.broadcast %261 : f32 to vector<16x22xf32>
    %263 = arith.mulf %262, %256 : vector<16x22xf32>
    %264 = arith.addf %255, %263 : vector<16x22xf32>
    %265 = vector.extract_strided_slice %228 {offsets = [0, 4], sizes = [16, 22], strides = [1, 1]} : vector<16x28xf32> to vector<16x22xf32>
    %c25 = arith.constant 25 : index
    %266 = memref.load %arg2[%c25] : memref<147xf32, #tpu.memory_space<smem>>
    %267 = vector.broadcast %266 : f32 to vector<16x22xf32>
    %268 = arith.mulf %267, %265 : vector<16x22xf32>
    %269 = arith.addf %260, %268 : vector<16x22xf32>
    %c25_70 = arith.constant 25 : index
    %270 = memref.load %arg3[%c25_70] : memref<147xf32, #tpu.memory_space<smem>>
    %271 = vector.broadcast %270 : f32 to vector<16x22xf32>
    %272 = arith.mulf %271, %265 : vector<16x22xf32>
    %273 = arith.addf %264, %272 : vector<16x22xf32>
    %274 = vector.extract_strided_slice %228 {offsets = [0, 5], sizes = [16, 22], strides = [1, 1]} : vector<16x28xf32> to vector<16x22xf32>
    %c26 = arith.constant 26 : index
    %275 = memref.load %arg2[%c26] : memref<147xf32, #tpu.memory_space<smem>>
    %276 = vector.broadcast %275 : f32 to vector<16x22xf32>
    %277 = arith.mulf %276, %274 : vector<16x22xf32>
    %278 = arith.addf %269, %277 : vector<16x22xf32>
    %c26_71 = arith.constant 26 : index
    %279 = memref.load %arg3[%c26_71] : memref<147xf32, #tpu.memory_space<smem>>
    %280 = vector.broadcast %279 : f32 to vector<16x22xf32>
    %281 = arith.mulf %280, %274 : vector<16x22xf32>
    %282 = arith.addf %273, %281 : vector<16x22xf32>
    %283 = vector.extract_strided_slice %228 {offsets = [0, 6], sizes = [16, 22], strides = [1, 1]} : vector<16x28xf32> to vector<16x22xf32>
    %c27 = arith.constant 27 : index
    %284 = memref.load %arg2[%c27] : memref<147xf32, #tpu.memory_space<smem>>
    %285 = vector.broadcast %284 : f32 to vector<16x22xf32>
    %286 = arith.mulf %285, %283 : vector<16x22xf32>
    %287 = arith.addf %278, %286 : vector<16x22xf32>
    %c27_72 = arith.constant 27 : index
    %288 = memref.load %arg3[%c27_72] : memref<147xf32, #tpu.memory_space<smem>>
    %289 = vector.broadcast %288 : f32 to vector<16x22xf32>
    %290 = arith.mulf %289, %283 : vector<16x22xf32>
    %291 = arith.addf %282, %290 : vector<16x22xf32>
    %c0_73 = arith.constant 0 : index
    %c4_74 = arith.constant 4 : index
    %c0_75 = arith.constant 0 : index
    %292 = vector.load %arg6[%c0_73, %c4_74, %c0_75] : memref<3x22x28xf32, #tpu.memory_space<vmem>>, vector<1x16x28xf32>
    %293 = vector.shape_cast %292 : vector<1x16x28xf32> to vector<16x28xf32>
    %294 = vector.extract_strided_slice %293 {offsets = [0, 0], sizes = [16, 22], strides = [1, 1]} : vector<16x28xf32> to vector<16x22xf32>
    %c28 = arith.constant 28 : index
    %295 = memref.load %arg2[%c28] : memref<147xf32, #tpu.memory_space<smem>>
    %296 = vector.broadcast %295 : f32 to vector<16x22xf32>
    %297 = arith.mulf %296, %294 : vector<16x22xf32>
    %298 = arith.addf %287, %297 : vector<16x22xf32>
    %c28_76 = arith.constant 28 : index
    %299 = memref.load %arg3[%c28_76] : memref<147xf32, #tpu.memory_space<smem>>
    %300 = vector.broadcast %299 : f32 to vector<16x22xf32>
    %301 = arith.mulf %300, %294 : vector<16x22xf32>
    %302 = arith.addf %291, %301 : vector<16x22xf32>
    %303 = vector.extract_strided_slice %293 {offsets = [0, 1], sizes = [16, 22], strides = [1, 1]} : vector<16x28xf32> to vector<16x22xf32>
    %c29 = arith.constant 29 : index
    %304 = memref.load %arg2[%c29] : memref<147xf32, #tpu.memory_space<smem>>
    %305 = vector.broadcast %304 : f32 to vector<16x22xf32>
    %306 = arith.mulf %305, %303 : vector<16x22xf32>
    %307 = arith.addf %298, %306 : vector<16x22xf32>
    %c29_77 = arith.constant 29 : index
    %308 = memref.load %arg3[%c29_77] : memref<147xf32, #tpu.memory_space<smem>>
    %309 = vector.broadcast %308 : f32 to vector<16x22xf32>
    %310 = arith.mulf %309, %303 : vector<16x22xf32>
    %311 = arith.addf %302, %310 : vector<16x22xf32>
    %312 = vector.extract_strided_slice %293 {offsets = [0, 2], sizes = [16, 22], strides = [1, 1]} : vector<16x28xf32> to vector<16x22xf32>
    %c30 = arith.constant 30 : index
    %313 = memref.load %arg2[%c30] : memref<147xf32, #tpu.memory_space<smem>>
    %314 = vector.broadcast %313 : f32 to vector<16x22xf32>
    %315 = arith.mulf %314, %312 : vector<16x22xf32>
    %316 = arith.addf %307, %315 : vector<16x22xf32>
    %c30_78 = arith.constant 30 : index
    %317 = memref.load %arg3[%c30_78] : memref<147xf32, #tpu.memory_space<smem>>
    %318 = vector.broadcast %317 : f32 to vector<16x22xf32>
    %319 = arith.mulf %318, %312 : vector<16x22xf32>
    %320 = arith.addf %311, %319 : vector<16x22xf32>
    %321 = vector.extract_strided_slice %293 {offsets = [0, 3], sizes = [16, 22], strides = [1, 1]} : vector<16x28xf32> to vector<16x22xf32>
    %c31 = arith.constant 31 : index
    %322 = memref.load %arg2[%c31] : memref<147xf32, #tpu.memory_space<smem>>
    %323 = vector.broadcast %322 : f32 to vector<16x22xf32>
    %324 = arith.mulf %323, %321 : vector<16x22xf32>
    %325 = arith.addf %316, %324 : vector<16x22xf32>
    %c31_79 = arith.constant 31 : index
    %326 = memref.load %arg3[%c31_79] : memref<147xf32, #tpu.memory_space<smem>>
    %327 = vector.broadcast %326 : f32 to vector<16x22xf32>
    %328 = arith.mulf %327, %321 : vector<16x22xf32>
    %329 = arith.addf %320, %328 : vector<16x22xf32>
    %330 = vector.extract_strided_slice %293 {offsets = [0, 4], sizes = [16, 22], strides = [1, 1]} : vector<16x28xf32> to vector<16x22xf32>
    %c32 = arith.constant 32 : index
    %331 = memref.load %arg2[%c32] : memref<147xf32, #tpu.memory_space<smem>>
    %332 = vector.broadcast %331 : f32 to vector<16x22xf32>
    %333 = arith.mulf %332, %330 : vector<16x22xf32>
    %334 = arith.addf %325, %333 : vector<16x22xf32>
    %c32_80 = arith.constant 32 : index
    %335 = memref.load %arg3[%c32_80] : memref<147xf32, #tpu.memory_space<smem>>
    %336 = vector.broadcast %335 : f32 to vector<16x22xf32>
    %337 = arith.mulf %336, %330 : vector<16x22xf32>
    %338 = arith.addf %329, %337 : vector<16x22xf32>
    %339 = vector.extract_strided_slice %293 {offsets = [0, 5], sizes = [16, 22], strides = [1, 1]} : vector<16x28xf32> to vector<16x22xf32>
    %c33 = arith.constant 33 : index
    %340 = memref.load %arg2[%c33] : memref<147xf32, #tpu.memory_space<smem>>
    %341 = vector.broadcast %340 : f32 to vector<16x22xf32>
    %342 = arith.mulf %341, %339 : vector<16x22xf32>
    %343 = arith.addf %334, %342 : vector<16x22xf32>
    %c33_81 = arith.constant 33 : index
    %344 = memref.load %arg3[%c33_81] : memref<147xf32, #tpu.memory_space<smem>>
    %345 = vector.broadcast %344 : f32 to vector<16x22xf32>
    %346 = arith.mulf %345, %339 : vector<16x22xf32>
    %347 = arith.addf %338, %346 : vector<16x22xf32>
    %348 = vector.extract_strided_slice %293 {offsets = [0, 6], sizes = [16, 22], strides = [1, 1]} : vector<16x28xf32> to vector<16x22xf32>
    %c34 = arith.constant 34 : index
    %349 = memref.load %arg2[%c34] : memref<147xf32, #tpu.memory_space<smem>>
    %350 = vector.broadcast %349 : f32 to vector<16x22xf32>
    %351 = arith.mulf %350, %348 : vector<16x22xf32>
    %352 = arith.addf %343, %351 : vector<16x22xf32>
    %c34_82 = arith.constant 34 : index
    %353 = memref.load %arg3[%c34_82] : memref<147xf32, #tpu.memory_space<smem>>
    %354 = vector.broadcast %353 : f32 to vector<16x22xf32>
    %355 = arith.mulf %354, %348 : vector<16x22xf32>
    %356 = arith.addf %347, %355 : vector<16x22xf32>
    %c0_83 = arith.constant 0 : index
    %c5_84 = arith.constant 5 : index
    %c0_85 = arith.constant 0 : index
    %357 = vector.load %arg6[%c0_83, %c5_84, %c0_85] : memref<3x22x28xf32, #tpu.memory_space<vmem>>, vector<1x16x28xf32>
    %358 = vector.shape_cast %357 : vector<1x16x28xf32> to vector<16x28xf32>
    %359 = vector.extract_strided_slice %358 {offsets = [0, 0], sizes = [16, 22], strides = [1, 1]} : vector<16x28xf32> to vector<16x22xf32>
    %c35 = arith.constant 35 : index
    %360 = memref.load %arg2[%c35] : memref<147xf32, #tpu.memory_space<smem>>
    %361 = vector.broadcast %360 : f32 to vector<16x22xf32>
    %362 = arith.mulf %361, %359 : vector<16x22xf32>
    %363 = arith.addf %352, %362 : vector<16x22xf32>
    %c35_86 = arith.constant 35 : index
    %364 = memref.load %arg3[%c35_86] : memref<147xf32, #tpu.memory_space<smem>>
    %365 = vector.broadcast %364 : f32 to vector<16x22xf32>
    %366 = arith.mulf %365, %359 : vector<16x22xf32>
    %367 = arith.addf %356, %366 : vector<16x22xf32>
    %368 = vector.extract_strided_slice %358 {offsets = [0, 1], sizes = [16, 22], strides = [1, 1]} : vector<16x28xf32> to vector<16x22xf32>
    %c36 = arith.constant 36 : index
    %369 = memref.load %arg2[%c36] : memref<147xf32, #tpu.memory_space<smem>>
    %370 = vector.broadcast %369 : f32 to vector<16x22xf32>
    %371 = arith.mulf %370, %368 : vector<16x22xf32>
    %372 = arith.addf %363, %371 : vector<16x22xf32>
    %c36_87 = arith.constant 36 : index
    %373 = memref.load %arg3[%c36_87] : memref<147xf32, #tpu.memory_space<smem>>
    %374 = vector.broadcast %373 : f32 to vector<16x22xf32>
    %375 = arith.mulf %374, %368 : vector<16x22xf32>
    %376 = arith.addf %367, %375 : vector<16x22xf32>
    %377 = vector.extract_strided_slice %358 {offsets = [0, 2], sizes = [16, 22], strides = [1, 1]} : vector<16x28xf32> to vector<16x22xf32>
    %c37 = arith.constant 37 : index
    %378 = memref.load %arg2[%c37] : memref<147xf32, #tpu.memory_space<smem>>
    %379 = vector.broadcast %378 : f32 to vector<16x22xf32>
    %380 = arith.mulf %379, %377 : vector<16x22xf32>
    %381 = arith.addf %372, %380 : vector<16x22xf32>
    %c37_88 = arith.constant 37 : index
    %382 = memref.load %arg3[%c37_88] : memref<147xf32, #tpu.memory_space<smem>>
    %383 = vector.broadcast %382 : f32 to vector<16x22xf32>
    %384 = arith.mulf %383, %377 : vector<16x22xf32>
    %385 = arith.addf %376, %384 : vector<16x22xf32>
    %386 = vector.extract_strided_slice %358 {offsets = [0, 3], sizes = [16, 22], strides = [1, 1]} : vector<16x28xf32> to vector<16x22xf32>
    %c38 = arith.constant 38 : index
    %387 = memref.load %arg2[%c38] : memref<147xf32, #tpu.memory_space<smem>>
    %388 = vector.broadcast %387 : f32 to vector<16x22xf32>
    %389 = arith.mulf %388, %386 : vector<16x22xf32>
    %390 = arith.addf %381, %389 : vector<16x22xf32>
    %c38_89 = arith.constant 38 : index
    %391 = memref.load %arg3[%c38_89] : memref<147xf32, #tpu.memory_space<smem>>
    %392 = vector.broadcast %391 : f32 to vector<16x22xf32>
    %393 = arith.mulf %392, %386 : vector<16x22xf32>
    %394 = arith.addf %385, %393 : vector<16x22xf32>
    %395 = vector.extract_strided_slice %358 {offsets = [0, 4], sizes = [16, 22], strides = [1, 1]} : vector<16x28xf32> to vector<16x22xf32>
    %c39 = arith.constant 39 : index
    %396 = memref.load %arg2[%c39] : memref<147xf32, #tpu.memory_space<smem>>
    %397 = vector.broadcast %396 : f32 to vector<16x22xf32>
    %398 = arith.mulf %397, %395 : vector<16x22xf32>
    %399 = arith.addf %390, %398 : vector<16x22xf32>
    %c39_90 = arith.constant 39 : index
    %400 = memref.load %arg3[%c39_90] : memref<147xf32, #tpu.memory_space<smem>>
    %401 = vector.broadcast %400 : f32 to vector<16x22xf32>
    %402 = arith.mulf %401, %395 : vector<16x22xf32>
    %403 = arith.addf %394, %402 : vector<16x22xf32>
    %404 = vector.extract_strided_slice %358 {offsets = [0, 5], sizes = [16, 22], strides = [1, 1]} : vector<16x28xf32> to vector<16x22xf32>
    %c40 = arith.constant 40 : index
    %405 = memref.load %arg2[%c40] : memref<147xf32, #tpu.memory_space<smem>>
    %406 = vector.broadcast %405 : f32 to vector<16x22xf32>
    %407 = arith.mulf %406, %404 : vector<16x22xf32>
    %408 = arith.addf %399, %407 : vector<16x22xf32>
    %c40_91 = arith.constant 40 : index
    %409 = memref.load %arg3[%c40_91] : memref<147xf32, #tpu.memory_space<smem>>
    %410 = vector.broadcast %409 : f32 to vector<16x22xf32>
    %411 = arith.mulf %410, %404 : vector<16x22xf32>
    %412 = arith.addf %403, %411 : vector<16x22xf32>
    %413 = vector.extract_strided_slice %358 {offsets = [0, 6], sizes = [16, 22], strides = [1, 1]} : vector<16x28xf32> to vector<16x22xf32>
    %c41 = arith.constant 41 : index
    %414 = memref.load %arg2[%c41] : memref<147xf32, #tpu.memory_space<smem>>
    %415 = vector.broadcast %414 : f32 to vector<16x22xf32>
    %416 = arith.mulf %415, %413 : vector<16x22xf32>
    %417 = arith.addf %408, %416 : vector<16x22xf32>
    %c41_92 = arith.constant 41 : index
    %418 = memref.load %arg3[%c41_92] : memref<147xf32, #tpu.memory_space<smem>>
    %419 = vector.broadcast %418 : f32 to vector<16x22xf32>
    %420 = arith.mulf %419, %413 : vector<16x22xf32>
    %421 = arith.addf %412, %420 : vector<16x22xf32>
    %c0_93 = arith.constant 0 : index
    %c6_94 = arith.constant 6 : index
    %c0_95 = arith.constant 0 : index
    %422 = vector.load %arg6[%c0_93, %c6_94, %c0_95] : memref<3x22x28xf32, #tpu.memory_space<vmem>>, vector<1x16x28xf32>
    %423 = vector.shape_cast %422 : vector<1x16x28xf32> to vector<16x28xf32>
    %424 = vector.extract_strided_slice %423 {offsets = [0, 0], sizes = [16, 22], strides = [1, 1]} : vector<16x28xf32> to vector<16x22xf32>
    %c42 = arith.constant 42 : index
    %425 = memref.load %arg2[%c42] : memref<147xf32, #tpu.memory_space<smem>>
    %426 = vector.broadcast %425 : f32 to vector<16x22xf32>
    %427 = arith.mulf %426, %424 : vector<16x22xf32>
    %428 = arith.addf %417, %427 : vector<16x22xf32>
    %c42_96 = arith.constant 42 : index
    %429 = memref.load %arg3[%c42_96] : memref<147xf32, #tpu.memory_space<smem>>
    %430 = vector.broadcast %429 : f32 to vector<16x22xf32>
    %431 = arith.mulf %430, %424 : vector<16x22xf32>
    %432 = arith.addf %421, %431 : vector<16x22xf32>
    %433 = vector.extract_strided_slice %423 {offsets = [0, 1], sizes = [16, 22], strides = [1, 1]} : vector<16x28xf32> to vector<16x22xf32>
    %c43 = arith.constant 43 : index
    %434 = memref.load %arg2[%c43] : memref<147xf32, #tpu.memory_space<smem>>
    %435 = vector.broadcast %434 : f32 to vector<16x22xf32>
    %436 = arith.mulf %435, %433 : vector<16x22xf32>
    %437 = arith.addf %428, %436 : vector<16x22xf32>
    %c43_97 = arith.constant 43 : index
    %438 = memref.load %arg3[%c43_97] : memref<147xf32, #tpu.memory_space<smem>>
    %439 = vector.broadcast %438 : f32 to vector<16x22xf32>
    %440 = arith.mulf %439, %433 : vector<16x22xf32>
    %441 = arith.addf %432, %440 : vector<16x22xf32>
    %442 = vector.extract_strided_slice %423 {offsets = [0, 2], sizes = [16, 22], strides = [1, 1]} : vector<16x28xf32> to vector<16x22xf32>
    %c44 = arith.constant 44 : index
    %443 = memref.load %arg2[%c44] : memref<147xf32, #tpu.memory_space<smem>>
    %444 = vector.broadcast %443 : f32 to vector<16x22xf32>
    %445 = arith.mulf %444, %442 : vector<16x22xf32>
    %446 = arith.addf %437, %445 : vector<16x22xf32>
    %c44_98 = arith.constant 44 : index
    %447 = memref.load %arg3[%c44_98] : memref<147xf32, #tpu.memory_space<smem>>
    %448 = vector.broadcast %447 : f32 to vector<16x22xf32>
    %449 = arith.mulf %448, %442 : vector<16x22xf32>
    %450 = arith.addf %441, %449 : vector<16x22xf32>
    %451 = vector.extract_strided_slice %423 {offsets = [0, 3], sizes = [16, 22], strides = [1, 1]} : vector<16x28xf32> to vector<16x22xf32>
    %c45 = arith.constant 45 : index
    %452 = memref.load %arg2[%c45] : memref<147xf32, #tpu.memory_space<smem>>
    %453 = vector.broadcast %452 : f32 to vector<16x22xf32>
    %454 = arith.mulf %453, %451 : vector<16x22xf32>
    %455 = arith.addf %446, %454 : vector<16x22xf32>
    %c45_99 = arith.constant 45 : index
    %456 = memref.load %arg3[%c45_99] : memref<147xf32, #tpu.memory_space<smem>>
    %457 = vector.broadcast %456 : f32 to vector<16x22xf32>
    %458 = arith.mulf %457, %451 : vector<16x22xf32>
    %459 = arith.addf %450, %458 : vector<16x22xf32>
    %460 = vector.extract_strided_slice %423 {offsets = [0, 4], sizes = [16, 22], strides = [1, 1]} : vector<16x28xf32> to vector<16x22xf32>
    %c46 = arith.constant 46 : index
    %461 = memref.load %arg2[%c46] : memref<147xf32, #tpu.memory_space<smem>>
    %462 = vector.broadcast %461 : f32 to vector<16x22xf32>
    %463 = arith.mulf %462, %460 : vector<16x22xf32>
    %464 = arith.addf %455, %463 : vector<16x22xf32>
    %c46_100 = arith.constant 46 : index
    %465 = memref.load %arg3[%c46_100] : memref<147xf32, #tpu.memory_space<smem>>
    %466 = vector.broadcast %465 : f32 to vector<16x22xf32>
    %467 = arith.mulf %466, %460 : vector<16x22xf32>
    %468 = arith.addf %459, %467 : vector<16x22xf32>
    %469 = vector.extract_strided_slice %423 {offsets = [0, 5], sizes = [16, 22], strides = [1, 1]} : vector<16x28xf32> to vector<16x22xf32>
    %c47 = arith.constant 47 : index
    %470 = memref.load %arg2[%c47] : memref<147xf32, #tpu.memory_space<smem>>
    %471 = vector.broadcast %470 : f32 to vector<16x22xf32>
    %472 = arith.mulf %471, %469 : vector<16x22xf32>
    %473 = arith.addf %464, %472 : vector<16x22xf32>
    %c47_101 = arith.constant 47 : index
    %474 = memref.load %arg3[%c47_101] : memref<147xf32, #tpu.memory_space<smem>>
    %475 = vector.broadcast %474 : f32 to vector<16x22xf32>
    %476 = arith.mulf %475, %469 : vector<16x22xf32>
    %477 = arith.addf %468, %476 : vector<16x22xf32>
    %478 = vector.extract_strided_slice %423 {offsets = [0, 6], sizes = [16, 22], strides = [1, 1]} : vector<16x28xf32> to vector<16x22xf32>
    %c48 = arith.constant 48 : index
    %479 = memref.load %arg2[%c48] : memref<147xf32, #tpu.memory_space<smem>>
    %480 = vector.broadcast %479 : f32 to vector<16x22xf32>
    %481 = arith.mulf %480, %478 : vector<16x22xf32>
    %482 = arith.addf %473, %481 : vector<16x22xf32>
    %c48_102 = arith.constant 48 : index
    %483 = memref.load %arg3[%c48_102] : memref<147xf32, #tpu.memory_space<smem>>
    %484 = vector.broadcast %483 : f32 to vector<16x22xf32>
    %485 = arith.mulf %484, %478 : vector<16x22xf32>
    %486 = arith.addf %477, %485 : vector<16x22xf32>
    %c1_103 = arith.constant 1 : index
    %c0_104 = arith.constant 0 : index
    %c0_105 = arith.constant 0 : index
    %487 = vector.load %arg6[%c1_103, %c0_104, %c0_105] : memref<3x22x28xf32, #tpu.memory_space<vmem>>, vector<1x16x28xf32>
    %488 = vector.shape_cast %487 : vector<1x16x28xf32> to vector<16x28xf32>
    %489 = vector.extract_strided_slice %488 {offsets = [0, 0], sizes = [16, 22], strides = [1, 1]} : vector<16x28xf32> to vector<16x22xf32>
    %c49 = arith.constant 49 : index
    %490 = memref.load %arg2[%c49] : memref<147xf32, #tpu.memory_space<smem>>
    %491 = vector.broadcast %490 : f32 to vector<16x22xf32>
    %492 = arith.mulf %491, %489 : vector<16x22xf32>
    %493 = arith.addf %482, %492 : vector<16x22xf32>
    %c49_106 = arith.constant 49 : index
    %494 = memref.load %arg3[%c49_106] : memref<147xf32, #tpu.memory_space<smem>>
    %495 = vector.broadcast %494 : f32 to vector<16x22xf32>
    %496 = arith.mulf %495, %489 : vector<16x22xf32>
    %497 = arith.addf %486, %496 : vector<16x22xf32>
    %498 = vector.extract_strided_slice %488 {offsets = [0, 1], sizes = [16, 22], strides = [1, 1]} : vector<16x28xf32> to vector<16x22xf32>
    %c50 = arith.constant 50 : index
    %499 = memref.load %arg2[%c50] : memref<147xf32, #tpu.memory_space<smem>>
    %500 = vector.broadcast %499 : f32 to vector<16x22xf32>
    %501 = arith.mulf %500, %498 : vector<16x22xf32>
    %502 = arith.addf %493, %501 : vector<16x22xf32>
    %c50_107 = arith.constant 50 : index
    %503 = memref.load %arg3[%c50_107] : memref<147xf32, #tpu.memory_space<smem>>
    %504 = vector.broadcast %503 : f32 to vector<16x22xf32>
    %505 = arith.mulf %504, %498 : vector<16x22xf32>
    %506 = arith.addf %497, %505 : vector<16x22xf32>
    %507 = vector.extract_strided_slice %488 {offsets = [0, 2], sizes = [16, 22], strides = [1, 1]} : vector<16x28xf32> to vector<16x22xf32>
    %c51 = arith.constant 51 : index
    %508 = memref.load %arg2[%c51] : memref<147xf32, #tpu.memory_space<smem>>
    %509 = vector.broadcast %508 : f32 to vector<16x22xf32>
    %510 = arith.mulf %509, %507 : vector<16x22xf32>
    %511 = arith.addf %502, %510 : vector<16x22xf32>
    %c51_108 = arith.constant 51 : index
    %512 = memref.load %arg3[%c51_108] : memref<147xf32, #tpu.memory_space<smem>>
    %513 = vector.broadcast %512 : f32 to vector<16x22xf32>
    %514 = arith.mulf %513, %507 : vector<16x22xf32>
    %515 = arith.addf %506, %514 : vector<16x22xf32>
    %516 = vector.extract_strided_slice %488 {offsets = [0, 3], sizes = [16, 22], strides = [1, 1]} : vector<16x28xf32> to vector<16x22xf32>
    %c52 = arith.constant 52 : index
    %517 = memref.load %arg2[%c52] : memref<147xf32, #tpu.memory_space<smem>>
    %518 = vector.broadcast %517 : f32 to vector<16x22xf32>
    %519 = arith.mulf %518, %516 : vector<16x22xf32>
    %520 = arith.addf %511, %519 : vector<16x22xf32>
    %c52_109 = arith.constant 52 : index
    %521 = memref.load %arg3[%c52_109] : memref<147xf32, #tpu.memory_space<smem>>
    %522 = vector.broadcast %521 : f32 to vector<16x22xf32>
    %523 = arith.mulf %522, %516 : vector<16x22xf32>
    %524 = arith.addf %515, %523 : vector<16x22xf32>
    %525 = vector.extract_strided_slice %488 {offsets = [0, 4], sizes = [16, 22], strides = [1, 1]} : vector<16x28xf32> to vector<16x22xf32>
    %c53 = arith.constant 53 : index
    %526 = memref.load %arg2[%c53] : memref<147xf32, #tpu.memory_space<smem>>
    %527 = vector.broadcast %526 : f32 to vector<16x22xf32>
    %528 = arith.mulf %527, %525 : vector<16x22xf32>
    %529 = arith.addf %520, %528 : vector<16x22xf32>
    %c53_110 = arith.constant 53 : index
    %530 = memref.load %arg3[%c53_110] : memref<147xf32, #tpu.memory_space<smem>>
    %531 = vector.broadcast %530 : f32 to vector<16x22xf32>
    %532 = arith.mulf %531, %525 : vector<16x22xf32>
    %533 = arith.addf %524, %532 : vector<16x22xf32>
    %534 = vector.extract_strided_slice %488 {offsets = [0, 5], sizes = [16, 22], strides = [1, 1]} : vector<16x28xf32> to vector<16x22xf32>
    %c54 = arith.constant 54 : index
    %535 = memref.load %arg2[%c54] : memref<147xf32, #tpu.memory_space<smem>>
    %536 = vector.broadcast %535 : f32 to vector<16x22xf32>
    %537 = arith.mulf %536, %534 : vector<16x22xf32>
    %538 = arith.addf %529, %537 : vector<16x22xf32>
    %c54_111 = arith.constant 54 : index
    %539 = memref.load %arg3[%c54_111] : memref<147xf32, #tpu.memory_space<smem>>
    %540 = vector.broadcast %539 : f32 to vector<16x22xf32>
    %541 = arith.mulf %540, %534 : vector<16x22xf32>
    %542 = arith.addf %533, %541 : vector<16x22xf32>
    %543 = vector.extract_strided_slice %488 {offsets = [0, 6], sizes = [16, 22], strides = [1, 1]} : vector<16x28xf32> to vector<16x22xf32>
    %c55 = arith.constant 55 : index
    %544 = memref.load %arg2[%c55] : memref<147xf32, #tpu.memory_space<smem>>
    %545 = vector.broadcast %544 : f32 to vector<16x22xf32>
    %546 = arith.mulf %545, %543 : vector<16x22xf32>
    %547 = arith.addf %538, %546 : vector<16x22xf32>
    %c55_112 = arith.constant 55 : index
    %548 = memref.load %arg3[%c55_112] : memref<147xf32, #tpu.memory_space<smem>>
    %549 = vector.broadcast %548 : f32 to vector<16x22xf32>
    %550 = arith.mulf %549, %543 : vector<16x22xf32>
    %551 = arith.addf %542, %550 : vector<16x22xf32>
    %c1_113 = arith.constant 1 : index
    %c1_114 = arith.constant 1 : index
    %c0_115 = arith.constant 0 : index
    %552 = vector.load %arg6[%c1_113, %c1_114, %c0_115] : memref<3x22x28xf32, #tpu.memory_space<vmem>>, vector<1x16x28xf32>
    %553 = vector.shape_cast %552 : vector<1x16x28xf32> to vector<16x28xf32>
    %554 = vector.extract_strided_slice %553 {offsets = [0, 0], sizes = [16, 22], strides = [1, 1]} : vector<16x28xf32> to vector<16x22xf32>
    %c56 = arith.constant 56 : index
    %555 = memref.load %arg2[%c56] : memref<147xf32, #tpu.memory_space<smem>>
    %556 = vector.broadcast %555 : f32 to vector<16x22xf32>
    %557 = arith.mulf %556, %554 : vector<16x22xf32>
    %558 = arith.addf %547, %557 : vector<16x22xf32>
    %c56_116 = arith.constant 56 : index
    %559 = memref.load %arg3[%c56_116] : memref<147xf32, #tpu.memory_space<smem>>
    %560 = vector.broadcast %559 : f32 to vector<16x22xf32>
    %561 = arith.mulf %560, %554 : vector<16x22xf32>
    %562 = arith.addf %551, %561 : vector<16x22xf32>
    %563 = vector.extract_strided_slice %553 {offsets = [0, 1], sizes = [16, 22], strides = [1, 1]} : vector<16x28xf32> to vector<16x22xf32>
    %c57 = arith.constant 57 : index
    %564 = memref.load %arg2[%c57] : memref<147xf32, #tpu.memory_space<smem>>
    %565 = vector.broadcast %564 : f32 to vector<16x22xf32>
    %566 = arith.mulf %565, %563 : vector<16x22xf32>
    %567 = arith.addf %558, %566 : vector<16x22xf32>
    %c57_117 = arith.constant 57 : index
    %568 = memref.load %arg3[%c57_117] : memref<147xf32, #tpu.memory_space<smem>>
    %569 = vector.broadcast %568 : f32 to vector<16x22xf32>
    %570 = arith.mulf %569, %563 : vector<16x22xf32>
    %571 = arith.addf %562, %570 : vector<16x22xf32>
    %572 = vector.extract_strided_slice %553 {offsets = [0, 2], sizes = [16, 22], strides = [1, 1]} : vector<16x28xf32> to vector<16x22xf32>
    %c58 = arith.constant 58 : index
    %573 = memref.load %arg2[%c58] : memref<147xf32, #tpu.memory_space<smem>>
    %574 = vector.broadcast %573 : f32 to vector<16x22xf32>
    %575 = arith.mulf %574, %572 : vector<16x22xf32>
    %576 = arith.addf %567, %575 : vector<16x22xf32>
    %c58_118 = arith.constant 58 : index
    %577 = memref.load %arg3[%c58_118] : memref<147xf32, #tpu.memory_space<smem>>
    %578 = vector.broadcast %577 : f32 to vector<16x22xf32>
    %579 = arith.mulf %578, %572 : vector<16x22xf32>
    %580 = arith.addf %571, %579 : vector<16x22xf32>
    %581 = vector.extract_strided_slice %553 {offsets = [0, 3], sizes = [16, 22], strides = [1, 1]} : vector<16x28xf32> to vector<16x22xf32>
    %c59 = arith.constant 59 : index
    %582 = memref.load %arg2[%c59] : memref<147xf32, #tpu.memory_space<smem>>
    %583 = vector.broadcast %582 : f32 to vector<16x22xf32>
    %584 = arith.mulf %583, %581 : vector<16x22xf32>
    %585 = arith.addf %576, %584 : vector<16x22xf32>
    %c59_119 = arith.constant 59 : index
    %586 = memref.load %arg3[%c59_119] : memref<147xf32, #tpu.memory_space<smem>>
    %587 = vector.broadcast %586 : f32 to vector<16x22xf32>
    %588 = arith.mulf %587, %581 : vector<16x22xf32>
    %589 = arith.addf %580, %588 : vector<16x22xf32>
    %590 = vector.extract_strided_slice %553 {offsets = [0, 4], sizes = [16, 22], strides = [1, 1]} : vector<16x28xf32> to vector<16x22xf32>
    %c60 = arith.constant 60 : index
    %591 = memref.load %arg2[%c60] : memref<147xf32, #tpu.memory_space<smem>>
    %592 = vector.broadcast %591 : f32 to vector<16x22xf32>
    %593 = arith.mulf %592, %590 : vector<16x22xf32>
    %594 = arith.addf %585, %593 : vector<16x22xf32>
    %c60_120 = arith.constant 60 : index
    %595 = memref.load %arg3[%c60_120] : memref<147xf32, #tpu.memory_space<smem>>
    %596 = vector.broadcast %595 : f32 to vector<16x22xf32>
    %597 = arith.mulf %596, %590 : vector<16x22xf32>
    %598 = arith.addf %589, %597 : vector<16x22xf32>
    %599 = vector.extract_strided_slice %553 {offsets = [0, 5], sizes = [16, 22], strides = [1, 1]} : vector<16x28xf32> to vector<16x22xf32>
    %c61 = arith.constant 61 : index
    %600 = memref.load %arg2[%c61] : memref<147xf32, #tpu.memory_space<smem>>
    %601 = vector.broadcast %600 : f32 to vector<16x22xf32>
    %602 = arith.mulf %601, %599 : vector<16x22xf32>
    %603 = arith.addf %594, %602 : vector<16x22xf32>
    %c61_121 = arith.constant 61 : index
    %604 = memref.load %arg3[%c61_121] : memref<147xf32, #tpu.memory_space<smem>>
    %605 = vector.broadcast %604 : f32 to vector<16x22xf32>
    %606 = arith.mulf %605, %599 : vector<16x22xf32>
    %607 = arith.addf %598, %606 : vector<16x22xf32>
    %608 = vector.extract_strided_slice %553 {offsets = [0, 6], sizes = [16, 22], strides = [1, 1]} : vector<16x28xf32> to vector<16x22xf32>
    %c62 = arith.constant 62 : index
    %609 = memref.load %arg2[%c62] : memref<147xf32, #tpu.memory_space<smem>>
    %610 = vector.broadcast %609 : f32 to vector<16x22xf32>
    %611 = arith.mulf %610, %608 : vector<16x22xf32>
    %612 = arith.addf %603, %611 : vector<16x22xf32>
    %c62_122 = arith.constant 62 : index
    %613 = memref.load %arg3[%c62_122] : memref<147xf32, #tpu.memory_space<smem>>
    %614 = vector.broadcast %613 : f32 to vector<16x22xf32>
    %615 = arith.mulf %614, %608 : vector<16x22xf32>
    %616 = arith.addf %607, %615 : vector<16x22xf32>
    %c1_123 = arith.constant 1 : index
    %c2_124 = arith.constant 2 : index
    %c0_125 = arith.constant 0 : index
    %617 = vector.load %arg6[%c1_123, %c2_124, %c0_125] : memref<3x22x28xf32, #tpu.memory_space<vmem>>, vector<1x16x28xf32>
    %618 = vector.shape_cast %617 : vector<1x16x28xf32> to vector<16x28xf32>
    %619 = vector.extract_strided_slice %618 {offsets = [0, 0], sizes = [16, 22], strides = [1, 1]} : vector<16x28xf32> to vector<16x22xf32>
    %c63 = arith.constant 63 : index
    %620 = memref.load %arg2[%c63] : memref<147xf32, #tpu.memory_space<smem>>
    %621 = vector.broadcast %620 : f32 to vector<16x22xf32>
    %622 = arith.mulf %621, %619 : vector<16x22xf32>
    %623 = arith.addf %612, %622 : vector<16x22xf32>
    %c63_126 = arith.constant 63 : index
    %624 = memref.load %arg3[%c63_126] : memref<147xf32, #tpu.memory_space<smem>>
    %625 = vector.broadcast %624 : f32 to vector<16x22xf32>
    %626 = arith.mulf %625, %619 : vector<16x22xf32>
    %627 = arith.addf %616, %626 : vector<16x22xf32>
    %628 = vector.extract_strided_slice %618 {offsets = [0, 1], sizes = [16, 22], strides = [1, 1]} : vector<16x28xf32> to vector<16x22xf32>
    %c64 = arith.constant 64 : index
    %629 = memref.load %arg2[%c64] : memref<147xf32, #tpu.memory_space<smem>>
    %630 = vector.broadcast %629 : f32 to vector<16x22xf32>
    %631 = arith.mulf %630, %628 : vector<16x22xf32>
    %632 = arith.addf %623, %631 : vector<16x22xf32>
    %c64_127 = arith.constant 64 : index
    %633 = memref.load %arg3[%c64_127] : memref<147xf32, #tpu.memory_space<smem>>
    %634 = vector.broadcast %633 : f32 to vector<16x22xf32>
    %635 = arith.mulf %634, %628 : vector<16x22xf32>
    %636 = arith.addf %627, %635 : vector<16x22xf32>
    %637 = vector.extract_strided_slice %618 {offsets = [0, 2], sizes = [16, 22], strides = [1, 1]} : vector<16x28xf32> to vector<16x22xf32>
    %c65 = arith.constant 65 : index
    %638 = memref.load %arg2[%c65] : memref<147xf32, #tpu.memory_space<smem>>
    %639 = vector.broadcast %638 : f32 to vector<16x22xf32>
    %640 = arith.mulf %639, %637 : vector<16x22xf32>
    %641 = arith.addf %632, %640 : vector<16x22xf32>
    %c65_128 = arith.constant 65 : index
    %642 = memref.load %arg3[%c65_128] : memref<147xf32, #tpu.memory_space<smem>>
    %643 = vector.broadcast %642 : f32 to vector<16x22xf32>
    %644 = arith.mulf %643, %637 : vector<16x22xf32>
    %645 = arith.addf %636, %644 : vector<16x22xf32>
    %646 = vector.extract_strided_slice %618 {offsets = [0, 3], sizes = [16, 22], strides = [1, 1]} : vector<16x28xf32> to vector<16x22xf32>
    %c66 = arith.constant 66 : index
    %647 = memref.load %arg2[%c66] : memref<147xf32, #tpu.memory_space<smem>>
    %648 = vector.broadcast %647 : f32 to vector<16x22xf32>
    %649 = arith.mulf %648, %646 : vector<16x22xf32>
    %650 = arith.addf %641, %649 : vector<16x22xf32>
    %c66_129 = arith.constant 66 : index
    %651 = memref.load %arg3[%c66_129] : memref<147xf32, #tpu.memory_space<smem>>
    %652 = vector.broadcast %651 : f32 to vector<16x22xf32>
    %653 = arith.mulf %652, %646 : vector<16x22xf32>
    %654 = arith.addf %645, %653 : vector<16x22xf32>
    %655 = vector.extract_strided_slice %618 {offsets = [0, 4], sizes = [16, 22], strides = [1, 1]} : vector<16x28xf32> to vector<16x22xf32>
    %c67 = arith.constant 67 : index
    %656 = memref.load %arg2[%c67] : memref<147xf32, #tpu.memory_space<smem>>
    %657 = vector.broadcast %656 : f32 to vector<16x22xf32>
    %658 = arith.mulf %657, %655 : vector<16x22xf32>
    %659 = arith.addf %650, %658 : vector<16x22xf32>
    %c67_130 = arith.constant 67 : index
    %660 = memref.load %arg3[%c67_130] : memref<147xf32, #tpu.memory_space<smem>>
    %661 = vector.broadcast %660 : f32 to vector<16x22xf32>
    %662 = arith.mulf %661, %655 : vector<16x22xf32>
    %663 = arith.addf %654, %662 : vector<16x22xf32>
    %664 = vector.extract_strided_slice %618 {offsets = [0, 5], sizes = [16, 22], strides = [1, 1]} : vector<16x28xf32> to vector<16x22xf32>
    %c68 = arith.constant 68 : index
    %665 = memref.load %arg2[%c68] : memref<147xf32, #tpu.memory_space<smem>>
    %666 = vector.broadcast %665 : f32 to vector<16x22xf32>
    %667 = arith.mulf %666, %664 : vector<16x22xf32>
    %668 = arith.addf %659, %667 : vector<16x22xf32>
    %c68_131 = arith.constant 68 : index
    %669 = memref.load %arg3[%c68_131] : memref<147xf32, #tpu.memory_space<smem>>
    %670 = vector.broadcast %669 : f32 to vector<16x22xf32>
    %671 = arith.mulf %670, %664 : vector<16x22xf32>
    %672 = arith.addf %663, %671 : vector<16x22xf32>
    %673 = vector.extract_strided_slice %618 {offsets = [0, 6], sizes = [16, 22], strides = [1, 1]} : vector<16x28xf32> to vector<16x22xf32>
    %c69 = arith.constant 69 : index
    %674 = memref.load %arg2[%c69] : memref<147xf32, #tpu.memory_space<smem>>
    %675 = vector.broadcast %674 : f32 to vector<16x22xf32>
    %676 = arith.mulf %675, %673 : vector<16x22xf32>
    %677 = arith.addf %668, %676 : vector<16x22xf32>
    %c69_132 = arith.constant 69 : index
    %678 = memref.load %arg3[%c69_132] : memref<147xf32, #tpu.memory_space<smem>>
    %679 = vector.broadcast %678 : f32 to vector<16x22xf32>
    %680 = arith.mulf %679, %673 : vector<16x22xf32>
    %681 = arith.addf %672, %680 : vector<16x22xf32>
    %c1_133 = arith.constant 1 : index
    %c3_134 = arith.constant 3 : index
    %c0_135 = arith.constant 0 : index
    %682 = vector.load %arg6[%c1_133, %c3_134, %c0_135] : memref<3x22x28xf32, #tpu.memory_space<vmem>>, vector<1x16x28xf32>
    %683 = vector.shape_cast %682 : vector<1x16x28xf32> to vector<16x28xf32>
    %684 = vector.extract_strided_slice %683 {offsets = [0, 0], sizes = [16, 22], strides = [1, 1]} : vector<16x28xf32> to vector<16x22xf32>
    %c70 = arith.constant 70 : index
    %685 = memref.load %arg2[%c70] : memref<147xf32, #tpu.memory_space<smem>>
    %686 = vector.broadcast %685 : f32 to vector<16x22xf32>
    %687 = arith.mulf %686, %684 : vector<16x22xf32>
    %688 = arith.addf %677, %687 : vector<16x22xf32>
    %c70_136 = arith.constant 70 : index
    %689 = memref.load %arg3[%c70_136] : memref<147xf32, #tpu.memory_space<smem>>
    %690 = vector.broadcast %689 : f32 to vector<16x22xf32>
    %691 = arith.mulf %690, %684 : vector<16x22xf32>
    %692 = arith.addf %681, %691 : vector<16x22xf32>
    %693 = vector.extract_strided_slice %683 {offsets = [0, 1], sizes = [16, 22], strides = [1, 1]} : vector<16x28xf32> to vector<16x22xf32>
    %c71 = arith.constant 71 : index
    %694 = memref.load %arg2[%c71] : memref<147xf32, #tpu.memory_space<smem>>
    %695 = vector.broadcast %694 : f32 to vector<16x22xf32>
    %696 = arith.mulf %695, %693 : vector<16x22xf32>
    %697 = arith.addf %688, %696 : vector<16x22xf32>
    %c71_137 = arith.constant 71 : index
    %698 = memref.load %arg3[%c71_137] : memref<147xf32, #tpu.memory_space<smem>>
    %699 = vector.broadcast %698 : f32 to vector<16x22xf32>
    %700 = arith.mulf %699, %693 : vector<16x22xf32>
    %701 = arith.addf %692, %700 : vector<16x22xf32>
    %702 = vector.extract_strided_slice %683 {offsets = [0, 2], sizes = [16, 22], strides = [1, 1]} : vector<16x28xf32> to vector<16x22xf32>
    %c72 = arith.constant 72 : index
    %703 = memref.load %arg2[%c72] : memref<147xf32, #tpu.memory_space<smem>>
    %704 = vector.broadcast %703 : f32 to vector<16x22xf32>
    %705 = arith.mulf %704, %702 : vector<16x22xf32>
    %706 = arith.addf %697, %705 : vector<16x22xf32>
    %c72_138 = arith.constant 72 : index
    %707 = memref.load %arg3[%c72_138] : memref<147xf32, #tpu.memory_space<smem>>
    %708 = vector.broadcast %707 : f32 to vector<16x22xf32>
    %709 = arith.mulf %708, %702 : vector<16x22xf32>
    %710 = arith.addf %701, %709 : vector<16x22xf32>
    %711 = vector.extract_strided_slice %683 {offsets = [0, 3], sizes = [16, 22], strides = [1, 1]} : vector<16x28xf32> to vector<16x22xf32>
    %c73 = arith.constant 73 : index
    %712 = memref.load %arg2[%c73] : memref<147xf32, #tpu.memory_space<smem>>
    %713 = vector.broadcast %712 : f32 to vector<16x22xf32>
    %714 = arith.mulf %713, %711 : vector<16x22xf32>
    %715 = arith.addf %706, %714 : vector<16x22xf32>
    %c73_139 = arith.constant 73 : index
    %716 = memref.load %arg3[%c73_139] : memref<147xf32, #tpu.memory_space<smem>>
    %717 = vector.broadcast %716 : f32 to vector<16x22xf32>
    %718 = arith.mulf %717, %711 : vector<16x22xf32>
    %719 = arith.addf %710, %718 : vector<16x22xf32>
    %720 = vector.extract_strided_slice %683 {offsets = [0, 4], sizes = [16, 22], strides = [1, 1]} : vector<16x28xf32> to vector<16x22xf32>
    %c74 = arith.constant 74 : index
    %721 = memref.load %arg2[%c74] : memref<147xf32, #tpu.memory_space<smem>>
    %722 = vector.broadcast %721 : f32 to vector<16x22xf32>
    %723 = arith.mulf %722, %720 : vector<16x22xf32>
    %724 = arith.addf %715, %723 : vector<16x22xf32>
    %c74_140 = arith.constant 74 : index
    %725 = memref.load %arg3[%c74_140] : memref<147xf32, #tpu.memory_space<smem>>
    %726 = vector.broadcast %725 : f32 to vector<16x22xf32>
    %727 = arith.mulf %726, %720 : vector<16x22xf32>
    %728 = arith.addf %719, %727 : vector<16x22xf32>
    %729 = vector.extract_strided_slice %683 {offsets = [0, 5], sizes = [16, 22], strides = [1, 1]} : vector<16x28xf32> to vector<16x22xf32>
    %c75 = arith.constant 75 : index
    %730 = memref.load %arg2[%c75] : memref<147xf32, #tpu.memory_space<smem>>
    %731 = vector.broadcast %730 : f32 to vector<16x22xf32>
    %732 = arith.mulf %731, %729 : vector<16x22xf32>
    %733 = arith.addf %724, %732 : vector<16x22xf32>
    %c75_141 = arith.constant 75 : index
    %734 = memref.load %arg3[%c75_141] : memref<147xf32, #tpu.memory_space<smem>>
    %735 = vector.broadcast %734 : f32 to vector<16x22xf32>
    %736 = arith.mulf %735, %729 : vector<16x22xf32>
    %737 = arith.addf %728, %736 : vector<16x22xf32>
    %738 = vector.extract_strided_slice %683 {offsets = [0, 6], sizes = [16, 22], strides = [1, 1]} : vector<16x28xf32> to vector<16x22xf32>
    %c76 = arith.constant 76 : index
    %739 = memref.load %arg2[%c76] : memref<147xf32, #tpu.memory_space<smem>>
    %740 = vector.broadcast %739 : f32 to vector<16x22xf32>
    %741 = arith.mulf %740, %738 : vector<16x22xf32>
    %742 = arith.addf %733, %741 : vector<16x22xf32>
    %c76_142 = arith.constant 76 : index
    %743 = memref.load %arg3[%c76_142] : memref<147xf32, #tpu.memory_space<smem>>
    %744 = vector.broadcast %743 : f32 to vector<16x22xf32>
    %745 = arith.mulf %744, %738 : vector<16x22xf32>
    %746 = arith.addf %737, %745 : vector<16x22xf32>
    %c1_143 = arith.constant 1 : index
    %c4_144 = arith.constant 4 : index
    %c0_145 = arith.constant 0 : index
    %747 = vector.load %arg6[%c1_143, %c4_144, %c0_145] : memref<3x22x28xf32, #tpu.memory_space<vmem>>, vector<1x16x28xf32>
    %748 = vector.shape_cast %747 : vector<1x16x28xf32> to vector<16x28xf32>
    %749 = vector.extract_strided_slice %748 {offsets = [0, 0], sizes = [16, 22], strides = [1, 1]} : vector<16x28xf32> to vector<16x22xf32>
    %c77 = arith.constant 77 : index
    %750 = memref.load %arg2[%c77] : memref<147xf32, #tpu.memory_space<smem>>
    %751 = vector.broadcast %750 : f32 to vector<16x22xf32>
    %752 = arith.mulf %751, %749 : vector<16x22xf32>
    %753 = arith.addf %742, %752 : vector<16x22xf32>
    %c77_146 = arith.constant 77 : index
    %754 = memref.load %arg3[%c77_146] : memref<147xf32, #tpu.memory_space<smem>>
    %755 = vector.broadcast %754 : f32 to vector<16x22xf32>
    %756 = arith.mulf %755, %749 : vector<16x22xf32>
    %757 = arith.addf %746, %756 : vector<16x22xf32>
    %758 = vector.extract_strided_slice %748 {offsets = [0, 1], sizes = [16, 22], strides = [1, 1]} : vector<16x28xf32> to vector<16x22xf32>
    %c78 = arith.constant 78 : index
    %759 = memref.load %arg2[%c78] : memref<147xf32, #tpu.memory_space<smem>>
    %760 = vector.broadcast %759 : f32 to vector<16x22xf32>
    %761 = arith.mulf %760, %758 : vector<16x22xf32>
    %762 = arith.addf %753, %761 : vector<16x22xf32>
    %c78_147 = arith.constant 78 : index
    %763 = memref.load %arg3[%c78_147] : memref<147xf32, #tpu.memory_space<smem>>
    %764 = vector.broadcast %763 : f32 to vector<16x22xf32>
    %765 = arith.mulf %764, %758 : vector<16x22xf32>
    %766 = arith.addf %757, %765 : vector<16x22xf32>
    %767 = vector.extract_strided_slice %748 {offsets = [0, 2], sizes = [16, 22], strides = [1, 1]} : vector<16x28xf32> to vector<16x22xf32>
    %c79 = arith.constant 79 : index
    %768 = memref.load %arg2[%c79] : memref<147xf32, #tpu.memory_space<smem>>
    %769 = vector.broadcast %768 : f32 to vector<16x22xf32>
    %770 = arith.mulf %769, %767 : vector<16x22xf32>
    %771 = arith.addf %762, %770 : vector<16x22xf32>
    %c79_148 = arith.constant 79 : index
    %772 = memref.load %arg3[%c79_148] : memref<147xf32, #tpu.memory_space<smem>>
    %773 = vector.broadcast %772 : f32 to vector<16x22xf32>
    %774 = arith.mulf %773, %767 : vector<16x22xf32>
    %775 = arith.addf %766, %774 : vector<16x22xf32>
    %776 = vector.extract_strided_slice %748 {offsets = [0, 3], sizes = [16, 22], strides = [1, 1]} : vector<16x28xf32> to vector<16x22xf32>
    %c80 = arith.constant 80 : index
    %777 = memref.load %arg2[%c80] : memref<147xf32, #tpu.memory_space<smem>>
    %778 = vector.broadcast %777 : f32 to vector<16x22xf32>
    %779 = arith.mulf %778, %776 : vector<16x22xf32>
    %780 = arith.addf %771, %779 : vector<16x22xf32>
    %c80_149 = arith.constant 80 : index
    %781 = memref.load %arg3[%c80_149] : memref<147xf32, #tpu.memory_space<smem>>
    %782 = vector.broadcast %781 : f32 to vector<16x22xf32>
    %783 = arith.mulf %782, %776 : vector<16x22xf32>
    %784 = arith.addf %775, %783 : vector<16x22xf32>
    %785 = vector.extract_strided_slice %748 {offsets = [0, 4], sizes = [16, 22], strides = [1, 1]} : vector<16x28xf32> to vector<16x22xf32>
    %c81 = arith.constant 81 : index
    %786 = memref.load %arg2[%c81] : memref<147xf32, #tpu.memory_space<smem>>
    %787 = vector.broadcast %786 : f32 to vector<16x22xf32>
    %788 = arith.mulf %787, %785 : vector<16x22xf32>
    %789 = arith.addf %780, %788 : vector<16x22xf32>
    %c81_150 = arith.constant 81 : index
    %790 = memref.load %arg3[%c81_150] : memref<147xf32, #tpu.memory_space<smem>>
    %791 = vector.broadcast %790 : f32 to vector<16x22xf32>
    %792 = arith.mulf %791, %785 : vector<16x22xf32>
    %793 = arith.addf %784, %792 : vector<16x22xf32>
    %794 = vector.extract_strided_slice %748 {offsets = [0, 5], sizes = [16, 22], strides = [1, 1]} : vector<16x28xf32> to vector<16x22xf32>
    %c82 = arith.constant 82 : index
    %795 = memref.load %arg2[%c82] : memref<147xf32, #tpu.memory_space<smem>>
    %796 = vector.broadcast %795 : f32 to vector<16x22xf32>
    %797 = arith.mulf %796, %794 : vector<16x22xf32>
    %798 = arith.addf %789, %797 : vector<16x22xf32>
    %c82_151 = arith.constant 82 : index
    %799 = memref.load %arg3[%c82_151] : memref<147xf32, #tpu.memory_space<smem>>
    %800 = vector.broadcast %799 : f32 to vector<16x22xf32>
    %801 = arith.mulf %800, %794 : vector<16x22xf32>
    %802 = arith.addf %793, %801 : vector<16x22xf32>
    %803 = vector.extract_strided_slice %748 {offsets = [0, 6], sizes = [16, 22], strides = [1, 1]} : vector<16x28xf32> to vector<16x22xf32>
    %c83 = arith.constant 83 : index
    %804 = memref.load %arg2[%c83] : memref<147xf32, #tpu.memory_space<smem>>
    %805 = vector.broadcast %804 : f32 to vector<16x22xf32>
    %806 = arith.mulf %805, %803 : vector<16x22xf32>
    %807 = arith.addf %798, %806 : vector<16x22xf32>
    %c83_152 = arith.constant 83 : index
    %808 = memref.load %arg3[%c83_152] : memref<147xf32, #tpu.memory_space<smem>>
    %809 = vector.broadcast %808 : f32 to vector<16x22xf32>
    %810 = arith.mulf %809, %803 : vector<16x22xf32>
    %811 = arith.addf %802, %810 : vector<16x22xf32>
    %c1_153 = arith.constant 1 : index
    %c5_154 = arith.constant 5 : index
    %c0_155 = arith.constant 0 : index
    %812 = vector.load %arg6[%c1_153, %c5_154, %c0_155] : memref<3x22x28xf32, #tpu.memory_space<vmem>>, vector<1x16x28xf32>
    %813 = vector.shape_cast %812 : vector<1x16x28xf32> to vector<16x28xf32>
    %814 = vector.extract_strided_slice %813 {offsets = [0, 0], sizes = [16, 22], strides = [1, 1]} : vector<16x28xf32> to vector<16x22xf32>
    %c84 = arith.constant 84 : index
    %815 = memref.load %arg2[%c84] : memref<147xf32, #tpu.memory_space<smem>>
    %816 = vector.broadcast %815 : f32 to vector<16x22xf32>
    %817 = arith.mulf %816, %814 : vector<16x22xf32>
    %818 = arith.addf %807, %817 : vector<16x22xf32>
    %c84_156 = arith.constant 84 : index
    %819 = memref.load %arg3[%c84_156] : memref<147xf32, #tpu.memory_space<smem>>
    %820 = vector.broadcast %819 : f32 to vector<16x22xf32>
    %821 = arith.mulf %820, %814 : vector<16x22xf32>
    %822 = arith.addf %811, %821 : vector<16x22xf32>
    %823 = vector.extract_strided_slice %813 {offsets = [0, 1], sizes = [16, 22], strides = [1, 1]} : vector<16x28xf32> to vector<16x22xf32>
    %c85 = arith.constant 85 : index
    %824 = memref.load %arg2[%c85] : memref<147xf32, #tpu.memory_space<smem>>
    %825 = vector.broadcast %824 : f32 to vector<16x22xf32>
    %826 = arith.mulf %825, %823 : vector<16x22xf32>
    %827 = arith.addf %818, %826 : vector<16x22xf32>
    %c85_157 = arith.constant 85 : index
    %828 = memref.load %arg3[%c85_157] : memref<147xf32, #tpu.memory_space<smem>>
    %829 = vector.broadcast %828 : f32 to vector<16x22xf32>
    %830 = arith.mulf %829, %823 : vector<16x22xf32>
    %831 = arith.addf %822, %830 : vector<16x22xf32>
    %832 = vector.extract_strided_slice %813 {offsets = [0, 2], sizes = [16, 22], strides = [1, 1]} : vector<16x28xf32> to vector<16x22xf32>
    %c86 = arith.constant 86 : index
    %833 = memref.load %arg2[%c86] : memref<147xf32, #tpu.memory_space<smem>>
    %834 = vector.broadcast %833 : f32 to vector<16x22xf32>
    %835 = arith.mulf %834, %832 : vector<16x22xf32>
    %836 = arith.addf %827, %835 : vector<16x22xf32>
    %c86_158 = arith.constant 86 : index
    %837 = memref.load %arg3[%c86_158] : memref<147xf32, #tpu.memory_space<smem>>
    %838 = vector.broadcast %837 : f32 to vector<16x22xf32>
    %839 = arith.mulf %838, %832 : vector<16x22xf32>
    %840 = arith.addf %831, %839 : vector<16x22xf32>
    %841 = vector.extract_strided_slice %813 {offsets = [0, 3], sizes = [16, 22], strides = [1, 1]} : vector<16x28xf32> to vector<16x22xf32>
    %c87 = arith.constant 87 : index
    %842 = memref.load %arg2[%c87] : memref<147xf32, #tpu.memory_space<smem>>
    %843 = vector.broadcast %842 : f32 to vector<16x22xf32>
    %844 = arith.mulf %843, %841 : vector<16x22xf32>
    %845 = arith.addf %836, %844 : vector<16x22xf32>
    %c87_159 = arith.constant 87 : index
    %846 = memref.load %arg3[%c87_159] : memref<147xf32, #tpu.memory_space<smem>>
    %847 = vector.broadcast %846 : f32 to vector<16x22xf32>
    %848 = arith.mulf %847, %841 : vector<16x22xf32>
    %849 = arith.addf %840, %848 : vector<16x22xf32>
    %850 = vector.extract_strided_slice %813 {offsets = [0, 4], sizes = [16, 22], strides = [1, 1]} : vector<16x28xf32> to vector<16x22xf32>
    %c88 = arith.constant 88 : index
    %851 = memref.load %arg2[%c88] : memref<147xf32, #tpu.memory_space<smem>>
    %852 = vector.broadcast %851 : f32 to vector<16x22xf32>
    %853 = arith.mulf %852, %850 : vector<16x22xf32>
    %854 = arith.addf %845, %853 : vector<16x22xf32>
    %c88_160 = arith.constant 88 : index
    %855 = memref.load %arg3[%c88_160] : memref<147xf32, #tpu.memory_space<smem>>
    %856 = vector.broadcast %855 : f32 to vector<16x22xf32>
    %857 = arith.mulf %856, %850 : vector<16x22xf32>
    %858 = arith.addf %849, %857 : vector<16x22xf32>
    %859 = vector.extract_strided_slice %813 {offsets = [0, 5], sizes = [16, 22], strides = [1, 1]} : vector<16x28xf32> to vector<16x22xf32>
    %c89 = arith.constant 89 : index
    %860 = memref.load %arg2[%c89] : memref<147xf32, #tpu.memory_space<smem>>
    %861 = vector.broadcast %860 : f32 to vector<16x22xf32>
    %862 = arith.mulf %861, %859 : vector<16x22xf32>
    %863 = arith.addf %854, %862 : vector<16x22xf32>
    %c89_161 = arith.constant 89 : index
    %864 = memref.load %arg3[%c89_161] : memref<147xf32, #tpu.memory_space<smem>>
    %865 = vector.broadcast %864 : f32 to vector<16x22xf32>
    %866 = arith.mulf %865, %859 : vector<16x22xf32>
    %867 = arith.addf %858, %866 : vector<16x22xf32>
    %868 = vector.extract_strided_slice %813 {offsets = [0, 6], sizes = [16, 22], strides = [1, 1]} : vector<16x28xf32> to vector<16x22xf32>
    %c90 = arith.constant 90 : index
    %869 = memref.load %arg2[%c90] : memref<147xf32, #tpu.memory_space<smem>>
    %870 = vector.broadcast %869 : f32 to vector<16x22xf32>
    %871 = arith.mulf %870, %868 : vector<16x22xf32>
    %872 = arith.addf %863, %871 : vector<16x22xf32>
    %c90_162 = arith.constant 90 : index
    %873 = memref.load %arg3[%c90_162] : memref<147xf32, #tpu.memory_space<smem>>
    %874 = vector.broadcast %873 : f32 to vector<16x22xf32>
    %875 = arith.mulf %874, %868 : vector<16x22xf32>
    %876 = arith.addf %867, %875 : vector<16x22xf32>
    %c1_163 = arith.constant 1 : index
    %c6_164 = arith.constant 6 : index
    %c0_165 = arith.constant 0 : index
    %877 = vector.load %arg6[%c1_163, %c6_164, %c0_165] : memref<3x22x28xf32, #tpu.memory_space<vmem>>, vector<1x16x28xf32>
    %878 = vector.shape_cast %877 : vector<1x16x28xf32> to vector<16x28xf32>
    %879 = vector.extract_strided_slice %878 {offsets = [0, 0], sizes = [16, 22], strides = [1, 1]} : vector<16x28xf32> to vector<16x22xf32>
    %c91 = arith.constant 91 : index
    %880 = memref.load %arg2[%c91] : memref<147xf32, #tpu.memory_space<smem>>
    %881 = vector.broadcast %880 : f32 to vector<16x22xf32>
    %882 = arith.mulf %881, %879 : vector<16x22xf32>
    %883 = arith.addf %872, %882 : vector<16x22xf32>
    %c91_166 = arith.constant 91 : index
    %884 = memref.load %arg3[%c91_166] : memref<147xf32, #tpu.memory_space<smem>>
    %885 = vector.broadcast %884 : f32 to vector<16x22xf32>
    %886 = arith.mulf %885, %879 : vector<16x22xf32>
    %887 = arith.addf %876, %886 : vector<16x22xf32>
    %888 = vector.extract_strided_slice %878 {offsets = [0, 1], sizes = [16, 22], strides = [1, 1]} : vector<16x28xf32> to vector<16x22xf32>
    %c92 = arith.constant 92 : index
    %889 = memref.load %arg2[%c92] : memref<147xf32, #tpu.memory_space<smem>>
    %890 = vector.broadcast %889 : f32 to vector<16x22xf32>
    %891 = arith.mulf %890, %888 : vector<16x22xf32>
    %892 = arith.addf %883, %891 : vector<16x22xf32>
    %c92_167 = arith.constant 92 : index
    %893 = memref.load %arg3[%c92_167] : memref<147xf32, #tpu.memory_space<smem>>
    %894 = vector.broadcast %893 : f32 to vector<16x22xf32>
    %895 = arith.mulf %894, %888 : vector<16x22xf32>
    %896 = arith.addf %887, %895 : vector<16x22xf32>
    %897 = vector.extract_strided_slice %878 {offsets = [0, 2], sizes = [16, 22], strides = [1, 1]} : vector<16x28xf32> to vector<16x22xf32>
    %c93 = arith.constant 93 : index
    %898 = memref.load %arg2[%c93] : memref<147xf32, #tpu.memory_space<smem>>
    %899 = vector.broadcast %898 : f32 to vector<16x22xf32>
    %900 = arith.mulf %899, %897 : vector<16x22xf32>
    %901 = arith.addf %892, %900 : vector<16x22xf32>
    %c93_168 = arith.constant 93 : index
    %902 = memref.load %arg3[%c93_168] : memref<147xf32, #tpu.memory_space<smem>>
    %903 = vector.broadcast %902 : f32 to vector<16x22xf32>
    %904 = arith.mulf %903, %897 : vector<16x22xf32>
    %905 = arith.addf %896, %904 : vector<16x22xf32>
    %906 = vector.extract_strided_slice %878 {offsets = [0, 3], sizes = [16, 22], strides = [1, 1]} : vector<16x28xf32> to vector<16x22xf32>
    %c94 = arith.constant 94 : index
    %907 = memref.load %arg2[%c94] : memref<147xf32, #tpu.memory_space<smem>>
    %908 = vector.broadcast %907 : f32 to vector<16x22xf32>
    %909 = arith.mulf %908, %906 : vector<16x22xf32>
    %910 = arith.addf %901, %909 : vector<16x22xf32>
    %c94_169 = arith.constant 94 : index
    %911 = memref.load %arg3[%c94_169] : memref<147xf32, #tpu.memory_space<smem>>
    %912 = vector.broadcast %911 : f32 to vector<16x22xf32>
    %913 = arith.mulf %912, %906 : vector<16x22xf32>
    %914 = arith.addf %905, %913 : vector<16x22xf32>
    %915 = vector.extract_strided_slice %878 {offsets = [0, 4], sizes = [16, 22], strides = [1, 1]} : vector<16x28xf32> to vector<16x22xf32>
    %c95 = arith.constant 95 : index
    %916 = memref.load %arg2[%c95] : memref<147xf32, #tpu.memory_space<smem>>
    %917 = vector.broadcast %916 : f32 to vector<16x22xf32>
    %918 = arith.mulf %917, %915 : vector<16x22xf32>
    %919 = arith.addf %910, %918 : vector<16x22xf32>
    %c95_170 = arith.constant 95 : index
    %920 = memref.load %arg3[%c95_170] : memref<147xf32, #tpu.memory_space<smem>>
    %921 = vector.broadcast %920 : f32 to vector<16x22xf32>
    %922 = arith.mulf %921, %915 : vector<16x22xf32>
    %923 = arith.addf %914, %922 : vector<16x22xf32>
    %924 = vector.extract_strided_slice %878 {offsets = [0, 5], sizes = [16, 22], strides = [1, 1]} : vector<16x28xf32> to vector<16x22xf32>
    %c96 = arith.constant 96 : index
    %925 = memref.load %arg2[%c96] : memref<147xf32, #tpu.memory_space<smem>>
    %926 = vector.broadcast %925 : f32 to vector<16x22xf32>
    %927 = arith.mulf %926, %924 : vector<16x22xf32>
    %928 = arith.addf %919, %927 : vector<16x22xf32>
    %c96_171 = arith.constant 96 : index
    %929 = memref.load %arg3[%c96_171] : memref<147xf32, #tpu.memory_space<smem>>
    %930 = vector.broadcast %929 : f32 to vector<16x22xf32>
    %931 = arith.mulf %930, %924 : vector<16x22xf32>
    %932 = arith.addf %923, %931 : vector<16x22xf32>
    %933 = vector.extract_strided_slice %878 {offsets = [0, 6], sizes = [16, 22], strides = [1, 1]} : vector<16x28xf32> to vector<16x22xf32>
    %c97 = arith.constant 97 : index
    %934 = memref.load %arg2[%c97] : memref<147xf32, #tpu.memory_space<smem>>
    %935 = vector.broadcast %934 : f32 to vector<16x22xf32>
    %936 = arith.mulf %935, %933 : vector<16x22xf32>
    %937 = arith.addf %928, %936 : vector<16x22xf32>
    %c97_172 = arith.constant 97 : index
    %938 = memref.load %arg3[%c97_172] : memref<147xf32, #tpu.memory_space<smem>>
    %939 = vector.broadcast %938 : f32 to vector<16x22xf32>
    %940 = arith.mulf %939, %933 : vector<16x22xf32>
    %941 = arith.addf %932, %940 : vector<16x22xf32>
    %c2_173 = arith.constant 2 : index
    %c0_174 = arith.constant 0 : index
    %c0_175 = arith.constant 0 : index
    %942 = vector.load %arg6[%c2_173, %c0_174, %c0_175] : memref<3x22x28xf32, #tpu.memory_space<vmem>>, vector<1x16x28xf32>
    %943 = vector.shape_cast %942 : vector<1x16x28xf32> to vector<16x28xf32>
    %944 = vector.extract_strided_slice %943 {offsets = [0, 0], sizes = [16, 22], strides = [1, 1]} : vector<16x28xf32> to vector<16x22xf32>
    %c98 = arith.constant 98 : index
    %945 = memref.load %arg2[%c98] : memref<147xf32, #tpu.memory_space<smem>>
    %946 = vector.broadcast %945 : f32 to vector<16x22xf32>
    %947 = arith.mulf %946, %944 : vector<16x22xf32>
    %948 = arith.addf %937, %947 : vector<16x22xf32>
    %c98_176 = arith.constant 98 : index
    %949 = memref.load %arg3[%c98_176] : memref<147xf32, #tpu.memory_space<smem>>
    %950 = vector.broadcast %949 : f32 to vector<16x22xf32>
    %951 = arith.mulf %950, %944 : vector<16x22xf32>
    %952 = arith.addf %941, %951 : vector<16x22xf32>
    %953 = vector.extract_strided_slice %943 {offsets = [0, 1], sizes = [16, 22], strides = [1, 1]} : vector<16x28xf32> to vector<16x22xf32>
    %c99 = arith.constant 99 : index
    %954 = memref.load %arg2[%c99] : memref<147xf32, #tpu.memory_space<smem>>
    %955 = vector.broadcast %954 : f32 to vector<16x22xf32>
    %956 = arith.mulf %955, %953 : vector<16x22xf32>
    %957 = arith.addf %948, %956 : vector<16x22xf32>
    %c99_177 = arith.constant 99 : index
    %958 = memref.load %arg3[%c99_177] : memref<147xf32, #tpu.memory_space<smem>>
    %959 = vector.broadcast %958 : f32 to vector<16x22xf32>
    %960 = arith.mulf %959, %953 : vector<16x22xf32>
    %961 = arith.addf %952, %960 : vector<16x22xf32>
    %962 = vector.extract_strided_slice %943 {offsets = [0, 2], sizes = [16, 22], strides = [1, 1]} : vector<16x28xf32> to vector<16x22xf32>
    %c100 = arith.constant 100 : index
    %963 = memref.load %arg2[%c100] : memref<147xf32, #tpu.memory_space<smem>>
    %964 = vector.broadcast %963 : f32 to vector<16x22xf32>
    %965 = arith.mulf %964, %962 : vector<16x22xf32>
    %966 = arith.addf %957, %965 : vector<16x22xf32>
    %c100_178 = arith.constant 100 : index
    %967 = memref.load %arg3[%c100_178] : memref<147xf32, #tpu.memory_space<smem>>
    %968 = vector.broadcast %967 : f32 to vector<16x22xf32>
    %969 = arith.mulf %968, %962 : vector<16x22xf32>
    %970 = arith.addf %961, %969 : vector<16x22xf32>
    %971 = vector.extract_strided_slice %943 {offsets = [0, 3], sizes = [16, 22], strides = [1, 1]} : vector<16x28xf32> to vector<16x22xf32>
    %c101 = arith.constant 101 : index
    %972 = memref.load %arg2[%c101] : memref<147xf32, #tpu.memory_space<smem>>
    %973 = vector.broadcast %972 : f32 to vector<16x22xf32>
    %974 = arith.mulf %973, %971 : vector<16x22xf32>
    %975 = arith.addf %966, %974 : vector<16x22xf32>
    %c101_179 = arith.constant 101 : index
    %976 = memref.load %arg3[%c101_179] : memref<147xf32, #tpu.memory_space<smem>>
    %977 = vector.broadcast %976 : f32 to vector<16x22xf32>
    %978 = arith.mulf %977, %971 : vector<16x22xf32>
    %979 = arith.addf %970, %978 : vector<16x22xf32>
    %980 = vector.extract_strided_slice %943 {offsets = [0, 4], sizes = [16, 22], strides = [1, 1]} : vector<16x28xf32> to vector<16x22xf32>
    %c102 = arith.constant 102 : index
    %981 = memref.load %arg2[%c102] : memref<147xf32, #tpu.memory_space<smem>>
    %982 = vector.broadcast %981 : f32 to vector<16x22xf32>
    %983 = arith.mulf %982, %980 : vector<16x22xf32>
    %984 = arith.addf %975, %983 : vector<16x22xf32>
    %c102_180 = arith.constant 102 : index
    %985 = memref.load %arg3[%c102_180] : memref<147xf32, #tpu.memory_space<smem>>
    %986 = vector.broadcast %985 : f32 to vector<16x22xf32>
    %987 = arith.mulf %986, %980 : vector<16x22xf32>
    %988 = arith.addf %979, %987 : vector<16x22xf32>
    %989 = vector.extract_strided_slice %943 {offsets = [0, 5], sizes = [16, 22], strides = [1, 1]} : vector<16x28xf32> to vector<16x22xf32>
    %c103 = arith.constant 103 : index
    %990 = memref.load %arg2[%c103] : memref<147xf32, #tpu.memory_space<smem>>
    %991 = vector.broadcast %990 : f32 to vector<16x22xf32>
    %992 = arith.mulf %991, %989 : vector<16x22xf32>
    %993 = arith.addf %984, %992 : vector<16x22xf32>
    %c103_181 = arith.constant 103 : index
    %994 = memref.load %arg3[%c103_181] : memref<147xf32, #tpu.memory_space<smem>>
    %995 = vector.broadcast %994 : f32 to vector<16x22xf32>
    %996 = arith.mulf %995, %989 : vector<16x22xf32>
    %997 = arith.addf %988, %996 : vector<16x22xf32>
    %998 = vector.extract_strided_slice %943 {offsets = [0, 6], sizes = [16, 22], strides = [1, 1]} : vector<16x28xf32> to vector<16x22xf32>
    %c104 = arith.constant 104 : index
    %999 = memref.load %arg2[%c104] : memref<147xf32, #tpu.memory_space<smem>>
    %1000 = vector.broadcast %999 : f32 to vector<16x22xf32>
    %1001 = arith.mulf %1000, %998 : vector<16x22xf32>
    %1002 = arith.addf %993, %1001 : vector<16x22xf32>
    %c104_182 = arith.constant 104 : index
    %1003 = memref.load %arg3[%c104_182] : memref<147xf32, #tpu.memory_space<smem>>
    %1004 = vector.broadcast %1003 : f32 to vector<16x22xf32>
    %1005 = arith.mulf %1004, %998 : vector<16x22xf32>
    %1006 = arith.addf %997, %1005 : vector<16x22xf32>
    %c2_183 = arith.constant 2 : index
    %c1_184 = arith.constant 1 : index
    %c0_185 = arith.constant 0 : index
    %1007 = vector.load %arg6[%c2_183, %c1_184, %c0_185] : memref<3x22x28xf32, #tpu.memory_space<vmem>>, vector<1x16x28xf32>
    %1008 = vector.shape_cast %1007 : vector<1x16x28xf32> to vector<16x28xf32>
    %1009 = vector.extract_strided_slice %1008 {offsets = [0, 0], sizes = [16, 22], strides = [1, 1]} : vector<16x28xf32> to vector<16x22xf32>
    %c105 = arith.constant 105 : index
    %1010 = memref.load %arg2[%c105] : memref<147xf32, #tpu.memory_space<smem>>
    %1011 = vector.broadcast %1010 : f32 to vector<16x22xf32>
    %1012 = arith.mulf %1011, %1009 : vector<16x22xf32>
    %1013 = arith.addf %1002, %1012 : vector<16x22xf32>
    %c105_186 = arith.constant 105 : index
    %1014 = memref.load %arg3[%c105_186] : memref<147xf32, #tpu.memory_space<smem>>
    %1015 = vector.broadcast %1014 : f32 to vector<16x22xf32>
    %1016 = arith.mulf %1015, %1009 : vector<16x22xf32>
    %1017 = arith.addf %1006, %1016 : vector<16x22xf32>
    %1018 = vector.extract_strided_slice %1008 {offsets = [0, 1], sizes = [16, 22], strides = [1, 1]} : vector<16x28xf32> to vector<16x22xf32>
    %c106 = arith.constant 106 : index
    %1019 = memref.load %arg2[%c106] : memref<147xf32, #tpu.memory_space<smem>>
    %1020 = vector.broadcast %1019 : f32 to vector<16x22xf32>
    %1021 = arith.mulf %1020, %1018 : vector<16x22xf32>
    %1022 = arith.addf %1013, %1021 : vector<16x22xf32>
    %c106_187 = arith.constant 106 : index
    %1023 = memref.load %arg3[%c106_187] : memref<147xf32, #tpu.memory_space<smem>>
    %1024 = vector.broadcast %1023 : f32 to vector<16x22xf32>
    %1025 = arith.mulf %1024, %1018 : vector<16x22xf32>
    %1026 = arith.addf %1017, %1025 : vector<16x22xf32>
    %1027 = vector.extract_strided_slice %1008 {offsets = [0, 2], sizes = [16, 22], strides = [1, 1]} : vector<16x28xf32> to vector<16x22xf32>
    %c107 = arith.constant 107 : index
    %1028 = memref.load %arg2[%c107] : memref<147xf32, #tpu.memory_space<smem>>
    %1029 = vector.broadcast %1028 : f32 to vector<16x22xf32>
    %1030 = arith.mulf %1029, %1027 : vector<16x22xf32>
    %1031 = arith.addf %1022, %1030 : vector<16x22xf32>
    %c107_188 = arith.constant 107 : index
    %1032 = memref.load %arg3[%c107_188] : memref<147xf32, #tpu.memory_space<smem>>
    %1033 = vector.broadcast %1032 : f32 to vector<16x22xf32>
    %1034 = arith.mulf %1033, %1027 : vector<16x22xf32>
    %1035 = arith.addf %1026, %1034 : vector<16x22xf32>
    %1036 = vector.extract_strided_slice %1008 {offsets = [0, 3], sizes = [16, 22], strides = [1, 1]} : vector<16x28xf32> to vector<16x22xf32>
    %c108 = arith.constant 108 : index
    %1037 = memref.load %arg2[%c108] : memref<147xf32, #tpu.memory_space<smem>>
    %1038 = vector.broadcast %1037 : f32 to vector<16x22xf32>
    %1039 = arith.mulf %1038, %1036 : vector<16x22xf32>
    %1040 = arith.addf %1031, %1039 : vector<16x22xf32>
    %c108_189 = arith.constant 108 : index
    %1041 = memref.load %arg3[%c108_189] : memref<147xf32, #tpu.memory_space<smem>>
    %1042 = vector.broadcast %1041 : f32 to vector<16x22xf32>
    %1043 = arith.mulf %1042, %1036 : vector<16x22xf32>
    %1044 = arith.addf %1035, %1043 : vector<16x22xf32>
    %1045 = vector.extract_strided_slice %1008 {offsets = [0, 4], sizes = [16, 22], strides = [1, 1]} : vector<16x28xf32> to vector<16x22xf32>
    %c109 = arith.constant 109 : index
    %1046 = memref.load %arg2[%c109] : memref<147xf32, #tpu.memory_space<smem>>
    %1047 = vector.broadcast %1046 : f32 to vector<16x22xf32>
    %1048 = arith.mulf %1047, %1045 : vector<16x22xf32>
    %1049 = arith.addf %1040, %1048 : vector<16x22xf32>
    %c109_190 = arith.constant 109 : index
    %1050 = memref.load %arg3[%c109_190] : memref<147xf32, #tpu.memory_space<smem>>
    %1051 = vector.broadcast %1050 : f32 to vector<16x22xf32>
    %1052 = arith.mulf %1051, %1045 : vector<16x22xf32>
    %1053 = arith.addf %1044, %1052 : vector<16x22xf32>
    %1054 = vector.extract_strided_slice %1008 {offsets = [0, 5], sizes = [16, 22], strides = [1, 1]} : vector<16x28xf32> to vector<16x22xf32>
    %c110 = arith.constant 110 : index
    %1055 = memref.load %arg2[%c110] : memref<147xf32, #tpu.memory_space<smem>>
    %1056 = vector.broadcast %1055 : f32 to vector<16x22xf32>
    %1057 = arith.mulf %1056, %1054 : vector<16x22xf32>
    %1058 = arith.addf %1049, %1057 : vector<16x22xf32>
    %c110_191 = arith.constant 110 : index
    %1059 = memref.load %arg3[%c110_191] : memref<147xf32, #tpu.memory_space<smem>>
    %1060 = vector.broadcast %1059 : f32 to vector<16x22xf32>
    %1061 = arith.mulf %1060, %1054 : vector<16x22xf32>
    %1062 = arith.addf %1053, %1061 : vector<16x22xf32>
    %1063 = vector.extract_strided_slice %1008 {offsets = [0, 6], sizes = [16, 22], strides = [1, 1]} : vector<16x28xf32> to vector<16x22xf32>
    %c111 = arith.constant 111 : index
    %1064 = memref.load %arg2[%c111] : memref<147xf32, #tpu.memory_space<smem>>
    %1065 = vector.broadcast %1064 : f32 to vector<16x22xf32>
    %1066 = arith.mulf %1065, %1063 : vector<16x22xf32>
    %1067 = arith.addf %1058, %1066 : vector<16x22xf32>
    %c111_192 = arith.constant 111 : index
    %1068 = memref.load %arg3[%c111_192] : memref<147xf32, #tpu.memory_space<smem>>
    %1069 = vector.broadcast %1068 : f32 to vector<16x22xf32>
    %1070 = arith.mulf %1069, %1063 : vector<16x22xf32>
    %1071 = arith.addf %1062, %1070 : vector<16x22xf32>
    %c2_193 = arith.constant 2 : index
    %c2_194 = arith.constant 2 : index
    %c0_195 = arith.constant 0 : index
    %1072 = vector.load %arg6[%c2_193, %c2_194, %c0_195] : memref<3x22x28xf32, #tpu.memory_space<vmem>>, vector<1x16x28xf32>
    %1073 = vector.shape_cast %1072 : vector<1x16x28xf32> to vector<16x28xf32>
    %1074 = vector.extract_strided_slice %1073 {offsets = [0, 0], sizes = [16, 22], strides = [1, 1]} : vector<16x28xf32> to vector<16x22xf32>
    %c112 = arith.constant 112 : index
    %1075 = memref.load %arg2[%c112] : memref<147xf32, #tpu.memory_space<smem>>
    %1076 = vector.broadcast %1075 : f32 to vector<16x22xf32>
    %1077 = arith.mulf %1076, %1074 : vector<16x22xf32>
    %1078 = arith.addf %1067, %1077 : vector<16x22xf32>
    %c112_196 = arith.constant 112 : index
    %1079 = memref.load %arg3[%c112_196] : memref<147xf32, #tpu.memory_space<smem>>
    %1080 = vector.broadcast %1079 : f32 to vector<16x22xf32>
    %1081 = arith.mulf %1080, %1074 : vector<16x22xf32>
    %1082 = arith.addf %1071, %1081 : vector<16x22xf32>
    %1083 = vector.extract_strided_slice %1073 {offsets = [0, 1], sizes = [16, 22], strides = [1, 1]} : vector<16x28xf32> to vector<16x22xf32>
    %c113 = arith.constant 113 : index
    %1084 = memref.load %arg2[%c113] : memref<147xf32, #tpu.memory_space<smem>>
    %1085 = vector.broadcast %1084 : f32 to vector<16x22xf32>
    %1086 = arith.mulf %1085, %1083 : vector<16x22xf32>
    %1087 = arith.addf %1078, %1086 : vector<16x22xf32>
    %c113_197 = arith.constant 113 : index
    %1088 = memref.load %arg3[%c113_197] : memref<147xf32, #tpu.memory_space<smem>>
    %1089 = vector.broadcast %1088 : f32 to vector<16x22xf32>
    %1090 = arith.mulf %1089, %1083 : vector<16x22xf32>
    %1091 = arith.addf %1082, %1090 : vector<16x22xf32>
    %1092 = vector.extract_strided_slice %1073 {offsets = [0, 2], sizes = [16, 22], strides = [1, 1]} : vector<16x28xf32> to vector<16x22xf32>
    %c114 = arith.constant 114 : index
    %1093 = memref.load %arg2[%c114] : memref<147xf32, #tpu.memory_space<smem>>
    %1094 = vector.broadcast %1093 : f32 to vector<16x22xf32>
    %1095 = arith.mulf %1094, %1092 : vector<16x22xf32>
    %1096 = arith.addf %1087, %1095 : vector<16x22xf32>
    %c114_198 = arith.constant 114 : index
    %1097 = memref.load %arg3[%c114_198] : memref<147xf32, #tpu.memory_space<smem>>
    %1098 = vector.broadcast %1097 : f32 to vector<16x22xf32>
    %1099 = arith.mulf %1098, %1092 : vector<16x22xf32>
    %1100 = arith.addf %1091, %1099 : vector<16x22xf32>
    %1101 = vector.extract_strided_slice %1073 {offsets = [0, 3], sizes = [16, 22], strides = [1, 1]} : vector<16x28xf32> to vector<16x22xf32>
    %c115 = arith.constant 115 : index
    %1102 = memref.load %arg2[%c115] : memref<147xf32, #tpu.memory_space<smem>>
    %1103 = vector.broadcast %1102 : f32 to vector<16x22xf32>
    %1104 = arith.mulf %1103, %1101 : vector<16x22xf32>
    %1105 = arith.addf %1096, %1104 : vector<16x22xf32>
    %c115_199 = arith.constant 115 : index
    %1106 = memref.load %arg3[%c115_199] : memref<147xf32, #tpu.memory_space<smem>>
    %1107 = vector.broadcast %1106 : f32 to vector<16x22xf32>
    %1108 = arith.mulf %1107, %1101 : vector<16x22xf32>
    %1109 = arith.addf %1100, %1108 : vector<16x22xf32>
    %1110 = vector.extract_strided_slice %1073 {offsets = [0, 4], sizes = [16, 22], strides = [1, 1]} : vector<16x28xf32> to vector<16x22xf32>
    %c116 = arith.constant 116 : index
    %1111 = memref.load %arg2[%c116] : memref<147xf32, #tpu.memory_space<smem>>
    %1112 = vector.broadcast %1111 : f32 to vector<16x22xf32>
    %1113 = arith.mulf %1112, %1110 : vector<16x22xf32>
    %1114 = arith.addf %1105, %1113 : vector<16x22xf32>
    %c116_200 = arith.constant 116 : index
    %1115 = memref.load %arg3[%c116_200] : memref<147xf32, #tpu.memory_space<smem>>
    %1116 = vector.broadcast %1115 : f32 to vector<16x22xf32>
    %1117 = arith.mulf %1116, %1110 : vector<16x22xf32>
    %1118 = arith.addf %1109, %1117 : vector<16x22xf32>
    %1119 = vector.extract_strided_slice %1073 {offsets = [0, 5], sizes = [16, 22], strides = [1, 1]} : vector<16x28xf32> to vector<16x22xf32>
    %c117 = arith.constant 117 : index
    %1120 = memref.load %arg2[%c117] : memref<147xf32, #tpu.memory_space<smem>>
    %1121 = vector.broadcast %1120 : f32 to vector<16x22xf32>
    %1122 = arith.mulf %1121, %1119 : vector<16x22xf32>
    %1123 = arith.addf %1114, %1122 : vector<16x22xf32>
    %c117_201 = arith.constant 117 : index
    %1124 = memref.load %arg3[%c117_201] : memref<147xf32, #tpu.memory_space<smem>>
    %1125 = vector.broadcast %1124 : f32 to vector<16x22xf32>
    %1126 = arith.mulf %1125, %1119 : vector<16x22xf32>
    %1127 = arith.addf %1118, %1126 : vector<16x22xf32>
    %1128 = vector.extract_strided_slice %1073 {offsets = [0, 6], sizes = [16, 22], strides = [1, 1]} : vector<16x28xf32> to vector<16x22xf32>
    %c118 = arith.constant 118 : index
    %1129 = memref.load %arg2[%c118] : memref<147xf32, #tpu.memory_space<smem>>
    %1130 = vector.broadcast %1129 : f32 to vector<16x22xf32>
    %1131 = arith.mulf %1130, %1128 : vector<16x22xf32>
    %1132 = arith.addf %1123, %1131 : vector<16x22xf32>
    %c118_202 = arith.constant 118 : index
    %1133 = memref.load %arg3[%c118_202] : memref<147xf32, #tpu.memory_space<smem>>
    %1134 = vector.broadcast %1133 : f32 to vector<16x22xf32>
    %1135 = arith.mulf %1134, %1128 : vector<16x22xf32>
    %1136 = arith.addf %1127, %1135 : vector<16x22xf32>
    %c2_203 = arith.constant 2 : index
    %c3_204 = arith.constant 3 : index
    %c0_205 = arith.constant 0 : index
    %1137 = vector.load %arg6[%c2_203, %c3_204, %c0_205] : memref<3x22x28xf32, #tpu.memory_space<vmem>>, vector<1x16x28xf32>
    %1138 = vector.shape_cast %1137 : vector<1x16x28xf32> to vector<16x28xf32>
    %1139 = vector.extract_strided_slice %1138 {offsets = [0, 0], sizes = [16, 22], strides = [1, 1]} : vector<16x28xf32> to vector<16x22xf32>
    %c119 = arith.constant 119 : index
    %1140 = memref.load %arg2[%c119] : memref<147xf32, #tpu.memory_space<smem>>
    %1141 = vector.broadcast %1140 : f32 to vector<16x22xf32>
    %1142 = arith.mulf %1141, %1139 : vector<16x22xf32>
    %1143 = arith.addf %1132, %1142 : vector<16x22xf32>
    %c119_206 = arith.constant 119 : index
    %1144 = memref.load %arg3[%c119_206] : memref<147xf32, #tpu.memory_space<smem>>
    %1145 = vector.broadcast %1144 : f32 to vector<16x22xf32>
    %1146 = arith.mulf %1145, %1139 : vector<16x22xf32>
    %1147 = arith.addf %1136, %1146 : vector<16x22xf32>
    %1148 = vector.extract_strided_slice %1138 {offsets = [0, 1], sizes = [16, 22], strides = [1, 1]} : vector<16x28xf32> to vector<16x22xf32>
    %c120 = arith.constant 120 : index
    %1149 = memref.load %arg2[%c120] : memref<147xf32, #tpu.memory_space<smem>>
    %1150 = vector.broadcast %1149 : f32 to vector<16x22xf32>
    %1151 = arith.mulf %1150, %1148 : vector<16x22xf32>
    %1152 = arith.addf %1143, %1151 : vector<16x22xf32>
    %c120_207 = arith.constant 120 : index
    %1153 = memref.load %arg3[%c120_207] : memref<147xf32, #tpu.memory_space<smem>>
    %1154 = vector.broadcast %1153 : f32 to vector<16x22xf32>
    %1155 = arith.mulf %1154, %1148 : vector<16x22xf32>
    %1156 = arith.addf %1147, %1155 : vector<16x22xf32>
    %1157 = vector.extract_strided_slice %1138 {offsets = [0, 2], sizes = [16, 22], strides = [1, 1]} : vector<16x28xf32> to vector<16x22xf32>
    %c121 = arith.constant 121 : index
    %1158 = memref.load %arg2[%c121] : memref<147xf32, #tpu.memory_space<smem>>
    %1159 = vector.broadcast %1158 : f32 to vector<16x22xf32>
    %1160 = arith.mulf %1159, %1157 : vector<16x22xf32>
    %1161 = arith.addf %1152, %1160 : vector<16x22xf32>
    %c121_208 = arith.constant 121 : index
    %1162 = memref.load %arg3[%c121_208] : memref<147xf32, #tpu.memory_space<smem>>
    %1163 = vector.broadcast %1162 : f32 to vector<16x22xf32>
    %1164 = arith.mulf %1163, %1157 : vector<16x22xf32>
    %1165 = arith.addf %1156, %1164 : vector<16x22xf32>
    %1166 = vector.extract_strided_slice %1138 {offsets = [0, 3], sizes = [16, 22], strides = [1, 1]} : vector<16x28xf32> to vector<16x22xf32>
    %c122 = arith.constant 122 : index
    %1167 = memref.load %arg2[%c122] : memref<147xf32, #tpu.memory_space<smem>>
    %1168 = vector.broadcast %1167 : f32 to vector<16x22xf32>
    %1169 = arith.mulf %1168, %1166 : vector<16x22xf32>
    %1170 = arith.addf %1161, %1169 : vector<16x22xf32>
    %c122_209 = arith.constant 122 : index
    %1171 = memref.load %arg3[%c122_209] : memref<147xf32, #tpu.memory_space<smem>>
    %1172 = vector.broadcast %1171 : f32 to vector<16x22xf32>
    %1173 = arith.mulf %1172, %1166 : vector<16x22xf32>
    %1174 = arith.addf %1165, %1173 : vector<16x22xf32>
    %1175 = vector.extract_strided_slice %1138 {offsets = [0, 4], sizes = [16, 22], strides = [1, 1]} : vector<16x28xf32> to vector<16x22xf32>
    %c123 = arith.constant 123 : index
    %1176 = memref.load %arg2[%c123] : memref<147xf32, #tpu.memory_space<smem>>
    %1177 = vector.broadcast %1176 : f32 to vector<16x22xf32>
    %1178 = arith.mulf %1177, %1175 : vector<16x22xf32>
    %1179 = arith.addf %1170, %1178 : vector<16x22xf32>
    %c123_210 = arith.constant 123 : index
    %1180 = memref.load %arg3[%c123_210] : memref<147xf32, #tpu.memory_space<smem>>
    %1181 = vector.broadcast %1180 : f32 to vector<16x22xf32>
    %1182 = arith.mulf %1181, %1175 : vector<16x22xf32>
    %1183 = arith.addf %1174, %1182 : vector<16x22xf32>
    %1184 = vector.extract_strided_slice %1138 {offsets = [0, 5], sizes = [16, 22], strides = [1, 1]} : vector<16x28xf32> to vector<16x22xf32>
    %c124 = arith.constant 124 : index
    %1185 = memref.load %arg2[%c124] : memref<147xf32, #tpu.memory_space<smem>>
    %1186 = vector.broadcast %1185 : f32 to vector<16x22xf32>
    %1187 = arith.mulf %1186, %1184 : vector<16x22xf32>
    %1188 = arith.addf %1179, %1187 : vector<16x22xf32>
    %c124_211 = arith.constant 124 : index
    %1189 = memref.load %arg3[%c124_211] : memref<147xf32, #tpu.memory_space<smem>>
    %1190 = vector.broadcast %1189 : f32 to vector<16x22xf32>
    %1191 = arith.mulf %1190, %1184 : vector<16x22xf32>
    %1192 = arith.addf %1183, %1191 : vector<16x22xf32>
    %1193 = vector.extract_strided_slice %1138 {offsets = [0, 6], sizes = [16, 22], strides = [1, 1]} : vector<16x28xf32> to vector<16x22xf32>
    %c125 = arith.constant 125 : index
    %1194 = memref.load %arg2[%c125] : memref<147xf32, #tpu.memory_space<smem>>
    %1195 = vector.broadcast %1194 : f32 to vector<16x22xf32>
    %1196 = arith.mulf %1195, %1193 : vector<16x22xf32>
    %1197 = arith.addf %1188, %1196 : vector<16x22xf32>
    %c125_212 = arith.constant 125 : index
    %1198 = memref.load %arg3[%c125_212] : memref<147xf32, #tpu.memory_space<smem>>
    %1199 = vector.broadcast %1198 : f32 to vector<16x22xf32>
    %1200 = arith.mulf %1199, %1193 : vector<16x22xf32>
    %1201 = arith.addf %1192, %1200 : vector<16x22xf32>
    %c2_213 = arith.constant 2 : index
    %c4_214 = arith.constant 4 : index
    %c0_215 = arith.constant 0 : index
    %1202 = vector.load %arg6[%c2_213, %c4_214, %c0_215] : memref<3x22x28xf32, #tpu.memory_space<vmem>>, vector<1x16x28xf32>
    %1203 = vector.shape_cast %1202 : vector<1x16x28xf32> to vector<16x28xf32>
    %1204 = vector.extract_strided_slice %1203 {offsets = [0, 0], sizes = [16, 22], strides = [1, 1]} : vector<16x28xf32> to vector<16x22xf32>
    %c126 = arith.constant 126 : index
    %1205 = memref.load %arg2[%c126] : memref<147xf32, #tpu.memory_space<smem>>
    %1206 = vector.broadcast %1205 : f32 to vector<16x22xf32>
    %1207 = arith.mulf %1206, %1204 : vector<16x22xf32>
    %1208 = arith.addf %1197, %1207 : vector<16x22xf32>
    %c126_216 = arith.constant 126 : index
    %1209 = memref.load %arg3[%c126_216] : memref<147xf32, #tpu.memory_space<smem>>
    %1210 = vector.broadcast %1209 : f32 to vector<16x22xf32>
    %1211 = arith.mulf %1210, %1204 : vector<16x22xf32>
    %1212 = arith.addf %1201, %1211 : vector<16x22xf32>
    %1213 = vector.extract_strided_slice %1203 {offsets = [0, 1], sizes = [16, 22], strides = [1, 1]} : vector<16x28xf32> to vector<16x22xf32>
    %c127 = arith.constant 127 : index
    %1214 = memref.load %arg2[%c127] : memref<147xf32, #tpu.memory_space<smem>>
    %1215 = vector.broadcast %1214 : f32 to vector<16x22xf32>
    %1216 = arith.mulf %1215, %1213 : vector<16x22xf32>
    %1217 = arith.addf %1208, %1216 : vector<16x22xf32>
    %c127_217 = arith.constant 127 : index
    %1218 = memref.load %arg3[%c127_217] : memref<147xf32, #tpu.memory_space<smem>>
    %1219 = vector.broadcast %1218 : f32 to vector<16x22xf32>
    %1220 = arith.mulf %1219, %1213 : vector<16x22xf32>
    %1221 = arith.addf %1212, %1220 : vector<16x22xf32>
    %1222 = vector.extract_strided_slice %1203 {offsets = [0, 2], sizes = [16, 22], strides = [1, 1]} : vector<16x28xf32> to vector<16x22xf32>
    %c128 = arith.constant 128 : index
    %1223 = memref.load %arg2[%c128] : memref<147xf32, #tpu.memory_space<smem>>
    %1224 = vector.broadcast %1223 : f32 to vector<16x22xf32>
    %1225 = arith.mulf %1224, %1222 : vector<16x22xf32>
    %1226 = arith.addf %1217, %1225 : vector<16x22xf32>
    %c128_218 = arith.constant 128 : index
    %1227 = memref.load %arg3[%c128_218] : memref<147xf32, #tpu.memory_space<smem>>
    %1228 = vector.broadcast %1227 : f32 to vector<16x22xf32>
    %1229 = arith.mulf %1228, %1222 : vector<16x22xf32>
    %1230 = arith.addf %1221, %1229 : vector<16x22xf32>
    %1231 = vector.extract_strided_slice %1203 {offsets = [0, 3], sizes = [16, 22], strides = [1, 1]} : vector<16x28xf32> to vector<16x22xf32>
    %c129 = arith.constant 129 : index
    %1232 = memref.load %arg2[%c129] : memref<147xf32, #tpu.memory_space<smem>>
    %1233 = vector.broadcast %1232 : f32 to vector<16x22xf32>
    %1234 = arith.mulf %1233, %1231 : vector<16x22xf32>
    %1235 = arith.addf %1226, %1234 : vector<16x22xf32>
    %c129_219 = arith.constant 129 : index
    %1236 = memref.load %arg3[%c129_219] : memref<147xf32, #tpu.memory_space<smem>>
    %1237 = vector.broadcast %1236 : f32 to vector<16x22xf32>
    %1238 = arith.mulf %1237, %1231 : vector<16x22xf32>
    %1239 = arith.addf %1230, %1238 : vector<16x22xf32>
    %1240 = vector.extract_strided_slice %1203 {offsets = [0, 4], sizes = [16, 22], strides = [1, 1]} : vector<16x28xf32> to vector<16x22xf32>
    %c130 = arith.constant 130 : index
    %1241 = memref.load %arg2[%c130] : memref<147xf32, #tpu.memory_space<smem>>
    %1242 = vector.broadcast %1241 : f32 to vector<16x22xf32>
    %1243 = arith.mulf %1242, %1240 : vector<16x22xf32>
    %1244 = arith.addf %1235, %1243 : vector<16x22xf32>
    %c130_220 = arith.constant 130 : index
    %1245 = memref.load %arg3[%c130_220] : memref<147xf32, #tpu.memory_space<smem>>
    %1246 = vector.broadcast %1245 : f32 to vector<16x22xf32>
    %1247 = arith.mulf %1246, %1240 : vector<16x22xf32>
    %1248 = arith.addf %1239, %1247 : vector<16x22xf32>
    %1249 = vector.extract_strided_slice %1203 {offsets = [0, 5], sizes = [16, 22], strides = [1, 1]} : vector<16x28xf32> to vector<16x22xf32>
    %c131 = arith.constant 131 : index
    %1250 = memref.load %arg2[%c131] : memref<147xf32, #tpu.memory_space<smem>>
    %1251 = vector.broadcast %1250 : f32 to vector<16x22xf32>
    %1252 = arith.mulf %1251, %1249 : vector<16x22xf32>
    %1253 = arith.addf %1244, %1252 : vector<16x22xf32>
    %c131_221 = arith.constant 131 : index
    %1254 = memref.load %arg3[%c131_221] : memref<147xf32, #tpu.memory_space<smem>>
    %1255 = vector.broadcast %1254 : f32 to vector<16x22xf32>
    %1256 = arith.mulf %1255, %1249 : vector<16x22xf32>
    %1257 = arith.addf %1248, %1256 : vector<16x22xf32>
    %1258 = vector.extract_strided_slice %1203 {offsets = [0, 6], sizes = [16, 22], strides = [1, 1]} : vector<16x28xf32> to vector<16x22xf32>
    %c132 = arith.constant 132 : index
    %1259 = memref.load %arg2[%c132] : memref<147xf32, #tpu.memory_space<smem>>
    %1260 = vector.broadcast %1259 : f32 to vector<16x22xf32>
    %1261 = arith.mulf %1260, %1258 : vector<16x22xf32>
    %1262 = arith.addf %1253, %1261 : vector<16x22xf32>
    %c132_222 = arith.constant 132 : index
    %1263 = memref.load %arg3[%c132_222] : memref<147xf32, #tpu.memory_space<smem>>
    %1264 = vector.broadcast %1263 : f32 to vector<16x22xf32>
    %1265 = arith.mulf %1264, %1258 : vector<16x22xf32>
    %1266 = arith.addf %1257, %1265 : vector<16x22xf32>
    %c2_223 = arith.constant 2 : index
    %c5_224 = arith.constant 5 : index
    %c0_225 = arith.constant 0 : index
    %1267 = vector.load %arg6[%c2_223, %c5_224, %c0_225] : memref<3x22x28xf32, #tpu.memory_space<vmem>>, vector<1x16x28xf32>
    %1268 = vector.shape_cast %1267 : vector<1x16x28xf32> to vector<16x28xf32>
    %1269 = vector.extract_strided_slice %1268 {offsets = [0, 0], sizes = [16, 22], strides = [1, 1]} : vector<16x28xf32> to vector<16x22xf32>
    %c133 = arith.constant 133 : index
    %1270 = memref.load %arg2[%c133] : memref<147xf32, #tpu.memory_space<smem>>
    %1271 = vector.broadcast %1270 : f32 to vector<16x22xf32>
    %1272 = arith.mulf %1271, %1269 : vector<16x22xf32>
    %1273 = arith.addf %1262, %1272 : vector<16x22xf32>
    %c133_226 = arith.constant 133 : index
    %1274 = memref.load %arg3[%c133_226] : memref<147xf32, #tpu.memory_space<smem>>
    %1275 = vector.broadcast %1274 : f32 to vector<16x22xf32>
    %1276 = arith.mulf %1275, %1269 : vector<16x22xf32>
    %1277 = arith.addf %1266, %1276 : vector<16x22xf32>
    %1278 = vector.extract_strided_slice %1268 {offsets = [0, 1], sizes = [16, 22], strides = [1, 1]} : vector<16x28xf32> to vector<16x22xf32>
    %c134 = arith.constant 134 : index
    %1279 = memref.load %arg2[%c134] : memref<147xf32, #tpu.memory_space<smem>>
    %1280 = vector.broadcast %1279 : f32 to vector<16x22xf32>
    %1281 = arith.mulf %1280, %1278 : vector<16x22xf32>
    %1282 = arith.addf %1273, %1281 : vector<16x22xf32>
    %c134_227 = arith.constant 134 : index
    %1283 = memref.load %arg3[%c134_227] : memref<147xf32, #tpu.memory_space<smem>>
    %1284 = vector.broadcast %1283 : f32 to vector<16x22xf32>
    %1285 = arith.mulf %1284, %1278 : vector<16x22xf32>
    %1286 = arith.addf %1277, %1285 : vector<16x22xf32>
    %1287 = vector.extract_strided_slice %1268 {offsets = [0, 2], sizes = [16, 22], strides = [1, 1]} : vector<16x28xf32> to vector<16x22xf32>
    %c135 = arith.constant 135 : index
    %1288 = memref.load %arg2[%c135] : memref<147xf32, #tpu.memory_space<smem>>
    %1289 = vector.broadcast %1288 : f32 to vector<16x22xf32>
    %1290 = arith.mulf %1289, %1287 : vector<16x22xf32>
    %1291 = arith.addf %1282, %1290 : vector<16x22xf32>
    %c135_228 = arith.constant 135 : index
    %1292 = memref.load %arg3[%c135_228] : memref<147xf32, #tpu.memory_space<smem>>
    %1293 = vector.broadcast %1292 : f32 to vector<16x22xf32>
    %1294 = arith.mulf %1293, %1287 : vector<16x22xf32>
    %1295 = arith.addf %1286, %1294 : vector<16x22xf32>
    %1296 = vector.extract_strided_slice %1268 {offsets = [0, 3], sizes = [16, 22], strides = [1, 1]} : vector<16x28xf32> to vector<16x22xf32>
    %c136 = arith.constant 136 : index
    %1297 = memref.load %arg2[%c136] : memref<147xf32, #tpu.memory_space<smem>>
    %1298 = vector.broadcast %1297 : f32 to vector<16x22xf32>
    %1299 = arith.mulf %1298, %1296 : vector<16x22xf32>
    %1300 = arith.addf %1291, %1299 : vector<16x22xf32>
    %c136_229 = arith.constant 136 : index
    %1301 = memref.load %arg3[%c136_229] : memref<147xf32, #tpu.memory_space<smem>>
    %1302 = vector.broadcast %1301 : f32 to vector<16x22xf32>
    %1303 = arith.mulf %1302, %1296 : vector<16x22xf32>
    %1304 = arith.addf %1295, %1303 : vector<16x22xf32>
    %1305 = vector.extract_strided_slice %1268 {offsets = [0, 4], sizes = [16, 22], strides = [1, 1]} : vector<16x28xf32> to vector<16x22xf32>
    %c137 = arith.constant 137 : index
    %1306 = memref.load %arg2[%c137] : memref<147xf32, #tpu.memory_space<smem>>
    %1307 = vector.broadcast %1306 : f32 to vector<16x22xf32>
    %1308 = arith.mulf %1307, %1305 : vector<16x22xf32>
    %1309 = arith.addf %1300, %1308 : vector<16x22xf32>
    %c137_230 = arith.constant 137 : index
    %1310 = memref.load %arg3[%c137_230] : memref<147xf32, #tpu.memory_space<smem>>
    %1311 = vector.broadcast %1310 : f32 to vector<16x22xf32>
    %1312 = arith.mulf %1311, %1305 : vector<16x22xf32>
    %1313 = arith.addf %1304, %1312 : vector<16x22xf32>
    %1314 = vector.extract_strided_slice %1268 {offsets = [0, 5], sizes = [16, 22], strides = [1, 1]} : vector<16x28xf32> to vector<16x22xf32>
    %c138 = arith.constant 138 : index
    %1315 = memref.load %arg2[%c138] : memref<147xf32, #tpu.memory_space<smem>>
    %1316 = vector.broadcast %1315 : f32 to vector<16x22xf32>
    %1317 = arith.mulf %1316, %1314 : vector<16x22xf32>
    %1318 = arith.addf %1309, %1317 : vector<16x22xf32>
    %c138_231 = arith.constant 138 : index
    %1319 = memref.load %arg3[%c138_231] : memref<147xf32, #tpu.memory_space<smem>>
    %1320 = vector.broadcast %1319 : f32 to vector<16x22xf32>
    %1321 = arith.mulf %1320, %1314 : vector<16x22xf32>
    %1322 = arith.addf %1313, %1321 : vector<16x22xf32>
    %1323 = vector.extract_strided_slice %1268 {offsets = [0, 6], sizes = [16, 22], strides = [1, 1]} : vector<16x28xf32> to vector<16x22xf32>
    %c139 = arith.constant 139 : index
    %1324 = memref.load %arg2[%c139] : memref<147xf32, #tpu.memory_space<smem>>
    %1325 = vector.broadcast %1324 : f32 to vector<16x22xf32>
    %1326 = arith.mulf %1325, %1323 : vector<16x22xf32>
    %1327 = arith.addf %1318, %1326 : vector<16x22xf32>
    %c139_232 = arith.constant 139 : index
    %1328 = memref.load %arg3[%c139_232] : memref<147xf32, #tpu.memory_space<smem>>
    %1329 = vector.broadcast %1328 : f32 to vector<16x22xf32>
    %1330 = arith.mulf %1329, %1323 : vector<16x22xf32>
    %1331 = arith.addf %1322, %1330 : vector<16x22xf32>
    %c2_233 = arith.constant 2 : index
    %c6_234 = arith.constant 6 : index
    %c0_235 = arith.constant 0 : index
    %1332 = vector.load %arg6[%c2_233, %c6_234, %c0_235] : memref<3x22x28xf32, #tpu.memory_space<vmem>>, vector<1x16x28xf32>
    %1333 = vector.shape_cast %1332 : vector<1x16x28xf32> to vector<16x28xf32>
    %1334 = vector.extract_strided_slice %1333 {offsets = [0, 0], sizes = [16, 22], strides = [1, 1]} : vector<16x28xf32> to vector<16x22xf32>
    %c140 = arith.constant 140 : index
    %1335 = memref.load %arg2[%c140] : memref<147xf32, #tpu.memory_space<smem>>
    %1336 = vector.broadcast %1335 : f32 to vector<16x22xf32>
    %1337 = arith.mulf %1336, %1334 : vector<16x22xf32>
    %1338 = arith.addf %1327, %1337 : vector<16x22xf32>
    %c140_236 = arith.constant 140 : index
    %1339 = memref.load %arg3[%c140_236] : memref<147xf32, #tpu.memory_space<smem>>
    %1340 = vector.broadcast %1339 : f32 to vector<16x22xf32>
    %1341 = arith.mulf %1340, %1334 : vector<16x22xf32>
    %1342 = arith.addf %1331, %1341 : vector<16x22xf32>
    %1343 = vector.extract_strided_slice %1333 {offsets = [0, 1], sizes = [16, 22], strides = [1, 1]} : vector<16x28xf32> to vector<16x22xf32>
    %c141 = arith.constant 141 : index
    %1344 = memref.load %arg2[%c141] : memref<147xf32, #tpu.memory_space<smem>>
    %1345 = vector.broadcast %1344 : f32 to vector<16x22xf32>
    %1346 = arith.mulf %1345, %1343 : vector<16x22xf32>
    %1347 = arith.addf %1338, %1346 : vector<16x22xf32>
    %c141_237 = arith.constant 141 : index
    %1348 = memref.load %arg3[%c141_237] : memref<147xf32, #tpu.memory_space<smem>>
    %1349 = vector.broadcast %1348 : f32 to vector<16x22xf32>
    %1350 = arith.mulf %1349, %1343 : vector<16x22xf32>
    %1351 = arith.addf %1342, %1350 : vector<16x22xf32>
    %1352 = vector.extract_strided_slice %1333 {offsets = [0, 2], sizes = [16, 22], strides = [1, 1]} : vector<16x28xf32> to vector<16x22xf32>
    %c142 = arith.constant 142 : index
    %1353 = memref.load %arg2[%c142] : memref<147xf32, #tpu.memory_space<smem>>
    %1354 = vector.broadcast %1353 : f32 to vector<16x22xf32>
    %1355 = arith.mulf %1354, %1352 : vector<16x22xf32>
    %1356 = arith.addf %1347, %1355 : vector<16x22xf32>
    %c142_238 = arith.constant 142 : index
    %1357 = memref.load %arg3[%c142_238] : memref<147xf32, #tpu.memory_space<smem>>
    %1358 = vector.broadcast %1357 : f32 to vector<16x22xf32>
    %1359 = arith.mulf %1358, %1352 : vector<16x22xf32>
    %1360 = arith.addf %1351, %1359 : vector<16x22xf32>
    %1361 = vector.extract_strided_slice %1333 {offsets = [0, 3], sizes = [16, 22], strides = [1, 1]} : vector<16x28xf32> to vector<16x22xf32>
    %c143 = arith.constant 143 : index
    %1362 = memref.load %arg2[%c143] : memref<147xf32, #tpu.memory_space<smem>>
    %1363 = vector.broadcast %1362 : f32 to vector<16x22xf32>
    %1364 = arith.mulf %1363, %1361 : vector<16x22xf32>
    %1365 = arith.addf %1356, %1364 : vector<16x22xf32>
    %c143_239 = arith.constant 143 : index
    %1366 = memref.load %arg3[%c143_239] : memref<147xf32, #tpu.memory_space<smem>>
    %1367 = vector.broadcast %1366 : f32 to vector<16x22xf32>
    %1368 = arith.mulf %1367, %1361 : vector<16x22xf32>
    %1369 = arith.addf %1360, %1368 : vector<16x22xf32>
    %1370 = vector.extract_strided_slice %1333 {offsets = [0, 4], sizes = [16, 22], strides = [1, 1]} : vector<16x28xf32> to vector<16x22xf32>
    %c144 = arith.constant 144 : index
    %1371 = memref.load %arg2[%c144] : memref<147xf32, #tpu.memory_space<smem>>
    %1372 = vector.broadcast %1371 : f32 to vector<16x22xf32>
    %1373 = arith.mulf %1372, %1370 : vector<16x22xf32>
    %1374 = arith.addf %1365, %1373 : vector<16x22xf32>
    %c144_240 = arith.constant 144 : index
    %1375 = memref.load %arg3[%c144_240] : memref<147xf32, #tpu.memory_space<smem>>
    %1376 = vector.broadcast %1375 : f32 to vector<16x22xf32>
    %1377 = arith.mulf %1376, %1370 : vector<16x22xf32>
    %1378 = arith.addf %1369, %1377 : vector<16x22xf32>
    %1379 = vector.extract_strided_slice %1333 {offsets = [0, 5], sizes = [16, 22], strides = [1, 1]} : vector<16x28xf32> to vector<16x22xf32>
    %c145 = arith.constant 145 : index
    %1380 = memref.load %arg2[%c145] : memref<147xf32, #tpu.memory_space<smem>>
    %1381 = vector.broadcast %1380 : f32 to vector<16x22xf32>
    %1382 = arith.mulf %1381, %1379 : vector<16x22xf32>
    %1383 = arith.addf %1374, %1382 : vector<16x22xf32>
    %c145_241 = arith.constant 145 : index
    %1384 = memref.load %arg3[%c145_241] : memref<147xf32, #tpu.memory_space<smem>>
    %1385 = vector.broadcast %1384 : f32 to vector<16x22xf32>
    %1386 = arith.mulf %1385, %1379 : vector<16x22xf32>
    %1387 = arith.addf %1378, %1386 : vector<16x22xf32>
    %1388 = vector.extract_strided_slice %1333 {offsets = [0, 6], sizes = [16, 22], strides = [1, 1]} : vector<16x28xf32> to vector<16x22xf32>
    %c146 = arith.constant 146 : index
    %1389 = memref.load %arg2[%c146] : memref<147xf32, #tpu.memory_space<smem>>
    %1390 = vector.broadcast %1389 : f32 to vector<16x22xf32>
    %1391 = arith.mulf %1390, %1388 : vector<16x22xf32>
    %1392 = arith.addf %1383, %1391 : vector<16x22xf32>
    %c146_242 = arith.constant 146 : index
    %1393 = memref.load %arg3[%c146_242] : memref<147xf32, #tpu.memory_space<smem>>
    %1394 = vector.broadcast %1393 : f32 to vector<16x22xf32>
    %1395 = arith.mulf %1394, %1388 : vector<16x22xf32>
    %1396 = arith.addf %1387, %1395 : vector<16x22xf32>
    %1397 = vector.broadcast %28 : f32 to vector<16x22xf32>
    %1398 = arith.addf %1392, %1397 : vector<16x22xf32>
    %c0_243 = arith.constant 0 : index
    %c0_244 = arith.constant 0 : index
    %c0_245 = arith.constant 0 : index
    %c0_246 = arith.constant 0 : index
    %1399 = vector.load %arg5[%c0_243, %c0_244, %c0_245, %c0_246] : memref<1x2x16x22xf32, #tpu.memory_space<vmem>>, vector<1x1x16x22xf32>
    %1400 = vector.shape_cast %1399 : vector<1x1x16x22xf32> to vector<16x22xf32>
    %1401 = vector.shape_cast %1398 : vector<16x22xf32> to vector<1x1x16x22xf32>
    tpu.vector_store %arg5[%c0_243, %c0_244, %c0_245, %c0_246], %1401 {strides = array<i32>} : memref<1x2x16x22xf32, #tpu.memory_space<vmem>>, vector<1x1x16x22xf32>,
    %1402 = vector.broadcast %29 : f32 to vector<16x22xf32>
    %1403 = arith.addf %1396, %1402 : vector<16x22xf32>
    %c0_247 = arith.constant 0 : index
    %c1_248 = arith.constant 1 : index
    %c0_249 = arith.constant 0 : index
    %c0_250 = arith.constant 0 : index
    %1404 = vector.load %arg5[%c0_247, %c1_248, %c0_249, %c0_250] : memref<1x2x16x22xf32, #tpu.memory_space<vmem>>, vector<1x1x16x22xf32>
    %1405 = vector.shape_cast %1404 : vector<1x1x16x22xf32> to vector<16x22xf32>
    %1406 = vector.shape_cast %1403 : vector<16x22xf32> to vector<1x1x16x22xf32>
    tpu.vector_store %arg5[%c0_247, %c1_248, %c0_249, %c0_250], %1406 {strides = array<i32>} : memref<1x2x16x22xf32, #tpu.memory_space<vmem>>, vector<1x1x16x22xf32>,
    return
  }
  func.func @transform_0(%arg0: i32) -> (i32, i32, i32, i32) {
    %c0_i32 = arith.constant 0 : i32
    %c0_i32_0 = arith.constant 0 : i32
    %c0_i32_1 = arith.constant 0 : i32
    %c0_i32_2 = arith.constant 0 : i32
    return %arg0, %c0_i32, %c0_i32_0, %c0_i32_1 : i32, i32, i32, i32
  }
  func.func @transform_1(%arg0: i32) -> i32 {
    %c0_i32 = arith.constant 0 : i32
    %c0_i32_0 = arith.constant 0 : i32
    return %c0_i32 : i32
  }
  func.func @transform_2(%arg0: i32) -> i32 {
    %c0_i32 = arith.constant 0 : i32
    %c0_i32_0 = arith.constant 0 : i32
    return %c0_i32 : i32
  }
  func.func @transform_3(%arg0: i32) -> i32 {
    %c0_i32 = arith.constant 0 : i32
    %c0_i32_0 = arith.constant 0 : i32
    return %c0_i32 : i32
  }
  func.func @transform_4(%arg0: i32) -> (i32, i32, i32, i32) {
    %c0_i32 = arith.constant 0 : i32
    %c0_i32_0 = arith.constant 0 : i32
    %c0_i32_1 = arith.constant 0 : i32
    %c0_i32_2 = arith.constant 0 : i32
    return %arg0, %c0_i32, %c0_i32_0, %c0_i32_1 : i32, i32, i32, i32
  }
}

</mosaic_0001>

<bundles_post_ra>
// kernel: spatial_gate.1
= control target key start
LH: loop header
LB: loop body
LE: loop exit
PB: predicated region body
PF: predicated region fallthrough
CT: control target
= control target key end

     0   :  { %9 = vsyncpa [#allocation4], 0  ;;  %s7419_s0 = inlined_call_operand.vmem [shape: f32[2,4,16,16], index: 0, kind: input, shape index: {}]   ;;  %s7420_s1 = inlined_call_operand.vmem [shape: f32[147], index: 1, kind: input, shape index: {}]   ;;  %s7421_s2 = inlined_call_operand.vmem [shape: f32[147], index: 2, kind: input, shape index: {}]   ;;  %s7422_s3 = inlined_call_operand.vmem [shape: f32[2], index: 3, kind: input, shape index: {}]   ;;  %s7423_s4 = inlined_call_operand.vmem [shape: f32[2,2,16,22], index: 4, kind: output, shape index: {}]  }
   0x1   :  { %10 = vsyncpa [#allocation6], 0  ;;  %s4706_s15 = smov 0  }
   0x2 LB: > { %s4712_s16 = sadd.s32 4294967295, %s4668_s15   ;;  %p4246_p0 = scmp.ge.s32.totalorder %s4668_s15, 1  ;;  %s4668_s15 = sphi %s4706_s15, %s16_s15  }
   0x3   : > { %p136_p1 = scmp.lt.s32.totalorder %s4668_s15, 3  ;;  %s160_s19 = sshll.u32 %s7421_s2, 4  ;;  %s161_s19 = int_to_ptr.vmem [resolvable:$true] %s160_s19 }
   0x4   : > { %p7424_p3 = scmp.eq.s32.totalorder %s4712_s16, 0  ;;  %s149_s23 = sshll.u32 %s7420_s1, 4  ;;  %s150_s23 = int_to_ptr.vmem [resolvable:$true] %s149_s23 }
   0x5   : > { %p4719_p2 = pnand %p4246_p0, %p136_p1  ;;  %s171_s26 = sshll.u32 %s7422_s3, 4  ;;  %s4738_s26 = int_to_ptr.vmem [resolvable:$true] %s171_s26 }
   0x6   : > { %s4609_s28 = scalar_lea.vmem %s161_s19, 32  ;;  %p4617_p10 = scmp.lt.s32.totalorder %s161_s19, %s161_s19 }
   0x7   : > { %s7426_s20 = scalar_select %p4719_p2, 1, 0 }
   0x8   : > { %p4574_p4 = pneg %p4719_p2  ;;  %p4610_p6 = scmp.ne.s32.totalorder %s161_s19, %s4609_s28 }
   0x9   : > { %p4618_p11 = scmp.lt.s32.totalorder %s4609_s28, %s4609_s28 }
   0xa   : > { %p4734_p5 = pnand %p7424_p3, %p4574_p4 }
   0xb   : > { %p4619_p12 = por %p4618_p11, %p4617_p10 }
   0xc   : > { %p4611_p7 = pneg %p4734_p5 }
   0xe   : > { %p4612_p8 = pnand %p4611_p7, %p4610_p6 }
  0x10   : > { %p4613_p9 = pneg %p4612_p8 }
  0x12   : > { %p4620_p13 = pnand %p4619_p12, %p4613_p9 }
  0x14   : > { %4623 = shalt.err (!%p4620_p13)
}
  0x15   : > { %s4670_s29 = smov [#allocation5]   ;;  %s4624_s30 = scalar_lea.vmem %s150_s23, 32 }
  0x16   : > { %4580 = dma.vmem_to_smem (!%p4734_p5), %s161_s19, 32, %s4670_s29, [#allocation6]  }
  0x17   : > { %p4625_p0 = scmp.ne.s32.totalorder %s150_s23, %s4624_s30  ;;  %p4632_p3 = scmp.lt.s32.totalorder %s150_s23, %s150_s23 }
  0x18   : > { %p4633_p2 = scmp.lt.s32.totalorder %s4624_s30, %s4624_s30 }
  0x19   : > { %p4627_p1 = pnand %p4625_p0, %p4611_p7 }
  0x1a   : > { %p4634_p6 = por %p4633_p2, %p4632_p3 }
  0x1b   : > { %p4628_p4 = pneg %p4627_p1 }
  0x1d   : > { %p4635_p8 = pnand %p4634_p6, %p4628_p4 }
  0x1f   : > { %4638 = shalt.err (!%p4635_p8)
}
  0x20   : > { %s4671_s5 = smov [#allocation3]   ;;  %s4639_s6 = scalar_lea.vmem %s4738_s26, 16 }
  0x21   : > { %4577 = dma.vmem_to_smem (!%p4734_p5), %s150_s23, 32, %s4671_s5, [#allocation4]  }
  0x22   : > { %p4640_p9 = scmp.ne.s32.totalorder %s4738_s26, %s4639_s6  ;;  %p4647_p12 = scmp.lt.s32.totalorder %s4738_s26, %s4738_s26 }
  0x23   : > { %p4648_p13 = scmp.lt.s32.totalorder %s4639_s6, %s4639_s6 }
  0x24   : > { %p4642_p10 = pnand %p4640_p9, %p4611_p7 }
  0x25   : > { %p4649_p2 = por %p4648_p13, %p4647_p12 }
  0x26   : > { %p4643_p11 = pneg %p4642_p10 }
  0x28   : > { %p4650_p3 = pnand %p4649_p2, %p4643_p11 }
  0x2a   : > { %4653 = shalt.err (!%p4650_p3)
}
  0x2b   : > { %s4672_s7 = smov [#allocation7]   ;;  %p7428_p0 = scmp.ne.s32.totalorder %s7426_s20, 0 }
  0x2c   : > { %4583 = dma.vmem_to_smem (!%p4734_p5), %s4738_s26, 16, %s4672_s7, [#allocation6]  }
  0x2d   : > { %192 = sbr.rel (%p7428_p0) target bundleno = 1321 (0x529), region = 36  ;;  %p7429_p1 = scmp.eq.s32.totalorder (!%p7428_p0), %s4712_s16, 0 }
  0x32   : > { %4659 = dma.done.wait (%p7429_p1), [#allocation4], 32   ;;  %p7430_p7 = pmov %p7429_p1 }
  0x33   : > { %p7431_p4 = pmov %p7429_p1 }
  0x34   : > { %4661 = vsyncadd (%p7430_p7), [#allocation4], 4294967264 }
  0x35   : > { %4663 = dma.done.wait (%p7431_p4), [#allocation6], 48   ;;  %p7432_p6 = pmov %p7429_p1 }
  0x37   : > { %4665 = vsyncadd (%p7432_p6), [#allocation6], 4294967248 }
  0x38   : > { %206 = sfence }
  0x39   : > { %p227_p8 = scmp.lt.s32.totalorder %s4712_s16, 1  ;;  %vm269_vm0 = vcmask 223232   ;;  %v4673_v0 = vmov 0.0   ;;  %vm246_vm1 = vcmask 130048   ;;  %s4674_s12 = smov 6   ;;  %vm284_vm2 = vcmask 48128  }
  0x3a   : > { %270 = vst.msk [vmem:[#allocation2] sm:$0x7] %vm269_vm0, %v4673_v0  ;;  %271 = vst.msk [vmem:[#allocation2 + $0x18] sm:$0x7] %vm269_vm0, %v4673_v0  ;;  %vm287_vm3 = vcmask 179200   ;;  %vm290_vm4 = vcmask 228352  }
  0x3b   : > { %272 = vst.msk [vmem:[#allocation2 + $0x30] sm:$0x7] %vm269_vm0, %v4673_v0  ;;  %273 = vst.msk [vmem:[#allocation2 + $0x13] sm:$0x7] %vm269_vm0, %v4673_v0  ;;  %s7434_s16 = smov (!%p227_p8, %s4712_s16), 1  ;;  %s4794_s13 = sld [smem:[#allocation3 + $0x1]] }
  0x3c   : > { %274 = vst.msk [vmem:[#allocation2 + $0x2b] sm:$0x7] %vm269_vm0, %v4673_v0  ;;  %275 = vst.msk [vmem:[#allocation2 + $0x43] sm:$0x7] %vm269_vm0, %v4673_v0  ;;  %s4560_s8 = sshll.u32 %s7434_s16, 6  ;;  %s4801_s14 = sld [smem:[#allocation5 + $0x1]] }
  0x3d   : > { %s231_s11 = scalar_lea.vmem %s7419_s0, %s4560_s8  ;;  %s4266_s17 = sld [smem:[#allocation3 + $0x2]] }
  0x3e   : > { %v237_v1 = vld [vmem:[%s231_s11] sm:$0xff]  ;;  %v239_v2 = vld [vmem:[%s231_s11 + $0x10] sm:$0xff]  ;;  %v238_v3 = vld [vmem:[%s231_s11 + $0x8] sm:$0xff]  ;;  %s4267_s18 = sld [smem:[#allocation5 + $0x2]]  ;;  %s4675_s19 = smov 127  }
  0x3f   : > { %v247_v4 = vsel %vm246_vm1, %v237_v1, -inf  ;;  %v248_v5 = vsel %vm246_vm1, %v239_v2, -inf  ;;  %v240_v6 = vld [vmem:[%s231_s11 + $0x18] sm:$0xff]  ;;  %v250_v7 = vsel %vm246_vm1, %v238_v3, -inf  ;;  %v253_v10 = vsel %vm246_vm1, %v237_v1, 0.0  ;;  %v4259_v12 = vld [vmem:[%s231_s11 + $0x20] sm:$0xff] }
  0x40   : > { %v249_v8 = vmax.f32 %v247_v4, %v248_v5  ;;  %v251_v9 = vsel %vm246_vm1, %v240_v6, -inf  ;;  %v254_v11 = vsel %vm246_vm1, %v239_v2, 0.0  ;;  %v256_v14 = vsel %vm246_vm1, %v238_v3, 0.0  ;;  %v4261_v15 = vld [vmem:[%s231_s11 + $0x30] sm:$0xff]  ;;  %v4260_v16 = vld [vmem:[%s231_s11 + $0x28] sm:$0xff]  ;;  %v4262_v17 = vld [vmem:[%s231_s11 + $0x38] sm:$0xff] }
  0x41   : > { %v255_v13 = vadd.f32 %v254_v11, %v253_v10  ;;  %v252_v18 = vmax.f32 %v250_v7, %v251_v9  ;;  %v257_v19 = vsel %vm246_vm1, %v240_v6, 0.0  ;;  %v259_v20 = vsel %vm246_vm1, %v4259_v12, 0.0  ;;  %s4268_s20 = sld [smem:[#allocation3 + $0x3]]  ;;  %s4676_s22 = smov 126  }
  0x42   : > { %278 = vrot.lane.b32.xlu0 %v249_v8, %s4674_s12  ;;  %v260_v21 = vsel %vm246_vm1, %v4261_v15, 0.0  ;;  %v258_v23 = vadd.f32 %v257_v19, %v256_v14  ;;  %v262_v25 = vsel %vm246_vm1, %v4260_v16, 0.0  ;;  %v263_v26 = vsel %vm246_vm1, %v4262_v17, 0.0  ;;  %s4824_s21 = sld [smem:[#allocation5 + $0x3]]  ;;  %s4677_s25 = smov 125  }
  0x43   : > { %v265_v22 = vmul.f32 0.5, %v255_v13  ;;  %v261_v24 = vadd.f32 %v260_v21, %v259_v20  ;;  %v264_v28 = vadd.f32 %v263_v26, %v262_v25  ;;  %v340_v46 = vstv %s4794_s13  ;;  %s4830_s23 = sld [smem:[#allocation3 + $0x4]]  ;;  %s4678_s28 = smov 124  }
  0x44   : > { %v266_v27 = vmul.f32 0.5, %v258_v23  ;;  %v354_v49 = vstv %s4801_s14  ;;  %v368_v52 = vstv %s4266_s17  ;;  %v382_v55 = vstv %s4267_s18  ;;  %s4837_s24 = sld [smem:[#allocation5 + $0x4]]  ;;  %s4679_s5 = smov 123  }
  0x45   : > { %295 = vrot.lane.b32.xlu1 %v265_v22, %s4674_s12  ;;  %v267_v29 = vmul.f32 0.5, %v261_v24  ;;  %v268_v30 = vmul.f32 0.5, %v264_v28  ;;  %s4844_s26 = sld [smem:[#allocation3 + $0x5]]  ;;  %s4680_s8 = smov 122  }
  0x46   : > { %280 = vrot.lane.b32.xlu0 %v252_v18, %s4674_s12  ;;  %s4853_s27 = sld [smem:[#allocation5 + $0x5]] }
  0x47   : > { %v396_v58 = vstv %s4268_s20  ;;  %s4274_s29 = sld [smem:[#allocation3 + $0x6]] }
  0x48   : > { %v410_v61 = vstv %s4824_s21  ;;  %s4275_s30 = sld [smem:[#allocation5 + $0x6]] }
  0x49   : > { %297 = vrot.lane.b32.xlu1 %v266_v27, %s4674_s12  ;;  %v424_v1 = vstv %s4830_s23  ;;  %s4278_s6 = sld [smem:[#allocation3 + $0x8]] }
  0x4a   : > { %310 = vrot.lane.b32.xlu0 %v267_v29, %s4674_s12  ;;  %v438_v6 = vstv %s4837_s24  ;;  %s4279_s7 = sld [smem:[#allocation5 + $0x8]] }
  0x4b   : > { %v452_v9 = vstv %s4844_s26  ;;  %s4280_s9 = sld [smem:[#allocation3 + $0x9]] }
  0x4c   : > { %v466_v12 = vstv %s4853_s27  ;;  %s4281_s10 = sld [smem:[#allocation5 + $0x9]] }
  0x4d   : > { %312 = vrot.lane.b32.xlu1 %v268_v30, %s4674_s12  ;;  %v480_v15 = vstv %s4274_s29  ;;  %s4282_s11 = sld [smem:[#allocation3 + $0xa]] }
  0x4e   : > { %v494_v18 = vstv %s4275_s30  ;;  %s4283_s12 = sld [smem:[#allocation5 + $0xa]] }
  0x4f   : > { %v522_v22 = vstv %s4278_s6  ;;  %s4284_s13 = sld [smem:[#allocation3 + $0xb]] }
  0x50   : > { %v536_v25 = vstv %s4279_s7  ;;  %s4285_s14 = sld [smem:[#allocation5 + $0xb]] }
  0x51   : > { %v550_v29 = vstv %s4280_s9  ;;  %s4286_s17 = sld [smem:[#allocation3 + $0xc]] }
  0x52   : > { %s4287_s18 = sld [smem:[#allocation5 + $0xc]] }
  0x53   : > { %s4288_s20 = sld [smem:[#allocation3 + $0xd]] }
  0x54   : > { %s4289_s21 = sld [smem:[#allocation5 + $0xd]] }
  0x55   : > { %s4292_s23 = sld [smem:[#allocation3 + $0xf]] }
  0x56   : > { %s4293_s24 = sld [smem:[#allocation5 + $0xf]] }
  0x57   : > { %s4294_s26 = sld [smem:[#allocation3 + $0x10]] }
  0x58   : > { %s4295_s27 = sld [smem:[#allocation5 + $0x10]] }
  0x59   : > { %s4296_s29 = sld [smem:[#allocation3 + $0x11]] }
  0x5a   : > { %s4297_s30 = sld [smem:[#allocation5 + $0x11]] }
  0x5b   : > { %s4950_s6 = sld [smem:[#allocation3 + $0x12]] }
  0x5c   : > { %s4956_s7 = sld [smem:[#allocation5 + $0x12]] }
  0x5d   : > { %s4965_s9 = sld [smem:[#allocation3 + $0x13]] }
  0xb4   : > { %v279_v31 = vpop.permute.xlu0 %278 }
  0xb5   : > { %v285_v32 = vsel %vm284_vm2, 0.0, %v279_v31 }
  0xb6   : > { %v288_v33 = vsel %vm287_vm3, %v285_v32, 0.0  ;;  %v564_v32 = vstv %s4281_s10  ;;  %s4974_s10 = sld [smem:[#allocation5 + $0x13]] }
  0xb7   : > { %291 = vst.msk [vmem:[#allocation2 + $0x3] sm:$0xff] %vm290_vm4, %v288_v33  ;;  %v296_v34 = vpop.permute.xlu1 %295 }
  0xb8   : > { %v281_v35 = vpop.permute.xlu0 %280  ;;  %v301_v36 = vsel %vm284_vm2, 0.0, %v296_v34 }
  0xb9   : > { %v286_v37 = vsel %vm284_vm2, 0.0, %v281_v35  ;;  %v303_v38 = vsel %vm287_vm3, %v301_v36, 0.0  ;;  %v578_v35 = vstv %s4282_s11  ;;  %s4983_s11 = sld [smem:[#allocation3 + $0x14]] }
  0xba   : > { %v289_v39 = vsel %vm287_vm3, %v286_v37, 0.0  ;;  %306 = vst.msk [vmem:[#allocation2 + $0x1b] sm:$0xff] %vm290_vm4, %v303_v38  ;;  %v592_v38 = vstv %s4283_s12  ;;  %s4994_s12 = sld [smem:[#allocation5 + $0x14]] }
  0xbb   : > { %292 = vst.msk [vmem:[#allocation2 + $0xb] sm:$0xff] %vm290_vm4, %v289_v39  ;;  %v298_v40 = vpop.permute.xlu1 %297 }
  0xbc   : > { %v302_v41 = vsel %vm284_vm2, 0.0, %v298_v40  ;;  %v311_v42 = vpop.permute.xlu0 %310 }
  0xbd   : > { %v304_v43 = vsel %vm287_vm3, %v302_v41, 0.0  ;;  %v316_v44 = vsel %vm284_vm2, 0.0, %v311_v42  ;;  %v606_v41 = vstv %s4284_s13  ;;  %s5003_s13 = sld [smem:[#allocation3 + $0x16]] }
  0xbe   : > { %v4808_v45 = vld [vmem:[#allocation2] sm:$0xff]  ;;  %307 = vst.msk [vmem:[#allocation2 + $0x23] sm:$0xff] %vm290_vm4, %v304_v43  ;;  %v318_v47 = vsel %vm287_vm3, %v316_v44, 0.0  ;;  %v620_v44 = vstv %s4285_s14  ;;  %s5005_s14 = sld [smem:[#allocation3]] }
  0xbf   : > { %321 = vst.msk [vmem:[#allocation2 + $0x33] sm:$0xff] %vm290_vm4, %v318_v47  ;;  %v341_v48 = vmul.f32 %v340_v46, %v4808_v45  ;;  %v355_v51 = vmul.f32 %v354_v49, %v4808_v45  ;;  %v369_v54 = vmul.f32 %v368_v52, %v4808_v45  ;;  %v383_v57 = vmul.f32 %v382_v55, %v4808_v45  ;;  %v313_v0 = vpop.permute.xlu1 %312  ;;  %v4877_v21 = vld [vmem:[#allocation2 + $0x1] sm:$0xff] }
  0xc0   : > { %v397_v60 = vmul.f32 %v396_v58, %v4808_v45  ;;  %v411_v63 = vmul.f32 %v410_v61, %v4808_v45  ;;  %v317_v3 = vsel %vm284_vm2, 0.0, %v313_v0  ;;  %v425_v4 = vmul.f32 %v424_v1, %v4808_v45 }
  0xc1   : > { %345 = vrot.lane.b32.xlu0 %v341_v48, %s4675_s19  ;;  %v319_v5 = vsel %vm287_vm3, %v317_v3, 0.0  ;;  %v439_v8 = vmul.f32 %v438_v6, %v4808_v45  ;;  %v453_v11 = vmul.f32 %v452_v9, %v4808_v45  ;;  %v467_v14 = vmul.f32 %v466_v12, %v4808_v45 }
  0xc2   : > { %v4817_v50 = vld [vmem:[#allocation2 + $0x8] sm:$0xff]  ;;  %322 = vst.msk [vmem:[#allocation2 + $0x3b] sm:$0xff] %vm290_vm4, %v319_v5  ;;  %v481_v17 = vmul.f32 %v480_v15, %v4808_v45  ;;  %v495_v20 = vmul.f32 %v494_v18, %v4808_v45  ;;  %v523_v24 = vmul.f32 %v522_v22, %v4877_v21  ;;  %v537_v28 = vmul.f32 %v536_v25, %v4877_v21 }
  0xc3   : > { %v342_v53 = vmul.f32 %v340_v46, %v4817_v50  ;;  %v356_v56 = vmul.f32 %v354_v49, %v4817_v50  ;;  %v370_v59 = vmul.f32 %v368_v52, %v4817_v50  ;;  %v384_v62 = vmul.f32 %v382_v55, %v4817_v50  ;;  %v4886_v27 = vld [vmem:[#allocation2 + $0x9] sm:$0xff] }
  0xc4   : > { %v398_v2 = vmul.f32 %v396_v58, %v4817_v50  ;;  %v412_v7 = vmul.f32 %v410_v61, %v4817_v50  ;;  %v426_v10 = vmul.f32 %v424_v1, %v4817_v50  ;;  %v440_v13 = vmul.f32 %v438_v6, %v4817_v50  ;;  %v4929_v61 = vld [vmem:[#allocation2 + $0x2] sm:$0xff]  ;;  %v4938_v3 = vld [vmem:[#allocation2 + $0xa] sm:$0xff] }
  0xc5   : > { %359 = vrot.lane.b32.xlu0 %v355_v51, %s4675_s19  ;;  %347 = vrot.lane.b32.xlu1 %v342_v53, %s4675_s19  ;;  %v454_v16 = vmul.f32 %v452_v9, %v4817_v50  ;;  %v468_v19 = vmul.f32 %v466_v12, %v4817_v50  ;;  %v482_v23 = vmul.f32 %v480_v15, %v4817_v50  ;;  %v634_v48 = vstv %s4286_s17  ;;  %s5014_s17 = sld [smem:[#allocation5 + $0x16]] }
  0xc6   : > { %v496_v26 = vmul.f32 %v494_v18, %v4817_v50  ;;  %v524_v30 = vmul.f32 %v522_v22, %v4886_v27  ;;  %v551_v31 = vmul.f32 %v550_v29, %v4877_v21  ;;  %v538_v33 = vmul.f32 %v536_v25, %v4886_v27 }
  0xc7   : > { %v565_v34 = vmul.f32 %v564_v32, %v4877_v21  ;;  %v552_v36 = vmul.f32 %v550_v29, %v4886_v27  ;;  %v579_v37 = vmul.f32 %v578_v35, %v4877_v21  ;;  %v566_v39 = vmul.f32 %v564_v32, %v4886_v27 }
  0xc8   : > { %v593_v40 = vmul.f32 %v592_v38, %v4877_v21  ;;  %v580_v42 = vmul.f32 %v578_v35, %v4886_v27  ;;  %v607_v43 = vmul.f32 %v606_v41, %v4877_v21  ;;  %v594_v46 = vmul.f32 %v592_v38, %v4886_v27 }
  0xc9   : > { %373 = vrot.lane.b32.xlu0 %v369_v54, %s4676_s22  ;;  %361 = vrot.lane.b32.xlu1 %v356_v56, %s4675_s19  ;;  %v621_v47 = vmul.f32 %v620_v44, %v4877_v21  ;;  %v608_v49 = vmul.f32 %v606_v41, %v4886_v27  ;;  %v635_v51 = vmul.f32 %v634_v48, %v4877_v21  ;;  %v648_v52 = vstv %s4287_s18  ;;  %s5016_s18 = sld [smem:[#allocation5]] }
  0xca   : > { %v622_v53 = vmul.f32 %v620_v44, %v4886_v27  ;;  %v649_v54 = vmul.f32 %v648_v52, %v4877_v21  ;;  %v662_v55 = vstv %s4288_s20  ;;  %v636_v56 = vmul.f32 %v634_v48, %v4886_v27  ;;  %s5027_s20 = sld [smem:[#allocation3 + $0x17]] }
  0xcb   : > { %v676_v58 = vstv %s4289_s21  ;;  %v718_v1 = vstv %s4293_s24  ;;  %v732_v5 = vstv %s4294_s26  ;;  %v788_v18 = vstv %s4950_s6  ;;  %s5038_s21 = sld [smem:[#allocation5 + $0x17]] }
  0xcc   : > { %v720_v9 = vmul.f32 %v718_v1, %v4938_v3  ;;  %v734_v12 = vmul.f32 %v732_v5, %v4938_v3  ;;  %v789_v22 = vmul.f32 %v788_v18, %v4929_v61  ;;  %v816_v29 = vstv %s4965_s9  ;;  %s5052_s24 = sld [smem:[#allocation3 + $0x18]] }
  0xcd   : > { %387 = vrot.lane.b32.xlu0 %v383_v57, %s4676_s22  ;;  %375 = vrot.lane.b32.xlu1 %v370_v59, %s4676_s22  ;;  %v663_v57 = vmul.f32 %v662_v55, %v4877_v21  ;;  %v650_v59 = vmul.f32 %v648_v52, %v4886_v27  ;;  %v818_v41 = vmul.f32 %v816_v29, %v4938_v3  ;;  %v858_v44 = vstv %s4994_s12  ;;  %s5054_s26 = sld [smem:[#allocation5 + $0x7]] }
  0xce   : > { %v886_v52 = vstv %s5003_s13  ;;  %s5103_s6 = sld [smem:[#allocation3 + $0x1a]] }
  0xcf   : > { %s5126_s9 = sld [smem:[#allocation3 + $0x1b]] }
  0xd0   : > { %s5153_s12 = sld [smem:[#allocation5 + $0x1d]] }
  0xd1   : > { %401 = vrot.lane.b32.xlu0 %v397_v60, %s4677_s25  ;;  %389 = vrot.lane.b32.xlu1 %v384_v62, %s4676_s22  ;;  %v677_v60 = vmul.f32 %v676_v58, %v4877_v21  ;;  %v704_v62 = vstv %s4292_s23  ;;  %s5041_s23 = sld [smem:[#allocation3 + $0x7]] }
  0xd2   : > { %v705_v0 = vmul.f32 %v704_v62, %v4929_v61  ;;  %v706_v6 = vmul.f32 %v704_v62, %v4938_v3  ;;  %s5162_s13 = sld [smem:[#allocation3 + $0x1e]] }
  0xd5   : > { %415 = vrot.lane.b32.xlu0 %v411_v63, %s4677_s25  ;;  %403 = vrot.lane.b32.xlu1 %v398_v2, %s4677_s25  ;;  %v664_v63 = vmul.f32 %v662_v55, %v4886_v27  ;;  %v678_v2 = vmul.f32 %v676_v58, %v4886_v27 }
  0xd9   : > { %429 = vrot.lane.b32.xlu0 %v425_v4, %s4678_s28  ;;  %417 = vrot.lane.b32.xlu1 %v412_v7, %s4677_s25  ;;  %v719_v4 = vmul.f32 %v718_v1, %v4929_v61  ;;  %v733_v7 = vmul.f32 %v732_v5, %v4929_v61  ;;  %v5046_v1 = vld [vmem:[#allocation2 + $0xb] sm:$0xff] }
  0xdd   : > { %443 = vrot.lane.b32.xlu0 %v439_v8, %s4678_s28  ;;  %431 = vrot.lane.b32.xlu1 %v426_v10, %s4678_s28  ;;  %v746_v8 = vstv %s4295_s27  ;;  %s5064_s27 = sld [smem:[#allocation5 + $0x18]] }
  0xde   : > { %v747_v10 = vmul.f32 %v746_v8, %v4929_v61  ;;  %v748_v15 = vmul.f32 %v746_v8, %v4938_v3 }
  0xe1   : > { %457 = vrot.lane.b32.xlu0 %v453_v11, %s4679_s5  ;;  %445 = vrot.lane.b32.xlu1 %v440_v13, %s4678_s28  ;;  %v760_v11 = vstv %s4296_s29  ;;  %s5076_s29 = sld [smem:[#allocation3 + $0x19]] }
  0xe2   : > { %v761_v13 = vmul.f32 %v760_v11, %v4929_v61 }
  0xe5   : > { %471 = vrot.lane.b32.xlu0 %v467_v14, %s4679_s5  ;;  %459 = vrot.lane.b32.xlu1 %v454_v16, %s4679_s5  ;;  %v774_v14 = vstv %s4297_s30  ;;  %s5090_s30 = sld [smem:[#allocation5 + $0x19]] }
  0xe6   : > { %v776_v25 = vmul.f32 %v774_v14, %v4938_v3 }
  0xe9   : > { %485 = vrot.lane.b32.xlu0 %v481_v17, %s4680_s8  ;;  %473 = vrot.lane.b32.xlu1 %v468_v19, %s4679_s5  ;;  %v775_v17 = vmul.f32 %v774_v14, %v4929_v61  ;;  %v762_v19 = vmul.f32 %v760_v11, %v4938_v3  ;;  %v888_v11 = vmul.f32 %v886_v52, %v5046_v1 }
  0xed   : > { %499 = vrot.lane.b32.xlu0 %v495_v20, %s4680_s8  ;;  %487 = vrot.lane.b32.xlu1 %v482_v23, %s4680_s8  ;;  %v802_v23 = vstv %s4956_s7  ;;  %s5115_s7 = sld [smem:[#allocation5 + $0x1a]] }
  0xf1   : > { %527 = vrot.lane.b32.xlu0 %v523_v24, %s4675_s19  ;;  %501 = vrot.lane.b32.xlu1 %v496_v26, %s4680_s8 }
  0xf5   : > { %541 = vrot.lane.b32.xlu0 %v537_v28, %s4675_s19  ;;  %529 = vrot.lane.b32.xlu1 %v524_v30, %s4675_s19  ;;  %v803_v28 = vmul.f32 %v802_v23, %v4929_v61 }
  0xf9   : > { %555 = vrot.lane.b32.xlu0 %v551_v31, %s4676_s22  ;;  %543 = vrot.lane.b32.xlu1 %v538_v33, %s4675_s19  ;;  %v790_v31 = vmul.f32 %v788_v18, %v4938_v3  ;;  %v817_v33 = vmul.f32 %v816_v29, %v4929_v61 }
  0xfd   : > { %569 = vrot.lane.b32.xlu0 %v565_v34, %s4676_s22  ;;  %557 = vrot.lane.b32.xlu1 %v552_v36, %s4676_s22  ;;  %v830_v34 = vstv %s4974_s10  ;;  %v804_v36 = vmul.f32 %v802_v23, %v4938_v3  ;;  %s5135_s10 = sld [smem:[#allocation5 + $0x1b]] }
  0xfe   : > { %v831_v38 = vmul.f32 %v830_v34, %v4929_v61 }
 0x101   : > { %583 = vrot.lane.b32.xlu0 %v579_v37, %s4677_s25  ;;  %571 = vrot.lane.b32.xlu1 %v566_v39, %s4676_s22  ;;  %v844_v39 = vstv %s4983_s11  ;;  %s5144_s11 = sld [smem:[#allocation3 + $0x1d]] }
 0x102   : > { %v846_v55 = vmul.f32 %v844_v39, %v4938_v3 }
 0x105   : > { %597 = vrot.lane.b32.xlu0 %v593_v40, %s4677_s25  ;;  %585 = vrot.lane.b32.xlu1 %v580_v42, %s4677_s25 }
 0x109   : > { %611 = vrot.lane.b32.xlu0 %v607_v43, %s4678_s28  ;;  %599 = vrot.lane.b32.xlu1 %v594_v46, %s4677_s25  ;;  %v845_v43 = vmul.f32 %v844_v39, %v4929_v61 }
 0x10d   : > { %625 = vrot.lane.b32.xlu0 %v621_v47, %s4678_s28  ;;  %613 = vrot.lane.b32.xlu1 %v608_v49, %s4678_s28  ;;  %v832_v47 = vmul.f32 %v830_v34, %v4938_v3  ;;  %v859_v49 = vmul.f32 %v858_v44, %v4929_v61  ;;  %v516_v34 = vstv %s5054_s26  ;;  %s5234_s26 = sld [smem:[#allocation3 + $0x21]] }
 0x111   : > { %639 = vrot.lane.b32.xlu0 %v635_v51, %s4679_s5  ;;  %627 = vrot.lane.b32.xlu1 %v622_v53, %s4678_s28  ;;  %v5023_v51 = vld [vmem:[#allocation2 + $0x3] sm:$0xff]  ;;  %v328_v53 = vstv %s5005_s14  ;;  %s5171_s14 = sld [smem:[#allocation5 + $0x1e]] }
 0x112   : > { %v329_v58 = vmul.f32 %v328_v53, %v4808_v45 }
 0x115   : > { %653 = vrot.lane.b32.xlu0 %v649_v54, %s4679_s5  ;;  %641 = vrot.lane.b32.xlu1 %v636_v56, %s4679_s5 }
 0x119   : > { %667 = vrot.lane.b32.xlu0 %v663_v57, %s4680_s8  ;;  %655 = vrot.lane.b32.xlu1 %v650_v59, %s4679_s5  ;;  %v887_v57 = vmul.f32 %v886_v52, %v5023_v51  ;;  %v900_v59 = vstv %s5014_s17  ;;  %s5173_s17 = sld [smem:[#allocation3 + $0xe]] }
 0x11a   : > { %v902_v23 = vmul.f32 %v900_v59, %v5046_v1 }
 0x11d   : > { %681 = vrot.lane.b32.xlu0 %v677_v60, %s4680_s8  ;;  %669 = vrot.lane.b32.xlu1 %v664_v63, %s4680_s8  ;;  %v334_v60 = vstv %s5016_s18  ;;  %s5184_s18 = sld [smem:[#allocation3 + $0x1f]] }
 0x11e   : > { %v335_v5 = vmul.f32 %v334_v60, %v4808_v45  ;;  %v330_v45 = vmul.f32 %v328_v53, %v4817_v50 }
 0x121   : > { %709 = vrot.lane.b32.xlu0 %v705_v0, %s4675_s19  ;;  %683 = vrot.lane.b32.xlu1 %v678_v2, %s4680_s8  ;;  %v860_v0 = vmul.f32 %v858_v44, %v4938_v3 }
 0x125   : > { %723 = vrot.lane.b32.xlu0 %v719_v4, %s4675_s19  ;;  %711 = vrot.lane.b32.xlu1 %v706_v6, %s4675_s19  ;;  %v901_v4 = vmul.f32 %v900_v59, %v5023_v51 }
 0x129   : > { %737 = vrot.lane.b32.xlu0 %v733_v7, %s4676_s22  ;;  %725 = vrot.lane.b32.xlu1 %v720_v9, %s4675_s19  ;;  %v914_v7 = vstv %s5027_s20  ;;  %s5186_s20 = sld [smem:[#allocation5 + $0xe]] }
 0x12a   : > { %v916_v39 = vmul.f32 %v914_v7, %v5046_v1 }
 0x12d   : > { %751 = vrot.lane.b32.xlu0 %v747_v10, %s4676_s22  ;;  %739 = vrot.lane.b32.xlu1 %v734_v12, %s4676_s22 }
 0x131   : > { %765 = vrot.lane.b32.xlu0 %v761_v13, %s4677_s25  ;;  %753 = vrot.lane.b32.xlu1 %v748_v15, %s4676_s22  ;;  %v915_v13 = vmul.f32 %v914_v7, %v5023_v51 }
 0x133   : > { %v4960_v16 = vpop.permute.xlu0 %345 }
 0x134   : > { %v351_v62 = vadd.f32 %v4960_v16, %v329_v58  ;;  %v928_v16 = vstv %s5038_s21  ;;  %s5195_s21 = sld [smem:[#allocation5 + $0x1f]] }
 0x135   : > { %779 = vrot.lane.b32.xlu0 %v775_v17, %s4677_s25  ;;  %767 = vrot.lane.b32.xlu1 %v762_v19, %s4677_s25  ;;  %v510_v17 = vstv %s5041_s23  ;;  %v929_v29 = vmul.f32 %v928_v16, %v5023_v51  ;;  %v930_v53 = vmul.f32 %v928_v16, %v5046_v1  ;;  %s5207_s23 = sld [smem:[#allocation3 + $0x20]] }
 0x137   : > { %v4969_v20 = vpop.permute.xlu0 %359  ;;  %v4977_v24 = vpop.permute.xlu1 %347 }
 0x138   : > { %v365_v8 = vadd.f32 %v4969_v20, %v335_v5  ;;  %v352_v18 = vadd.f32 %v4977_v24, %v330_v45 }
 0x139   : > { %793 = vrot.lane.b32.xlu0 %v789_v22, %s4678_s28  ;;  %781 = vrot.lane.b32.xlu1 %v776_v25, %s4677_s25  ;;  %v336_v25 = vmul.f32 %v334_v60, %v4817_v50 }
 0x13b   : > { %v374_v26 = vpop.permute.xlu0 %373  ;;  %v4986_v30 = vpop.permute.xlu1 %361 }
 0x13c   : > { %v379_v6 = vadd.f32 %v374_v26, %v351_v62 }
 0x13d   : > { %807 = vrot.lane.b32.xlu0 %v803_v28, %s4678_s28  ;;  %795 = vrot.lane.b32.xlu1 %v790_v31, %s4678_s28  ;;  %v511_v31 = vmul.f32 %v510_v17, %v4877_v21 }
 0x13f   : > { %v4989_v32 = vpop.permute.xlu0 %387  ;;  %v4997_v35 = vpop.permute.xlu1 %375 }
 0x140   : > { %v393_v14 = vadd.f32 %v4989_v32, %v365_v8  ;;  %v380_v26 = vadd.f32 %v4997_v35, %v352_v18 }
 0x141   : > { %821 = vrot.lane.b32.xlu0 %v817_v33, %s4679_s5  ;;  %809 = vrot.lane.b32.xlu1 %v804_v36, %s4678_s28  ;;  %v942_v33 = vstv %s5052_s24  ;;  %v366_v36 = vadd.f32 %v4986_v30, %v336_v25  ;;  %s5221_s24 = sld [smem:[#allocation5 + $0x20]] }
 0x142   : > { %v943_v44 = vmul.f32 %v942_v33, %v5023_v51 }
 0x143   : > { %v402_v37 = vpop.permute.xlu0 %401  ;;  %v5008_v40 = vpop.permute.xlu1 %389 }
 0x144   : > { %v407_v9 = vadd.f32 %v402_v37, %v379_v6  ;;  %v984_v6 = vstv %s5090_s30  ;;  %s5266_s30 = sld [smem:[#allocation5 + $0x22]] }
 0x145   : > { %835 = vrot.lane.b32.xlu0 %v831_v38, %s4679_s5  ;;  %823 = vrot.lane.b32.xlu1 %v818_v41, %s4679_s5  ;;  %v394_v41 = vadd.f32 %v5008_v40, %v366_v36 }
 0x147   : > { %v416_v42 = vpop.permute.xlu0 %415  ;;  %v5019_v46 = vpop.permute.xlu1 %403 }
 0x148   : > { %v421_v19 = vadd.f32 %v416_v42, %v393_v14  ;;  %v408_v50 = vadd.f32 %v5019_v46, %v380_v26  ;;  %v956_v46 = vstv %s5064_s27  ;;  %s5246_s27 = sld [smem:[#allocation5 + $0x21]] }
 0x149   : > { %849 = vrot.lane.b32.xlu0 %v845_v43, %s4680_s8  ;;  %837 = vrot.lane.b32.xlu1 %v832_v47, %s4679_s5  ;;  %v517_v47 = vmul.f32 %v516_v34, %v4877_v21  ;;  %v957_v58 = vmul.f32 %v956_v46, %v5023_v51 }
 0x14b   : > { %v430_v48 = vpop.permute.xlu0 %429  ;;  %v5031_v54 = vpop.permute.xlu1 %417 }
 0x14c   : > { %v435_v15 = vadd.f32 %v430_v48, %v407_v9  ;;  %v422_v48 = vadd.f32 %v5031_v54, %v394_v41  ;;  %v970_v54 = vstv %s5076_s29  ;;  %v958_v9 = vmul.f32 %v956_v46, %v5046_v1  ;;  %s5257_s29 = sld [smem:[#allocation3 + $0x22]] }
 0x14d   : > { %863 = vrot.lane.b32.xlu0 %v859_v49, %s4680_s8  ;;  %851 = vrot.lane.b32.xlu1 %v846_v55, %s4680_s8  ;;  %v512_v55 = vmul.f32 %v510_v17, %v4886_v27  ;;  %v971_v5 = vmul.f32 %v970_v54, %v5023_v51  ;;  %v986_v17 = vmul.f32 %v984_v6, %v5046_v1 }
 0x14f   : > { %v444_v56 = vpop.permute.xlu0 %443  ;;  %v432_v63 = vpop.permute.xlu1 %431 }
 0x150   : > { %v449_v32 = vadd.f32 %v444_v56, %v421_v19  ;;  %v436_v42 = vadd.f32 %v432_v63, %v408_v50  ;;  %v944_v63 = vmul.f32 %v942_v33, %v5046_v1  ;;  %v5158_v33 = vld [vmem:[#allocation2 + $0x4] sm:$0xff] }
 0x151   : > { %891 = vrot.lane.b32.xlu0 %v887_v57, %s4675_s19  ;;  %865 = vrot.lane.b32.xlu1 %v860_v0, %s4680_s8  ;;  %v518_v0 = vmul.f32 %v516_v34, %v4886_v27  ;;  %v1068_v34 = vstv %s5144_s11  ;;  %s5304_s11 = sld [smem:[#allocation3 + $0x15]] }
 0x153   : > { %v458_v2 = vpop.permute.xlu0 %457  ;;  %v446_v10 = vpop.permute.xlu1 %445 }
 0x154   : > { %v463_v20 = vadd.f32 %v458_v2, %v435_v15  ;;  %v450_v21 = vadd.f32 %v446_v10, %v422_v48  ;;  %v985_v10 = vmul.f32 %v984_v6, %v5023_v51  ;;  %v1012_v15 = vstv %s5115_s7  ;;  %s5284_s7 = sld [smem:[#allocation5 + $0x24]] }
 0x155   : > { %905 = vrot.lane.b32.xlu0 %v901_v4, %s4675_s19  ;;  %893 = vrot.lane.b32.xlu1 %v888_v11, %s4675_s19  ;;  %v998_v11 = vstv %s5103_s6  ;;  %v1013_v19 = vmul.f32 %v1012_v15, %v5023_v51  ;;  %v1096_v48 = vstv %s5162_s13  ;;  %s5275_s6 = sld [smem:[#allocation3 + $0x24]] }
 0x156   : > { %v999_v14 = vmul.f32 %v998_v11, %v5023_v51  ;;  %s5317_s13 = sld [smem:[#allocation5 + $0x15]] }
 0x157   : > { %v472_v12 = vpop.permute.xlu0 %471  ;;  %v460_v22 = vpop.permute.xlu1 %459 }
 0x158   : > { %v477_v35 = vadd.f32 %v472_v12, %v449_v32  ;;  %v464_v49 = vadd.f32 %v460_v22, %v436_v42  ;;  %v972_v12 = vmul.f32 %v970_v54, %v5046_v1  ;;  %v692_v54 = vstv %s5173_s17  ;;  %s5338_s17 = sld [smem:[#allocation3 + $0x27]] }
 0x159   : > { %919 = vrot.lane.b32.xlu0 %v915_v13, %s4676_s22  ;;  %907 = vrot.lane.b32.xlu1 %v902_v23, %s4675_s19  ;;  %v1000_v23 = vmul.f32 %v998_v11, %v5046_v1  ;;  %v693_v6 = vmul.f32 %v692_v54, %v4929_v61 }
 0x15b   : > { %v486_v28 = vpop.permute.xlu0 %485  ;;  %v474_v37 = vpop.permute.xlu1 %473 }
 0x15c   : > { %v491_v24 = vadd.f32 %v486_v28, %v463_v20  ;;  %v478_v59 = vadd.f32 %v474_v37, %v450_v21  ;;  %v1026_v20 = vstv %s5126_s9  ;;  %v1040_v28 = vstv %s5135_s10  ;;  %s5293_s9 = sld [smem:[#allocation3 + $0x25]] }
 0x15d   : > { %933 = vrot.lane.b32.xlu0 %v929_v29, %s4676_s22  ;;  %921 = vrot.lane.b32.xlu1 %v916_v39, %s4676_s22  ;;  %v1027_v26 = vmul.f32 %v1026_v20, %v5023_v51  ;;  %v1028_v50 = vmul.f32 %v1026_v20, %v5046_v1  ;;  %v1069_v37 = vmul.f32 %v1068_v34, %v5158_v33  ;;  %v1082_v39 = vstv %s5153_s12  ;;  %s5302_s10 = sld [smem:[#allocation5 + $0x25]] }
 0x15e   : > { %v5082_v38 = vadd.f32 %v511_v31, %v491_v24  ;;  %v1014_v31 = vmul.f32 %v1012_v15, %v5046_v1  ;;  %v1041_v24 = vmul.f32 %v1040_v28, %v5023_v51  ;;  %v1097_v21 = vmul.f32 %v1096_v48, %v5158_v33  ;;  %s5315_s12 = sld [smem:[#allocation3 + $0x26]] }
 0x15f   : > { %v500_v43 = vpop.permute.xlu0 %499  ;;  %v488_v52 = vpop.permute.xlu1 %487 }
 0x160   : > { %v505_v30 = vadd.f32 %v500_v43, %v477_v35  ;;  %v492_v56 = vadd.f32 %v488_v52, %v464_v49  ;;  %v1042_v43 = vmul.f32 %v1040_v28, %v5046_v1 }
 0x161   : > { %947 = vrot.lane.b32.xlu0 %v943_v44, %s4677_s25  ;;  %935 = vrot.lane.b32.xlu1 %v930_v53, %s4676_s22  ;;  %v5179_v44 = vld [vmem:[#allocation2 + $0xc] sm:$0xff] }
 0x162   : > { %v5094_v40 = vadd.f32 %v517_v47, %v505_v30  ;;  %v5105_v60 = vadd.f32 %v512_v55, %v492_v56  ;;  %v1083_v30 = vmul.f32 %v1082_v39, %v5158_v33  ;;  %v1070_v53 = vmul.f32 %v1068_v34, %v5179_v44 }
 0x163   : > { %v5098_v57 = vpop.permute.xlu0 %527  ;;  %v502_v62 = vpop.permute.xlu1 %501  ;;  %v1098_v15 = vmul.f32 %v1096_v48, %v5179_v44  ;;  %v1152_v34 = vstv %s5207_s23  ;;  %s5388_s23 = sld [smem:[#allocation3 + $0x29]] }
 0x164   : > { %v506_v2 = vadd.f32 %v502_v62, %v478_v59  ;;  %v533_v41 = vadd.f32 %v5098_v57, %v5082_v38 }
 0x165   : > { %961 = vrot.lane.b32.xlu0 %v957_v58, %s4677_s25  ;;  %949 = vrot.lane.b32.xlu1 %v944_v63, %s4677_s25  ;;  %v1110_v58 = vstv %s5171_s14  ;;  %s5326_s14 = sld [smem:[#allocation5 + $0x26]] }
 0x166   : > { %v5117_v7 = vadd.f32 %v518_v0, %v506_v2  ;;  %v1084_v0 = vmul.f32 %v1082_v39, %v5179_v44  ;;  %v1112_v28 = vmul.f32 %v1110_v58, %v5179_v44 }
 0x167   : > { %v5110_v4 = vpop.permute.xlu0 %541  ;;  %v5120_v8 = vpop.permute.xlu1 %529 }
 0x168   : > { %v547_v38 = vadd.f32 %v5110_v4, %v5094_v40  ;;  %v534_v40 = vadd.f32 %v5120_v8, %v5105_v60  ;;  %v698_v60 = vstv %s5186_s20  ;;  %s5365_s20 = sld [smem:[#allocation3 + $0x28]] }
 0x169   : > { %975 = vrot.lane.b32.xlu0 %v971_v5, %s4678_s28  ;;  %963 = vrot.lane.b32.xlu1 %v958_v9, %s4677_s25  ;;  %v1111_v5 = vmul.f32 %v1110_v58, %v5158_v33  ;;  %v699_v20 = vmul.f32 %v698_v60, %v4929_v61  ;;  %v700_v39 = vmul.f32 %v698_v60, %v4938_v3  ;;  %v1250_v60 = vstv %s5275_s6  ;;  %s5435_s6 = sld [smem:[#allocation3 + $0x1c]] }
 0x16b   : > { %v556_v27 = vpop.permute.xlu0 %555  ;;  %v5129_v45 = vpop.permute.xlu1 %543 }
 0x16c   : > { %v561_v46 = vadd.f32 %v556_v27, %v533_v41  ;;  %v548_v8 = vadd.f32 %v5129_v45, %v5117_v7  ;;  %v1138_v45 = vstv %s5195_s21  ;;  %s5377_s21 = sld [smem:[#allocation5 + $0x28]] }
 0x16d   : > { %989 = vrot.lane.b32.xlu0 %v985_v10, %s4678_s28  ;;  %977 = vrot.lane.b32.xlu1 %v972_v12, %s4678_s28  ;;  %v1124_v10 = vstv %s5184_s18  ;;  %v1140_v48 = vmul.f32 %v1138_v45, %v5179_v44  ;;  %s5352_s18 = sld [smem:[#allocation5 + $0x27]] }
 0x16f   : > { %v570_v13 = vpop.permute.xlu0 %569  ;;  %v5138_v16 = vpop.permute.xlu1 %557 }
 0x170   : > { %v575_v56 = vadd.f32 %v570_v13, %v547_v38  ;;  %v562_v2 = vadd.f32 %v5138_v16, %v534_v40 }
 0x171   : > { %1003 = vrot.lane.b32.xlu0 %v999_v14, %s4679_s5  ;;  %991 = vrot.lane.b32.xlu1 %v986_v17, %s4678_s28 }
 0x173   : > { %v584_v18 = vpop.permute.xlu0 %583  ;;  %v5147_v22 = vpop.permute.xlu1 %571 }
 0x174   : > { %v589_v49 = vadd.f32 %v584_v18, %v561_v46  ;;  %v576_v16 = vadd.f32 %v5147_v22, %v548_v8 }
 0x175   : > { %1017 = vrot.lane.b32.xlu0 %v1013_v19, %s4679_s5  ;;  %1005 = vrot.lane.b32.xlu1 %v1000_v23, %s4679_s5  ;;  %v1125_v19 = vmul.f32 %v1124_v10, %v5158_v33 }
 0x177   : > { %v598_v25 = vpop.permute.xlu0 %597  ;;  %v586_v29 = vpop.permute.xlu1 %585 }
 0x178   : > { %v603_v59 = vadd.f32 %v598_v25, %v575_v56  ;;  %v590_v11 = vadd.f32 %v586_v29, %v562_v2  ;;  %v694_v29 = vmul.f32 %v692_v54, %v4938_v3  ;;  %v1194_v56 = vstv %s5246_s27  ;;  %s5415_s27 = sld [smem:[#allocation5 + $0x2b]] }
 0x179   : > { %1031 = vrot.lane.b32.xlu0 %v1027_v26, %s4680_s8  ;;  %1019 = vrot.lane.b32.xlu1 %v1014_v31, %s4679_s5  ;;  %v1195_v40 = vmul.f32 %v1194_v56, %v5158_v33 }
 0x17b   : > { %v612_v32 = vpop.permute.xlu0 %611  ;;  %v5165_v36 = vpop.permute.xlu1 %599 }
 0x17c   : > { %v617_v57 = vadd.f32 %v612_v32, %v589_v49  ;;  %v604_v23 = vadd.f32 %v5165_v36, %v576_v16  ;;  %v1180_v49 = vstv %s5234_s26  ;;  %s5406_s26 = sld [smem:[#allocation3 + $0x2b]] }
 0x17d   : > { %1045 = vrot.lane.b32.xlu0 %v1041_v24, %s4680_s8  ;;  %1033 = vrot.lane.b32.xlu1 %v1028_v50, %s4680_s8  ;;  %v1139_v24 = vmul.f32 %v1138_v45, %v5158_v33 }
 0x17f   : > { %v626_v35 = vpop.permute.xlu0 %625  ;;  %v614_v42 = vpop.permute.xlu1 %613 }
 0x180   : > { %v631_v9 = vadd.f32 %v626_v35, %v603_v59  ;;  %v618_v17 = vadd.f32 %v614_v42, %v590_v11  ;;  %v1208_v59 = vstv %s5257_s29  ;;  %s5424_s29 = sld [smem:[#allocation3 + $0x2c]] }
 0x181   : > { %1073 = vrot.lane.b32.xlu0 %v1069_v37, %s4675_s19  ;;  %1047 = vrot.lane.b32.xlu1 %v1042_v43, %s4680_s8  ;;  %v1126_v37 = vmul.f32 %v1124_v10, %v5179_v44  ;;  %v1153_v43 = vmul.f32 %v1152_v34, %v5158_v33  ;;  %v1209_v2 = vmul.f32 %v1208_v59, %v5158_v33  ;;  %v5289_v10 = vld [vmem:[#allocation2 + $0x5] sm:$0xff] }
 0x182   : > { %v1210_v11 = vmul.f32 %v1208_v59, %v5179_v44 }
 0x183   : > { %v640_v47 = vpop.permute.xlu0 %639  ;;  %v628_v52 = vpop.permute.xlu1 %627 }
 0x184   : > { %v645_v62 = vadd.f32 %v640_v47, %v617_v57  ;;  %v632_v61 = vadd.f32 %v628_v52, %v604_v23  ;;  %v1166_v47 = vstv %s5221_s24  ;;  %v1278_v23 = vstv %s5293_s9  ;;  %s5397_s24 = sld [smem:[#allocation5 + $0x29]] }
 0x185   : > { %1087 = vrot.lane.b32.xlu0 %v1083_v30, %s4675_s19  ;;  %1075 = vrot.lane.b32.xlu1 %v1070_v53, %s4675_s19  ;;  %v1167_v38 = vmul.f32 %v1166_v47, %v5158_v33  ;;  %v1154_v53 = vmul.f32 %v1152_v34, %v5179_v44  ;;  %v1168_v58 = vmul.f32 %v1166_v47, %v5179_v44  ;;  %v874_v34 = vstv %s5304_s11  ;;  %s5448_s9 = sld [smem:[#allocation5 + $0x1c]] }
 0x186   : > { %v875_v47 = vmul.f32 %v874_v34, %v5023_v51  ;;  %s5469_s11 = sld [smem:[#allocation3 + $0x2e]] }
 0x187   : > { %v654_v55 = vpop.permute.xlu0 %653  ;;  %v642_v63 = vpop.permute.xlu1 %641 }
 0x188   : > { %v659_v12 = vadd.f32 %v654_v55, %v631_v9  ;;  %v646_v25 = vadd.f32 %v642_v63, %v618_v17  ;;  %v1182_v63 = vmul.f32 %v1180_v49, %v5179_v44 }
 0x189   : > { %1101 = vrot.lane.b32.xlu0 %v1097_v21, %s4676_s22  ;;  %1089 = vrot.lane.b32.xlu1 %v1084_v0, %s4675_s19  ;;  %v1181_v21 = vmul.f32 %v1180_v49, %v5158_v33 }
 0x18b   : > { %v668_v4 = vpop.permute.xlu0 %667  ;;  %v656_v13 = vpop.permute.xlu1 %655 }
 0x18c   : > { %v673_v27 = vadd.f32 %v668_v4, %v645_v62  ;;  %v660_v36 = vadd.f32 %v656_v13, %v632_v61  ;;  %v1222_v4 = vstv %s5266_s30  ;;  %v1251_v13 = vmul.f32 %v1250_v60, %v5289_v10  ;;  %s5433_s30 = sld [smem:[#allocation5 + $0x2c]] }
 0x18d   : > { %1115 = vrot.lane.b32.xlu0 %v1111_v5, %s4676_s22  ;;  %1103 = vrot.lane.b32.xlu1 %v1098_v15, %s4676_s22  ;;  %v1264_v15 = vstv %s5284_s7  ;;  %v1279_v61 = vmul.f32 %v1278_v23, %v5289_v10  ;;  %s5446_s7 = sld [smem:[#allocation3 + $0x2d]] }
 0x18e   : > { %v5213_v14 = vadd.f32 %v693_v6, %v673_v27  ;;  %v1196_v6 = vmul.f32 %v1194_v56, %v5179_v44  ;;  %v1223_v27 = vmul.f32 %v1222_v4, %v5158_v33 }
 0x18f   : > { %v682_v18 = vpop.permute.xlu0 %681  ;;  %v670_v26 = vpop.permute.xlu1 %669 }
 0x190   : > { %v687_v7 = vadd.f32 %v682_v18, %v659_v12  ;;  %v674_v31 = vadd.f32 %v670_v26, %v646_v25  ;;  %v1224_v18 = vmul.f32 %v1222_v4, %v5179_v44 }
 0x191   : > { %1129 = vrot.lane.b32.xlu0 %v1125_v19, %s4677_s25  ;;  %1117 = vrot.lane.b32.xlu1 %v1112_v28, %s4676_s22  ;;  %v5310_v19 = vld [vmem:[#allocation2 + $0xd] sm:$0xff] }
 0x192   : > { %v5225_v22 = vadd.f32 %v699_v20, %v687_v7  ;;  %v5236_v50 = vadd.f32 %v694_v29, %v674_v31  ;;  %v1265_v7 = vmul.f32 %v1264_v15, %v5289_v10  ;;  %v1252_v28 = vmul.f32 %v1250_v60, %v5310_v19 }
 0x193   : > { %v5229_v32 = vpop.permute.xlu0 %709  ;;  %v684_v35 = vpop.permute.xlu1 %683  ;;  %v1280_v56 = vmul.f32 %v1278_v23, %v5310_v19  ;;  %v1334_v60 = vstv %s5338_s17  ;;  %s5519_s17 = sld [smem:[#allocation3 + $0x30]] }
 0x194   : > { %v688_v41 = vadd.f32 %v684_v35, %v660_v36  ;;  %v715_v16 = vadd.f32 %v5229_v32, %v5213_v14 }
 0x195   : > { %1143 = vrot.lane.b32.xlu0 %v1139_v24, %s4677_s25  ;;  %1131 = vrot.lane.b32.xlu1 %v1126_v37, %s4677_s25  ;;  %v1292_v24 = vstv %s5302_s10  ;;  %s5457_s10 = sld [smem:[#allocation5 + $0x2d]] }
 0x196   : > { %v5248_v30 = vadd.f32 %v700_v39, %v688_v41  ;;  %v1266_v39 = vmul.f32 %v1264_v15, %v5310_v19  ;;  %v1294_v4 = vmul.f32 %v1292_v24, %v5310_v19 }
 0x197   : > { %v5241_v42 = vpop.permute.xlu0 %723  ;;  %v5251_v46 = vpop.permute.xlu1 %711 }
 0x198   : > { %v729_v14 = vadd.f32 %v5241_v42, %v5225_v22  ;;  %v716_v22 = vadd.f32 %v5251_v46, %v5236_v50  ;;  %v880_v50 = vstv %s5317_s13  ;;  %s5496_s13 = sld [smem:[#allocation3 + $0x2f]] }
 0x199   : > { %1157 = vrot.lane.b32.xlu0 %v1153_v43, %s4678_s28  ;;  %1145 = vrot.lane.b32.xlu1 %v1140_v48, %s4677_s25  ;;  %v1293_v43 = vmul.f32 %v1292_v24, %v5289_v10  ;;  %v881_v59 = vmul.f32 %v880_v50, %v5023_v51  ;;  %v882_v15 = vmul.f32 %v880_v50, %v5046_v1  ;;  %v1432_v50 = vstv %s5406_s26  ;;  %s5566_s26 = sld [smem:[#allocation3 + $0x23]] }
 0x19b   : > { %v738_v3 = vpop.permute.xlu0 %737  ;;  %v5260_v52 = vpop.permute.xlu1 %725 }
 0x19c   : > { %v743_v45 = vadd.f32 %v738_v3, %v715_v16  ;;  %v730_v46 = vadd.f32 %v5260_v52, %v5248_v30  ;;  %v1320_v52 = vstv %s5326_s14  ;;  %s5508_s14 = sld [smem:[#allocation5 + $0x2f]] }
 0x19d   : > { %1171 = vrot.lane.b32.xlu0 %v1167_v38, %s4678_s28  ;;  %1159 = vrot.lane.b32.xlu1 %v1154_v53, %s4678_s28  ;;  %v1306_v38 = vstv %s5315_s12  ;;  %v1322_v23 = vmul.f32 %v1320_v52, %v5310_v19  ;;  %s5483_s12 = sld [smem:[#allocation5 + $0x2e]] }
 0x19f   : > { %v752_v55 = vpop.permute.xlu0 %751  ;;  %v5269_v57 = vpop.permute.xlu1 %739 }
 0x1a0   : > { %v757_v31 = vadd.f32 %v752_v55, %v729_v14  ;;  %v744_v41 = vadd.f32 %v5269_v57, %v716_v22 }
 0x1a1   : > { %1185 = vrot.lane.b32.xlu0 %v1181_v21, %s4679_s5  ;;  %1173 = vrot.lane.b32.xlu1 %v1168_v58, %s4678_s28 }
 0x1a3   : > { %v766_v54 = vpop.permute.xlu0 %765  ;;  %v5278_v62 = vpop.permute.xlu1 %753 }
 0x1a4   : > { %v771_v25 = vadd.f32 %v766_v54, %v743_v45  ;;  %v758_v57 = vadd.f32 %v5278_v62, %v730_v46 }
 0x1a5   : > { %1199 = vrot.lane.b32.xlu0 %v1195_v40, %s4679_s5  ;;  %1187 = vrot.lane.b32.xlu1 %v1182_v63, %s4679_s5  ;;  %v1307_v40 = vmul.f32 %v1306_v38, %v5289_v10 }
 0x1a7   : > { %v780_v0 = vpop.permute.xlu0 %779  ;;  %v768_v5 = vpop.permute.xlu1 %767 }
 0x1a8   : > { %v785_v36 = vadd.f32 %v780_v0, %v757_v31  ;;  %v772_v49 = vadd.f32 %v768_v5, %v744_v41  ;;  %v876_v5 = vmul.f32 %v874_v34, %v5046_v1  ;;  %v1376_v31 = vstv %s5377_s21  ;;  %s5546_s21 = sld [smem:[#allocation5 + $0x32]] }
 0x1a9   : > { %1213 = vrot.lane.b32.xlu0 %v1209_v2, %s4680_s8  ;;  %1201 = vrot.lane.b32.xlu1 %v1196_v6, %s4679_s5  ;;  %v1377_v22 = vmul.f32 %v1376_v31, %v5289_v10 }
 0x1ab   : > { %v794_v9 = vpop.permute.xlu0 %793  ;;  %v5296_v8 = vpop.permute.xlu1 %781 }
 0x1ac   : > { %v799_v32 = vadd.f32 %v794_v9, %v771_v25  ;;  %v786_v63 = vadd.f32 %v5296_v8, %v758_v57  ;;  %v1362_v25 = vstv %s5365_s20  ;;  %s5537_s20 = sld [smem:[#allocation3 + $0x32]] }
 0x1ad   : > { %1227 = vrot.lane.b32.xlu0 %v1223_v27, %s4680_s8  ;;  %1215 = vrot.lane.b32.xlu1 %v1210_v11, %s4680_s8  ;;  %v1321_v27 = vmul.f32 %v1320_v52, %v5289_v10 }
 0x1af   : > { %v808_v12 = vpop.permute.xlu0 %807  ;;  %v796_v17 = vpop.permute.xlu1 %795 }
 0x1b0   : > { %v813_v48 = vadd.f32 %v808_v12, %v785_v36  ;;  %v800_v58 = vadd.f32 %v796_v17, %v772_v49  ;;  %v1390_v36 = vstv %s5388_s23  ;;  %s5555_s23 = sld [smem:[#allocation3 + $0x33]] }
 0x1b1   : > { %1255 = vrot.lane.b32.xlu0 %v1251_v13, %s4675_s19  ;;  %1229 = vrot.lane.b32.xlu1 %v1224_v18, %s4680_s8  ;;  %v1308_v13 = vmul.f32 %v1306_v38, %v5310_v19  ;;  %v1335_v18 = vmul.f32 %v1334_v60, %v5289_v10  ;;  %v1391_v41 = vmul.f32 %v1390_v36, %v5289_v10  ;;  %v5420_v38 = vld [vmem:[#allocation2 + $0x6] sm:$0xff] }
 0x1b2   : > { %v1392_v49 = vmul.f32 %v1390_v36, %v5310_v19 }
 0x1b3   : > { %v822_v20 = vpop.permute.xlu0 %821  ;;  %v810_v26 = vpop.permute.xlu1 %809 }
 0x1b4   : > { %v827_v35 = vadd.f32 %v822_v20, %v799_v32  ;;  %v814_v51 = vadd.f32 %v810_v26, %v786_v63  ;;  %v1348_v20 = vstv %s5352_s18  ;;  %v1460_v63 = vstv %s5424_s29  ;;  %s5528_s18 = sld [smem:[#allocation5 + $0x30]] }
 0x1b5   : > { %1269 = vrot.lane.b32.xlu0 %v1265_v7, %s4675_s19  ;;  %1257 = vrot.lane.b32.xlu1 %v1252_v28, %s4675_s19  ;;  %v1349_v14 = vmul.f32 %v1348_v20, %v5289_v10  ;;  %v1336_v28 = vmul.f32 %v1334_v60, %v5310_v19  ;;  %v1350_v24 = vmul.f32 %v1348_v20, %v5310_v19  ;;  %v1056_v60 = vstv %s5435_s6  ;;  %s5579_s29 = sld [smem:[#allocation5 + $0x23]] }
 0x1b6   : > { %v1057_v20 = vmul.f32 %v1056_v60, %v5158_v33  ;;  %s5600_s6 = sld [smem:[#allocation3 + $0x35]] }
 0x1b7   : > { %v836_v29 = vpop.permute.xlu0 %835  ;;  %v824_v37 = vpop.permute.xlu1 %823 }
 0x1b8   : > { %v841_v53 = vadd.f32 %v836_v29, %v813_v48  ;;  %v828_v0 = vadd.f32 %v824_v37, %v800_v58  ;;  %v1364_v37 = vmul.f32 %v1362_v25, %v5310_v19 }
 0x1b9   : > { %1283 = vrot.lane.b32.xlu0 %v1279_v61, %s4676_s22  ;;  %1271 = vrot.lane.b32.xlu1 %v1266_v39, %s4675_s19  ;;  %v1363_v61 = vmul.f32 %v1362_v25, %v5289_v10 }
 0x1bb   : > { %v850_v42 = vpop.permute.xlu0 %849  ;;  %v838_v55 = vpop.permute.xlu1 %837 }
 0x1bc   : > { %v855_v3 = vadd.f32 %v850_v42, %v827_v35  ;;  %v842_v8 = vadd.f32 %v838_v55, %v814_v51  ;;  %v1404_v42 = vstv %s5397_s24  ;;  %v1433_v55 = vmul.f32 %v1432_v50, %v5420_v38  ;;  %s5564_s24 = sld [smem:[#allocation5 + $0x33]] }
 0x1bd   : > { %1297 = vrot.lane.b32.xlu0 %v1293_v43, %s4676_s22  ;;  %1285 = vrot.lane.b32.xlu1 %v1280_v56, %s4676_s22  ;;  %v1446_v56 = vstv %s5415_s27  ;;  %v1461_v51 = vmul.f32 %v1460_v63, %v5420_v38  ;;  %s5577_s27 = sld [smem:[#allocation3 + $0x34]] }
 0x1be   : > { %v5344_v21 = vadd.f32 %v875_v47, %v855_v3  ;;  %v1378_v47 = vmul.f32 %v1376_v31, %v5310_v19  ;;  %v1405_v3 = vmul.f32 %v1404_v42, %v5289_v10 }
 0x1bf   : > { %v864_v54 = vpop.permute.xlu0 %863  ;;  %v852_v2 = vpop.permute.xlu1 %851 }
 0x1c0   : > { %v869_v30 = vadd.f32 %v864_v54, %v841_v53  ;;  %v856_v6 = vadd.f32 %v852_v2, %v828_v0  ;;  %v1406_v54 = vmul.f32 %v1404_v42, %v5310_v19 }
 0x1c1   : > { %1311 = vrot.lane.b32.xlu0 %v1307_v40, %s4677_s25  ;;  %1299 = vrot.lane.b32.xlu1 %v1294_v4, %s4676_s22  ;;  %v5441_v40 = vld [vmem:[#allocation2 + $0xe] sm:$0xff] }
 0x1c2   : > { %v5356_v62 = vadd.f32 %v881_v59, %v869_v30  ;;  %v5367_v11 = vadd.f32 %v876_v5, %v856_v6  ;;  %v1447_v30 = vmul.f32 %v1446_v56, %v5420_v38  ;;  %v1434_v4 = vmul.f32 %v1432_v50, %v5441_v40 }
 0x1c3   : > { %v5360_v9 = vpop.permute.xlu0 %891  ;;  %v866_v12 = vpop.permute.xlu1 %865  ;;  %v1462_v31 = vmul.f32 %v1460_v63, %v5441_v40  ;;  %v1516_v50 = vstv %s5469_s11  ;;  %s5650_s11 = sld [smem:[#allocation3 + $0x37]] }
 0x1c4   : > { %v870_v16 = vadd.f32 %v866_v12, %v842_v8  ;;  %v897_v57 = vadd.f32 %v5360_v9, %v5344_v21 }
 0x1c5   : > { %1325 = vrot.lane.b32.xlu0 %v1321_v27, %s4677_s25  ;;  %1313 = vrot.lane.b32.xlu1 %v1308_v13, %s4677_s25  ;;  %v1474_v27 = vstv %s5433_s30  ;;  %s5588_s30 = sld [smem:[#allocation5 + $0x34]] }
 0x1c6   : > { %v5379_v7 = vadd.f32 %v882_v15, %v870_v16  ;;  %v1448_v15 = vmul.f32 %v1446_v56, %v5441_v40  ;;  %v1476_v42 = vmul.f32 %v1474_v27, %v5441_v40 }
 0x1c7   : > { %v5372_v17 = vpop.permute.xlu0 %905  ;;  %v5382_v45 = vpop.permute.xlu1 %893 }
 0x1c8   : > { %v911_v21 = vadd.f32 %v5372_v17, %v5356_v62  ;;  %v898_v62 = vadd.f32 %v5382_v45, %v5367_v11  ;;  %v1062_v11 = vstv %s5448_s9  ;;  %s5627_s9 = sld [smem:[#allocation3 + $0x36]] }
 0x1c9   : > { %1339 = vrot.lane.b32.xlu0 %v1335_v18, %s4678_s28  ;;  %1327 = vrot.lane.b32.xlu1 %v1322_v23, %s4677_s25  ;;  %v1475_v18 = vmul.f32 %v1474_v27, %v5420_v38  ;;  %v1063_v36 = vmul.f32 %v1062_v11, %v5158_v33  ;;  %v1064_v56 = vmul.f32 %v1062_v11, %v5179_v44  ;;  %v1614_v11 = vstv %s5537_s20  ;;  %s5697_s20 = sld [smem:[#allocation3 + $0x2a]] }
 0x1cb   : > { %v920_v1 = vpop.permute.xlu0 %919  ;;  %v5391_v26 = vpop.permute.xlu1 %907 }
 0x1cc   : > { %v925_v52 = vadd.f32 %v920_v1, %v897_v57  ;;  %v912_v45 = vadd.f32 %v5391_v26, %v5379_v7  ;;  %v1502_v26 = vstv %s5457_s10  ;;  %s5639_s10 = sld [smem:[#allocation5 + $0x36]] }
 0x1cd   : > { %1353 = vrot.lane.b32.xlu0 %v1349_v14, %s4678_s28  ;;  %1341 = vrot.lane.b32.xlu1 %v1336_v28, %s4678_s28  ;;  %v1488_v14 = vstv %s5446_s7  ;;  %v1504_v63 = vmul.f32 %v1502_v26, %v5441_v40  ;;  %s5614_s7 = sld [smem:[#allocation5 + $0x35]] }
 0x1cf   : > { %v934_v29 = vpop.permute.xlu0 %933  ;;  %v5400_v32 = vpop.permute.xlu1 %921 }
 0x1d0   : > { %v939_v6 = vadd.f32 %v934_v29, %v911_v21  ;;  %v926_v16 = vadd.f32 %v5400_v32, %v898_v62 }
 0x1d1   : > { %1367 = vrot.lane.b32.xlu0 %v1363_v61, %s4679_s5  ;;  %1355 = vrot.lane.b32.xlu1 %v1350_v24, %s4678_s28 }
 0x1d3   : > { %v948_v34 = vpop.permute.xlu0 %947  ;;  %v5409_v35 = vpop.permute.xlu1 %935 }
 0x1d4   : > { %v953_v0 = vadd.f32 %v948_v34, %v925_v52  ;;  %v940_v32 = vadd.f32 %v5409_v35, %v912_v45 }
 0x1d5   : > { %1381 = vrot.lane.b32.xlu0 %v1377_v22, %s4679_s5  ;;  %1369 = vrot.lane.b32.xlu1 %v1364_v37, %s4679_s5  ;;  %v1489_v22 = vmul.f32 %v1488_v14, %v5420_v38 }
 0x1d7   : > { %v962_v39 = vpop.permute.xlu0 %961  ;;  %v950_v43 = vpop.permute.xlu1 %949 }
 0x1d8   : > { %v967_v8 = vadd.f32 %v962_v39, %v939_v6  ;;  %v954_v25 = vadd.f32 %v950_v43, %v926_v16  ;;  %v1058_v43 = vmul.f32 %v1056_v60, %v5179_v44  ;;  %v1558_v6 = vstv %s5508_s14  ;;  %s5677_s14 = sld [smem:[#allocation5 + $0x39]] }
 0x1d9   : > { %1395 = vrot.lane.b32.xlu0 %v1391_v41, %s4680_s8  ;;  %1383 = vrot.lane.b32.xlu1 %v1378_v47, %s4679_s5  ;;  %v1559_v62 = vmul.f32 %v1558_v6, %v5420_v38 }
 0x1db   : > { %v976_v48 = vpop.permute.xlu0 %975  ;;  %v5427_v46 = vpop.permute.xlu1 %963 }
 0x1dc   : > { %v981_v9 = vadd.f32 %v976_v48, %v953_v0  ;;  %v968_v37 = vadd.f32 %v5427_v46, %v940_v32  ;;  %v1544_v0 = vstv %s5496_s13  ;;  %s5668_s13 = sld [smem:[#allocation3 + $0x39]] }
 0x1dd   : > { %1409 = vrot.lane.b32.xlu0 %v1405_v3, %s4680_s8  ;;  %1397 = vrot.lane.b32.xlu1 %v1392_v49, %s4680_s8  ;;  %v1503_v3 = vmul.f32 %v1502_v26, %v5420_v38 }
 0x1df   : > { %v990_v53 = vpop.permute.xlu0 %989  ;;  %v978_v58 = vpop.permute.xlu1 %977 }
 0x1e0   : > { %v995_v23 = vadd.f32 %v990_v53, %v967_v8  ;;  %v982_v24 = vadd.f32 %v978_v58, %v954_v25  ;;  %v1572_v8 = vstv %s5519_s17  ;;  %s5686_s17 = sld [smem:[#allocation3 + $0x3a]] }
 0x1e1   : > { %1437 = vrot.lane.b32.xlu0 %v1433_v55, %s4675_s19  ;;  %1411 = vrot.lane.b32.xlu1 %v1406_v54, %s4680_s8  ;;  %v1490_v55 = vmul.f32 %v1488_v14, %v5441_v40  ;;  %v1517_v54 = vmul.f32 %v1516_v50, %v5420_v38  ;;  %v1573_v16 = vmul.f32 %v1572_v8, %v5420_v38  ;;  %v5551_v14 = vld [vmem:[#allocation2 + $0x18] sm:$0xff] }
 0x1e2   : > { %v1574_v25 = vmul.f32 %v1572_v8, %v5441_v40 }
 0x1e3   : > { %v1004_v59 = vpop.permute.xlu0 %1003  ;;  %v992_v2 = vpop.permute.xlu1 %991 }
 0x1e4   : > { %v1009_v12 = vadd.f32 %v1004_v59, %v981_v9  ;;  %v996_v33 = vadd.f32 %v992_v2, %v968_v37  ;;  %v1530_v59 = vstv %s5483_s12  ;;  %v1642_v37 = vstv %s5555_s23  ;;  %s5659_s12 = sld [smem:[#allocation5 + $0x37]] }
 0x1e5   : > { %1451 = vrot.lane.b32.xlu0 %v1447_v30, %s4675_s19  ;;  %1439 = vrot.lane.b32.xlu1 %v1434_v4, %s4675_s19  ;;  %v1531_v21 = vmul.f32 %v1530_v59, %v5420_v38  ;;  %v1518_v4 = vmul.f32 %v1516_v50, %v5441_v40  ;;  %v1532_v27 = vmul.f32 %v1530_v59, %v5441_v40  ;;  %v1238_v50 = vstv %s5566_s26  ;;  %s5710_s23 = sld [smem:[#allocation5 + $0x2a]] }
 0x1e6   : > { %v1239_v59 = vmul.f32 %v1238_v50, %v5289_v10  ;;  %s5731_s26 = sld [smem:[#allocation3 + $0x3c]] }
 0x1e7   : > { %v1018_v5 = vpop.permute.xlu0 %1017  ;;  %v1006_v13 = vpop.permute.xlu1 %1005 }
 0x1e8   : > { %v1023_v28 = vadd.f32 %v1018_v5, %v995_v23  ;;  %v1010_v39 = vadd.f32 %v1006_v13, %v982_v24  ;;  %v1546_v13 = vmul.f32 %v1544_v0, %v5441_v40 }
 0x1e9   : > { %1465 = vrot.lane.b32.xlu0 %v1461_v51, %s4676_s22  ;;  %1453 = vrot.lane.b32.xlu1 %v1448_v15, %s4675_s19  ;;  %v1545_v51 = vmul.f32 %v1544_v0, %v5420_v38 }
 0x1eb   : > { %v1032_v17 = vpop.permute.xlu0 %1031  ;;  %v1020_v29 = vpop.permute.xlu1 %1019 }
 0x1ec   : > { %v1037_v1 = vadd.f32 %v1032_v17, %v1009_v12  ;;  %v1024_v46 = vadd.f32 %v1020_v29, %v996_v33  ;;  %v1586_v17 = vstv %s5528_s18  ;;  %v1615_v29 = vmul.f32 %v1614_v11, %v5551_v14  ;;  %s5695_s18 = sld [smem:[#allocation5 + $0x3a]] }
 0x1ed   : > { %1479 = vrot.lane.b32.xlu0 %v1475_v18, %s4676_s22  ;;  %1467 = vrot.lane.b32.xlu1 %v1462_v31, %s4676_s22  ;;  %v1628_v31 = vstv %s5546_s21  ;;  %v1643_v33 = vmul.f32 %v1642_v37, %v5551_v14  ;;  %s5708_s21 = sld [smem:[#allocation3 + $0x3b]] }
 0x1ee   : > { %v5475_v61 = vadd.f32 %v1057_v20, %v1037_v1  ;;  %v1560_v20 = vmul.f32 %v1558_v6, %v5441_v40  ;;  %v1587_v1 = vmul.f32 %v1586_v17, %v5420_v38 }
 0x1ef   : > { %v1046_v34 = vpop.permute.xlu0 %1045  ;;  %v1034_v41 = vpop.permute.xlu1 %1033 }
 0x1f0   : > { %v1051_v7 = vadd.f32 %v1046_v34, %v1023_v28  ;;  %v1038_v47 = vadd.f32 %v1034_v41, %v1010_v39  ;;  %v1588_v34 = vmul.f32 %v1586_v17, %v5441_v40 }
 0x1f1   : > { %1493 = vrot.lane.b32.xlu0 %v1489_v22, %s4677_s25  ;;  %1481 = vrot.lane.b32.xlu1 %v1476_v42, %s4676_s22  ;;  %v5572_v22 = vld [vmem:[#allocation2 + $0x20] sm:$0xff] }
 0x1f2   : > { %v5487_v35 = vadd.f32 %v1063_v36, %v1051_v7  ;;  %v5498_v49 = vadd.f32 %v1058_v43, %v1038_v47  ;;  %v1629_v7 = vmul.f32 %v1628_v31, %v5551_v14  ;;  %v1616_v42 = vmul.f32 %v1614_v11, %v5572_v22 }
 0x1f3   : > { %v5491_v48 = vpop.permute.xlu0 %1073  ;;  %v1048_v53 = vpop.permute.xlu1 %1047  ;;  %v1644_v6 = vmul.f32 %v1642_v37, %v5572_v22  ;;  %v1698_v11 = vstv %s5600_s6  ;;  %s5781_s6 = sld [smem:[#allocation3 + $0x3e]] }
 0x1f4   : > { %v1052_v57 = vadd.f32 %v1048_v53, %v1024_v46  ;;  %v1079_v32 = vadd.f32 %v5491_v48, %v5475_v61 }
 0x1f5   : > { %1507 = vrot.lane.b32.xlu0 %v1503_v3, %s4677_s25  ;;  %1495 = vrot.lane.b32.xlu1 %v1490_v55, %s4677_s25  ;;  %v1656_v3 = vstv %s5564_s24  ;;  %s5719_s24 = sld [smem:[#allocation5 + $0x3b]] }
 0x1f6   : > { %v5510_v30 = vadd.f32 %v1064_v56, %v1052_v57  ;;  %v1630_v56 = vmul.f32 %v1628_v31, %v5572_v22  ;;  %v1658_v17 = vmul.f32 %v1656_v3, %v5572_v22 }
 0x1f7   : > { %v5503_v58 = vpop.permute.xlu0 %1087  ;;  %v5513_v52 = vpop.permute.xlu1 %1075 }
 0x1f8   : > { %v1093_v61 = vadd.f32 %v5503_v58, %v5487_v35  ;;  %v1080_v35 = vadd.f32 %v5513_v52, %v5498_v49  ;;  %v1244_v49 = vstv %s5579_s29  ;;  %s5758_s29 = sld [smem:[#allocation3 + $0x3d]] }
 0x1f9   : > { %1521 = vrot.lane.b32.xlu0 %v1517_v54, %s4678_s28  ;;  %1509 = vrot.lane.b32.xlu1 %v1504_v63, %s4677_s25  ;;  %v1657_v54 = vmul.f32 %v1656_v3, %v5551_v14  ;;  %v1245_v8 = vmul.f32 %v1244_v49, %v5289_v10  ;;  %v1246_v31 = vmul.f32 %v1244_v49, %v5310_v19  ;;  %v1796_v49 = vstv %s5668_s13  ;;  %s5828_s13 = sld [smem:[#allocation3 + $0x31]] }
 0x1fb   : > { %v1102_v44 = vpop.permute.xlu0 %1101  ;;  %v5522_v2 = vpop.permute.xlu1 %1089 }
 0x1fc   : > { %v1107_v26 = vadd.f32 %v1102_v44, %v1079_v32  ;;  %v1094_v52 = vadd.f32 %v5522_v2, %v5510_v30  ;;  %v1684_v2 = vstv %s5588_s30  ;;  %s5770_s30 = sld [smem:[#allocation5 + $0x3d]] }
 0x1fd   : > { %1535 = vrot.lane.b32.xlu0 %v1531_v21, %s4678_s28  ;;  %1523 = vrot.lane.b32.xlu1 %v1518_v4, %s4678_s28  ;;  %v1670_v21 = vstv %s5577_s27  ;;  %v1686_v37 = vmul.f32 %v1684_v2, %v5572_v22  ;;  %s5745_s27 = sld [smem:[#allocation5 + $0x3c]] }
 0x1ff   : > { %v1116_v5 = vpop.permute.xlu0 %1115  ;;  %v5531_v9 = vpop.permute.xlu1 %1103 }
 0x200   : > { %v1121_v47 = vadd.f32 %v1116_v5, %v1093_v61  ;;  %v1108_v57 = vadd.f32 %v5531_v9, %v1080_v35 }
 0x201   : > { %1549 = vrot.lane.b32.xlu0 %v1545_v51, %s4679_s5  ;;  %1537 = vrot.lane.b32.xlu1 %v1532_v27, %s4678_s28 }
 0x203   : > { %v1130_v60 = vpop.permute.xlu0 %1129  ;;  %v5540_v12 = vpop.permute.xlu1 %1117 }
 0x204   : > { %v1135_v39 = vadd.f32 %v1130_v60, %v1107_v26  ;;  %v1122_v9 = vadd.f32 %v5540_v12, %v1094_v52 }
 0x205   : > { %1563 = vrot.lane.b32.xlu0 %v1559_v62, %s4679_s5  ;;  %1551 = vrot.lane.b32.xlu1 %v1546_v13, %s4679_s5  ;;  %v1671_v62 = vmul.f32 %v1670_v21, %v5551_v14 }
 0x207   : > { %v1144_v15 = vpop.permute.xlu0 %1143  ;;  %v1132_v18 = vpop.permute.xlu1 %1131 }
 0x208   : > { %v1149_v46 = vadd.f32 %v1144_v15, %v1121_v47  ;;  %v1136_v0 = vadd.f32 %v1132_v18, %v1108_v57  ;;  %v1240_v18 = vmul.f32 %v1238_v50, %v5310_v19  ;;  %v1740_v47 = vstv %s5639_s10  ;;  %s5808_s10 = sld [smem:[#allocation5 + $0x40]] }
 0x209   : > { %1577 = vrot.lane.b32.xlu0 %v1573_v16, %s4680_s8  ;;  %1565 = vrot.lane.b32.xlu1 %v1560_v20, %s4679_s5  ;;  %v1741_v35 = vmul.f32 %v1740_v47, %v5551_v14 }
 0x20b   : > { %v1158_v23 = vpop.permute.xlu0 %1157  ;;  %v5558_v45 = vpop.permute.xlu1 %1145 }
 0x20c   : > { %v1163_v48 = vadd.f32 %v1158_v23, %v1135_v39  ;;  %v1150_v13 = vadd.f32 %v5558_v45, %v1122_v9  ;;  %v1726_v39 = vstv %s5627_s9  ;;  %s5799_s9 = sld [smem:[#allocation3 + $0x40]] }
 0x20d   : > { %1591 = vrot.lane.b32.xlu0 %v1587_v1, %s4680_s8  ;;  %1579 = vrot.lane.b32.xlu1 %v1574_v25, %s4680_s8  ;;  %v1685_v1 = vmul.f32 %v1684_v2, %v5551_v14 }
 0x20f   : > { %v1172_v28 = vpop.permute.xlu0 %1171  ;;  %v1160_v24 = vpop.permute.xlu1 %1159 }
 0x210   : > { %v1177_v63 = vadd.f32 %v1172_v28, %v1149_v46  ;;  %v1164_v27 = vadd.f32 %v1160_v24, %v1136_v0  ;;  %v1754_v46 = vstv %s5650_s11  ;;  %s5817_s11 = sld [smem:[#allocation3 + $0x41]] }
 0x211   : > { %1619 = vrot.lane.b32.xlu0 %v1615_v29, %s4675_s19  ;;  %1593 = vrot.lane.b32.xlu1 %v1588_v34, %s4680_s8  ;;  %v1672_v29 = vmul.f32 %v1670_v21, %v5572_v22  ;;  %v1699_v34 = vmul.f32 %v1698_v11, %v5551_v14  ;;  %v1755_v57 = vmul.f32 %v1754_v46, %v5551_v14  ;;  %v5682_v21 = vld [vmem:[#allocation2 + $0x19] sm:$0xff] }
 0x212   : > { %v1756_v0 = vmul.f32 %v1754_v46, %v5572_v22 }
 0x213   : > { %v1186_v36 = vpop.permute.xlu0 %1185  ;;  %v1174_v41 = vpop.permute.xlu1 %1173 }
 0x214   : > { %v1191_v53 = vadd.f32 %v1186_v36, %v1163_v48  ;;  %v1178_v10 = vadd.f32 %v1174_v41, %v1150_v13  ;;  %v1712_v36 = vstv %s5614_s7  ;;  %v1824_v13 = vstv %s5686_s17  ;;  %s5790_s7 = sld [smem:[#allocation5 + $0x3e]] }
 0x215   : > { %1633 = vrot.lane.b32.xlu0 %v1629_v7, %s4675_s19  ;;  %1621 = vrot.lane.b32.xlu1 %v1616_v42, %s4675_s19  ;;  %v1713_v61 = vmul.f32 %v1712_v36, %v5551_v14  ;;  %v1700_v42 = vmul.f32 %v1698_v11, %v5572_v22  ;;  %v1714_v3 = vmul.f32 %v1712_v36, %v5572_v22  ;;  %v1420_v11 = vstv %s5697_s20  ;;  %s5841_s17 = sld [smem:[#allocation5 + $0x31]] }
 0x216   : > { %v1421_v36 = vmul.f32 %v1420_v11, %v5420_v38  ;;  %s5862_s20 = sld [smem:[#allocation3 + $0x43]] }
 0x217   : > { %v1200_v43 = vpop.permute.xlu0 %1199  ;;  %v1188_v55 = vpop.permute.xlu1 %1187 }
 0x218   : > { %v1205_v4 = vadd.f32 %v1200_v43, %v1177_v63  ;;  %v1192_v15 = vadd.f32 %v1188_v55, %v1164_v27  ;;  %v1728_v55 = vmul.f32 %v1726_v39, %v5572_v22 }
 0x219   : > { %1647 = vrot.lane.b32.xlu0 %v1643_v33, %s4676_s22  ;;  %1635 = vrot.lane.b32.xlu1 %v1630_v56, %s4675_s19  ;;  %v1727_v33 = vmul.f32 %v1726_v39, %v5551_v14 }
 0x21b   : > { %v1214_v58 = vpop.permute.xlu0 %1213  ;;  %v1202_v5 = vpop.permute.xlu1 %1201 }
 0x21c   : > { %v1219_v44 = vadd.f32 %v1214_v58, %v1191_v53  ;;  %v1206_v45 = vadd.f32 %v1202_v5, %v1178_v10  ;;  %v1768_v58 = vstv %s5659_s12  ;;  %v1797_v5 = vmul.f32 %v1796_v49, %v5682_v21  ;;  %s5826_s12 = sld [smem:[#allocation5 + $0x41]] }
 0x21d   : > { %1661 = vrot.lane.b32.xlu0 %v1657_v54, %s4676_s22  ;;  %1649 = vrot.lane.b32.xlu1 %v1644_v6, %s4676_s22  ;;  %v1810_v6 = vstv %s5677_s14  ;;  %v1825_v10 = vmul.f32 %v1824_v13, %v5682_v21  ;;  %s5839_s14 = sld [smem:[#allocation3 + $0x42]] }
 0x21e   : > { %v5606_v51 = vadd.f32 %v1239_v59, %v1219_v44  ;;  %v1742_v59 = vmul.f32 %v1740_v47, %v5572_v22  ;;  %v1769_v44 = vmul.f32 %v1768_v58, %v5551_v14 }
 0x21f   : > { %v1228_v60 = vpop.permute.xlu0 %1227  ;;  %v1216_v16 = vpop.permute.xlu1 %1215 }
 0x220   : > { %v1233_v30 = vadd.f32 %v1228_v60, %v1205_v4  ;;  %v1220_v20 = vadd.f32 %v1216_v16, %v1192_v15  ;;  %v1770_v60 = vmul.f32 %v1768_v58, %v5572_v22 }
 0x221   : > { %1675 = vrot.lane.b32.xlu0 %v1671_v62, %s4677_s25  ;;  %1663 = vrot.lane.b32.xlu1 %v1658_v17, %s4676_s22  ;;  %v5703_v62 = vld [vmem:[#allocation2 + $0x21] sm:$0xff] }
 0x222   : > { %v5618_v12 = vadd.f32 %v1245_v8, %v1233_v30  ;;  %v5629_v25 = vadd.f32 %v1240_v18, %v1220_v20  ;;  %v1811_v30 = vmul.f32 %v1810_v6, %v5682_v21  ;;  %v1798_v17 = vmul.f32 %v1796_v49, %v5703_v62 }
 0x223   : > { %v5622_v23 = vpop.permute.xlu0 %1255  ;;  %v1230_v28 = vpop.permute.xlu1 %1229  ;;  %v1826_v47 = vmul.f32 %v1824_v13, %v5703_v62  ;;  %v1880_v49 = vstv %s5731_s26  ;;  %s5912_s26 = sld [smem:[#allocation3 + $0x45]] }
 0x224   : > { %v1234_v32 = vadd.f32 %v1230_v28, %v1206_v45  ;;  %v1261_v9 = vadd.f32 %v5622_v23, %v5606_v51 }
 0x225   : > { %1689 = vrot.lane.b32.xlu0 %v1685_v1, %s4677_s25  ;;  %1677 = vrot.lane.b32.xlu1 %v1672_v29, %s4677_s25  ;;  %v1838_v1 = vstv %s5695_s18  ;;  %s5850_s18 = sld [smem:[#allocation5 + $0x42]] }
 0x226   : > { %v5641_v7 = vadd.f32 %v1246_v31, %v1234_v32  ;;  %v1812_v31 = vmul.f32 %v1810_v6, %v5703_v62  ;;  %v1840_v58 = vmul.f32 %v1838_v1, %v5703_v62 }
 0x227   : > { %v5634_v24 = vpop.permute.xlu0 %1269  ;;  %v5644_v26 = vpop.permute.xlu1 %1257 }
 0x228   : > { %v1275_v51 = vadd.f32 %v5634_v24, %v5618_v12  ;;  %v1262_v12 = vadd.f32 %v5644_v26, %v5629_v25  ;;  %v1426_v25 = vstv %s5710_s23  ;;  %s5889_s23 = sld [smem:[#allocation3 + $0x44]] }
 0x229   : > { %1703 = vrot.lane.b32.xlu0 %v1699_v34, %s4678_s28  ;;  %1691 = vrot.lane.b32.xlu1 %v1686_v37, %s4677_s25  ;;  %v1839_v34 = vmul.f32 %v1838_v1, %v5682_v21  ;;  %v1427_v46 = vmul.f32 %v1426_v25, %v5420_v38  ;;  %v1428_v6 = vmul.f32 %v1426_v25, %v5441_v40  ;;  %v1978_v25 = vstv %s5799_s9  ;;  %s5959_s9 = sld [smem:[#allocation3 + $0x38]] }
 0x22b   : > { %v1284_v19 = vpop.permute.xlu0 %1283  ;;  %v5653_v41 = vpop.permute.xlu1 %1271 }
 0x22c   : > { %v1289_v2 = vadd.f32 %v1284_v19, %v1261_v9  ;;  %v1276_v26 = vadd.f32 %v5653_v41, %v5641_v7  ;;  %v1866_v41 = vstv %s5719_s24  ;;  %s5901_s24 = sld [smem:[#allocation5 + $0x44]] }
 0x22d   : > { %1717 = vrot.lane.b32.xlu0 %v1713_v61, %s4678_s28  ;;  %1705 = vrot.lane.b32.xlu1 %v1700_v42, %s4678_s28  ;;  %v1852_v61 = vstv %s5708_s21  ;;  %v1868_v13 = vmul.f32 %v1866_v41, %v5703_v62  ;;  %s5876_s21 = sld [smem:[#allocation5 + $0x43]] }
 0x22f   : > { %v1298_v43 = vpop.permute.xlu0 %1297  ;;  %v5662_v48 = vpop.permute.xlu1 %1285 }
 0x230   : > { %v1303_v20 = vadd.f32 %v1298_v43, %v1275_v51  ;;  %v1290_v32 = vadd.f32 %v5662_v48, %v1262_v12 }
 0x231   : > { %1731 = vrot.lane.b32.xlu0 %v1727_v33, %s4679_s5  ;;  %1719 = vrot.lane.b32.xlu1 %v1714_v3, %s4678_s28 }
 0x233   : > { %v1312_v50 = vpop.permute.xlu0 %1311  ;;  %v5671_v53 = vpop.permute.xlu1 %1299 }
 0x234   : > { %v1317_v15 = vadd.f32 %v1312_v50, %v1289_v2  ;;  %v1304_v48 = vadd.f32 %v5671_v53, %v1276_v26 }
 0x235   : > { %1745 = vrot.lane.b32.xlu0 %v1741_v35, %s4679_s5  ;;  %1733 = vrot.lane.b32.xlu1 %v1728_v55, %s4679_s5  ;;  %v1853_v35 = vmul.f32 %v1852_v61, %v5682_v21 }
 0x237   : > { %v1326_v56 = vpop.permute.xlu0 %1325  ;;  %v1314_v54 = vpop.permute.xlu1 %1313 }
 0x238   : > { %v1331_v45 = vadd.f32 %v1326_v56, %v1303_v20  ;;  %v1318_v39 = vadd.f32 %v1314_v54, %v1290_v32  ;;  %v1422_v54 = vmul.f32 %v1420_v11, %v5441_v40  ;;  %v1922_v20 = vstv %s5770_s30  ;;  %s5939_s30 = sld [smem:[#allocation5 + $0x47]] }
 0x239   : > { %1759 = vrot.lane.b32.xlu0 %v1755_v57, %s4680_s8  ;;  %1747 = vrot.lane.b32.xlu1 %v1742_v59, %s4679_s5  ;;  %v1923_v12 = vmul.f32 %v1922_v20, %v5682_v21 }
 0x23b   : > { %v1340_v63 = vpop.permute.xlu0 %1339  ;;  %v5689_v52 = vpop.permute.xlu1 %1327 }
 0x23c   : > { %v1345_v23 = vadd.f32 %v1340_v63, %v1317_v15  ;;  %v1332_v55 = vadd.f32 %v5689_v52, %v1304_v48  ;;  %v1908_v15 = vstv %s5758_s29  ;;  %s5930_s29 = sld [smem:[#allocation3 + $0x47]] }
 0x23d   : > { %1773 = vrot.lane.b32.xlu0 %v1769_v44, %s4680_s8  ;;  %1761 = vrot.lane.b32.xlu1 %v1756_v0, %s4680_s8  ;;  %v1867_v44 = vmul.f32 %v1866_v41, %v5682_v21 }
 0x23f   : > { %v1354_v4 = vpop.permute.xlu0 %1353  ;;  %v1342_v27 = vpop.permute.xlu1 %1341 }
 0x240   : > { %v1359_v37 = vadd.f32 %v1354_v4, %v1331_v45  ;;  %v1346_v3 = vadd.f32 %v1342_v27, %v1318_v39  ;;  %v1936_v45 = vstv %s5781_s6  ;;  %s5948_s6 = sld [smem:[#allocation3 + $0x48]] }
 0x241   : > { %1801 = vrot.lane.b32.xlu0 %v1797_v5, %s4675_s19  ;;  %1775 = vrot.lane.b32.xlu1 %v1770_v60, %s4680_s8  ;;  %v1854_v5 = vmul.f32 %v1852_v61, %v5703_v62  ;;  %v1881_v60 = vmul.f32 %v1880_v49, %v5682_v21  ;;  %v1937_v32 = vmul.f32 %v1936_v45, %v5682_v21  ;;  %v5813_v61 = vld [vmem:[#allocation2 + $0x1a] sm:$0xff] }
 0x242   : > { %v1938_v39 = vmul.f32 %v1936_v45, %v5703_v62 }
 0x243   : > { %v1368_v8 = vpop.permute.xlu0 %1367  ;;  %v1356_v16 = vpop.permute.xlu1 %1355 }
 0x244   : > { %v1373_v28 = vadd.f32 %v1368_v8, %v1345_v23  ;;  %v1360_v38 = vadd.f32 %v1356_v16, %v1332_v55  ;;  %v1894_v8 = vstv %s5745_s27  ;;  %v2006_v55 = vstv %s5817_s11  ;;  %s5921_s27 = sld [smem:[#allocation5 + $0x45]] }
 0x245   : > { %1815 = vrot.lane.b32.xlu0 %v1811_v30, %s4675_s19  ;;  %1803 = vrot.lane.b32.xlu1 %v1798_v17, %s4675_s19  ;;  %v1895_v51 = vmul.f32 %v1894_v8, %v5682_v21  ;;  %v1882_v17 = vmul.f32 %v1880_v49, %v5703_v62  ;;  %v1896_v1 = vmul.f32 %v1894_v8, %v5703_v62  ;;  %v1602_v49 = vstv %s5828_s13  ;;  %s5972_s11 = sld [smem:[#allocation5 + $0x38]] }
 0x246   : > { %v1603_v8 = vmul.f32 %v1602_v49, %v5551_v14  ;;  %s5993_s13 = sld [smem:[#allocation3 + $0x4a]] }
 0x247   : > { %v1382_v18 = vpop.permute.xlu0 %1381  ;;  %v1370_v29 = vpop.permute.xlu1 %1369 }
 0x248   : > { %v1387_v42 = vadd.f32 %v1382_v18, %v1359_v37  ;;  %v1374_v56 = vadd.f32 %v1370_v29, %v1346_v3  ;;  %v1910_v29 = vmul.f32 %v1908_v15, %v5703_v62 }
 0x249   : > { %1829 = vrot.lane.b32.xlu0 %v1825_v10, %s4676_s22  ;;  %1817 = vrot.lane.b32.xlu1 %v1812_v31, %s4675_s19  ;;  %v1909_v10 = vmul.f32 %v1908_v15, %v5682_v21 }
 0x24b   : > { %v1396_v24 = vpop.permute.xlu0 %1395  ;;  %v1384_v43 = vpop.permute.xlu1 %1383 }
 0x24c   : > { %v1401_v19 = vadd.f32 %v1396_v24, %v1373_v28  ;;  %v1388_v52 = vadd.f32 %v1384_v43, %v1360_v38  ;;  %v1950_v24 = vstv %s5790_s7  ;;  %v1979_v43 = vmul.f32 %v1978_v25, %v5813_v61  ;;  %s5957_s7 = sld [smem:[#allocation5 + $0x48]] }
 0x24d   : > { %1843 = vrot.lane.b32.xlu0 %v1839_v34, %s4676_s22  ;;  %1831 = vrot.lane.b32.xlu1 %v1826_v47, %s4676_s22  ;;  %v1992_v47 = vstv %s5808_s10  ;;  %v2007_v38 = vmul.f32 %v2006_v55, %v5813_v61  ;;  %s5970_s10 = sld [smem:[#allocation3 + $0x49]] }
 0x24e   : > { %v5737_v33 = vadd.f32 %v1421_v36, %v1401_v19  ;;  %v1924_v36 = vmul.f32 %v1922_v20, %v5703_v62  ;;  %v1951_v19 = vmul.f32 %v1950_v24, %v5682_v21 }
 0x24f   : > { %v1410_v50 = vpop.permute.xlu0 %1409  ;;  %v1398_v57 = vpop.permute.xlu1 %1397 }
 0x250   : > { %v1415_v7 = vadd.f32 %v1410_v50, %v1387_v42  ;;  %v1402_v59 = vadd.f32 %v1398_v57, %v1374_v56  ;;  %v1952_v50 = vmul.f32 %v1950_v24, %v5703_v62 }
 0x251   : > { %1857 = vrot.lane.b32.xlu0 %v1853_v35, %s4677_s25  ;;  %1845 = vrot.lane.b32.xlu1 %v1840_v58, %s4676_s22  ;;  %v5834_v35 = vld [vmem:[#allocation2 + $0x22] sm:$0xff] }
 0x252   : > { %v5749_v53 = vadd.f32 %v1427_v46, %v1415_v7  ;;  %v5760_v0 = vadd.f32 %v1422_v54, %v1402_v59  ;;  %v1993_v7 = vmul.f32 %v1992_v47, %v5813_v61  ;;  %v1980_v58 = vmul.f32 %v1978_v25, %v5834_v35 }
 0x253   : > { %v5753_v63 = vpop.permute.xlu0 %1437  ;;  %v1412_v4 = vpop.permute.xlu1 %1411  ;;  %v2008_v20 = vmul.f32 %v2006_v55, %v5834_v35  ;;  %v2062_v25 = vstv %s5862_s20  ;;  %s6043_s20 = sld [smem:[#allocation3 + $0x4c]] }
 0x254   : > { %v1416_v9 = vadd.f32 %v1412_v4, %v1388_v52  ;;  %v1443_v48 = vadd.f32 %v5753_v63, %v5737_v33 }
 0x255   : > { %1871 = vrot.lane.b32.xlu0 %v1867_v44, %s4677_s25  ;;  %1859 = vrot.lane.b32.xlu1 %v1854_v5, %s4677_s25  ;;  %v2020_v44 = vstv %s5826_s12  ;;  %s5981_s12 = sld [smem:[#allocation5 + $0x49]] }
 0x256   : > { %v5772_v30 = vadd.f32 %v1428_v6, %v1416_v9  ;;  %v1994_v6 = vmul.f32 %v1992_v47, %v5834_v35  ;;  %v2022_v24 = vmul.f32 %v2020_v44, %v5834_v35 }
 0x257   : > { %v5765_v27 = vpop.permute.xlu0 %1451  ;;  %v5775_v2 = vpop.permute.xlu1 %1439 }
 0x258   : > { %v1457_v33 = vadd.f32 %v5765_v27, %v5749_v53  ;;  %v1444_v53 = vadd.f32 %v5775_v2, %v5760_v0  ;;  %v1608_v0 = vstv %s5841_s17  ;;  %s6020_s17 = sld [smem:[#allocation3 + $0x4b]] }
 0x259   : > { %1885 = vrot.lane.b32.xlu0 %v1881_v60, %s4678_s28  ;;  %1873 = vrot.lane.b32.xlu1 %v1868_v13, %s4677_s25  ;;  %v2021_v60 = vmul.f32 %v2020_v44, %v5813_v61  ;;  %v1609_v45 = vmul.f32 %v1608_v0, %v5551_v14  ;;  %v1610_v47 = vmul.f32 %v1608_v0, %v5572_v22  ;;  %v2160_v0 = vstv %s5930_s29  ;;  %s6090_s29 = sld [smem:[#allocation3 + $0x3f]] }
 0x25b   : > { %v1466_v40 = vpop.permute.xlu0 %1465  ;;  %v5784_v16 = vpop.permute.xlu1 %1453 }
 0x25c   : > { %v1471_v41 = vadd.f32 %v1466_v40, %v1443_v48  ;;  %v1458_v2 = vadd.f32 %v5784_v16, %v5772_v30  ;;  %v2048_v16 = vstv %s5850_s18  ;;  %s6032_s18 = sld [smem:[#allocation5 + $0x4b]] }
 0x25d   : > { %1899 = vrot.lane.b32.xlu0 %v1895_v51, %s4678_s28  ;;  %1887 = vrot.lane.b32.xlu1 %v1882_v17, %s4678_s28  ;;  %v2034_v51 = vstv %s5839_s14  ;;  %v2050_v55 = vmul.f32 %v2048_v16, %v5834_v35  ;;  %s6007_s14 = sld [smem:[#allocation5 + $0x4a]] }
 0x25f   : > { %v1480_v18 = vpop.permute.xlu0 %1479  ;;  %v5793_v23 = vpop.permute.xlu1 %1467 }
 0x260   : > { %v1485_v59 = vadd.f32 %v1480_v18, %v1457_v33  ;;  %v1472_v9 = vadd.f32 %v5793_v23, %v1444_v53 }
 0x261   : > { %1913 = vrot.lane.b32.xlu0 %v1909_v10, %s4679_s5  ;;  %1901 = vrot.lane.b32.xlu1 %v1896_v1, %s4678_s28 }
 0x263   : > { %v1494_v11 = vpop.permute.xlu0 %1493  ;;  %v5802_v28 = vpop.permute.xlu1 %1481 }
 0x264   : > { %v1499_v56 = vadd.f32 %v1494_v11, %v1471_v41  ;;  %v1486_v23 = vadd.f32 %v5802_v28, %v1458_v2 }
 0x265   : > { %1927 = vrot.lane.b32.xlu0 %v1923_v12, %s4679_s5  ;;  %1915 = vrot.lane.b32.xlu1 %v1910_v29, %s4679_s5  ;;  %v2035_v12 = vmul.f32 %v2034_v51, %v5813_v61 }
 0x267   : > { %v1508_v31 = vpop.permute.xlu0 %1507  ;;  %v1496_v34 = vpop.permute.xlu1 %1495 }
 0x268   : > { %v1513_v52 = vadd.f32 %v1508_v31, %v1485_v59  ;;  %v1500_v15 = vadd.f32 %v1496_v34, %v1472_v9  ;;  %v1604_v34 = vmul.f32 %v1602_v49, %v5572_v22  ;;  %v2104_v59 = vstv %s5901_s24  ;;  %s6070_s24 = sld [smem:[#allocation5 + $0x4e]] }
 0x269   : > { %1941 = vrot.lane.b32.xlu0 %v1937_v32, %s4680_s8  ;;  %1929 = vrot.lane.b32.xlu1 %v1924_v36, %s4679_s5  ;;  %v2105_v53 = vmul.f32 %v2104_v59, %v5813_v61 }
 0x26b   : > { %v1522_v37 = vpop.permute.xlu0 %1521  ;;  %v5820_v26 = vpop.permute.xlu1 %1509 }
 0x26c   : > { %v1527_v63 = vadd.f32 %v1522_v37, %v1499_v56  ;;  %v1514_v29 = vadd.f32 %v5820_v26, %v1486_v23  ;;  %v2090_v56 = vstv %s5889_s23  ;;  %s6061_s23 = sld [smem:[#allocation3 + $0x4e]] }
 0x26d   : > { %1955 = vrot.lane.b32.xlu0 %v1951_v19, %s4680_s8  ;;  %1943 = vrot.lane.b32.xlu1 %v1938_v39, %s4680_s8  ;;  %v2049_v19 = vmul.f32 %v2048_v16, %v5813_v61 }
 0x26f   : > { %v1536_v42 = vpop.permute.xlu0 %1535  ;;  %v1524_v3 = vpop.permute.xlu1 %1523 }
 0x270   : > { %v1541_v13 = vadd.f32 %v1536_v42, %v1513_v52  ;;  %v1528_v1 = vadd.f32 %v1524_v3, %v1500_v15  ;;  %v2118_v52 = vstv %s5912_s26  ;;  %s6079_s26 = sld [smem:[#allocation3 + $0x4f]] }
 0x271   : > { %1983 = vrot.lane.b32.xlu0 %v1979_v43, %s4675_s19  ;;  %1957 = vrot.lane.b32.xlu1 %v1952_v50, %s4680_s8  ;;  %v2036_v43 = vmul.f32 %v2034_v51, %v5834_v35  ;;  %v2063_v50 = vmul.f32 %v2062_v25, %v5813_v61  ;;  %v2119_v9 = vmul.f32 %v2118_v52, %v5813_v61  ;;  %v5944_v51 = vld [vmem:[#allocation2 + $0x1b] sm:$0xff] }
 0x272   : > { %v2120_v15 = vmul.f32 %v2118_v52, %v5834_v35 }
 0x273   : > { %v1550_v46 = vpop.permute.xlu0 %1549  ;;  %v1538_v57 = vpop.permute.xlu1 %1537 }
 0x274   : > { %v1555_v4 = vadd.f32 %v1550_v46, %v1527_v63  ;;  %v1542_v14 = vadd.f32 %v1538_v57, %v1514_v29  ;;  %v2076_v46 = vstv %s5876_s21  ;;  %v2188_v29 = vstv %s5948_s6  ;;  %s6052_s21 = sld [smem:[#allocation5 + $0x4c]] }
 0x275   : > { %1997 = vrot.lane.b32.xlu0 %v1993_v7, %s4675_s19  ;;  %1985 = vrot.lane.b32.xlu1 %v1980_v58, %s4675_s19  ;;  %v2077_v33 = vmul.f32 %v2076_v46, %v5813_v61  ;;  %v2064_v58 = vmul.f32 %v2062_v25, %v5834_v35  ;;  %v2078_v44 = vmul.f32 %v2076_v46, %v5834_v35  ;;  %v1784_v25 = vstv %s5959_s9  ;;  %s6103_s6 = sld [smem:[#allocation5 + $0x3f]] }
 0x276   : > { %v1785_v46 = vmul.f32 %v1784_v25, %v5682_v21  ;;  %s6124_s9 = sld [smem:[#allocation3 + $0x51]] }
 0x277   : > { %v1564_v54 = vpop.permute.xlu0 %1563  ;;  %v1552_v5 = vpop.permute.xlu1 %1551 }
 0x278   : > { %v1569_v17 = vadd.f32 %v1564_v54, %v1541_v13  ;;  %v1556_v31 = vadd.f32 %v1552_v5, %v1528_v1  ;;  %v2092_v5 = vmul.f32 %v2090_v56, %v5834_v35 }
 0x279   : > { %2011 = vrot.lane.b32.xlu0 %v2007_v38, %s4676_s22  ;;  %1999 = vrot.lane.b32.xlu1 %v1994_v6, %s4675_s19  ;;  %v2091_v38 = vmul.f32 %v2090_v56, %v5813_v61 }
 0x27b   : > { %v1578_v27 = vpop.permute.xlu0 %1577  ;;  %v1566_v18 = vpop.permute.xlu1 %1565 }
 0x27c   : > { %v1583_v40 = vadd.f32 %v1578_v27, %v1555_v4  ;;  %v1570_v26 = vadd.f32 %v1566_v18, %v1542_v14  ;;  %v2132_v27 = vstv %s5921_s27  ;;  %v2161_v18 = vmul.f32 %v2160_v0, %v5944_v51  ;;  %s6088_s27 = sld [smem:[#allocation5 + $0x4f]] }
 0x27d   : > { %2025 = vrot.lane.b32.xlu0 %v2021_v60, %s4676_s22  ;;  %2013 = vrot.lane.b32.xlu1 %v2008_v20, %s4676_s22  ;;  %v2174_v20 = vstv %s5939_s30  ;;  %v2189_v14 = vmul.f32 %v2188_v29, %v5944_v51  ;;  %s6101_s30 = sld [smem:[#allocation3 + $0x50]] }
 0x27e   : > { %v5868_v10 = vadd.f32 %v1603_v8, %v1583_v40  ;;  %v2106_v8 = vmul.f32 %v2104_v59, %v5834_v35  ;;  %v2133_v40 = vmul.f32 %v2132_v27, %v5813_v61 }
 0x27f   : > { %v1592_v11 = vpop.permute.xlu0 %1591  ;;  %v1580_v32 = vpop.permute.xlu1 %1579 }
 0x280   : > { %v1597_v30 = vadd.f32 %v1592_v11, %v1569_v17  ;;  %v1584_v36 = vadd.f32 %v1580_v32, %v1556_v31  ;;  %v2134_v11 = vmul.f32 %v2132_v27, %v5834_v35 }
 0x281   : > { %2039 = vrot.lane.b32.xlu0 %v2035_v12, %s4677_s25  ;;  %2027 = vrot.lane.b32.xlu1 %v2022_v24, %s4676_s22  ;;  %v5965_v12 = vld [vmem:[#allocation2 + $0x23] sm:$0xff] }
 0x282   : > { %v5880_v28 = vadd.f32 %v1609_v45, %v1597_v30  ;;  %v5891_v39 = vadd.f32 %v1604_v34, %v1584_v36  ;;  %v2175_v30 = vmul.f32 %v2174_v20, %v5944_v51  ;;  %v2162_v24 = vmul.f32 %v2160_v0, %v5965_v12 }
 0x283   : > { %v5884_v37 = vpop.permute.xlu0 %1619  ;;  %v1594_v42 = vpop.permute.xlu1 %1593  ;;  %v2190_v59 = vmul.f32 %v2188_v29, %v5965_v12  ;;  %v2244_v0 = vstv %s5993_s13  ;;  %s6176_s13 = sld [smem:[#allocation3 + $0x53]] }
 0x284   : > { %v1598_v48 = vadd.f32 %v1594_v42, %v1570_v26  ;;  %v1625_v23 = vadd.f32 %v5884_v37, %v5868_v10 }
 0x285   : > { %2053 = vrot.lane.b32.xlu0 %v2049_v19, %s4677_s25  ;;  %2041 = vrot.lane.b32.xlu1 %v2036_v43, %s4677_s25  ;;  %v2202_v19 = vstv %s5957_s7  ;;  %s6112_s7 = sld [smem:[#allocation5 + $0x50]] }
 0x286   : > { %v5903_v7 = vadd.f32 %v1610_v47, %v1598_v48  ;;  %v2176_v47 = vmul.f32 %v2174_v20, %v5965_v12  ;;  %v2204_v27 = vmul.f32 %v2202_v19, %v5965_v12 }
 0x287   : > { %v5896_v3 = vpop.permute.xlu0 %1633  ;;  %v5906_v41 = vpop.permute.xlu1 %1621 }
 0x288   : > { %v1639_v10 = vadd.f32 %v5896_v3, %v5880_v28  ;;  %v1626_v28 = vadd.f32 %v5906_v41, %v5891_v39  ;;  %v1790_v39 = vstv %s5972_s11  ;;  %s6151_s11 = sld [smem:[#allocation3 + $0x52]] }
 0x289   : > { %2067 = vrot.lane.b32.xlu0 %v2063_v50, %s4678_s28  ;;  %2055 = vrot.lane.b32.xlu1 %v2050_v55, %s4677_s25  ;;  %v2203_v50 = vmul.f32 %v2202_v19, %v5944_v51  ;;  %v1791_v52 = vmul.f32 %v1790_v39, %v5682_v21  ;;  %v1792_v20 = vmul.f32 %v1790_v39, %v5703_v62  ;;  %v2342_v39 = vstv %s6061_s23  ;;  %s6246_s23 = sld [smem:[#allocation3 + $0x57]] }
 0x28b   : > { %v1648_v22 = vpop.permute.xlu0 %1647  ;;  %v5915_v57 = vpop.permute.xlu1 %1635 }
 0x28c   : > { %v1653_v16 = vadd.f32 %v1648_v22, %v1625_v23  ;;  %v1640_v41 = vadd.f32 %v5915_v57, %v5903_v7  ;;  %v2230_v57 = vstv %s5981_s12  ;;  %s6163_s12 = sld [smem:[#allocation5 + $0x52]] }
 0x28d   : > { %2081 = vrot.lane.b32.xlu0 %v2077_v33, %s4678_s28  ;;  %2069 = vrot.lane.b32.xlu1 %v2064_v58, %s4678_s28  ;;  %v2216_v33 = vstv %s5970_s10  ;;  %v2232_v29 = vmul.f32 %v2230_v57, %v5965_v12  ;;  %s6138_s10 = sld [smem:[#allocation5 + $0x51]] }
 0x28f   : > { %v1662_v54 = vpop.permute.xlu0 %1661  ;;  %v5924_v63 = vpop.permute.xlu1 %1649 }
 0x290   : > { %v1667_v36 = vadd.f32 %v1662_v54, %v1639_v10  ;;  %v1654_v48 = vadd.f32 %v5924_v63, %v1626_v28 }
 0x291   : > { %2095 = vrot.lane.b32.xlu0 %v2091_v38, %s4679_s5  ;;  %2083 = vrot.lane.b32.xlu1 %v2078_v44, %s4678_s28 }
 0x293   : > { %v1676_v49 = vpop.permute.xlu0 %1675  ;;  %v5933_v4 = vpop.permute.xlu1 %1663 }
 0x294   : > { %v1681_v31 = vadd.f32 %v1676_v49, %v1653_v16  ;;  %v1668_v63 = vadd.f32 %v5933_v4, %v1640_v41 }
 0x295   : > { %2109 = vrot.lane.b32.xlu0 %v2105_v53, %s4679_s5  ;;  %2097 = vrot.lane.b32.xlu1 %v2092_v5, %s4679_s5  ;;  %v2217_v53 = vmul.f32 %v2216_v33, %v5944_v51 }
 0x297   : > { %v1690_v6 = vpop.permute.xlu0 %1689  ;;  %v1678_v60 = vpop.permute.xlu1 %1677 }
 0x298   : > { %v1695_v26 = vadd.f32 %v1690_v6, %v1667_v36  ;;  %v1682_v56 = vadd.f32 %v1678_v60, %v1654_v48  ;;  %v1786_v60 = vmul.f32 %v1784_v25, %v5703_v62  ;;  %v2286_v36 = vstv %s6032_s18  ;;  %s6209_s18 = sld [smem:[#allocation5 + $0x55]] }
 0x299   : > { %2123 = vrot.lane.b32.xlu0 %v2119_v9, %s4680_s8  ;;  %2111 = vrot.lane.b32.xlu1 %v2106_v8, %s4679_s5  ;;  %v2287_v28 = vmul.f32 %v2286_v36, %v5944_v51 }
 0x29b   : > { %v1704_v13 = vpop.permute.xlu0 %1703  ;;  %v5951_v2 = vpop.permute.xlu1 %1691 }
 0x29c   : > { %v1709_v37 = vadd.f32 %v1704_v13, %v1681_v31  ;;  %v1696_v5 = vadd.f32 %v5951_v2, %v1668_v63  ;;  %v2272_v31 = vstv %s6020_s17  ;;  %s6198_s17 = sld [smem:[#allocation3 + $0x55]] }
 0x29d   : > { %2137 = vrot.lane.b32.xlu0 %v2133_v40, %s4680_s8  ;;  %2125 = vrot.lane.b32.xlu1 %v2120_v15, %s4680_s8  ;;  %v2231_v40 = vmul.f32 %v2230_v57, %v5944_v51 }
 0x29f   : > { %v1718_v17 = vpop.permute.xlu0 %1717  ;;  %v1706_v1 = vpop.permute.xlu1 %1705 }
 0x2a0   : > { %v1723_v55 = vadd.f32 %v1718_v17, %v1695_v26  ;;  %v1710_v44 = vadd.f32 %v1706_v1, %v1682_v56  ;;  %v2300_v26 = vstv %s6043_s20  ;;  %s6222_s20 = sld [smem:[#allocation3 + $0x56]] }
 0x2a1   : > { %2165 = vrot.lane.b32.xlu0 %v2161_v18, %s4675_s19  ;;  %2139 = vrot.lane.b32.xlu1 %v2134_v11, %s4680_s8  ;;  %v2218_v18 = vmul.f32 %v2216_v33, %v5965_v12  ;;  %v2245_v11 = vmul.f32 %v2244_v0, %v5944_v51  ;;  %v2301_v48 = vmul.f32 %v2300_v26, %v5944_v51  ;;  %v6075_v33 = vld [vmem:[#allocation2 + $0x1c] sm:$0xff] }
 0x2a2   : > { %v2302_v56 = vmul.f32 %v2300_v26, %v5965_v12 }
 0x2a3   : > { %v1732_v45 = vpop.permute.xlu0 %1731  ;;  %v1720_v32 = vpop.permute.xlu1 %1719 }
 0x2a4   : > { %v1737_v42 = vadd.f32 %v1732_v45, %v1709_v37  ;;  %v1724_v21 = vadd.f32 %v1720_v32, %v1696_v5  ;;  %v2258_v45 = vstv %s6007_s14  ;;  %v2370_v5 = vstv %s6079_s26  ;;  %s6187_s14 = sld [smem:[#allocation5 + $0x53]] }
 0x2a5   : > { %2179 = vrot.lane.b32.xlu0 %v2175_v30, %s4675_s19  ;;  %2167 = vrot.lane.b32.xlu1 %v2162_v24, %s4675_s19  ;;  %v2259_v10 = vmul.f32 %v2258_v45, %v5944_v51  ;;  %v2246_v24 = vmul.f32 %v2244_v0, %v5965_v12  ;;  %v2260_v19 = vmul.f32 %v2258_v45, %v5965_v12  ;;  %v1966_v0 = vstv %s6090_s29  ;;  %s6268_s26 = sld [smem:[#allocation3 + $0x58]] }
 0x2a6   : > { %v1967_v45 = vmul.f32 %v1966_v0, %v5813_v61  ;;  %s6290_s29 = sld [smem:[#allocation3 + $0x59]] }
 0x2a7   : > { %v1746_v34 = vpop.permute.xlu0 %1745  ;;  %v1734_v43 = vpop.permute.xlu1 %1733 }
 0x2a8   : > { %v1751_v58 = vadd.f32 %v1746_v34, %v1723_v55  ;;  %v1738_v6 = vadd.f32 %v1734_v43, %v1710_v44  ;;  %v2274_v43 = vmul.f32 %v2272_v31, %v5965_v12 }
 0x2a9   : > { %2193 = vrot.lane.b32.xlu0 %v2189_v14, %s4676_s22  ;;  %2181 = vrot.lane.b32.xlu1 %v2176_v47, %s4675_s19  ;;  %v2273_v14 = vmul.f32 %v2272_v31, %v5944_v51 }
 0x2ab   : > { %v1760_v3 = vpop.permute.xlu0 %1759  ;;  %v1748_v54 = vpop.permute.xlu1 %1747 }
 0x2ac   : > { %v1765_v22 = vadd.f32 %v1760_v3, %v1737_v42  ;;  %v1752_v2 = vadd.f32 %v1748_v54, %v1724_v21  ;;  %v2314_v3 = vstv %s6052_s21  ;;  %v2343_v54 = vmul.f32 %v2342_v39, %v6075_v33  ;;  %s6233_s21 = sld [smem:[#allocation5 + $0x56]] }
 0x2ad   : > { %2207 = vrot.lane.b32.xlu0 %v2203_v50, %s4676_s22  ;;  %2195 = vrot.lane.b32.xlu1 %v2190_v59, %s4676_s22  ;;  %v2356_v59 = vstv %s6070_s24  ;;  %v2371_v21 = vmul.f32 %v2370_v5, %v6075_v33  ;;  %s6257_s24 = sld [smem:[#allocation5 + $0x57]] }
 0x2ae   : > { %v5999_v38 = vadd.f32 %v1785_v46, %v1765_v22  ;;  %v2288_v46 = vmul.f32 %v2286_v36, %v5965_v12  ;;  %v2315_v22 = vmul.f32 %v2314_v3, %v5944_v51 }
 0x2af   : > { %v1774_v49 = vpop.permute.xlu0 %1773  ;;  %v1762_v9 = vpop.permute.xlu1 %1761 }
 0x2b0   : > { %v1779_v7 = vadd.f32 %v1774_v49, %v1751_v58  ;;  %v1766_v8 = vadd.f32 %v1762_v9, %v1738_v6  ;;  %v2316_v49 = vmul.f32 %v2314_v3, %v5965_v12 }
 0x2b1   : > { %2221 = vrot.lane.b32.xlu0 %v2217_v53, %s4677_s25  ;;  %2209 = vrot.lane.b32.xlu1 %v2204_v27, %s4676_s22  ;;  %v6096_v53 = vld [vmem:[#allocation2 + $0x24] sm:$0xff] }
 0x2b2   : > { %v6011_v4 = vadd.f32 %v1791_v52, %v1779_v7  ;;  %v6022_v15 = vadd.f32 %v1786_v60, %v1766_v8  ;;  %v2357_v7 = vmul.f32 %v2356_v59, %v6075_v33  ;;  %v2344_v27 = vmul.f32 %v2342_v39, %v6096_v53 }
 0x2b3   : > { %v6015_v13 = vpop.permute.xlu0 %1801  ;;  %v1776_v17 = vpop.permute.xlu1 %1775  ;;  %v2372_v36 = vmul.f32 %v2370_v5, %v6096_v53  ;;  %v2426_v39 = vstv %s6124_s9  ;;  %s6331_s9 = sld [smem:[#allocation3 + $0x46]] }
 0x2b4   : > { %v1780_v23 = vadd.f32 %v1776_v17, %v1752_v2  ;;  %v1807_v63 = vadd.f32 %v6015_v13, %v5999_v38 }
 0x2b5   : > { %2235 = vrot.lane.b32.xlu0 %v2231_v40, %s4677_s25  ;;  %2223 = vrot.lane.b32.xlu1 %v2218_v18, %s4677_s25  ;;  %v2384_v40 = vstv %s6088_s27  ;;  %s6279_s27 = sld [smem:[#allocation5 + $0x58]] }
 0x2b6   : > { %v6034_v30 = vadd.f32 %v1792_v20, %v1780_v23  ;;  %v2358_v20 = vmul.f32 %v2356_v59, %v6096_v53  ;;  %v2386_v3 = vmul.f32 %v2384_v40, %v6096_v53 }
 0x2b7   : > { %v6027_v1 = vpop.permute.xlu0 %1815  ;;  %v6037_v16 = vpop.permute.xlu1 %1803 }
 0x2b8   : > { %v1821_v38 = vadd.f32 %v6027_v1, %v6011_v4  ;;  %v1808_v4 = vadd.f32 %v6037_v16, %v6022_v15  ;;  %v1972_v15 = vstv %s6103_s6  ;;  %s6312_s6 = sld [smem:[#allocation3 + $0x5a]] }
 0x2b9   : > { %2249 = vrot.lane.b32.xlu0 %v2245_v11, %s4678_s28  ;;  %2237 = vrot.lane.b32.xlu1 %v2232_v29, %s4677_s25  ;;  %v2385_v11 = vmul.f32 %v2384_v40, %v6075_v33  ;;  %v1973_v26 = vmul.f32 %v1972_v15, %v5813_v61  ;;  %v1974_v59 = vmul.f32 %v1972_v15, %v5834_v35  ;;  %v2524_v15 = vstv %s6198_s17  ;;  %s6399_s17 = sld [smem:[#allocation3 + $0x4d]] }
 0x2bb   : > { %v1830_v62 = vpop.permute.xlu0 %1829  ;;  %v6046_v32 = vpop.permute.xlu1 %1817 }
 0x2bc   : > { %v1835_v57 = vadd.f32 %v1830_v62, %v1807_v63  ;;  %v1822_v16 = vadd.f32 %v6046_v32, %v6034_v30  ;;  %v2412_v32 = vstv %s6112_s7  ;;  %s6323_s7 = sld [smem:[#allocation5 + $0x5a]] }
 0x2bd   : > { %2263 = vrot.lane.b32.xlu0 %v2259_v10, %s4678_s28  ;;  %2251 = vrot.lane.b32.xlu1 %v2246_v24, %s4678_s28  ;;  %v2398_v10 = vstv %s6101_s30  ;;  %v2414_v5 = vmul.f32 %v2412_v32, %v6096_v53  ;;  %s6301_s30 = sld [smem:[#allocation5 + $0x59]] }
 0x2bf   : > { %v1844_v34 = vpop.permute.xlu0 %1843  ;;  %v6055_v37 = vpop.permute.xlu1 %1831 }
 0x2c0   : > { %v1849_v8 = vadd.f32 %v1844_v34, %v1821_v38  ;;  %v1836_v23 = vadd.f32 %v6055_v37, %v1808_v4 }
 0x2c1   : > { %2277 = vrot.lane.b32.xlu0 %v2273_v14, %s4679_s5  ;;  %2265 = vrot.lane.b32.xlu1 %v2260_v19, %s4678_s28 }
 0x2c3   : > { %v1858_v25 = vpop.permute.xlu0 %1857  ;;  %v6064_v42 = vpop.permute.xlu1 %1845 }
 0x2c4   : > { %v1863_v6 = vadd.f32 %v1858_v25, %v1835_v57  ;;  %v1850_v37 = vadd.f32 %v6064_v42, %v1822_v16 }
 0x2c5   : > { %2291 = vrot.lane.b32.xlu0 %v2287_v28, %s4679_s5  ;;  %2279 = vrot.lane.b32.xlu1 %v2274_v43, %s4679_s5  ;;  %v2399_v28 = vmul.f32 %v2398_v10, %v6075_v33 }
 0x2c7   : > { %v1872_v47 = vpop.permute.xlu0 %1871  ;;  %v1860_v50 = vpop.permute.xlu1 %1859 }
 0x2c8   : > { %v1877_v2 = vadd.f32 %v1872_v47, %v1849_v8  ;;  %v1864_v31 = vadd.f32 %v1860_v50, %v1836_v23  ;;  %v1968_v50 = vmul.f32 %v1966_v0, %v5834_v35  ;;  %v2468_v8 = vstv %s6163_s12  ;;  %s6357_s12 = sld [smem:[#allocation5 + $0x5c]] }
 0x2c9   : > { %2305 = vrot.lane.b32.xlu0 %v2301_v48, %s4680_s8  ;;  %2293 = vrot.lane.b32.xlu1 %v2288_v46, %s4679_s5  ;;  %v2469_v4 = vmul.f32 %v2468_v8, %v6075_v33 }
 0x2cb   : > { %v1886_v55 = vpop.permute.xlu0 %1885  ;;  %v6082_v41 = vpop.permute.xlu1 %1873 }
 0x2cc   : > { %v1891_v13 = vadd.f32 %v1886_v55, %v1863_v6  ;;  %v1878_v43 = vadd.f32 %v6082_v41, %v1850_v37  ;;  %v2454_v6 = vstv %s6151_s11  ;;  %s6348_s11 = sld [smem:[#allocation5 + $0x46]] }
 0x2cd   : > { %2319 = vrot.lane.b32.xlu0 %v2315_v22, %s4680_s8  ;;  %2307 = vrot.lane.b32.xlu1 %v2302_v56, %s4680_s8  ;;  %v2413_v22 = vmul.f32 %v2412_v32, %v6075_v33 }
 0x2cf   : > { %v1900_v58 = vpop.permute.xlu0 %1899  ;;  %v1888_v44 = vpop.permute.xlu1 %1887 }
 0x2d0   : > { %v1905_v29 = vadd.f32 %v1900_v58, %v1877_v2  ;;  %v1892_v19 = vadd.f32 %v1888_v44, %v1864_v31  ;;  %v2482_v2 = vstv %s6176_s13  ;;  %s6376_s13 = sld [smem:[#allocation3 + $0x5d]] }
 0x2d1   : > { %2347 = vrot.lane.b32.xlu0 %v2343_v54, %s4675_s19  ;;  %2321 = vrot.lane.b32.xlu1 %v2316_v49, %s4680_s8  ;;  %v2400_v54 = vmul.f32 %v2398_v10, %v6096_v53  ;;  %v2427_v49 = vmul.f32 %v2426_v39, %v6075_v33  ;;  %v2483_v23 = vmul.f32 %v2482_v2, %v6075_v33  ;;  %v6218_v10 = vld [vmem:[#allocation2 + $0x1d] sm:$0xff] }
 0x2d2   : > { %v2484_v31 = vmul.f32 %v2482_v2, %v6096_v53 }
 0x2d3   : > { %v1914_v52 = vpop.permute.xlu0 %1913  ;;  %v1902_v9 = vpop.permute.xlu1 %1901 }
 0x2d4   : > { %v1919_v17 = vadd.f32 %v1914_v52, %v1891_v13  ;;  %v1906_v61 = vadd.f32 %v1902_v9, %v1878_v43  ;;  %v2440_v52 = vstv %s6138_s10  ;;  %s6339_s10 = sld [smem:[#allocation3 + $0x5c]] }
 0x2d5   : > { %2361 = vrot.lane.b32.xlu0 %v2357_v7, %s4675_s19  ;;  %2349 = vrot.lane.b32.xlu1 %v2344_v27, %s4675_s19  ;;  %v2441_v38 = vmul.f32 %v2440_v52, %v6075_v33  ;;  %v2428_v27 = vmul.f32 %v2426_v39, %v6096_v53  ;;  %v2442_v40 = vmul.f32 %v2440_v52, %v6096_v53  ;;  %v2580_v39 = vstv %s6246_s23  ;;  %s6440_s23 = sld [smem:[#allocation3 + $0x5f]] }
 0x2d7   : > { %v1928_v60 = vpop.permute.xlu0 %1927  ;;  %v1916_v18 = vpop.permute.xlu1 %1915 }
 0x2d8   : > { %v1933_v24 = vadd.f32 %v1928_v60, %v1905_v29  ;;  %v1920_v47 = vadd.f32 %v1916_v18, %v1892_v19  ;;  %v2456_v18 = vmul.f32 %v2454_v6, %v6096_v53 }
 0x2d9   : > { %2375 = vrot.lane.b32.xlu0 %v2371_v21, %s4676_s22  ;;  %2363 = vrot.lane.b32.xlu1 %v2358_v20, %s4675_s19  ;;  %v2455_v21 = vmul.f32 %v2454_v6, %v6075_v33  ;;  %v2608_v6 = vstv %s6268_s26  ;;  %s6467_s26 = sld [smem:[#allocation3 + $0x60]] }
 0x2db   : > { %v1942_v1 = vpop.permute.xlu0 %1941  ;;  %v1930_v34 = vpop.permute.xlu1 %1929 }
 0x2dc   : > { %v1947_v62 = vadd.f32 %v1942_v1, %v1919_v17  ;;  %v1934_v41 = vadd.f32 %v1930_v34, %v1906_v61  ;;  %v2496_v1 = vstv %s6187_s14  ;;  %v2525_v34 = vmul.f32 %v2524_v15, %v6218_v10  ;;  %s6394_s14 = sld [smem:[#allocation5 + $0x5d]] }
 0x2dd   : > { %2389 = vrot.lane.b32.xlu0 %v2385_v11, %s4676_s22  ;;  %2377 = vrot.lane.b32.xlu1 %v2372_v36, %s4676_s22  ;;  %v2538_v36 = vstv %s6209_s18  ;;  %v2498_v19 = vmul.f32 %v2496_v1, %v6096_v53  ;;  %s6412_s18 = sld [smem:[#allocation3 + $0x5e]] }
 0x2de   : > { %v6130_v14 = vadd.f32 %v1967_v45, %v1947_v62  ;;  %v2470_v45 = vmul.f32 %v2468_v8, %v6096_v53  ;;  %v2497_v62 = vmul.f32 %v2496_v1, %v6075_v33 }
 0x2df   : > { %v1956_v25 = vpop.permute.xlu0 %1955  ;;  %v1944_v48 = vpop.permute.xlu1 %1943 }
 0x2e0   : > { %v1961_v30 = vadd.f32 %v1956_v25, %v1933_v24  ;;  %v1948_v46 = vadd.f32 %v1944_v48, %v1920_v47  ;;  %v6239_v25 = vld [vmem:[#allocation2 + $0x25] sm:$0xff] }
 0x2e1   : > { %2403 = vrot.lane.b32.xlu0 %v2399_v28, %s4677_s25  ;;  %2391 = vrot.lane.b32.xlu1 %v2386_v3, %s4676_s22  ;;  %v2526_v43 = vmul.f32 %v2524_v15, %v6239_v25  ;;  %v2566_v3 = vstv %s6233_s21  ;;  %v2540_v61 = vmul.f32 %v2538_v36, %v6239_v25  ;;  %v2610_v15 = vmul.f32 %v2608_v6, %v6239_v25  ;;  %s6427_s21 = sld [smem:[#allocation5 + $0x5e]] }
 0x2e2   : > { %v6142_v42 = vadd.f32 %v1973_v26, %v1961_v30  ;;  %v6153_v56 = vadd.f32 %v1968_v50, %v1948_v46  ;;  %v2539_v26 = vmul.f32 %v2538_v36, %v6218_v10  ;;  %v2552_v30 = vstv %s6222_s20  ;;  %s6417_s20 = sld [smem:[#allocation5 + $0x4d]] }
 0x2e3   : > { %v6146_v55 = vpop.permute.xlu0 %1983  ;;  %v1958_v58 = vpop.permute.xlu1 %1957  ;;  %v2553_v48 = vmul.f32 %v2552_v30, %v6218_v10  ;;  %v2568_v52 = vmul.f32 %v2566_v3, %v6239_v25  ;;  %v2650_v36 = vstv %s6301_s30  ;;  %s6499_s30 = sld [smem:[#allocation5 + $0x61]] }
 0x2e4   : > { %v1962_v63 = vadd.f32 %v1958_v58, %v1934_v41  ;;  %v2554_v58 = vmul.f32 %v2552_v30, %v6239_v25 }
 0x2e5   : > { %2417 = vrot.lane.b32.xlu0 %v2413_v22, %s4677_s25  ;;  %2405 = vrot.lane.b32.xlu1 %v2400_v54, %s4677_s25  ;;  %v2567_v22 = vmul.f32 %v2566_v3, %v6218_v10 }
 0x2e6   : > { %v6165_v7 = vadd.f32 %v1974_v59, %v1962_v63  ;;  %v2581_v59 = vmul.f32 %v2580_v39, %v6218_v10  ;;  %v2594_v63 = vstv %s6257_s24  ;;  %s6454_s24 = sld [smem:[#allocation5 + $0x5f]] }
 0x2e7   : > { %v6158_v44 = vpop.permute.xlu0 %1997  ;;  %v6168_v57 = vpop.permute.xlu1 %1985 }
 0x2e9   : > { %2431 = vrot.lane.b32.xlu0 %v2427_v49, %s4678_s28  ;;  %2419 = vrot.lane.b32.xlu1 %v2414_v5, %s4677_s25 }
 0x2eb   : > { %v6171_v35 = vpop.permute.xlu0 %2011  ;;  %v6179_v9 = vpop.permute.xlu1 %1999 }
 0x2ed   : > { %2445 = vrot.lane.b32.xlu0 %v2441_v38, %s4678_s28  ;;  %2433 = vrot.lane.b32.xlu1 %v2428_v27, %s4678_s28  ;;  %v2595_v38 = vmul.f32 %v2594_v63, %v6218_v10 }
 0x2ef   : > { %v6182_v60 = vpop.permute.xlu0 %2025  ;;  %v6190_v13 = vpop.permute.xlu1 %2013 }
 0x2f1   : > { %2459 = vrot.lane.b32.xlu0 %v2455_v21, %s4679_s5  ;;  %2447 = vrot.lane.b32.xlu1 %v2442_v40, %s4678_s28  ;;  %v2582_v21 = vmul.f32 %v2580_v39, %v6239_v25  ;;  %v2609_v40 = vmul.f32 %v2608_v6, %v6218_v10 }
 0x2f3   : > { %v6193_v0 = vpop.permute.xlu0 %2039  ;;  %v6201_v17 = vpop.permute.xlu1 %2027 }
 0x2f5   : > { %2473 = vrot.lane.b32.xlu0 %v2469_v4, %s4679_s5  ;;  %2461 = vrot.lane.b32.xlu1 %v2456_v18, %s4679_s5  ;;  %v2622_v4 = vstv %s6279_s27  ;;  %v2596_v18 = vmul.f32 %v2594_v63, %v6239_v25  ;;  %s6479_s27 = sld [smem:[#allocation5 + $0x60]] }
 0x2f6   : > { %v2623_v1 = vmul.f32 %v2622_v4, %v6218_v10  ;;  %v2624_v30 = vmul.f32 %v2622_v4, %v6239_v25  ;;  %v6370_v4 = vld [vmem:[#allocation2 + $0x1e] sm:$0xff] }
 0x2f7   : > { %v6204_v20 = vpop.permute.xlu0 %2053  ;;  %v6212_v11 = vpop.permute.xlu1 %2041 }
 0x2f9   : > { %2487 = vrot.lane.b32.xlu0 %v2483_v23, %s4680_s8  ;;  %2475 = vrot.lane.b32.xlu1 %v2470_v45, %s4679_s5  ;;  %v2636_v45 = vstv %s6290_s29  ;;  %s6490_s29 = sld [smem:[#allocation3 + $0x61]] }
 0x2fa   : > { %v2638_v39 = vmul.f32 %v2636_v45, %v6239_v25 }
 0x2fb   : > { %v6215_v29 = vpop.permute.xlu0 %2067  ;;  %v6225_v16 = vpop.permute.xlu1 %2055 }
 0x2fd   : > { %2501 = vrot.lane.b32.xlu0 %v2497_v62, %s4680_s8  ;;  %2489 = vrot.lane.b32.xlu1 %v2484_v31, %s4680_s8 }
 0x2ff   : > { %v6228_v24 = vpop.permute.xlu0 %2081  ;;  %v6236_v37 = vpop.permute.xlu1 %2069 }
 0x301   : > { %2529 = vrot.lane.b32.xlu0 %v2525_v34, %s4675_s19  ;;  %2503 = vrot.lane.b32.xlu1 %v2498_v19, %s4680_s8  ;;  %v2637_v34 = vmul.f32 %v2636_v45, %v6218_v10  ;;  %v1989_v19 = vadd.f32 %v6146_v55, %v6130_v14  ;;  %v2003_v14 = vadd.f32 %v6158_v44, %v6142_v42  ;;  %v2678_v42 = vstv %s6323_s7  ;;  %s6517_s7 = sld [smem:[#allocation5 + $0x63]] }
 0x302   : > { %v1990_v44 = vadd.f32 %v6168_v57, %v6153_v56  ;;  %v2154_v45 = vstv %s6348_s11  ;;  %s6538_s11 = sld [smem:[#allocation3 + $0x54]] }
 0x303   : > { %v6241_v28 = vpop.permute.xlu0 %2095  ;;  %v6249_v32 = vpop.permute.xlu1 %2083  ;;  %v2017_v3 = vadd.f32 %v6171_v35, %v1989_v19  ;;  %v2720_v19 = vstv %s6357_s12  ;;  %s6548_s12 = sld [smem:[#allocation3 + $0x65]] }
 0x304   : > { %v2018_v6 = vadd.f32 %v6190_v13, %v1990_v44 }
 0x305   : > { %2543 = vrot.lane.b32.xlu0 %v2539_v26, %s4675_s19  ;;  %2531 = vrot.lane.b32.xlu1 %v2526_v43, %s4675_s19  ;;  %v2045_v55 = vadd.f32 %v6193_v0, %v2017_v3  ;;  %v6404_v3 = vld [vmem:[#allocation2 + $0x26] sm:$0xff] }
 0x306   : > { %v2046_v13 = vadd.f32 %v6212_v11, %v2018_v6 }
 0x307   : > { %v6252_v47 = vpop.permute.xlu0 %2109  ;;  %v6260_v50 = vpop.permute.xlu1 %2097  ;;  %v2073_v63 = vadd.f32 %v6215_v29, %v2045_v55  ;;  %v2148_v29 = vstv %s6331_s9  ;;  %s6526_s9 = sld [smem:[#allocation3 + $0x64]] }
 0x309   : > { %2557 = vrot.lane.b32.xlu0 %v2553_v48, %s4676_s22  ;;  %2545 = vrot.lane.b32.xlu1 %v2540_v61, %s4675_s19  ;;  %v2651_v48 = vmul.f32 %v2650_v36, %v6218_v10  ;;  %v2664_v61 = vstv %s6312_s6  ;;  %s6508_s6 = sld [smem:[#allocation3 + $0x63]] }
 0x30b   : > { %v6263_v46 = vpop.permute.xlu0 %2123  ;;  %v6271_v41 = vpop.permute.xlu1 %2111 }
 0x30d   : > { %2571 = vrot.lane.b32.xlu0 %v2567_v22, %s4676_s22  ;;  %2559 = vrot.lane.b32.xlu1 %v2554_v58, %s4676_s22  ;;  %v2665_v58 = vmul.f32 %v2664_v61, %v6218_v10 }
 0x30f   : > { %v6274_v54 = vpop.permute.xlu0 %2137  ;;  %v6282_v49 = vpop.permute.xlu1 %2125 }
 0x311   : > { %2585 = vrot.lane.b32.xlu0 %v2581_v59, %s4677_s25  ;;  %2573 = vrot.lane.b32.xlu1 %v2568_v52, %s4676_s22  ;;  %v2031_v59 = vadd.f32 %v6182_v60, %v2003_v14  ;;  %v2101_v52 = vadd.f32 %v6241_v28, %v2073_v63  ;;  %v2652_v60 = vmul.f32 %v2650_v36, %v6239_v25 }
 0x312   : > { %v2004_v28 = vadd.f32 %v6179_v9, %v6165_v7 }
 0x313   : > { %v6285_v5 = vpop.permute.xlu0 %2165  ;;  %v6293_v27 = vpop.permute.xlu1 %2139  ;;  %v2059_v0 = vadd.f32 %v6204_v20, %v2031_v59  ;;  %v2129_v57 = vadd.f32 %v6263_v46, %v2101_v52  ;;  %v2706_v20 = vstv %s6339_s10  ;;  %v2666_v46 = vmul.f32 %v2664_v61, %v6239_v25  ;;  %s6535_s10 = sld [smem:[#allocation5 + $0x64]] }
 0x314   : > { %v2707_v7 = vmul.f32 %v2706_v20, %v6370_v4  ;;  %v2708_v59 = vmul.f32 %v2706_v20, %v6404_v3 }
 0x315   : > { %2599 = vrot.lane.b32.xlu0 %v2595_v38, %s4677_s25  ;;  %2587 = vrot.lane.b32.xlu1 %v2582_v21, %s4677_s25  ;;  %v2087_v56 = vadd.f32 %v6228_v24, %v2059_v0 }
 0x317   : > { %v6296_v8 = vpop.permute.xlu0 %2179  ;;  %v6304_v2 = vpop.permute.xlu1 %2167 }
 0x319   : > { %2613 = vrot.lane.b32.xlu0 %v2609_v40, %s4678_s28  ;;  %2601 = vrot.lane.b32.xlu1 %v2596_v18, %s4677_s25  ;;  %v2679_v40 = vmul.f32 %v2678_v42, %v6218_v10  ;;  %v2149_v18 = vmul.f32 %v2148_v29, %v5944_v51 }
 0x31b   : > { %v6307_v23 = vpop.permute.xlu0 %2193  ;;  %v6315_v62 = vpop.permute.xlu1 %2181  ;;  %v2151_v9 = vadd.f32 %v2149_v18, %v2129_v57 }
 0x31d   : > { %2627 = vrot.lane.b32.xlu0 %v2623_v1, %s4678_s28  ;;  %2615 = vrot.lane.b32.xlu1 %v2610_v15, %s4678_s28  ;;  %v2115_v1 = vadd.f32 %v6252_v47, %v2087_v56  ;;  %v2032_v15 = vadd.f32 %v6201_v17, %v2004_v28  ;;  %v2155_v17 = vmul.f32 %v2154_v45, %v5944_v51  ;;  %v2734_v51 = vstv %s6376_s13  ;;  %s6551_s13 = sld [smem:[#allocation5 + $0x54]] }
 0x31e   : > { %v2735_v0 = vmul.f32 %v2734_v51, %v6370_v4 }
 0x31f   : > { %v6318_v31 = vpop.permute.xlu0 %2207  ;;  %v6328_v26 = vpop.permute.xlu1 %2195  ;;  %v2143_v11 = vadd.f32 %v6274_v54, %v2115_v1  ;;  %v2060_v47 = vadd.f32 %v6225_v16, %v2032_v15  ;;  %v2680_v54 = vmul.f32 %v2678_v42, %v6239_v25  ;;  %v2736_v15 = vmul.f32 %v2734_v51, %v6404_v3 }
 0x321   : > { %2641 = vrot.lane.b32.xlu0 %v2637_v34, %s4679_s5  ;;  %2629 = vrot.lane.b32.xlu1 %v2624_v30, %s4678_s28  ;;  %v2074_v34 = vadd.f32 %v6236_v37, %v2046_v13  ;;  %v2171_v37 = vadd.f32 %v6285_v5, %v2151_v9  ;;  %v2088_v61 = vadd.f32 %v6249_v32, %v2060_v47  ;;  %v2762_v13 = vstv %s6412_s18  ;;  %s6585_s18 = sld [smem:[#allocation5 + $0x66]] }
 0x322   : > { %v2157_v55 = vadd.f32 %v2155_v17, %v2143_v11  ;;  %v2150_v5 = vmul.f32 %v2148_v29, %v5965_v12  ;;  %v2330_v29 = vstv %s6399_s17  ;;  %v2763_v9 = vmul.f32 %v2762_v13, %v6370_v4  ;;  %s6571_s17 = sld [smem:[#allocation3 + $0x66]] }
 0x323   : > { %v6333_v43 = vpop.permute.xlu0 %2221  ;;  %v6345_v22 = vpop.permute.xlu1 %2209  ;;  %v2102_v30 = vadd.f32 %v6260_v50, %v2074_v34  ;;  %v2721_v50 = vmul.f32 %v2720_v19, %v6370_v4  ;;  %v2776_v11 = vstv %s6427_s21  ;;  %s6610_s21 = sld [smem:[#allocation5 + $0x67]] }
 0x324   : > { %v2185_v32 = vadd.f32 %v6296_v8, %v2157_v55  ;;  %v2156_v8 = vmul.f32 %v2154_v45, %v5965_v12  ;;  %v2764_v55 = vmul.f32 %v2762_v13, %v6404_v3  ;;  %v6522_v13 = vld [vmem:[#allocation2 + $0x30] sm:$0xff] }
 0x325   : > { %2655 = vrot.lane.b32.xlu0 %v2651_v48, %s4679_s5  ;;  %2643 = vrot.lane.b32.xlu1 %v2638_v39, %s4679_s5  ;;  %v2130_v16 = vadd.f32 %v6282_v49, %v2102_v30  ;;  %v2199_v39 = vadd.f32 %v6307_v23, %v2171_v37 }
 0x327   : > { %v6350_v35 = vpop.permute.xlu0 %2235  ;;  %v6364_v38 = vpop.permute.xlu1 %2223  ;;  %v2227_v49 = vadd.f32 %v6333_v43, %v2199_v39  ;;  %v2152_v63 = vadd.f32 %v2150_v5, %v2130_v16 }
 0x329   : > { %2669 = vrot.lane.b32.xlu0 %v2665_v58, %s4680_s8  ;;  %2657 = vrot.lane.b32.xlu1 %v2652_v60, %s4679_s5  ;;  %v2116_v58 = vadd.f32 %v6271_v41, %v2088_v61  ;;  %v2213_v41 = vadd.f32 %v6318_v31, %v2185_v32  ;;  %v2748_v60 = vstv %s6394_s14  ;;  %v2172_v43 = vadd.f32 %v6304_v2, %v2152_v63  ;;  %s6559_s14 = sld [smem:[#allocation5 + $0x65]] }
 0x32a   : > { %v2722_v31 = vmul.f32 %v2720_v19, %v6404_v3  ;;  %v2749_v20 = vmul.f32 %v2748_v60, %v6370_v4  ;;  %v2331_v2 = vmul.f32 %v2330_v29, %v6075_v33  ;;  %v2750_v17 = vmul.f32 %v2748_v60, %v6404_v3 }
 0x32b   : > { %v2250_v21 = vpop.permute.xlu0 %2249  ;;  %v6384_v24 = vpop.permute.xlu1 %2237  ;;  %v2144_v42 = vadd.f32 %v6293_v27, %v2116_v58  ;;  %v2241_v27 = vadd.f32 %v6350_v35, %v2213_v41  ;;  %v2200_v56 = vadd.f32 %v6328_v26, %v2172_v43  ;;  %v2336_v26 = vstv %s6417_s20  ;;  %s6598_s20 = sld [smem:[#allocation3 + $0x67]] }
 0x32c   : > { %v2255_v52 = vadd.f32 %v2250_v21, %v2227_v49  ;;  %v2777_v61 = vmul.f32 %v2776_v11, %v6370_v4  ;;  %v2338_v39 = vmul.f32 %v2336_v26, %v6096_v53  ;;  %v2804_v32 = vstv %s6454_s24  ;;  %s6630_s24 = sld [smem:[#allocation5 + $0x68]] }
 0x32d   : > { %2683 = vrot.lane.b32.xlu0 %v2679_v40, %s4680_s8  ;;  %2671 = vrot.lane.b32.xlu1 %v2666_v46, %s4680_s8  ;;  %v2158_v21 = vadd.f32 %v2156_v8, %v2144_v42  ;;  %v2228_v18 = vadd.f32 %v6364_v38, %v2200_v56  ;;  %v2805_v63 = vmul.f32 %v2804_v32, %v6370_v4  ;;  %v2818_v42 = vstv %s6467_s26  ;;  %s6639_s26 = sld [smem:[#allocation3 + $0x6a]] }
 0x32e   : > { %v2832_v60 = vstv %s6479_s27  ;;  %v2806_v43 = vmul.f32 %v2804_v32, %v6404_v3  ;;  %s6648_s27 = sld [smem:[#allocation5 + $0x6a]] }
 0x32f   : > { %v2264_v36 = vpop.permute.xlu0 %2263  ;;  %v2252_v48 = vpop.permute.xlu1 %2251  ;;  %v2186_v35 = vadd.f32 %v6315_v62, %v2158_v21  ;;  %v2337_v62 = vmul.f32 %v2336_v26, %v6075_v33 }
 0x330   : > { %v2269_v12 = vadd.f32 %v2264_v36, %v2241_v27  ;;  %v2256_v36 = vadd.f32 %v2252_v48, %v2228_v18  ;;  %v2332_v48 = vmul.f32 %v2330_v29, %v6096_v53  ;;  %v2833_v27 = vmul.f32 %v2832_v60, %v6370_v4 }
 0x331   : > { %2711 = vrot.lane.b32.xlu0 %v2707_v7, %s4675_s19  ;;  %2685 = vrot.lane.b32.xlu1 %v2680_v54, %s4680_s8  ;;  %v2214_v34 = vadd.f32 %v6345_v22, %v2186_v35  ;;  %v2888_v35 = vstv %s6508_s6  ;;  %s6669_s6 = sld [smem:[#allocation3 + $0x5b]] }
 0x333   : > { %v2278_v14 = vpop.permute.xlu0 %2277  ;;  %v2266_v23 = vpop.permute.xlu1 %2265  ;;  %v2242_v19 = vadd.f32 %v6384_v24, %v2214_v34  ;;  %v2790_v24 = vstv %s6440_s23  ;;  %s6621_s23 = sld [smem:[#allocation3 + $0x68]] }
 0x334   : > { %v2283_v6 = vadd.f32 %v2278_v14, %v2255_v52  ;;  %v2791_v58 = vmul.f32 %v2790_v24, %v6370_v4  ;;  %v2819_v52 = vmul.f32 %v2818_v42, %v6370_v4 }
 0x335   : > { %2725 = vrot.lane.b32.xlu0 %v2721_v50, %s4675_s19  ;;  %2713 = vrot.lane.b32.xlu1 %v2708_v59, %s4675_s19  ;;  %v2270_v37 = vadd.f32 %v2266_v23, %v2242_v19  ;;  %v2778_v59 = vmul.f32 %v2776_v11, %v6404_v3  ;;  %v2916_v19 = vstv %s6526_s9  ;;  %s6682_s9 = sld [smem:[#allocation5 + $0x5b]] }
 0x337   : > { %v2292_v44 = vpop.permute.xlu0 %2291  ;;  %v2280_v40 = vpop.permute.xlu1 %2279 }
 0x338   : > { %v2297_v1 = vadd.f32 %v2292_v44, %v2269_v12  ;;  %v2284_v47 = vadd.f32 %v2280_v40, %v2256_v36  ;;  %v2834_v12 = vmul.f32 %v2832_v60, %v6404_v3 }
 0x339   : > { %2739 = vrot.lane.b32.xlu0 %v2735_v0, %s4676_s22  ;;  %2727 = vrot.lane.b32.xlu1 %v2722_v31, %s4675_s19  ;;  %v2792_v0 = vmul.f32 %v2790_v24, %v6404_v3  ;;  %v2820_v31 = vmul.f32 %v2818_v42, %v6404_v3  ;;  %v2518_v42 = vstv %s6551_s13  ;;  %s6729_s13 = sld [smem:[#allocation3 + $0x6e]] }
 0x33b   : > { %v2306_v57 = vpop.permute.xlu0 %2305  ;;  %v2294_v46 = vpop.permute.xlu1 %2293 }
 0x33c   : > { %v2311_v28 = vadd.f32 %v2306_v57, %v2283_v6  ;;  %v2298_v16 = vadd.f32 %v2294_v46, %v2270_v37  ;;  %v2846_v6 = vstv %s6490_s29  ;;  %v2860_v57 = vstv %s6499_s30  ;;  %s6657_s29 = sld [smem:[#allocation3 + $0x6b]] }
 0x33d   : > { %2753 = vrot.lane.b32.xlu0 %v2749_v20, %s4676_s22  ;;  %2741 = vrot.lane.b32.xlu1 %v2736_v15, %s4676_s22  ;;  %v2847_v56 = vmul.f32 %v2846_v6, %v6370_v4  ;;  %v2848_v26 = vmul.f32 %v2846_v6, %v6404_v3  ;;  %v2889_v46 = vmul.f32 %v2888_v35, %v6522_v13  ;;  %v2902_v15 = vstv %s6517_s7  ;;  %s6666_s30 = sld [smem:[#allocation5 + $0x6b]] }
 0x33e   : > { %v6446_v45 = vadd.f32 %v2331_v2, %v2311_v28  ;;  %v2861_v28 = vmul.f32 %v2860_v57, %v6370_v4  ;;  %v2958_v6 = vstv %s6559_s14  ;;  %s6679_s7 = sld [smem:[#allocation3 + $0x6c]] }
 0x33f   : > { %v2320_v7 = vpop.permute.xlu0 %2319  ;;  %v2308_v30 = vpop.permute.xlu1 %2307  ;;  %s6741_s14 = sld [smem:[#allocation5 + $0x6e]] }
 0x340   : > { %v2325_v38 = vadd.f32 %v2320_v7, %v2297_v1  ;;  %v2312_v54 = vadd.f32 %v2308_v30, %v2284_v47  ;;  %v2862_v7 = vmul.f32 %v2860_v57, %v6404_v3 }
 0x341   : > { %2767 = vrot.lane.b32.xlu0 %v2763_v9, %s4677_s25  ;;  %2755 = vrot.lane.b32.xlu1 %v2750_v17, %s4676_s22  ;;  %v6543_v9 = vld [vmem:[#allocation2 + $0x38] sm:$0xff] }
 0x342   : > { %v6458_v22 = vadd.f32 %v2337_v62, %v2325_v38  ;;  %v6469_v14 = vadd.f32 %v2332_v48, %v2312_v54  ;;  %v2903_v38 = vmul.f32 %v2902_v15, %v6522_v13  ;;  %v2890_v17 = vmul.f32 %v2888_v35, %v6543_v9 }
 0x343   : > { %v6462_v33 = vpop.permute.xlu0 %2347  ;;  %v2322_v50 = vpop.permute.xlu1 %2321  ;;  %v2917_v48 = vmul.f32 %v2916_v19, %v6522_v13  ;;  %v2918_v60 = vmul.f32 %v2916_v19, %v6543_v9  ;;  %v2972_v35 = vstv %s6571_s17  ;;  %v2960_v19 = vmul.f32 %v2958_v6, %v6543_v9  ;;  %s6752_s17 = sld [smem:[#allocation3 + $0x6f]] }
 0x344   : > { %v2326_v51 = vadd.f32 %v2322_v50, %v2298_v16  ;;  %v2353_v34 = vadd.f32 %v6462_v33, %v6446_v45 }
 0x345   : > { %2781 = vrot.lane.b32.xlu0 %v2777_v61, %s4677_s25  ;;  %2769 = vrot.lane.b32.xlu1 %v2764_v55, %s4677_s25  ;;  %v2930_v61 = vstv %s6535_s10  ;;  %s6690_s10 = sld [smem:[#allocation5 + $0x6c]] }
 0x346   : > { %v6481_v49 = vadd.f32 %v2338_v39, %v2326_v51  ;;  %v2904_v39 = vmul.f32 %v2902_v15, %v6543_v9  ;;  %v2932_v57 = vmul.f32 %v2930_v61, %v6543_v9  ;;  %v2520_v15 = vmul.f32 %v2518_v42, %v6239_v25 }
 0x347   : > { %v6474_v5 = vpop.permute.xlu0 %2361  ;;  %v6484_v23 = vpop.permute.xlu1 %2349 }
 0x348   : > { %v2367_v45 = vadd.f32 %v6474_v5, %v6458_v22  ;;  %v2354_v24 = vadd.f32 %v6484_v23, %v6469_v14  ;;  %v2512_v22 = vstv %s6538_s11  ;;  %v2944_v23 = vstv %s6548_s12  ;;  %s6702_s11 = sld [smem:[#allocation3 + $0x6d]] }
 0x349   : > { %2795 = vrot.lane.b32.xlu0 %v2791_v58, %s4678_s28  ;;  %2783 = vrot.lane.b32.xlu1 %v2778_v59, %s4677_s25  ;;  %v2931_v58 = vmul.f32 %v2930_v61, %v6522_v13  ;;  %v2513_v59 = vmul.f32 %v2512_v22, %v6218_v10  ;;  %s6716_s12 = sld [smem:[#allocation5 + $0x6d]] }
 0x34b   : > { %v2376_v53 = vpop.permute.xlu0 %2375  ;;  %v6493_v44 = vpop.permute.xlu1 %2363 }
 0x34c   : > { %v2381_v11 = vadd.f32 %v2376_v53, %v2353_v34  ;;  %v2368_v53 = vadd.f32 %v6493_v44, %v6481_v49  ;;  %v2519_v49 = vmul.f32 %v2518_v42, %v6218_v10 }
 0x34d   : > { %2809 = vrot.lane.b32.xlu0 %v2805_v63, %s4678_s28  ;;  %2797 = vrot.lane.b32.xlu1 %v2792_v0, %s4678_s28 }
 0x34f   : > { %v2390_v41 = vpop.permute.xlu0 %2389  ;;  %v6502_v8 = vpop.permute.xlu1 %2377 }
 0x350   : > { %v2395_v54 = vadd.f32 %v2390_v41, %v2367_v45  ;;  %v2382_v51 = vadd.f32 %v6502_v8, %v2354_v24 }
 0x351   : > { %2823 = vrot.lane.b32.xlu0 %v2819_v52, %s4679_s5  ;;  %2811 = vrot.lane.b32.xlu1 %v2806_v43, %s4678_s28 }
 0x353   : > { %v2404_v29 = vpop.permute.xlu0 %2403  ;;  %v6511_v40 = vpop.permute.xlu1 %2391 }
 0x354   : > { %v2409_v47 = vadd.f32 %v2404_v29, %v2381_v11  ;;  %v2396_v8 = vadd.f32 %v6511_v40, %v2368_v53  ;;  %v3070_v53 = vstv %s6639_s26  ;;  %s6800_s26 = sld [smem:[#allocation3 + $0x62]] }
 0x355   : > { %2837 = vrot.lane.b32.xlu0 %v2833_v27, %s4679_s5  ;;  %2825 = vrot.lane.b32.xlu1 %v2820_v31, %s4679_s5  ;;  %v2945_v27 = vmul.f32 %v2944_v23, %v6522_v13 }
 0x357   : > { %v2418_v21 = vpop.permute.xlu0 %2417  ;;  %v2406_v20 = vpop.permute.xlu1 %2405 }
 0x358   : > { %v2423_v16 = vadd.f32 %v2418_v21, %v2395_v54  ;;  %v2410_v63 = vadd.f32 %v2406_v20, %v2382_v51  ;;  %v3014_v54 = vstv %s6610_s21  ;;  %s6779_s21 = sld [smem:[#allocation5 + $0x71]] }
 0x359   : > { %2851 = vrot.lane.b32.xlu0 %v2847_v56, %s4680_s8  ;;  %2839 = vrot.lane.b32.xlu1 %v2834_v12, %s4679_s5  ;;  %v2514_v12 = vmul.f32 %v2512_v22, %v6239_v25  ;;  %v3015_v22 = vmul.f32 %v3014_v54, %v6522_v13 }
 0x35b   : > { %v2432_v2 = vpop.permute.xlu0 %2431  ;;  %v6529_v18 = vpop.permute.xlu1 %2419 }
 0x35c   : > { %v2437_v33 = vadd.f32 %v2432_v2, %v2409_v47  ;;  %v2424_v31 = vadd.f32 %v6529_v18, %v2396_v8  ;;  %v3000_v47 = vstv %s6598_s20  ;;  %s6770_s20 = sld [smem:[#allocation3 + $0x71]] }
 0x35d   : > { %2865 = vrot.lane.b32.xlu0 %v2861_v28, %s4680_s8  ;;  %2853 = vrot.lane.b32.xlu1 %v2848_v26, %s4680_s8  ;;  %v2959_v28 = vmul.f32 %v2958_v6, %v6522_v13 }
 0x35f   : > { %v2446_v1 = vpop.permute.xlu0 %2445  ;;  %v2434_v36 = vpop.permute.xlu1 %2433 }
 0x360   : > { %v2451_v32 = vadd.f32 %v2446_v1, %v2423_v16  ;;  %v2438_v43 = vadd.f32 %v2434_v36, %v2410_v63  ;;  %v3028_v16 = vstv %s6621_s23  ;;  %s6788_s23 = sld [smem:[#allocation3 + $0x72]] }
 0x361   : > { %2893 = vrot.lane.b32.xlu0 %v2889_v46, %s4675_s19  ;;  %2867 = vrot.lane.b32.xlu1 %v2862_v7, %s4680_s8  ;;  %v2946_v46 = vmul.f32 %v2944_v23, %v6543_v9  ;;  %v2973_v7 = vmul.f32 %v2972_v35, %v6522_v13  ;;  %v3029_v51 = vmul.f32 %v3028_v16, %v6522_v13  ;;  %v6653_v23 = vld [vmem:[#allocation2 + $0x31] sm:$0xff] }
 0x362   : > { %v3030_v42 = vmul.f32 %v3028_v16, %v6543_v9  ;;  %v3140_v16 = vstv %s6690_s10  ;;  %s6872_s10 = sld [smem:[#allocation5 + $0x75]] }
 0x363   : > { %v2460_v62 = vpop.permute.xlu0 %2459  ;;  %v2448_v30 = vpop.permute.xlu1 %2447 }
 0x364   : > { %v2465_v50 = vadd.f32 %v2460_v62, %v2437_v33  ;;  %v2452_v20 = vadd.f32 %v2448_v30, %v2424_v31  ;;  %v2986_v62 = vstv %s6585_s18  ;;  %v3098_v31 = vstv %s6657_s29  ;;  %s6761_s18 = sld [smem:[#allocation5 + $0x6f]] }
 0x365   : > { %2907 = vrot.lane.b32.xlu0 %v2903_v38, %s4675_s19  ;;  %2895 = vrot.lane.b32.xlu1 %v2890_v17, %s4675_s19  ;;  %v2987_v45 = vmul.f32 %v2986_v62, %v6522_v13  ;;  %v2974_v17 = vmul.f32 %v2972_v35, %v6543_v9  ;;  %v2988_v61 = vmul.f32 %v2986_v62, %v6543_v9  ;;  %s6813_s29 = sld [smem:[#allocation5 + $0x62]] }
 0x367   : > { %v2474_v37 = vpop.permute.xlu0 %2473  ;;  %v2462_v55 = vpop.permute.xlu1 %2461 }
 0x368   : > { %v2479_v0 = vadd.f32 %v2474_v37, %v2451_v32  ;;  %v2466_v21 = vadd.f32 %v2462_v55, %v2438_v43  ;;  %v3002_v55 = vmul.f32 %v3000_v47, %v6543_v9  ;;  %v3016_v32 = vmul.f32 %v3014_v54, %v6543_v9 }
 0x369   : > { %2921 = vrot.lane.b32.xlu0 %v2917_v48, %s4676_s22  ;;  %2909 = vrot.lane.b32.xlu1 %v2904_v39, %s4675_s19  ;;  %v3001_v48 = vmul.f32 %v3000_v47, %v6522_v13  ;;  %v2700_v47 = vstv %s6682_s9  ;;  %s6860_s9 = sld [smem:[#allocation3 + $0x75]] }
 0x36b   : > { %v2488_v5 = vpop.permute.xlu0 %2487  ;;  %v2476_v41 = vpop.permute.xlu1 %2475 }
 0x36c   : > { %v2493_v14 = vadd.f32 %v2488_v5, %v2465_v50  ;;  %v2480_v18 = vadd.f32 %v2476_v41, %v2452_v20  ;;  %v3042_v5 = vstv %s6630_s24  ;;  %v3071_v41 = vmul.f32 %v3070_v53, %v6653_v23  ;;  %s6797_s24 = sld [smem:[#allocation5 + $0x72]] }
 0x36d   : > { %2935 = vrot.lane.b32.xlu0 %v2931_v58, %s4676_s22  ;;  %2923 = vrot.lane.b32.xlu1 %v2918_v60, %s4676_s22  ;;  %v3084_v60 = vstv %s6648_s27  ;;  %s6810_s27 = sld [smem:[#allocation3 + $0x73]] }
 0x36e   : > { %v6577_v52 = vadd.f32 %v2513_v59, %v2493_v14  ;;  %v3043_v14 = vmul.f32 %v3042_v5, %v6522_v13 }
 0x36f   : > { %v2502_v29 = vpop.permute.xlu0 %2501  ;;  %v2490_v56 = vpop.permute.xlu1 %2489 }
 0x370   : > { %v2507_v44 = vadd.f32 %v2502_v29, %v2479_v0  ;;  %v2494_v2 = vadd.f32 %v2490_v56, %v2466_v21  ;;  %v3044_v29 = vmul.f32 %v3042_v5, %v6543_v9 }
 0x371   : > { %2949 = vrot.lane.b32.xlu0 %v2945_v27, %s4677_s25  ;;  %2937 = vrot.lane.b32.xlu1 %v2932_v57, %s4676_s22  ;;  %v6674_v27 = vld [vmem:[#allocation2 + $0x39] sm:$0xff] }
 0x372   : > { %v6589_v40 = vadd.f32 %v2519_v49, %v2507_v44  ;;  %v6600_v26 = vadd.f32 %v2514_v12, %v2494_v2  ;;  %v3085_v44 = vmul.f32 %v3084_v60, %v6653_v23  ;;  %v3072_v57 = vmul.f32 %v3070_v53, %v6674_v27 }
 0x373   : > { %v6593_v10 = vpop.permute.xlu0 %2529  ;;  %v2504_v1 = vpop.permute.xlu1 %2503  ;;  %v3099_v12 = vmul.f32 %v3098_v31, %v6653_v23  ;;  %v3100_v54 = vmul.f32 %v3098_v31, %v6674_v27  ;;  %v3154_v53 = vstv %s6702_s11  ;;  %v3142_v31 = vmul.f32 %v3140_v16, %v6674_v27  ;;  %s6883_s11 = sld [smem:[#allocation3 + $0x76]] }
 0x374   : > { %v2508_v34 = vadd.f32 %v2504_v1, %v2480_v18  ;;  %v2535_v8 = vadd.f32 %v6593_v10, %v6577_v52 }
 0x375   : > { %2963 = vrot.lane.b32.xlu0 %v2959_v28, %s4677_s25  ;;  %2951 = vrot.lane.b32.xlu1 %v2946_v46, %s4677_s25  ;;  %v3112_v28 = vstv %s6666_s30  ;;  %s6821_s30 = sld [smem:[#allocation5 + $0x73]] }
 0x376   : > { %v6612_v38 = vadd.f32 %v2520_v15, %v2508_v34  ;;  %v3086_v15 = vmul.f32 %v3084_v60, %v6674_v27  ;;  %v3114_v5 = vmul.f32 %v3112_v28, %v6674_v27  ;;  %v2702_v60 = vmul.f32 %v2700_v47, %v6404_v3 }
 0x377   : > { %v6605_v36 = vpop.permute.xlu0 %2543  ;;  %v6615_v11 = vpop.permute.xlu1 %2531 }
 0x378   : > { %v2549_v52 = vadd.f32 %v6605_v36, %v6589_v40  ;;  %v2536_v35 = vadd.f32 %v6615_v11, %v6600_v26  ;;  %v2694_v40 = vstv %s6669_s6  ;;  %v3126_v11 = vstv %s6679_s7  ;;  %s6833_s6 = sld [smem:[#allocation3 + $0x74]] }
 0x379   : > { %2977 = vrot.lane.b32.xlu0 %v2973_v7, %s4678_s28  ;;  %2965 = vrot.lane.b32.xlu1 %v2960_v19, %s4677_s25  ;;  %v3113_v7 = vmul.f32 %v3112_v28, %v6653_v23  ;;  %v2695_v19 = vmul.f32 %v2694_v40, %v6370_v4  ;;  %s6847_s7 = sld [smem:[#allocation5 + $0x74]] }
 0x37b   : > { %v2558_v25 = vpop.permute.xlu0 %2557  ;;  %v6624_v30 = vpop.permute.xlu1 %2545 }
 0x37c   : > { %v2563_v6 = vadd.f32 %v2558_v25, %v2535_v8  ;;  %v2550_v25 = vadd.f32 %v6624_v30, %v6612_v38  ;;  %v2701_v38 = vmul.f32 %v2700_v47, %v6370_v4 }
 0x37d   : > { %2991 = vrot.lane.b32.xlu0 %v2987_v45, %s4678_s28  ;;  %2979 = vrot.lane.b32.xlu1 %v2974_v17, %s4678_s28 }
 0x37f   : > { %v2572_v37 = vpop.permute.xlu0 %2571  ;;  %v6633_v33 = vpop.permute.xlu1 %2559 }
 0x380   : > { %v2577_v2 = vadd.f32 %v2572_v37, %v2549_v52  ;;  %v2564_v34 = vadd.f32 %v6633_v33, %v2536_v35 }
 0x381   : > { %3005 = vrot.lane.b32.xlu0 %v3001_v48, %s4679_s5  ;;  %2993 = vrot.lane.b32.xlu1 %v2988_v61, %s4678_s28 }
 0x383   : > { %v2586_v24 = vpop.permute.xlu0 %2585  ;;  %v6642_v50 = vpop.permute.xlu1 %2573 }
 0x384   : > { %v2591_v21 = vadd.f32 %v2586_v24, %v2563_v6  ;;  %v2578_v33 = vadd.f32 %v6642_v50, %v2550_v25  ;;  %v3252_v25 = vstv %s6770_s20  ;;  %s6931_s20 = sld [smem:[#allocation3 + $0x69]] }
 0x385   : > { %3019 = vrot.lane.b32.xlu0 %v3015_v22, %s4679_s5  ;;  %3007 = vrot.lane.b32.xlu1 %v3002_v55, %s4679_s5  ;;  %v3127_v22 = vmul.f32 %v3126_v11, %v6653_v23 }
 0x387   : > { %v2600_v39 = vpop.permute.xlu0 %2599  ;;  %v2588_v58 = vpop.permute.xlu1 %2587 }
 0x388   : > { %v2605_v18 = vadd.f32 %v2600_v39, %v2577_v2  ;;  %v2592_v45 = vadd.f32 %v2588_v58, %v2564_v34  ;;  %v3196_v2 = vstv %s6741_s14  ;;  %s6910_s14 = sld [smem:[#allocation5 + $0x78]] }
 0x389   : > { %3033 = vrot.lane.b32.xlu0 %v3029_v51, %s4680_s8  ;;  %3021 = vrot.lane.b32.xlu1 %v3016_v32, %s4679_s5  ;;  %v2696_v32 = vmul.f32 %v2694_v40, %v6404_v3  ;;  %v3197_v40 = vmul.f32 %v3196_v2, %v6653_v23 }
 0x38b   : > { %v2614_v59 = vpop.permute.xlu0 %2613  ;;  %v6660_v63 = vpop.permute.xlu1 %2601 }
 0x38c   : > { %v2619_v10 = vadd.f32 %v2614_v59, %v2591_v21  ;;  %v2606_v55 = vadd.f32 %v6660_v63, %v2578_v33  ;;  %v3182_v21 = vstv %s6729_s13  ;;  %s6901_s13 = sld [smem:[#allocation3 + $0x78]] }
 0x38d   : > { %3047 = vrot.lane.b32.xlu0 %v3043_v14, %s4680_s8  ;;  %3035 = vrot.lane.b32.xlu1 %v3030_v42, %s4680_s8  ;;  %v3141_v14 = vmul.f32 %v3140_v16, %v6653_v23 }
 0x38f   : > { %v2628_v0 = vpop.permute.xlu0 %2627  ;;  %v2616_v43 = vpop.permute.xlu1 %2615 }
 0x390   : > { %v2633_v62 = vadd.f32 %v2628_v0, %v2605_v18  ;;  %v2620_v61 = vadd.f32 %v2616_v43, %v2592_v45  ;;  %v3210_v18 = vstv %s6752_s17  ;;  %s6919_s17 = sld [smem:[#allocation3 + $0x79]] }
 0x391   : > { %3075 = vrot.lane.b32.xlu0 %v3071_v41, %s4675_s19  ;;  %3049 = vrot.lane.b32.xlu1 %v3044_v29, %s4680_s8  ;;  %v3128_v41 = vmul.f32 %v3126_v11, %v6674_v27  ;;  %v3155_v29 = vmul.f32 %v3154_v53, %v6653_v23  ;;  %v3211_v34 = vmul.f32 %v3210_v18, %v6653_v23  ;;  %v6784_v11 = vld [vmem:[#allocation2 + $0x32] sm:$0xff] }
 0x392   : > { %v3212_v47 = vmul.f32 %v3210_v18, %v6674_v27  ;;  %v3322_v18 = vstv %s6821_s30  ;;  %s7003_s30 = sld [smem:[#allocation5 + $0x7c]] }
 0x393   : > { %v2642_v49 = vpop.permute.xlu0 %2641  ;;  %v2630_v56 = vpop.permute.xlu1 %2629 }
 0x394   : > { %v2647_v1 = vadd.f32 %v2642_v49, %v2619_v10  ;;  %v2634_v58 = vadd.f32 %v2630_v56, %v2606_v55  ;;  %v3168_v49 = vstv %s6716_s12  ;;  %v3280_v55 = vstv %s6788_s23  ;;  %s6892_s12 = sld [smem:[#allocation5 + $0x76]] }
 0x395   : > { %3089 = vrot.lane.b32.xlu0 %v3085_v44, %s4675_s19  ;;  %3077 = vrot.lane.b32.xlu1 %v3072_v57, %s4675_s19  ;;  %v3169_v52 = vmul.f32 %v3168_v49, %v6653_v23  ;;  %v3156_v57 = vmul.f32 %v3154_v53, %v6674_v27  ;;  %v3170_v28 = vmul.f32 %v3168_v49, %v6674_v27  ;;  %s6944_s23 = sld [smem:[#allocation5 + $0x69]] }
 0x397   : > { %v2656_v20 = vpop.permute.xlu0 %2655  ;;  %v2644_v46 = vpop.permute.xlu1 %2643 }
 0x398   : > { %v2661_v17 = vadd.f32 %v2656_v20, %v2633_v62  ;;  %v2648_v39 = vadd.f32 %v2644_v46, %v2620_v61  ;;  %v3184_v46 = vmul.f32 %v3182_v21, %v6674_v27  ;;  %v3198_v62 = vmul.f32 %v3196_v2, %v6674_v27 }
 0x399   : > { %3103 = vrot.lane.b32.xlu0 %v3099_v12, %s4676_s22  ;;  %3091 = vrot.lane.b32.xlu1 %v3086_v15, %s4675_s19  ;;  %v3183_v12 = vmul.f32 %v3182_v21, %v6653_v23  ;;  %v2882_v21 = vstv %s6813_s29  ;;  %s6991_s29 = sld [smem:[#allocation3 + $0x7c]] }
 0x39b   : > { %v2670_v36 = vpop.permute.xlu0 %2669  ;;  %v2658_v37 = vpop.permute.xlu1 %2657 }
 0x39c   : > { %v2675_v26 = vadd.f32 %v2670_v36, %v2647_v1  ;;  %v2662_v63 = vadd.f32 %v2658_v37, %v2634_v58  ;;  %v3224_v36 = vstv %s6761_s18  ;;  %v3253_v37 = vmul.f32 %v3252_v25, %v6784_v11  ;;  %s6928_s18 = sld [smem:[#allocation5 + $0x79]] }
 0x39d   : > { %3117 = vrot.lane.b32.xlu0 %v3113_v7, %s4676_s22  ;;  %3105 = vrot.lane.b32.xlu1 %v3100_v54, %s4676_s22  ;;  %v3266_v54 = vstv %s6779_s21  ;;  %s6941_s21 = sld [smem:[#allocation3 + $0x7a]] }
 0x39e   : > { %v6708_v48 = vadd.f32 %v2695_v19, %v2675_v26  ;;  %v3225_v26 = vmul.f32 %v3224_v36, %v6653_v23 }
 0x39f   : > { %v2684_v24 = vpop.permute.xlu0 %2683  ;;  %v2672_v51 = vpop.permute.xlu1 %2671 }
 0x3a0   : > { %v2689_v30 = vadd.f32 %v2684_v24, %v2661_v17  ;;  %v2676_v59 = vadd.f32 %v2672_v51, %v2648_v39  ;;  %v3226_v24 = vmul.f32 %v3224_v36, %v6674_v27 }
 0x3a1   : > { %3131 = vrot.lane.b32.xlu0 %v3127_v22, %s4677_s25  ;;  %3119 = vrot.lane.b32.xlu1 %v3114_v5, %s4676_s22  ;;  %v6805_v22 = vld [vmem:[#allocation2 + $0x3a] sm:$0xff] }
 0x3a2   : > { %v6720_v50 = vadd.f32 %v2701_v38, %v2689_v30  ;;  %v6731_v42 = vadd.f32 %v2696_v32, %v2676_v59  ;;  %v3267_v30 = vmul.f32 %v3266_v54, %v6784_v11  ;;  %v3254_v5 = vmul.f32 %v3252_v25, %v6805_v22 }
 0x3a3   : > { %v6724_v4 = vpop.permute.xlu0 %2711  ;;  %v2686_v0 = vpop.permute.xlu1 %2685  ;;  %v3281_v32 = vmul.f32 %v3280_v55, %v6784_v11  ;;  %v3282_v2 = vmul.f32 %v3280_v55, %v6805_v22  ;;  %v3336_v25 = vstv %s6833_s6  ;;  %v3324_v55 = vmul.f32 %v3322_v18, %v6805_v22  ;;  %s7014_s6 = sld [smem:[#allocation3 + $0x7d]] }
 0x3a4   : > { %v2690_v8 = vadd.f32 %v2686_v0, %v2662_v63  ;;  %v2717_v33 = vadd.f32 %v6724_v4, %v6708_v48 }
 0x3a5   : > { %3145 = vrot.lane.b32.xlu0 %v3141_v14, %s4677_s25  ;;  %3133 = vrot.lane.b32.xlu1 %v3128_v41, %s4677_s25  ;;  %v3294_v14 = vstv %s6797_s24  ;;  %s6952_s24 = sld [smem:[#allocation5 + $0x7a]] }
 0x3a6   : > { %v6743_v44 = vadd.f32 %v2702_v60, %v2690_v8  ;;  %v3268_v60 = vmul.f32 %v3266_v54, %v6805_v22  ;;  %v3296_v36 = vmul.f32 %v3294_v14, %v6805_v22 }
 0x3a7   : > { %v6736_v43 = vpop.permute.xlu0 %2725  ;;  %v6746_v6 = vpop.permute.xlu1 %2713 }
 0x3a8   : > { %v2731_v48 = vadd.f32 %v6736_v43, %v6720_v50  ;;  %v2718_v53 = vadd.f32 %v6746_v6, %v6731_v42  ;;  %v2876_v50 = vstv %s6800_s26  ;;  %v3308_v6 = vstv %s6810_s27  ;;  %s6964_s26 = sld [smem:[#allocation3 + $0x7b]] }
 0x3a9   : > { %3159 = vrot.lane.b32.xlu0 %v3155_v29, %s4678_s28  ;;  %3147 = vrot.lane.b32.xlu1 %v3142_v31, %s4677_s25  ;;  %v3295_v29 = vmul.f32 %v3294_v14, %v6784_v11  ;;  %v2877_v31 = vmul.f32 %v2876_v50, %v6522_v13  ;;  %s6978_s27 = sld [smem:[#allocation5 + $0x7b]] }
 0x3ab   : > { %v2740_v3 = vpop.permute.xlu0 %2739  ;;  %v6755_v56 = vpop.permute.xlu1 %2727 }
 0x3ac   : > { %v2745_v16 = vadd.f32 %v2740_v3, %v2717_v33  ;;  %v2732_v3 = vadd.f32 %v6755_v56, %v6743_v44  ;;  %v2883_v44 = vmul.f32 %v2882_v21, %v6522_v13  ;;  %v2884_v33 = vmul.f32 %v2882_v21, %v6543_v9 }
 0x3ad   : > { %3173 = vrot.lane.b32.xlu0 %v3169_v52, %s4678_s28  ;;  %3161 = vrot.lane.b32.xlu1 %v3156_v57, %s4678_s28 }
 0x3af   : > { %v2754_v20 = vpop.permute.xlu0 %2753  ;;  %v6764_v10 = vpop.permute.xlu1 %2741 }
 0x3b0   : > { %v2759_v59 = vadd.f32 %v2754_v20, %v2731_v48  ;;  %v2746_v8 = vadd.f32 %v6764_v10, %v2718_v53 }
 0x3b1   : > { %3187 = vrot.lane.b32.xlu0 %v3183_v12, %s4679_s5  ;;  %3175 = vrot.lane.b32.xlu1 %v3170_v28, %s4678_s28 }
 0x3b3   : > { %v2768_v35 = vpop.permute.xlu0 %2767  ;;  %v6773_v1 = vpop.permute.xlu1 %2755 }
 0x3b4   : > { %v2773_v39 = vadd.f32 %v2768_v35, %v2745_v16  ;;  %v2760_v10 = vadd.f32 %v6773_v1, %v2732_v3  ;;  %v3434_v3 = vstv %s6901_s13  ;;  %s7062_s13 = sld [smem:[#allocation3 + $0x70]] }
 0x3b5   : > { %3201 = vrot.lane.b32.xlu0 %v3197_v40, %s4679_s5  ;;  %3189 = vrot.lane.b32.xlu1 %v3184_v46, %s4679_s5  ;;  %v3309_v40 = vmul.f32 %v3308_v6, %v6784_v11 }
 0x3b7   : > { %v2782_v15 = vpop.permute.xlu0 %2781  ;;  %v2770_v7 = vpop.permute.xlu1 %2769 }
 0x3b8   : > { %v2787_v63 = vadd.f32 %v2782_v15, %v2759_v59  ;;  %v2774_v52 = vadd.f32 %v2770_v7, %v2746_v8  ;;  %v3378_v59 = vstv %s6872_s10  ;;  %s7041_s10 = sld [smem:[#allocation5 + $0x7f]] }
 0x3b9   : > { %3215 = vrot.lane.b32.xlu0 %v3211_v34, %s4680_s8  ;;  %3203 = vrot.lane.b32.xlu1 %v3198_v62, %s4679_s5 }
 0x3bb   : > { %v2796_v19 = vpop.permute.xlu0 %2795  ;;  %v6791_v45 = vpop.permute.xlu1 %2783 }
 0x3bc   : > { %v2801_v4 = vadd.f32 %v2796_v19, %v2773_v39  ;;  %v2788_v46 = vadd.f32 %v6791_v45, %v2760_v10  ;;  %v2878_v19 = vmul.f32 %v2876_v50, %v6543_v9  ;;  %v3364_v39 = vstv %s6860_s9  ;;  %s7032_s9 = sld [smem:[#allocation3 + $0x7f]] }
 0x3bd   : > { %3229 = vrot.lane.b32.xlu0 %v3225_v26, %s4680_s8  ;;  %3217 = vrot.lane.b32.xlu1 %v3212_v47, %s4680_s8  ;;  %v3323_v26 = vmul.f32 %v3322_v18, %v6784_v11  ;;  %v3379_v50 = vmul.f32 %v3378_v59, %v6784_v11 }
 0x3bf   : > { %v2810_v17 = vpop.permute.xlu0 %2809  ;;  %v2798_v61 = vpop.permute.xlu1 %2797 }
 0x3c0   : > { %v2815_v49 = vadd.f32 %v2810_v17, %v2787_v63  ;;  %v2802_v28 = vadd.f32 %v2798_v61, %v2774_v52  ;;  %v3392_v63 = vstv %s6883_s11  ;;  %s7050_s11 = sld [smem:[#allocation3 + $0x80]] }
 0x3c1   : > { %3257 = vrot.lane.b32.xlu0 %v3253_v37, %s4675_s19  ;;  %3231 = vrot.lane.b32.xlu1 %v3226_v24, %s4680_s8  ;;  %v3310_v37 = vmul.f32 %v3308_v6, %v6805_v22  ;;  %v3337_v24 = vmul.f32 %v3336_v25, %v6784_v11  ;;  %v3393_v8 = vmul.f32 %v3392_v63, %v6784_v11  ;;  %v6915_v6 = vld [vmem:[#allocation2 + $0x33] sm:$0xff] }
 0x3c2   : > { %v3394_v21 = vmul.f32 %v3392_v63, %v6805_v22  ;;  %v3504_v63 = vstv %s6952_s24  ;;  %s7134_s24 = sld [smem:[#allocation5 + $0x83]] }
 0x3c3   : > { %v2824_v38 = vpop.permute.xlu0 %2823  ;;  %v2812_v51 = vpop.permute.xlu1 %2811 }
 0x3c4   : > { %v2829_v0 = vadd.f32 %v2824_v38, %v2801_v4  ;;  %v2816_v7 = vadd.f32 %v2812_v51, %v2788_v46  ;;  %v3350_v38 = vstv %s6847_s7  ;;  %v3462_v46 = vstv %s6919_s17  ;;  %s7023_s7 = sld [smem:[#allocation5 + $0x7d]] }
 0x3c5   : > { %3271 = vrot.lane.b32.xlu0 %v3267_v30, %s4675_s19  ;;  %3259 = vrot.lane.b32.xlu1 %v3254_v5, %s4675_s19  ;;  %v3351_v9 = vmul.f32 %v3350_v38, %v6784_v11  ;;  %v3338_v5 = vmul.f32 %v3336_v25, %v6805_v22  ;;  %v3352_v14 = vmul.f32 %v3350_v38, %v6805_v22  ;;  %s7075_s17 = sld [smem:[#allocation5 + $0x70]] }
 0x3c7   : > { %v2838_v58 = vpop.permute.xlu0 %2837  ;;  %v2826_v41 = vpop.permute.xlu1 %2825 }
 0x3c8   : > { %v2843_v57 = vadd.f32 %v2838_v58, %v2815_v49  ;;  %v2830_v15 = vadd.f32 %v2826_v41, %v2802_v28  ;;  %v3366_v41 = vmul.f32 %v3364_v39, %v6805_v22  ;;  %v3380_v49 = vmul.f32 %v3378_v59, %v6805_v22 }
 0x3c9   : > { %3285 = vrot.lane.b32.xlu0 %v3281_v32, %s4676_s22  ;;  %3273 = vrot.lane.b32.xlu1 %v3268_v60, %s4675_s19  ;;  %v3365_v32 = vmul.f32 %v3364_v39, %v6784_v11  ;;  %v3064_v39 = vstv %s6944_s23  ;;  %s7122_s23 = sld [smem:[#allocation3 + $0x83]] }
 0x3cb   : > { %v2852_v43 = vpop.permute.xlu0 %2851  ;;  %v2840_v20 = vpop.permute.xlu1 %2839 }
 0x3cc   : > { %v2857_v42 = vadd.f32 %v2852_v43, %v2829_v0  ;;  %v2844_v45 = vadd.f32 %v2840_v20, %v2816_v7  ;;  %v3406_v43 = vstv %s6892_s12  ;;  %v3435_v20 = vmul.f32 %v3434_v3, %v6915_v6  ;;  %s7059_s12 = sld [smem:[#allocation5 + $0x80]] }
 0x3cd   : > { %3299 = vrot.lane.b32.xlu0 %v3295_v29, %s4676_s22  ;;  %3287 = vrot.lane.b32.xlu1 %v3282_v2, %s4676_s22  ;;  %v3448_v2 = vstv %s6910_s14  ;;  %s7072_s14 = sld [smem:[#allocation3 + $0x81]] }
 0x3ce   : > { %v6839_v12 = vadd.f32 %v2877_v31, %v2857_v42  ;;  %v3407_v42 = vmul.f32 %v3406_v43, %v6784_v11 }
 0x3cf   : > { %v2866_v35 = vpop.permute.xlu0 %2865  ;;  %v2854_v34 = vpop.permute.xlu1 %2853 }
 0x3d0   : > { %v2871_v56 = vadd.f32 %v2866_v35, %v2843_v57  ;;  %v2858_v62 = vadd.f32 %v2854_v34, %v2830_v15  ;;  %v3408_v35 = vmul.f32 %v3406_v43, %v6805_v22 }
 0x3d1   : > { %3313 = vrot.lane.b32.xlu0 %v3309_v40, %s4677_s25  ;;  %3301 = vrot.lane.b32.xlu1 %v3296_v36, %s4676_s22  ;;  %v6936_v40 = vld [vmem:[#allocation2 + $0x3b] sm:$0xff] }
 0x3d2   : > { %v6851_v1 = vadd.f32 %v2883_v44, %v2871_v56  ;;  %v6862_v47 = vadd.f32 %v2878_v19, %v2858_v62  ;;  %v3449_v56 = vmul.f32 %v3448_v2, %v6915_v6  ;;  %v3436_v36 = vmul.f32 %v3434_v3, %v6936_v40 }
 0x3d3   : > { %v6855_v13 = vpop.permute.xlu0 %2893  ;;  %v2868_v17 = vpop.permute.xlu1 %2867  ;;  %v3463_v62 = vmul.f32 %v3462_v46, %v6915_v6  ;;  %v3464_v59 = vmul.f32 %v3462_v46, %v6936_v40  ;;  %v3518_v3 = vstv %s6964_s26  ;;  %v3506_v46 = vmul.f32 %v3504_v63, %v6936_v40  ;;  %s7145_s26 = sld [smem:[#allocation3 + $0x84]] }
 0x3d4   : > { %v2872_v54 = vadd.f32 %v2868_v17, %v2844_v45  ;;  %v2899_v10 = vadd.f32 %v6855_v13, %v6839_v12 }
 0x3d5   : > { %3327 = vrot.lane.b32.xlu0 %v3323_v26, %s4677_s25  ;;  %3315 = vrot.lane.b32.xlu1 %v3310_v37, %s4677_s25  ;;  %v3476_v26 = vstv %s6928_s18  ;;  %s7083_s18 = sld [smem:[#allocation5 + $0x81]] }
 0x3d6   : > { %v6874_v30 = vadd.f32 %v2884_v33, %v2872_v54  ;;  %v3450_v54 = vmul.f32 %v3448_v2, %v6936_v40  ;;  %v3478_v43 = vmul.f32 %v3476_v26, %v6936_v40  ;;  %v3066_v2 = vmul.f32 %v3064_v39, %v6674_v27 }
 0x3d7   : > { %v6867_v61 = vpop.permute.xlu0 %2907  ;;  %v6877_v16 = vpop.permute.xlu1 %2895 }
 0x3d8   : > { %v2913_v12 = vadd.f32 %v6867_v61, %v6851_v1  ;;  %v2900_v25 = vadd.f32 %v6877_v16, %v6862_v47  ;;  %v3058_v1 = vstv %s6931_s20  ;;  %v3490_v16 = vstv %s6941_s21  ;;  %s7095_s20 = sld [smem:[#allocation3 + $0x82]] }
 0x3d9   : > { %3341 = vrot.lane.b32.xlu0 %v3337_v24, %s4678_s28  ;;  %3329 = vrot.lane.b32.xlu1 %v3324_v55, %s4677_s25  ;;  %v3477_v24 = vmul.f32 %v3476_v26, %v6915_v6  ;;  %v3059_v55 = vmul.f32 %v3058_v1, %v6653_v23  ;;  %s7109_s21 = sld [smem:[#allocation5 + $0x82]] }
 0x3db   : > { %v2922_v48 = vpop.permute.xlu0 %2921  ;;  %v6886_v51 = vpop.permute.xlu1 %2909 }
 0x3dc   : > { %v2927_v18 = vadd.f32 %v2922_v48, %v2899_v10  ;;  %v2914_v48 = vadd.f32 %v6886_v51, %v6874_v30  ;;  %v3065_v30 = vmul.f32 %v3064_v39, %v6653_v23 }
 0x3dd   : > { %3355 = vrot.lane.b32.xlu0 %v3351_v9, %s4678_s28  ;;  %3343 = vrot.lane.b32.xlu1 %v3338_v5, %s4678_s28 }
 0x3df   : > { %v2936_v58 = vpop.permute.xlu0 %2935  ;;  %v6895_v4 = vpop.permute.xlu1 %2923 }
 0x3e0   : > { %v2941_v19 = vadd.f32 %v2936_v58, %v2913_v12  ;;  %v2928_v33 = vadd.f32 %v6895_v4, %v2900_v25 }
 0x3e1   : > { %3369 = vrot.lane.b32.xlu0 %v3365_v32, %s4679_s5  ;;  %3357 = vrot.lane.b32.xlu1 %v3352_v14, %s4678_s28 }
 0x3e3   : > { %v2950_v53 = vpop.permute.xlu0 %2949  ;;  %v6904_v0 = vpop.permute.xlu1 %2937 }
 0x3e4   : > { %v2955_v15 = vadd.f32 %v2950_v53, %v2927_v18  ;;  %v2942_v4 = vadd.f32 %v6904_v0, %v2914_v48  ;;  %v3616_v48 = vstv %s7032_s9  ;;  %s7193_s9 = sld [smem:[#allocation3 + $0x77]] }
 0x3e5   : > { %3383 = vrot.lane.b32.xlu0 %v3379_v50, %s4679_s5  ;;  %3371 = vrot.lane.b32.xlu1 %v3366_v41, %s4679_s5  ;;  %v3491_v50 = vmul.f32 %v3490_v16, %v6915_v6 }
 0x3e7   : > { %v2964_v60 = vpop.permute.xlu0 %2963  ;;  %v2952_v29 = vpop.permute.xlu1 %2951 }
 0x3e8   : > { %v2969_v45 = vadd.f32 %v2964_v60, %v2941_v19  ;;  %v2956_v9 = vadd.f32 %v2952_v29, %v2928_v33  ;;  %v3560_v19 = vstv %s7003_s30  ;;  %s7172_s30 = sld [smem:[#allocation5 + $0x86]] }
 0x3e9   : > { %3397 = vrot.lane.b32.xlu0 %v3393_v8, %s4680_s8  ;;  %3385 = vrot.lane.b32.xlu1 %v3380_v49, %s4679_s5  ;;  %v3060_v49 = vmul.f32 %v3058_v1, %v6674_v27  ;;  %v3561_v1 = vmul.f32 %v3560_v19, %v6915_v6 }
 0x3eb   : > { %v2978_v31 = vpop.permute.xlu0 %2977  ;;  %v6922_v52 = vpop.permute.xlu1 %2965 }
 0x3ec   : > { %v2983_v13 = vadd.f32 %v2978_v31, %v2955_v15  ;;  %v2970_v41 = vadd.f32 %v6922_v52, %v2942_v4  ;;  %v3546_v15 = vstv %s6991_s29  ;;  %s7163_s29 = sld [smem:[#allocation3 + $0x86]] }
 0x3ed   : > { %3411 = vrot.lane.b32.xlu0 %v3407_v42, %s4680_s8  ;;  %3399 = vrot.lane.b32.xlu1 %v3394_v21, %s4680_s8  ;;  %v3505_v42 = vmul.f32 %v3504_v63, %v6915_v6 }
 0x3ef   : > { %v2992_v57 = vpop.permute.xlu0 %2991  ;;  %v2980_v28 = vpop.permute.xlu1 %2979 }
 0x3f0   : > { %v2997_v38 = vadd.f32 %v2992_v57, %v2969_v45  ;;  %v2984_v14 = vadd.f32 %v2980_v28, %v2956_v9  ;;  %v3574_v45 = vstv %s7014_s6  ;;  %s7181_s6 = sld [smem:[#allocation3 + $0x87]] }
 0x3f1   : > { %3439 = vrot.lane.b32.xlu0 %v3435_v20, %s4675_s19  ;;  %3413 = vrot.lane.b32.xlu1 %v3408_v35, %s4680_s8  ;;  %v3492_v20 = vmul.f32 %v3490_v16, %v6936_v40  ;;  %v3519_v35 = vmul.f32 %v3518_v3, %v6915_v6  ;;  %v3575_v33 = vmul.f32 %v3574_v45, %v6915_v6  ;;  %v7046_v16 = vld [vmem:[#allocation2 + $0x34] sm:$0xff] }
 0x3f2   : > { %v3576_v39 = vmul.f32 %v3574_v45, %v6936_v40 }
 0x3f3   : > { %v3006_v44 = vpop.permute.xlu0 %3005  ;;  %v2994_v34 = vpop.permute.xlu1 %2993 }
 0x3f4   : > { %v3011_v17 = vadd.f32 %v3006_v44, %v2983_v13  ;;  %v2998_v29 = vadd.f32 %v2994_v34, %v2970_v41  ;;  %v3532_v44 = vstv %s6978_s27  ;;  %v3644_v41 = vstv %s7050_s11  ;;  %s7154_s27 = sld [smem:[#allocation5 + $0x84]] }
 0x3f5   : > { %3453 = vrot.lane.b32.xlu0 %v3449_v56, %s4675_s19  ;;  %3441 = vrot.lane.b32.xlu1 %v3436_v36, %s4675_s19  ;;  %v3533_v12 = vmul.f32 %v3532_v44, %v6915_v6  ;;  %v3520_v36 = vmul.f32 %v3518_v3, %v6936_v40  ;;  %v3534_v26 = vmul.f32 %v3532_v44, %v6936_v40  ;;  %s7206_s11 = sld [smem:[#allocation5 + $0x77]] }
 0x3f7   : > { %v3020_v7 = vpop.permute.xlu0 %3019  ;;  %v3008_v37 = vpop.permute.xlu1 %3007 }
 0x3f8   : > { %v3025_v5 = vadd.f32 %v3020_v7, %v2997_v38  ;;  %v3012_v60 = vadd.f32 %v3008_v37, %v2984_v14  ;;  %v3548_v37 = vmul.f32 %v3546_v15, %v6936_v40  ;;  %v3562_v38 = vmul.f32 %v3560_v19, %v6936_v40 }
 0x3f9   : > { %3467 = vrot.lane.b32.xlu0 %v3463_v62, %s4676_s22  ;;  %3455 = vrot.lane.b32.xlu1 %v3450_v54, %s4675_s19  ;;  %v3547_v62 = vmul.f32 %v3546_v15, %v6915_v6  ;;  %v3246_v15 = vstv %s7075_s17  ;;  %s7247_s17 = sld [smem:[#allocation3 + $0x8a]] }
 0x3fb   : > { %v3034_v61 = vpop.permute.xlu0 %3033  ;;  %v3022_v58 = vpop.permute.xlu1 %3021 }
 0x3fc   : > { %v3039_v47 = vadd.f32 %v3034_v61, %v3011_v17  ;;  %v3026_v52 = vadd.f32 %v3022_v58, %v2998_v29  ;;  %v3588_v61 = vstv %s7023_s7  ;;  %v3617_v58 = vmul.f32 %v3616_v48, %v7046_v16  ;;  %s7190_s7 = sld [smem:[#allocation5 + $0x87]] }
 0x3fd   : > { %3481 = vrot.lane.b32.xlu0 %v3477_v24, %s4676_s22  ;;  %3469 = vrot.lane.b32.xlu1 %v3464_v59, %s4676_s22  ;;  %v3630_v59 = vstv %s7041_s10  ;;  %s7203_s10 = sld [smem:[#allocation3 + $0x88]] }
 0x3fe   : > { %v6970_v32 = vadd.f32 %v3059_v55, %v3039_v47  ;;  %v3589_v47 = vmul.f32 %v3588_v61, %v6915_v6 }
 0x3ff   : > { %v3048_v53 = vpop.permute.xlu0 %3047  ;;  %v3036_v8 = vpop.permute.xlu1 %3035 }
 0x400   : > { %v3053_v51 = vadd.f32 %v3048_v53, %v3025_v5  ;;  %v3040_v31 = vadd.f32 %v3036_v8, %v3012_v60  ;;  %v3590_v53 = vmul.f32 %v3588_v61, %v6936_v40 }
 0x401   : > { %3495 = vrot.lane.b32.xlu0 %v3491_v50, %s4677_s25  ;;  %3483 = vrot.lane.b32.xlu1 %v3478_v43, %s4676_s22  ;;  %v7067_v50 = vld [vmem:[#allocation2 + $0x3c] sm:$0xff] }
 0x402   : > { %v6982_v0 = vadd.f32 %v3065_v30, %v3053_v51  ;;  %v6993_v21 = vadd.f32 %v3060_v49, %v3040_v31  ;;  %v3631_v51 = vmul.f32 %v3630_v59, %v7046_v16  ;;  %v3618_v43 = vmul.f32 %v3616_v48, %v7067_v50 }
 0x403   : > { %v6986_v23 = vpop.permute.xlu0 %3075  ;;  %v3050_v57 = vpop.permute.xlu1 %3049  ;;  %v3645_v49 = vmul.f32 %v3644_v41, %v7046_v16  ;;  %v3700_v48 = vstv %s7095_s20  ;;  %s7262_s20 = sld [smem:[#allocation3 + $0x8b]] }
 0x404   : > { %v3054_v10 = vadd.f32 %v3050_v57, %v3026_v52  ;;  %v3081_v4 = vadd.f32 %v6986_v23, %v6970_v32 }
 0x405   : > { %3509 = vrot.lane.b32.xlu0 %v3505_v42, %s4677_s25  ;;  %3497 = vrot.lane.b32.xlu1 %v3492_v20, %s4677_s25  ;;  %v3658_v42 = vstv %s7059_s12  ;;  %s7214_s12 = sld [smem:[#allocation5 + $0x88]] }
 0x406   : > { %v7005_v56 = vadd.f32 %v3066_v2, %v3054_v10  ;;  %v3632_v2 = vmul.f32 %v3630_v59, %v7067_v50 }
 0x407   : > { %v6998_v28 = vpop.permute.xlu0 %3089  ;;  %v7008_v18 = vpop.permute.xlu1 %3077 }
 0x408   : > { %v3095_v32 = vadd.f32 %v6998_v28, %v6982_v0  ;;  %v3082_v3 = vadd.f32 %v7008_v18, %v6993_v21  ;;  %v3240_v0 = vstv %s7062_s13  ;;  %s7226_s13 = sld [smem:[#allocation3 + $0x89]] }
 0x409   : > { %3523 = vrot.lane.b32.xlu0 %v3519_v35, %s4678_s28  ;;  %3511 = vrot.lane.b32.xlu1 %v3506_v46, %s4677_s25  ;;  %v3659_v35 = vmul.f32 %v3658_v42, %v7046_v16  ;;  %v3241_v21 = vmul.f32 %v3240_v0, %v6784_v11 }
 0x40b   : > { %v3104_v27 = vpop.permute.xlu0 %3103  ;;  %v7017_v34 = vpop.permute.xlu1 %3091 }
 0x40c   : > { %v3109_v63 = vadd.f32 %v3104_v27, %v3081_v4  ;;  %v3672_v27 = vstv %s7072_s14  ;;  %v3096_v18 = vadd.f32 %v7017_v34, %v7005_v56  ;;  %v3686_v56 = vstv %s7083_s18  ;;  %s7238_s14 = sld [smem:[#allocation5 + $0x89]] }
 0x40d   : > { %3537 = vrot.lane.b32.xlu0 %v3533_v12, %s4678_s28  ;;  %3525 = vrot.lane.b32.xlu1 %v3520_v36, %s4678_s28  ;;  %v3247_v34 = vmul.f32 %v3246_v15, %v6784_v11  ;;  %v3242_v11 = vmul.f32 %v3240_v0, %v6805_v22  ;;  %s7255_s18 = sld [smem:[#allocation5 + $0x8a]] }
 0x40f   : > { %v3118_v7 = vpop.permute.xlu0 %3117  ;;  %v7026_v13 = vpop.permute.xlu1 %3105 }
 0x410   : > { %v3123_v31 = vadd.f32 %v3118_v7, %v3095_v32  ;;  %v3110_v10 = vadd.f32 %v7026_v13, %v3082_v3 }
 0x411   : > { %3551 = vrot.lane.b32.xlu0 %v3547_v62, %s4679_s5  ;;  %3539 = vrot.lane.b32.xlu1 %v3534_v26, %s4678_s28  ;;  %v3646_v62 = vmul.f32 %v3644_v41, %v7067_v50  ;;  %v3688_v41 = vmul.f32 %v3686_v56, %v7067_v50 }
 0x413   : > { %v3132_v25 = vpop.permute.xlu0 %3131  ;;  %v7035_v17 = vpop.permute.xlu1 %3119 }
 0x414   : > { %v3137_v60 = vadd.f32 %v3132_v25, %v3109_v63  ;;  %v3124_v13 = vadd.f32 %v7035_v17, %v3096_v18  ;;  %v3660_v17 = vmul.f32 %v3658_v42, %v7067_v50  ;;  %v3798_v18 = vstv %s7163_s29  ;;  %s7302_s29 = sld [smem:[#allocation3 + $0x7e]] }
 0x415   : > { %3565 = vrot.lane.b32.xlu0 %v3561_v1, %s4679_s5  ;;  %3553 = vrot.lane.b32.xlu1 %v3548_v37, %s4679_s5  ;;  %v3673_v1 = vmul.f32 %v3672_v27, %v7046_v16 }
 0x417   : > { %v3146_v54 = vpop.permute.xlu0 %3145  ;;  %v3134_v24 = vpop.permute.xlu1 %3133 }
 0x418   : > { %v3151_v52 = vadd.f32 %v3146_v54, %v3123_v31  ;;  %v3138_v12 = vadd.f32 %v3134_v24, %v3110_v10  ;;  %v3742_v31 = vstv %s7134_s24  ;;  %s7283_s24 = sld [smem:[#allocation5 + $0x8d]] }
 0x419   : > { %3579 = vrot.lane.b32.xlu0 %v3575_v33, %s4680_s8  ;;  %3567 = vrot.lane.b32.xlu1 %v3562_v38, %s4679_s5  ;;  %v3743_v0 = vmul.f32 %v3742_v31, %v7046_v16 }
 0x41b   : > { %v3160_v55 = vpop.permute.xlu0 %3159  ;;  %v7053_v9 = vpop.permute.xlu1 %3147 }
 0x41c   : > { %v3165_v23 = vadd.f32 %v3160_v55, %v3137_v60  ;;  %v3152_v37 = vadd.f32 %v7053_v9, %v3124_v13 }
 0x41d   : > { %3593 = vrot.lane.b32.xlu0 %v3589_v47, %s4680_s8  ;;  %3581 = vrot.lane.b32.xlu1 %v3576_v39, %s4680_s8  ;;  %v3687_v47 = vmul.f32 %v3686_v56, %v7046_v16 }
 0x41f   : > { %v3174_v5 = vpop.permute.xlu0 %3173  ;;  %v3162_v14 = vpop.permute.xlu1 %3161 }
 0x420   : > { %v3179_v44 = vadd.f32 %v3174_v5, %v3151_v52  ;;  %v3166_v26 = vadd.f32 %v3162_v14, %v3138_v12  ;;  %v3701_v14 = vmul.f32 %v3700_v48, %v7046_v16  ;;  %v3756_v52 = vstv %s7145_s26  ;;  %s7292_s26 = sld [smem:[#allocation3 + $0x8e]] }
 0x421   : > { %3621 = vrot.lane.b32.xlu0 %v3617_v58, %s4675_s19  ;;  %3595 = vrot.lane.b32.xlu1 %v3590_v53, %s4680_s8  ;;  %v3674_v58 = vmul.f32 %v3672_v27, %v7067_v50  ;;  %v3248_v53 = vmul.f32 %v3246_v15, %v6805_v22  ;;  %v3728_v22 = vstv %s7122_s23  ;;  %v3757_v10 = vmul.f32 %v3756_v52, %v7046_v16  ;;  %s7276_s23 = sld [smem:[#allocation3 + $0x8d]] }
 0x422   : > { %v3758_v15 = vmul.f32 %v3756_v52, %v7067_v50 }
 0x423   : > { %v3188_v30 = vpop.permute.xlu0 %3187  ;;  %v3176_v8 = vpop.permute.xlu1 %3175 }
 0x424   : > { %v3193_v57 = vadd.f32 %v3188_v30, %v3165_v23  ;;  %v3180_v24 = vadd.f32 %v3176_v8, %v3152_v37  ;;  %v3714_v30 = vstv %s7109_s21  ;;  %v3826_v37 = vstv %s7181_s6  ;;  %s7269_s21 = sld [smem:[#allocation5 + $0x8b]] }
 0x425   : > { %3635 = vrot.lane.b32.xlu0 %v3631_v51, %s4675_s19  ;;  %3623 = vrot.lane.b32.xlu1 %v3618_v43, %s4675_s19  ;;  %v3715_v60 = vmul.f32 %v3714_v30, %v7046_v16  ;;  %v3702_v43 = vmul.f32 %v3700_v48, %v7067_v50  ;;  %v3716_v42 = vmul.f32 %v3714_v30, %v7067_v50  ;;  %s7313_s6 = sld [smem:[#allocation5 + $0x7e]] }
 0x427   : > { %v3202_v29 = vpop.permute.xlu0 %3201  ;;  %v3190_v20 = vpop.permute.xlu1 %3189 }
 0x428   : > { %v3207_v36 = vadd.f32 %v3202_v29, %v3179_v44  ;;  %v3194_v54 = vadd.f32 %v3190_v20, %v3166_v26  ;;  %v3730_v20 = vmul.f32 %v3728_v22, %v7067_v50  ;;  %v3744_v44 = vmul.f32 %v3742_v31, %v7067_v50 }
 0x429   : > { %3649 = vrot.lane.b32.xlu0 %v3645_v49, %s4676_s22  ;;  %3637 = vrot.lane.b32.xlu1 %v3632_v2, %s4675_s19  ;;  %v3729_v49 = vmul.f32 %v3728_v22, %v7046_v16  ;;  %v3428_v22 = vstv %s7206_s11  ;;  %s7360_s11 = sld [smem:[#allocation3 + $0x92]] }
 0x42b   : > { %v3216_v28 = vpop.permute.xlu0 %3215  ;;  %v3204_v7 = vpop.permute.xlu1 %3203 }
 0x42c   : > { %v3221_v46 = vadd.f32 %v3216_v28, %v3193_v57  ;;  %v3208_v9 = vadd.f32 %v3204_v7, %v3180_v24  ;;  %v3770_v28 = vstv %s7154_s27  ;;  %s7299_s27 = sld [smem:[#allocation5 + $0x8e]] }
 0x42d   : > { %3663 = vrot.lane.b32.xlu0 %v3659_v35, %s4676_s22  ;;  %3651 = vrot.lane.b32.xlu1 %v3646_v62, %s4676_s22  ;;  %v3771_v27 = vmul.f32 %v3770_v28, %v7046_v16  ;;  %v3812_v62 = vstv %s7172_s30  ;;  %s7310_s30 = sld [smem:[#allocation3 + $0x8f]] }
 0x42e   : > { %v7102_v19 = vadd.f32 %v3241_v21, %v3221_v46  ;;  %v7177_v21 = vld [vmem:[#allocation2 + $0x35] sm:$0xff] }
 0x42f   : > { %v3230_v25 = vpop.permute.xlu0 %3229  ;;  %v3218_v33 = vpop.permute.xlu1 %3217  ;;  %v3799_v7 = vmul.f32 %v3798_v18, %v7177_v21  ;;  %v3813_v56 = vmul.f32 %v3812_v62, %v7177_v21 }
 0x430   : > { %v3235_v45 = vadd.f32 %v3230_v25, %v3207_v36  ;;  %v3222_v38 = vadd.f32 %v3218_v33, %v3194_v54  ;;  %v3772_v25 = vmul.f32 %v3770_v28, %v7067_v50 }
 0x431   : > { %3677 = vrot.lane.b32.xlu0 %v3673_v1, %s4677_s25  ;;  %3665 = vrot.lane.b32.xlu1 %v3660_v17, %s4676_s22  ;;  %v7198_v1 = vld [vmem:[#allocation2 + $0x3d] sm:$0xff] }
 0x432   : > { %v7114_v61 = vadd.f32 %v3247_v34, %v3235_v45  ;;  %v7125_v39 = vadd.f32 %v3242_v11, %v3222_v38  ;;  %v3800_v17 = vmul.f32 %v3798_v18, %v7198_v1  ;;  %v3827_v38 = vmul.f32 %v3826_v37, %v7177_v21 }
 0x433   : > { %v7116_v55 = vpop.permute.xlu0 %3257  ;;  %v3232_v5 = vpop.permute.xlu1 %3231  ;;  %v3840_v11 = vstv %s7190_s7  ;;  %s7319_s7 = sld [smem:[#allocation5 + $0x8f]] }
 0x434   : > { %v3236_v59 = vadd.f32 %v3232_v5, %v3208_v9  ;;  %v3263_v13 = vadd.f32 %v7116_v55, %v7102_v19 }
 0x435   : > { %3691 = vrot.lane.b32.xlu0 %v3687_v47, %s4677_s25  ;;  %3679 = vrot.lane.b32.xlu1 %v3674_v58, %s4677_s25 }
 0x436   : > { %v7137_v51 = vadd.f32 %v3248_v53, %v3236_v59  ;;  %v3814_v59 = vmul.f32 %v3812_v62, %v7198_v1  ;;  %v3841_v53 = vmul.f32 %v3840_v11, %v7177_v21 }
 0x437   : > { %v7128_v4 = vpop.permute.xlu0 %3271  ;;  %v7139_v63 = vpop.permute.xlu1 %3259 }
 0x438   : > { %v3277_v19 = vadd.f32 %v7128_v4, %v7114_v61  ;;  %v3264_v48 = vadd.f32 %v7139_v63, %v7125_v39  ;;  %v3422_v61 = vstv %s7193_s9  ;;  %s7328_s9 = sld [smem:[#allocation3 + $0x90]] }
 0x439   : > { %3705 = vrot.lane.b32.xlu0 %v3701_v14, %s4678_s28  ;;  %3693 = vrot.lane.b32.xlu1 %v3688_v41, %s4677_s25  ;;  %v3423_v39 = vmul.f32 %v3422_v61, %v6915_v6  ;;  %v3424_v18 = vmul.f32 %v3422_v61, %v6936_v40 }
 0x43b   : > { %v3286_v32 = vpop.permute.xlu0 %3285  ;;  %v7148_v8 = vpop.permute.xlu1 %3273 }
 0x43c   : > { %v3291_v34 = vadd.f32 %v3286_v32, %v3263_v13  ;;  %v3854_v32 = vstv %s7203_s10  ;;  %v3278_v63 = vadd.f32 %v7148_v8, %v7137_v51  ;;  %v3429_v51 = vmul.f32 %v3428_v22, %v6915_v6  ;;  %s7345_s10 = sld [smem:[#allocation3 + $0x91]] }
 0x43d   : > { %3719 = vrot.lane.b32.xlu0 %v3715_v60, %s4678_s28  ;;  %3707 = vrot.lane.b32.xlu1 %v3702_v43, %s4678_s28  ;;  %v3856_v62 = vmul.f32 %v3854_v32, %v7198_v1 }
 0x43f   : > { %v3300_v29 = vpop.permute.xlu0 %3299  ;;  %v7157_v23 = vpop.permute.xlu1 %3287 }
 0x440   : > { %v3305_v55 = vadd.f32 %v3300_v29, %v3277_v19  ;;  %v3292_v4 = vadd.f32 %v7157_v23, %v3264_v48 }
 0x441   : > { %3733 = vrot.lane.b32.xlu0 %v3729_v49, %s4679_s5  ;;  %3721 = vrot.lane.b32.xlu1 %v3716_v42, %s4678_s28  ;;  %v3828_v49 = vmul.f32 %v3826_v37, %v7198_v1 }
 0x443   : > { %v3314_v3 = vpop.permute.xlu0 %3313  ;;  %v7166_v57 = vpop.permute.xlu1 %3301 }
 0x444   : > { %v3319_v54 = vadd.f32 %v3314_v3, %v3291_v34  ;;  %v3306_v23 = vadd.f32 %v7166_v57, %v3278_v63  ;;  %v3842_v57 = vmul.f32 %v3840_v11, %v7198_v1  ;;  %v3896_v34 = vstv %s7238_s14  ;;  %s7404_s14 = sld [smem:[#allocation7 + $0x1]] }
 0x445   : > { %3747 = vrot.lane.b32.xlu0 %v3743_v0, %s4679_s5  ;;  %3735 = vrot.lane.b32.xlu1 %v3730_v20, %s4679_s5  ;;  %v3855_v0 = vmul.f32 %v3854_v32, %v7177_v21  ;;  %v3868_v20 = vstv %s7214_s12  ;;  %s7367_s12 = sld [smem:[#allocation5 + $0x92]] }
 0x447   : > { %v3328_v2 = vpop.permute.xlu0 %3327  ;;  %v3316_v35 = vpop.permute.xlu1 %3315 }
 0x448   : > { %v3333_v9 = vadd.f32 %v3328_v2, %v3305_v55  ;;  %v3320_v60 = vadd.f32 %v3316_v35, %v3292_v4 }
 0x449   : > { %3761 = vrot.lane.b32.xlu0 %v3757_v10, %s4680_s8  ;;  %3749 = vrot.lane.b32.xlu1 %v3744_v44, %s4679_s5 }
 0x44b   : > { %v3342_v46 = vpop.permute.xlu0 %3341  ;;  %v7184_v12 = vpop.permute.xlu1 %3329 }
 0x44c   : > { %v3347_v47 = vadd.f32 %v3342_v46, %v3319_v54  ;;  %v3334_v8 = vadd.f32 %v7184_v12, %v3306_v23  ;;  %v3870_v54 = vmul.f32 %v3868_v20, %v7198_v1 }
 0x44d   : > { %3775 = vrot.lane.b32.xlu0 %v3771_v27, %s4680_s8  ;;  %3763 = vrot.lane.b32.xlu1 %v3758_v15, %s4680_s8  ;;  %v3869_v27 = vmul.f32 %v3868_v20, %v7177_v21  ;;  %v3882_v15 = vstv %s7226_s13  ;;  %v3980_v20 = vstv %s7276_s23  ;;  %s7402_s13 = sld [smem:[#allocation7]] }
 0x44f   : > { %v3356_v36 = vpop.permute.xlu0 %3355  ;;  %v3344_v26 = vpop.permute.xlu1 %3343 }
 0x450   : > { %v3361_v30 = vadd.f32 %v3356_v36, %v3333_v9  ;;  %v3348_v42 = vadd.f32 %v3344_v26, %v3320_v60 }
 0x451   : > { %3803 = vrot.lane.b32.xlu0 %v3799_v7, %s4675_s19  ;;  %3777 = vrot.lane.b32.xlu1 %v3772_v25, %s4680_s8  ;;  %v3883_v25 = vmul.f32 %v3882_v15, %v7177_v21 }
 0x453   : > { %v3370_v45 = vpop.permute.xlu0 %3369  ;;  %v3358_v33 = vpop.permute.xlu1 %3357 }
 0x454   : > { %v3375_v5 = vadd.f32 %v3370_v45, %v3347_v47  ;;  %v3362_v35 = vadd.f32 %v3358_v33, %v3334_v8  ;;  %v3430_v45 = vmul.f32 %v3428_v22, %v6936_v40  ;;  %v3884_v47 = vmul.f32 %v3882_v15, %v7198_v1 }
 0x455   : > { %3817 = vrot.lane.b32.xlu0 %v3813_v56, %s4675_s19  ;;  %3805 = vrot.lane.b32.xlu1 %v3800_v17, %s4675_s19 }
 0x457   : > { %v3384_v24 = vpop.permute.xlu0 %3383  ;;  %v3372_v58 = vpop.permute.xlu1 %3371 }
 0x458   : > { %v3389_v43 = vadd.f32 %v3384_v24, %v3361_v30  ;;  %v3376_v2 = vadd.f32 %v3372_v58, %v3348_v42  ;;  %v3897_v24 = vmul.f32 %v3896_v34, %v7177_v21 }
 0x459   : > { %3831 = vrot.lane.b32.xlu0 %v3827_v38, %s4676_s22  ;;  %3819 = vrot.lane.b32.xlu1 %v3814_v59, %s4675_s19  ;;  %v3910_v38 = vstv %s7247_s17  ;;  %v3898_v59 = vmul.f32 %v3896_v34, %v7198_v1  ;;  %v3604_v34 = vstv %s7302_s29  ;;  %s4561_s17 = sshll.u32 %s7434_s16, 5 }
 0x45a   : > { %v3911_v61 = vmul.f32 %v3910_v38, %v7177_v21 }
 0x45b   : > { %v3398_v14 = vpop.permute.xlu0 %3397  ;;  %v3386_v29 = vpop.permute.xlu1 %3385 }
 0x45c   : > { %v3403_v41 = vadd.f32 %v3398_v14, %v3375_v5  ;;  %v3390_v12 = vadd.f32 %v3386_v29, %v3362_v35  ;;  %v3924_v5 = vstv %s7255_s18  ;;  %v3952_v29 = vstv %s7269_s21  ;;  %s236_s21 = scalar_lea.vmem %s7423_s4, %s4561_s17 }
 0x45d   : > { %3845 = vrot.lane.b32.xlu0 %v3841_v53, %s4676_s22  ;;  %3833 = vrot.lane.b32.xlu1 %v3828_v49, %s4676_s22  ;;  %v3925_v53 = vmul.f32 %v3924_v5, %v7177_v21  ;;  %v3994_v35 = vstv %s7283_s24 }
 0x45e   : > { %v3425_v31 = vadd.f32 %v3423_v39, %v3403_v41  ;;  %v3938_v41 = vstv %s7262_s20  ;;  %v3912_v39 = vmul.f32 %v3910_v38, %v7198_v1  ;;  %v3605_v38 = vmul.f32 %v3604_v34, %v7046_v16 }
 0x45f   : > { %v3412_v3 = vpop.permute.xlu0 %3411  ;;  %v3400_v10 = vpop.permute.xlu1 %3399  ;;  %v3939_v22 = vmul.f32 %v3938_v41, %v7177_v21  ;;  %v3940_v8 = vmul.f32 %v3938_v41, %v7198_v1 }
 0x460   : > { %v3417_v52 = vadd.f32 %v3412_v3, %v3389_v43  ;;  %v3404_v44 = vadd.f32 %v3400_v10, %v3376_v2  ;;  %v3953_v3 = vmul.f32 %v3952_v29, %v7177_v21 }
 0x461   : > { %3859 = vrot.lane.b32.xlu0 %v3855_v0, %s4677_s25  ;;  %3847 = vrot.lane.b32.xlu1 %v3842_v57, %s4676_s22  ;;  %v7288_v0 = vld [vmem:[#allocation2 + $0x36] sm:$0xff] }
 0x462   : > { %v3431_v28 = vadd.f32 %v3429_v51, %v3417_v52  ;;  %v3426_v36 = vadd.f32 %v3424_v18, %v3404_v44  ;;  %v3981_v57 = vmul.f32 %v3980_v20, %v7288_v0  ;;  %v3995_v15 = vmul.f32 %v3994_v35, %v7288_v0 }
 0x463   : > { %v3440_v46 = vpop.permute.xlu0 %3439  ;;  %v3414_v7 = vpop.permute.xlu1 %3413 }
 0x464   : > { %v3445_v6 = vadd.f32 %v3440_v46, %v3425_v31  ;;  %v3418_v13 = vadd.f32 %v3414_v7, %v3390_v12  ;;  %v3926_v31 = vmul.f32 %v3924_v5, %v7198_v1  ;;  %v3954_v46 = vmul.f32 %v3952_v29, %v7198_v1 }
 0x465   : > { %3873 = vrot.lane.b32.xlu0 %v3869_v27, %s4677_s25  ;;  %3861 = vrot.lane.b32.xlu1 %v3856_v62, %s4677_s25  ;;  %v7305_v27 = vld [vmem:[#allocation2 + $0x3e] sm:$0xff] }
 0x466   : > { %v3432_v37 = vadd.f32 %v3430_v45, %v3418_v13  ;;  %v3982_v62 = vmul.f32 %v3980_v20, %v7305_v27 }
 0x467   : > { %v3454_v26 = vpop.permute.xlu0 %3453  ;;  %v3442_v19 = vpop.permute.xlu1 %3441 }
 0x468   : > { %v3459_v56 = vadd.f32 %v3454_v26, %v3431_v28  ;;  %v3446_v33 = vadd.f32 %v3442_v19, %v3426_v36  ;;  %v4008_v36 = vstv %s7292_s26  ;;  %v3996_v19 = vmul.f32 %v3994_v35, %v7305_v27 }
 0x469   : > { %3887 = vrot.lane.b32.xlu0 %v3883_v25, %s4678_s28  ;;  %3875 = vrot.lane.b32.xlu1 %v3870_v54, %s4677_s25  ;;  %v4009_v25 = vmul.f32 %v4008_v36, %v7288_v0 }
 0x46b   : > { %v3468_v17 = vpop.permute.xlu0 %3467  ;;  %v3456_v55 = vpop.permute.xlu1 %3455 }
 0x46c   : > { %v3473_v40 = vadd.f32 %v3468_v17, %v3445_v6  ;;  %v3460_v11 = vadd.f32 %v3456_v55, %v3432_v37  ;;  %v3610_v55 = vstv %s7313_s6 }
 0x46d   : > { %3901 = vrot.lane.b32.xlu0 %v3897_v24, %s4678_s28  ;;  %3889 = vrot.lane.b32.xlu1 %v3884_v47, %s4678_s28 }
 0x46f   : > { %v3482_v48 = vpop.permute.xlu0 %3481  ;;  %v3470_v58 = vpop.permute.xlu1 %3469 }
 0x470   : > { %v3487_v9 = vadd.f32 %v3482_v48, %v3459_v56  ;;  %v3474_v4 = vadd.f32 %v3470_v58, %v3446_v33  ;;  %v4022_v56 = vstv %s7299_s27 }
 0x471   : > { %3915 = vrot.lane.b32.xlu0 %v3911_v61, %s4679_s5  ;;  %3903 = vrot.lane.b32.xlu1 %v3898_v59, %s4678_s28  ;;  %v4023_v17 = vmul.f32 %v4022_v56, %v7288_v0  ;;  %v4050_v59 = vstv %s7319_s7 }
 0x473   : > { %v3496_v14 = vpop.permute.xlu0 %3495  ;;  %v3484_v32 = vpop.permute.xlu1 %3483 }
 0x474   : > { %v3501_v30 = vadd.f32 %v3496_v14, %v3473_v40  ;;  %v3488_v63 = vadd.f32 %v3484_v32, %v3460_v11  ;;  %v4036_v40 = vstv %s7310_s30  ;;  %v4010_v11 = vmul.f32 %v4008_v36, %v7305_v27 }
 0x475   : > { %3929 = vrot.lane.b32.xlu0 %v3925_v53, %s4679_s5  ;;  %3917 = vrot.lane.b32.xlu1 %v3912_v39, %s4679_s5  ;;  %v4037_v5 = vmul.f32 %v4036_v40, %v7288_v0  ;;  %v4024_v53 = vmul.f32 %v4022_v56, %v7305_v27  ;;  %v4051_v39 = vmul.f32 %v4050_v59, %v7288_v0 }
 0x476   : > { %v4038_v29 = vmul.f32 %v4036_v40, %v7305_v27 }
 0x477   : > { %v3510_v60 = vpop.permute.xlu0 %3509  ;;  %v3498_v49 = vpop.permute.xlu1 %3497 }
 0x478   : > { %v3515_v43 = vadd.f32 %v3510_v60, %v3487_v9  ;;  %v3502_v23 = vadd.f32 %v3498_v49, %v3474_v4  ;;  %v3611_v4 = vmul.f32 %v3610_v55, %v7046_v16 }
 0x479   : > { %3943 = vrot.lane.b32.xlu0 %v3939_v22, %s4680_s8  ;;  %3931 = vrot.lane.b32.xlu1 %v3926_v31, %s4679_s5  ;;  %v4064_v22 = vstv %s7328_s9 }
 0x47b   : > { %v3524_v42 = vpop.permute.xlu0 %3523  ;;  %v3512_v51 = vpop.permute.xlu1 %3511 }
 0x47c   : > { %v3529_v52 = vadd.f32 %v3524_v42, %v3501_v30  ;;  %v3516_v2 = vadd.f32 %v3512_v51, %v3488_v63  ;;  %v3606_v63 = vmul.f32 %v3604_v34, %v7067_v50  ;;  %v3612_v42 = vmul.f32 %v3610_v55, %v7067_v50 }
 0x47d   : > { %3957 = vrot.lane.b32.xlu0 %v3953_v3, %s4680_s8  ;;  %3945 = vrot.lane.b32.xlu1 %v3940_v8, %s4680_s8  ;;  %v4052_v8 = vmul.f32 %v4050_v59, %v7305_v27 }
 0x47f   : > { %v3538_v10 = vpop.permute.xlu0 %3537  ;;  %v3526_v44 = vpop.permute.xlu1 %3525 }
 0x480   : > { %v3543_v28 = vadd.f32 %v3538_v10, %v3515_v43  ;;  %v3530_v18 = vadd.f32 %v3526_v44, %v3502_v23  ;;  %v4065_v23 = vmul.f32 %v4064_v22, %v7288_v0  ;;  %v4066_v44 = vmul.f32 %v4064_v22, %v7305_v27 }
 0x481   : > { %3985 = vrot.lane.b32.xlu0 %v3981_v57, %s4675_s19  ;;  %3959 = vrot.lane.b32.xlu1 %v3954_v46, %s4680_s8 }
 0x483   : > { %v3552_v6 = vpop.permute.xlu0 %3551  ;;  %v3540_v7 = vpop.permute.xlu1 %3539 }
 0x484   : > { %v3557_v12 = vadd.f32 %v3552_v6, %v3529_v52  ;;  %v3544_v13 = vadd.f32 %v3540_v7, %v3516_v2 }
 0x485   : > { %3999 = vrot.lane.b32.xlu0 %v3995_v15, %s4675_s19  ;;  %3987 = vrot.lane.b32.xlu1 %v3982_v62, %s4675_s19 }
 0x487   : > { %v3566_v26 = vpop.permute.xlu0 %3565  ;;  %v3554_v37 = vpop.permute.xlu1 %3553 }
 0x488   : > { %v3571_v45 = vadd.f32 %v3566_v26, %v3543_v28  ;;  %v3558_v54 = vadd.f32 %v3554_v37, %v3530_v18  ;;  %v4092_v28 = vstv %s7345_s10 }
 0x489   : > { %4013 = vrot.lane.b32.xlu0 %v4009_v25, %s4676_s22  ;;  %4001 = vrot.lane.b32.xlu1 %v3996_v19, %s4675_s19  ;;  %s7337_s19 = sld [smem:[#allocation5 + $0x90]]  ;;  %v4093_v6 = vmul.f32 %v4092_v28, %v7288_v0  ;;  %v4094_v34 = vmul.f32 %v4092_v28, %v7305_v27 }
 0x48b   : > { %v3580_v33 = vpop.permute.xlu0 %3579  ;;  %v3568_v47 = vpop.permute.xlu1 %3567 }
 0x48c   : > { %v3585_v24 = vadd.f32 %v3580_v33, %v3557_v12  ;;  %v3572_v61 = vadd.f32 %v3568_v47, %v3544_v13 }
 0x48d   : > { %4027 = vrot.lane.b32.xlu0 %v4023_v17, %s4676_s22  ;;  %4015 = vrot.lane.b32.xlu1 %v4010_v11, %s4676_s22  ;;  %v4134_v17 = vstv %s7367_s12 }
 0x48e   : > { %v3607_v48 = vadd.f32 %v3605_v38, %v3585_v24  ;;  %v4135_v47 = vmul.f32 %v4134_v17, %v7288_v0 }
 0x48f   : > { %v3594_v9 = vpop.permute.xlu0 %3593  ;;  %v3582_v14 = vpop.permute.xlu1 %3581  ;;  %v4078_v52 = vstv %s7337_s19 }
 0x490   : > { %v3599_v58 = vadd.f32 %v3594_v9, %v3571_v45  ;;  %v3586_v41 = vadd.f32 %v3582_v14, %v3558_v54  ;;  %v4079_v57 = vmul.f32 %v4078_v52, %v7288_v0  ;;  %v4080_v7 = vmul.f32 %v4078_v52, %v7305_v27 }
 0x491   : > { %4041 = vrot.lane.b32.xlu0 %v4037_v5, %s4677_s25  ;;  %4029 = vrot.lane.b32.xlu1 %v4024_v53, %s4676_s22  ;;  %s7353_s22 = sld [smem:[#allocation5 + $0x91]]  ;;  %v4120_v45 = vstv %s7360_s11 }
 0x492   : > { %v3613_v30 = vadd.f32 %v3611_v4, %v3599_v58  ;;  %v3608_v16 = vadd.f32 %v3606_v63, %v3586_v41  ;;  %v4121_v54 = vmul.f32 %v4120_v45, %v7288_v0  ;;  %v4136_v4 = vmul.f32 %v4134_v17, %v7305_v27 }
 0x493   : > { %v3622_v32 = vpop.permute.xlu0 %3621  ;;  %v3596_v43 = vpop.permute.xlu1 %3595 }
 0x494   : > { %v3627_v60 = vadd.f32 %v3622_v32, %v3607_v48  ;;  %v3600_v49 = vadd.f32 %v3596_v43, %v3572_v61  ;;  %v4122_v61 = vmul.f32 %v4120_v45, %v7305_v27 }
 0x495   : > { %4055 = vrot.lane.b32.xlu0 %v4051_v39, %s4677_s25  ;;  %4043 = vrot.lane.b32.xlu1 %v4038_v29, %s4677_s25 }
 0x496   : > { %v3614_v20 = vadd.f32 %v3612_v42, %v3600_v49 }
 0x497   : > { %v3636_v31 = vpop.permute.xlu0 %3635  ;;  %v3624_v51 = vpop.permute.xlu1 %3623  ;;  %v4106_v12 = vstv %s7353_s22 }
 0x498   : > { %v3641_v3 = vadd.f32 %v3636_v31, %v3613_v30  ;;  %v3628_v2 = vadd.f32 %v3624_v51, %v3608_v16  ;;  %v4107_v26 = vmul.f32 %v4106_v12, %v7288_v0  ;;  %v4108_v40 = vmul.f32 %v4106_v12, %v7305_v27 }
 0x499   : > { %4069 = vrot.lane.b32.xlu0 %v4065_v23, %s4678_s28  ;;  %4057 = vrot.lane.b32.xlu1 %v4052_v8, %s4677_s25  ;;  %s4528_s25 = sld [smem:[#allocation3 + $0x85]] }
 0x49b   : > { %v3650_v10 = vpop.permute.xlu0 %3649  ;;  %v3638_v35 = vpop.permute.xlu1 %3637 }
 0x49c   : > { %v3655_v50 = vadd.f32 %v3650_v10, %v3627_v60  ;;  %v3642_v46 = vadd.f32 %v3638_v35, %v3614_v20 }
 0x49d   : > { %4083 = vrot.lane.b32.xlu0 %v4079_v57, %s4678_s28  ;;  %4071 = vrot.lane.b32.xlu1 %v4066_v44, %s4678_s28 }
 0x49f   : > { %v3664_v18 = vpop.permute.xlu0 %3663  ;;  %v3652_v36 = vpop.permute.xlu1 %3651  ;;  %v3786_v60 = vstv %s4528_s25 }
 0x4a0   : > { %v3669_v15 = vadd.f32 %v3664_v18, %v3641_v3  ;;  %v3656_v62 = vadd.f32 %v3652_v36, %v3628_v2  ;;  %v3787_v49 = vmul.f32 %v3786_v60, %v7177_v21 }
 0x4a1   : > { %4097 = vrot.lane.b32.xlu0 %v4093_v6, %s4679_s5  ;;  %4085 = vrot.lane.b32.xlu1 %v4080_v7, %s4678_s28  ;;  %s4529_s28 = sld [smem:[#allocation5 + $0x85]] }
 0x4a3   : > { %v3678_v13 = vpop.permute.xlu0 %3677  ;;  %v3666_v56 = vpop.permute.xlu1 %3665 }
 0x4a4   : > { %v3683_v25 = vadd.f32 %v3678_v13, %v3655_v50  ;;  %v3670_v37 = vadd.f32 %v3666_v56, %v3642_v46  ;;  %v3788_v50 = vmul.f32 %v3786_v60, %v7198_v1 }
 0x4a5   : > { %4111 = vrot.lane.b32.xlu0 %v4107_v26, %s4679_s5  ;;  %4099 = vrot.lane.b32.xlu1 %v4094_v34, %s4679_s5 }
 0x4a7   : > { %v3692_v19 = vpop.permute.xlu0 %3691  ;;  %v3680_v24 = vpop.permute.xlu1 %3679  ;;  %v3792_v31 = vstv %s4529_s28 }
 0x4a8   : > { %v3697_v33 = vadd.f32 %v3692_v19, %v3669_v15  ;;  %v3684_v38 = vadd.f32 %v3680_v24, %v3656_v62  ;;  %v3793_v51 = vmul.f32 %v3792_v31, %v7177_v21  ;;  %v3794_v6 = vmul.f32 %v3792_v31, %v7198_v1 }
 0x4a9   : > { %4125 = vrot.lane.b32.xlu0 %v4121_v54, %s4680_s8  ;;  %4113 = vrot.lane.b32.xlu1 %v4108_v40, %s4679_s5  ;;  %s7392_s5 = sld [smem:[#allocation3 + $0x8c]] }
 0x4ab   : > { %v3706_v55 = vpop.permute.xlu0 %3705  ;;  %v3694_v48 = vpop.permute.xlu1 %3693 }
 0x4ac   : > { %v3711_v11 = vadd.f32 %v3706_v55, %v3683_v25  ;;  %v3698_v9 = vadd.f32 %v3694_v48, %v3670_v37 }
 0x4ad   : > { %4139 = vrot.lane.b32.xlu0 %v4135_v47, %s4680_s8  ;;  %4127 = vrot.lane.b32.xlu1 %v4122_v61, %s4680_s8 }
 0x4af   : > { %v3720_v5 = vpop.permute.xlu0 %3719  ;;  %v3708_v59 = vpop.permute.xlu1 %3707  ;;  %v3968_v48 = vstv %s7392_s5 }
 0x4b0   : > { %v3725_v58 = vadd.f32 %v3720_v5, %v3697_v33  ;;  %v3712_v14 = vadd.f32 %v3708_v59, %v3684_v38 }
 0x4b1   : > { %4141 = vrot.lane.b32.xlu1 %v4136_v4, %s4680_s8  ;;  %s7394_s8 = sld [smem:[#allocation5 + $0x8c]] }
 0x4b3   : > { %v3734_v53 = vpop.permute.xlu0 %3733  ;;  %v3722_v41 = vpop.permute.xlu1 %3721 }
 0x4b4   : > { %v3739_v30 = vadd.f32 %v3734_v53, %v3711_v11  ;;  %v3726_v32 = vadd.f32 %v3722_v41, %v3698_v9  ;;  %v3969_v53 = vmul.f32 %v3968_v48, %v7288_v0 }
 0x4b7   : > { %v3748_v39 = vpop.permute.xlu0 %3747  ;;  %v3736_v22 = vpop.permute.xlu1 %3735  ;;  %v3974_v41 = vstv %s7394_s8 }
 0x4b8   : > { %v3753_v63 = vadd.f32 %v3748_v39, %v3725_v58  ;;  %v3740_v16 = vadd.f32 %v3736_v22, %v3712_v14 }
 0x4bb   : > { %v3762_v43 = vpop.permute.xlu0 %3761  ;;  %v3750_v23 = vpop.permute.xlu1 %3749 }
 0x4bc   : > { %v3767_v29 = vadd.f32 %v3762_v43, %v3739_v30  ;;  %v3754_v3 = vadd.f32 %v3750_v23, %v3726_v32 }
 0x4be   : > { %v3789_v42 = vadd.f32 %v3787_v49, %v3767_v29  ;;  %v3975_v29 = vmul.f32 %v3974_v41, %v7288_v0 }
 0x4bf   : > { %v3776_v52 = vpop.permute.xlu0 %3775  ;;  %v3764_v8 = vpop.permute.xlu1 %3763 }
 0x4c0   : > { %v3781_v20 = vadd.f32 %v3776_v52, %v3753_v63  ;;  %v3768_v10 = vadd.f32 %v3764_v8, %v3740_v16 }
 0x4c2   : > { %v3795_v2 = vadd.f32 %v3793_v51, %v3781_v20  ;;  %v3790_v35 = vadd.f32 %v3788_v50, %v3768_v10  ;;  %v3970_v51 = vmul.f32 %v3968_v48, %v7305_v27 }
 0x4c3   : > { %v3804_v57 = vpop.permute.xlu0 %3803  ;;  %v3778_v44 = vpop.permute.xlu1 %3777 }
 0x4c4   : > { %v3809_v28 = vadd.f32 %v3804_v57, %v3789_v42  ;;  %v3782_v46 = vadd.f32 %v3778_v44, %v3754_v3 }
 0x4c6   : > { %v3796_v12 = vadd.f32 %v3794_v6, %v3782_v46 }
 0x4c7   : > { %v3818_v18 = vpop.permute.xlu0 %3817  ;;  %v3806_v36 = vpop.permute.xlu1 %3805 }
 0x4c8   : > { %v3823_v15 = vadd.f32 %v3818_v18, %v3795_v2  ;;  %v3810_v7 = vadd.f32 %v3806_v36, %v3790_v35 }
 0x4cb   : > { %v3832_v62 = vpop.permute.xlu0 %3831  ;;  %v3820_v13 = vpop.permute.xlu1 %3819 }
 0x4cc   : > { %v3824_v21 = vadd.f32 %v3820_v13, %v3796_v12  ;;  %v3837_v24 = vadd.f32 %v3832_v62, %v3809_v28  ;;  %v3976_v28 = vmul.f32 %v3974_v41, %v7305_v27 }
 0x4cf   : > { %v3846_v26 = vpop.permute.xlu0 %3845  ;;  %v3834_v25 = vpop.permute.xlu1 %3833 }
 0x4d0   : > { %v3851_v47 = vadd.f32 %v3846_v26, %v3823_v15  ;;  %v3838_v58 = vadd.f32 %v3834_v25, %v3810_v7 }
 0x4d3   : > { %v3860_v45 = vpop.permute.xlu0 %3859  ;;  %v3848_v56 = vpop.permute.xlu1 %3847 }
 0x4d4   : > { %v3865_v40 = vadd.f32 %v3860_v45, %v3837_v24  ;;  %v3852_v60 = vadd.f32 %v3848_v56, %v3824_v21 }
 0x4d7   : > { %v3874_v34 = vpop.permute.xlu0 %3873  ;;  %v3862_v37 = vpop.permute.xlu1 %3861 }
 0x4d8   : > { %v3879_v61 = vadd.f32 %v3874_v34, %v3851_v47  ;;  %v3866_v30 = vadd.f32 %v3862_v37, %v3838_v58 }
 0x4db   : > { %v3888_v19 = vpop.permute.xlu0 %3887  ;;  %v3876_v54 = vpop.permute.xlu1 %3875 }
 0x4dc   : > { %v3893_v11 = vadd.f32 %v3888_v19, %v3865_v40  ;;  %v3880_v49 = vadd.f32 %v3876_v54, %v3852_v60 }
 0x4df   : > { %v3902_v33 = vpop.permute.xlu0 %3901  ;;  %v3890_v1 = vpop.permute.xlu1 %3889 }
 0x4e0   : > { %v3907_v4 = vadd.f32 %v3902_v33, %v3879_v61  ;;  %v3894_v22 = vadd.f32 %v3890_v1, %v3866_v30 }
 0x4e3   : > { %v3916_v17 = vpop.permute.xlu0 %3915  ;;  %v3904_v38 = vpop.permute.xlu1 %3903 }
 0x4e4   : > { %v3921_v9 = vadd.f32 %v3916_v17, %v3893_v11  ;;  %v3908_v3 = vadd.f32 %v3904_v38, %v3880_v49 }
 0x4e7   : > { %v3930_v55 = vpop.permute.xlu0 %3929  ;;  %v3918_v5 = vpop.permute.xlu1 %3917 }
 0x4e8   : > { %v3935_v32 = vadd.f32 %v3930_v55, %v3907_v4  ;;  %v3922_v31 = vadd.f32 %v3918_v5, %v3894_v22  ;;  %v4147_v55 = vstv %s7402_s13 }
 0x4eb   : > { %v3944_v59 = vpop.permute.xlu0 %3943  ;;  %v3932_v39 = vpop.permute.xlu1 %3931 }
 0x4ec   : > { %v3949_v14 = vadd.f32 %v3944_v59, %v3921_v9  ;;  %v3936_v8 = vadd.f32 %v3932_v39, %v3908_v3 }
 0x4ee   : > { %v3971_v63 = vadd.f32 %v3969_v53, %v3949_v14  ;;  %v4152_v53 = vstv %s7404_s14 }
 0x4ef   : > { %v3958_v16 = vpop.permute.xlu0 %3957  ;;  %v3946_v23 = vpop.permute.xlu1 %3945 }
 0x4f0   : > { %v3963_v43 = vadd.f32 %v3958_v16, %v3935_v32  ;;  %v3950_v52 = vadd.f32 %v3946_v23, %v3922_v31 }
 0x4f2   : > { %v3977_v42 = vadd.f32 %v3975_v29, %v3963_v43  ;;  %v3972_v2 = vadd.f32 %v3970_v51, %v3950_v52 }
 0x4f3   : > { %v3986_v20 = vpop.permute.xlu0 %3985  ;;  %v3960_v10 = vpop.permute.xlu1 %3959 }
 0x4f4   : > { %v3964_v57 = vadd.f32 %v3960_v10, %v3936_v8  ;;  %v3991_v26 = vadd.f32 %v3986_v20, %v3971_v63 }
 0x4f6   : > { %v3978_v35 = vadd.f32 %v3976_v28, %v3964_v57 }
 0x4f7   : > { %v4000_v50 = vpop.permute.xlu0 %3999  ;;  %v3988_v44 = vpop.permute.xlu1 %3987 }
 0x4f8   : > { %v4005_v56 = vadd.f32 %v4000_v50, %v3977_v42  ;;  %v3992_v1 = vadd.f32 %v3988_v44, %v3972_v2 }
 0x4fb   : > { %v4014_v46 = vpop.permute.xlu0 %4013  ;;  %v4002_v0 = vpop.permute.xlu1 %4001 }
 0x4fc   : > { %v4019_v27 = vadd.f32 %v4014_v46, %v3991_v26  ;;  %v4006_v61 = vadd.f32 %v4002_v0, %v3978_v35 }
 0x4ff   : > { %v4028_v18 = vpop.permute.xlu0 %4027  ;;  %v4016_v6 = vpop.permute.xlu1 %4015 }
 0x500   : > { %v4033_v54 = vadd.f32 %v4028_v18, %v4005_v56  ;;  %v4020_v38 = vadd.f32 %v4016_v6, %v3992_v1 }
 0x503   : > { %v4042_v15 = vpop.permute.xlu0 %4041  ;;  %v4030_v12 = vpop.permute.xlu1 %4029 }
 0x504   : > { %v4047_v34 = vadd.f32 %v4042_v15, %v4019_v27  ;;  %v4034_v4 = vadd.f32 %v4030_v12, %v4006_v61 }
 0x507   : > { %v4056_v36 = vpop.permute.xlu0 %4055  ;;  %v4044_v7 = vpop.permute.xlu1 %4043 }
 0x508   : > { %v4061_v17 = vadd.f32 %v4056_v36, %v4033_v54  ;;  %v4048_v9 = vadd.f32 %v4044_v7, %v4020_v38 }
 0x50b   : > { %v4070_v62 = vpop.permute.xlu0 %4069  ;;  %v4058_v13 = vpop.permute.xlu1 %4057 }
 0x50c   : > { %v4075_v33 = vadd.f32 %v4070_v62, %v4047_v34  ;;  %v4062_v32 = vadd.f32 %v4058_v13, %v4034_v4 }
 0x50f   : > { %v4084_v21 = vpop.permute.xlu0 %4083  ;;  %v4072_v25 = vpop.permute.xlu1 %4071 }
 0x510   : > { %v4089_v11 = vadd.f32 %v4084_v21, %v4061_v17  ;;  %v4076_v14 = vadd.f32 %v4072_v25, %v4048_v9 }
 0x513   : > { %v4098_v45 = vpop.permute.xlu0 %4097  ;;  %v4086_v37 = vpop.permute.xlu1 %4085 }
 0x514   : > { %v4103_v24 = vadd.f32 %v4098_v45, %v4075_v33  ;;  %v4090_v22 = vadd.f32 %v4086_v37, %v4062_v32 }
 0x517   : > { %v4112_v19 = vpop.permute.xlu0 %4111  ;;  %v4100_v40 = vpop.permute.xlu1 %4099 }
 0x518   : > { %v4117_v5 = vadd.f32 %v4112_v19, %v4089_v11  ;;  %v4104_v39 = vadd.f32 %v4100_v40, %v4076_v14 }
 0x51b   : > { %v4126_v47 = vpop.permute.xlu0 %4125  ;;  %v4114_v58 = vpop.permute.xlu1 %4113 }
 0x51c   : > { %v4131_v48 = vadd.f32 %v4126_v47, %v4103_v24  ;;  %v4118_v43 = vadd.f32 %v4114_v58, %v4090_v22 }
 0x51e   : > { %v4148_v59 = vadd.f32 %v4147_v55, %v4131_v48 }
 0x51f   : > { %v4140_v30 = vpop.permute.xlu0 %4139  ;;  %v4128_v63 = vpop.permute.xlu1 %4127 }
 0x520   : > { %4150 = vst.msk [vmem:[%s236_s21] sm:$0xff] %vm287_vm3, %v4148_v59  ;;  %v4145_v41 = vadd.f32 %v4140_v30, %v4117_v5  ;;  %v4132_v16 = vadd.f32 %v4128_v63, %v4104_v39 }
 0x522   : > { %v4153_v60 = vadd.f32 %v4152_v53, %v4145_v41  ;;  %v4149_v29 = vadd.f32 %v4147_v55, %v4132_v16 }
 0x523   : > { %v4142_v49 = vpop.permute.xlu1 %4141 }
 0x524   : > { %4556 = vst.msk [vmem:[%s236_s21 + $0x10] sm:$0xff] %vm287_vm3, %v4153_v60  ;;  %4151 = vst.msk [vmem:[%s236_s21 + $0x8] sm:$0xff] %vm287_vm3, %v4149_v29  ;;  %v4146_v31 = vadd.f32 %v4142_v49, %v4118_v43 }
 0x526   : > { %v4154_v23 = vadd.f32 %v4152_v53, %v4146_v31 }
 0x528   : > { %4557 = vst.msk [vmem:[%s236_s21 + $0x18] sm:$0xff] %vm287_vm3, %v4154_v23 }
 0x529 PF: > { %s16_s15 = sadd.s32 1, %s4668_s15  }
 0x52a   : > { %p13_p5 = scmp.ge.s32.totalorder %s16_s15, 4  }
 0x52c   :  { %15 = sbr.rel (!%p13_p5) target bundleno = 2 (0x2), region = 83 }
 0x531   :  { %4179 = vsyncpa [#allocation4], 1 }
 0x532   :  { %4181 = vsyncpa [#allocation4 + $0x1], 1 }
 0x533   :  { %4182 = vsyncpa [#allocation6], 1 }

</bundles_post_ra>
